<compile_context>
chip_gen: v5e
topology: v5e:2x2
jax: 0.10.0
libtpu: 0.0.40
codegen_flags: <defaults>
</compile_context>

<pallas_src>
import functools

import jax
import jax.numpy as jnp
from jax import lax
from jax.experimental import pallas as pl
from jax.experimental.pallas import tpu as pltpu

DEPTH = 3        # PoolBlock depth
POOL_W = 5       # PoolBlock width (max-pool kernel), stride=1, padding=2
POOL_PAD = 2
EPS = 1e-5       # BatchNorm2d default eps
NEG = -1e30      # stand-in for the -inf padding of max_pool2d


def pool_block_kernel(x_ref, es_ref, eb_ref, wt_ref, cb_ref,
                      pw_ref, ph_ref, cm_ref, lidx_ref, out_ref, *, width):
    depth = es_ref.shape[0]
    n_batch, _, hw = x_ref.shape
    inv_count = jnp.float32(1.0 / (n_batch * hw))

    # Probe the lane-rotation direction convention once so the flat spatial
    # shifts below are correct regardless of it.
    lane = lidx_ref[...]                              # (1, HW) iota
    probe = pltpu.roll(lane, hw - 1, axis=1)          # "roll by -1"
    fwd = (probe[:, 0:1] == 1).astype(jnp.float32)    # (1, 1): 1.0 if jnp.roll-like

    def shift_lanes(v, s):
        # z[:, i] = v[:, i + s] wherever i + s is a valid flat index; positions
        # whose source is out of range / crosses a row are masked by the caller.
        s = s % hw
        if s == 0:
            return v
        a = pltpu.roll(v, hw - s, axis=1)   # correct if roll matches jnp.roll
        b = pltpu.roll(v, s, axis=1)        # correct under the other convention
        return a * fwd + b * (1.0 - fwd)

    outs = [x_ref[n] for n in range(n_batch)]         # per-sample (C, HW) slabs

    for d in range(depth):
        # ---- AdaptiveBatchNorm: batch stats in a single pass over the data ----
        s1 = sum(jnp.sum(o, axis=1, keepdims=True) for o in outs)       # (C, 1)
        s2 = sum(jnp.sum(o * o, axis=1, keepdims=True) for o in outs)   # (C, 1)
        mean = s1 * inv_count
        var = s2 * inv_count - mean * mean
        rstd = lax.rsqrt(var + EPS)                                     # (C, 1)

        new_outs = []
        for n in range(n_batch):
            a = rstd * es_ref[d, n]                  # folded gamma*scale   (C, 1)
            b = eb_ref[d, n] - mean * a              # folded beta/bias     (C, 1)
            y = outs[n] * a + b                      # normalized + adaptive affine

            # ---- max_pool2d(kernel=5, stride=1, padding=2), -inf pad, separable ----
            rmax = y
            for dx in range(-POOL_PAD, POOL_PAD + 1):
                if dx == 0:
                    continue
                t = shift_lanes(y, dx) + pw_ref[dx + POOL_PAD]
                rmax = jnp.maximum(rmax, t)
            pooled = rmax
            for dy in range(-POOL_PAD, POOL_PAD + 1):
                if dy == 0:
                    continue
                t = shift_lanes(rmax, dy * width) + ph_ref[dy + POOL_PAD]
                pooled = jnp.maximum(pooled, t)

            # ---- Conv2d(C, C, 3, padding=1): channel contraction on the MXU ----
            acc = jnp.dot(wt_ref[d, 1, 1], pooled,
                          preferred_element_type=jnp.float32)
            for ky in range(3):
                for kx in range(3):
                    if ky == 1 and kx == 1:
                        continue
                    t = shift_lanes(pooled, (ky - 1) * width + (kx - 1))
                    t = t * cm_ref[ky, kx]           # zero the wrapped positions
                    acc = acc + jnp.dot(wt_ref[d, ky, kx], t,
                                        preferred_element_type=jnp.float32)

            new_outs.append(outs[n] + acc + cb_ref[d])                  # residual
        outs = new_outs

    for n in range(n_batch):
        out_ref[n] = outs[n]


def pool_block_forward(x_nchw, cond, params):
    gamma, beta, sw, sb, bw, bb, cw, cb = params
    N, C, H, W = x_nchw.shape
    HW = H * W
    x_flat = x_nchw.reshape(N, C, HW).astype(jnp.float32)

    # Hoisted, fused condition matmuls + BN affine folding (loop-invariant).
    hp = lax.Precision.HIGHEST
    cond32 = cond.astype(jnp.float32)
    scale = jnp.einsum('na,dac->dnc', cond32, sw, precision=hp) + sb[:, None, :]
    bias_ = jnp.einsum('na,dac->dnc', cond32, bw, precision=hp) + bb[:, None, :]
    eff_scale = (gamma[:, None, :] * scale)[..., None].astype(jnp.float32)        # (D,N,C,1)
    eff_bias = (beta[:, None, :] * scale + bias_)[..., None].astype(jnp.float32)  # (D,N,C,1)

    wt = jnp.swapaxes(cw, -1, -2).astype(jnp.float32)     # (D,3,3,Cout,Cin)
    cbk = cb[:, :, None].astype(jnp.float32)              # (D, C, 1)

    # Flattened-spatial boundary masks (computed once, outside the kernel).
    w_idx = jnp.arange(HW, dtype=jnp.int32) % W
    h_idx = jnp.arange(HW, dtype=jnp.int32) // W

    def valid_w(dx):
        return (w_idx + dx >= 0) & (w_idx + dx < W)

    def valid_h(dy):
        return (h_idx + dy >= 0) & (h_idx + dy < H)

    pool_w_add = jnp.stack([jnp.where(valid_w(dx), 0.0, NEG)
                            for dx in range(-POOL_PAD, POOL_PAD + 1)]
                           ).astype(jnp.float32)[:, None, :]          # (5, 1, HW)
    pool_h_add = jnp.stack([jnp.where(valid_h(dy), 0.0, NEG)
                            for dy in range(-POOL_PAD, POOL_PAD + 1)]
                           ).astype(jnp.float32)[:, None, :]          # (5, 1, HW)
    conv_mul = jnp.stack([jnp.stack([(valid_h(ky - 1) & valid_w(kx - 1))
                                     .astype(jnp.float32)
                                     for kx in range(3)])
                          for ky in range(3)])[:, :, None, :]         # (3, 3, 1, HW)
    lane_iota = jnp.arange(HW, dtype=jnp.int32)[None, :]              # (1, HW)

    vmem = pl.BlockSpec(memory_space=pltpu.MemorySpace.VMEM)
    out_flat = pl.pallas_call(
        functools.partial(pool_block_kernel, width=W),
        out_shape=jax.ShapeDtypeStruct((N, C, HW), jnp.float32),
        in_specs=[vmem] * 9,
        out_specs=vmem,
    )(x_flat, eff_scale, eff_bias, wt, cbk,
      pool_w_add, pool_h_add, conv_mul, lane_iota)
    return out_flat.reshape(N, C, H, W)


def pool_block_reference(x_nchw, cond, params):
    """Pure-JAX reference mirroring the PyTorch forward (NCHW in/out)."""
    gamma, beta, sw, sb, bw, bb, cw, cb = params
    out = jnp.transpose(x_nchw, (0, 2, 3, 1))  # NHWC
    for d in range(DEPTH):
        mean = jnp.mean(out, axis=(0, 1, 2))
        var = jnp.mean((out - mean) ** 2, axis=(0, 1, 2))
        xhat = (out - mean) * lax.rsqrt(var + EPS)
        xhat = xhat * gamma[d] + beta[d]
        scale = jnp.dot(cond, sw[d], precision=lax.Precision.HIGHEST) + sb[d]
        bias = jnp.dot(cond, bw[d], precision=lax.Precision.HIGHEST) + bb[d]
        y = xhat * scale[:, None, None, :] + bias[:, None, None, :]
        pooled = lax.reduce_window(
            y, -jnp.inf, lax.max,
            (1, POOL_W, POOL_W, 1), (1, 1, 1, 1),
            ((0, 0), (POOL_PAD, POOL_PAD), (POOL_PAD, POOL_PAD), (0, 0)))
        conv = lax.conv_general_dilated(
            pooled, cw[d], window_strides=(1, 1), padding=((1, 1), (1, 1)),
            dimension_numbers=('NHWC', 'HWIO', 'NHWC'),
            precision=lax.Precision.HIGHEST) + cb[d]
        out = out + conv
    return jnp.transpose(out, (0, 3, 1, 2))


if __name__ == "__main__":
    N, C, H, W = 2, 4, 16, 16   # batch, size (channels), spatial
    A = 8                       # ada_size

    key = jax.random.PRNGKey(0)
    ks = jax.random.split(key, 10)
    x = jax.random.normal(ks[0], (N, C, H, W), jnp.float32)
    cond = jax.random.normal(ks[1], (N, A), jnp.float32)

    gamma = 1.0 + 0.1 * jax.random.normal(ks[2], (DEPTH, C), jnp.float32)
    beta = 0.1 * jax.random.normal(ks[3], (DEPTH, C), jnp.float32)
    sw = 0.3 * jax.random.normal(ks[4], (DEPTH, A, C), jnp.float32)   # Linear(ada_size, size) weight^T
    sb = 1.0 + 0.1 * jax.random.normal(ks[5], (DEPTH, C), jnp.float32)
    bw = 0.3 * jax.random.normal(ks[6], (DEPTH, A, C), jnp.float32)
    bb = 0.1 * jax.random.normal(ks[7], (DEPTH, C), jnp.float32)
    cw = 0.15 * jax.random.normal(ks[8], (DEPTH, 3, 3, C, C), jnp.float32)  # HWIO per depth
    cb = 0.05 * jax.random.normal(ks[9], (DEPTH, C), jnp.float32)
    params = (gamma, beta, sw, sb, bw, bb, cw, cb)

    out = jax.jit(pool_block_forward)(x, cond, params)
    out = jax.block_until_ready(out)

    ref = pool_block_reference(x, cond, params)
    assert out.shape == (N, C, H, W)
    assert bool(jnp.allclose(out, ref, atol=5e-3, rtol=5e-3)), (
        f"mismatch, max abs err = {float(jnp.max(jnp.abs(out - ref)))}")
    print("KERNEL_OK")
</pallas_src>

<mosaic_0001>
module attributes {stable_mosaic.version = 11 : i64} {
  func.func @pool_block_kernel(%arg0: memref<2x4x256xf32, #tpu.memory_space<vmem>>, %arg1: memref<3x2x4x1xf32, #tpu.memory_space<vmem>>, %arg2: memref<3x2x4x1xf32, #tpu.memory_space<vmem>>, %arg3: memref<3x3x3x4x4xf32, #tpu.memory_space<vmem>>, %arg4: memref<3x4x1xf32, #tpu.memory_space<vmem>>, %arg5: memref<5x1x256xf32, #tpu.memory_space<vmem>>, %arg6: memref<5x1x256xf32, #tpu.memory_space<vmem>>, %arg7: memref<3x3x1x256xf32, #tpu.memory_space<vmem>>, %arg8: memref<1x256xi32, #tpu.memory_space<vmem>>, %arg9: memref<2x4x256xf32, #tpu.memory_space<vmem>>) attributes {dimension_semantics = [], scalar_prefetch = 0 : i64, scratch_operands = 0 : i64, tpu.core_type = #tpu.core_type<tc>} {
    %c0 = arith.constant 0 : index
    %c0_0 = arith.constant 0 : index
    %0 = vector.load %arg8[%c0, %c0_0] : memref<1x256xi32, #tpu.memory_space<vmem>>, vector<1x256xi32>
    %c255_i32 = arith.constant 255 : i32
    %1 = tpu.dynamic_rotate %0 by %c255_i32 dim 1 : vector<1x256xi32>, i32 -> vector<1x256xi32>
    %2 = vector.extract_strided_slice %1 {offsets = [0, 0], sizes = [1, 1], strides = [1, 1]} : vector<1x256xi32> to vector<1x1xi32>
    %c1_i32 = arith.constant 1 : i32
    %3 = vector.broadcast %c1_i32 : i32 to vector<1x1xi32>
    %4 = arith.cmpi eq, %2, %3 : vector<1x1xi32>
    %5 = arith.extui %4 : vector<1x1xi1> to vector<1x1xi32>
    %6 = arith.sitofp %5 : vector<1x1xi32> to vector<1x1xf32>
    %c0_1 = arith.constant 0 : index
    %c0_2 = arith.constant 0 : index
    %c0_3 = arith.constant 0 : index
    %7 = vector.load %arg0[%c0_1, %c0_2, %c0_3] : memref<2x4x256xf32, #tpu.memory_space<vmem>>, vector<1x4x256xf32>
    %8 = vector.shape_cast %7 : vector<1x4x256xf32> to vector<4x256xf32>
    %c1 = arith.constant 1 : index
    %c0_4 = arith.constant 0 : index
    %c0_5 = arith.constant 0 : index
    %9 = vector.load %arg0[%c1, %c0_4, %c0_5] : memref<2x4x256xf32, #tpu.memory_space<vmem>>, vector<1x4x256xf32>
    %10 = vector.shape_cast %9 : vector<1x4x256xf32> to vector<4x256xf32>
    %cst = arith.constant dense<0.000000e+00> : vector<4xf32>
    %11 = vector.multi_reduction <add>, %8, %cst [1] : vector<4x256xf32> to vector<4xf32>
    %12 = vector.shape_cast %11 : vector<4xf32> to vector<4x1xf32>
    %cst_6 = arith.constant 0.000000e+00 : f32
    %13 = vector.broadcast %cst_6 : f32 to vector<4x1xf32>
    %14 = arith.addf %13, %12 : vector<4x1xf32>
    %cst_7 = arith.constant dense<0.000000e+00> : vector<4xf32>
    %15 = vector.multi_reduction <add>, %10, %cst_7 [1] : vector<4x256xf32> to vector<4xf32>
    %16 = vector.shape_cast %15 : vector<4xf32> to vector<4x1xf32>
    %17 = arith.addf %14, %16 : vector<4x1xf32>
    %18 = arith.mulf %8, %8 : vector<4x256xf32>
    %cst_8 = arith.constant dense<0.000000e+00> : vector<4xf32>
    %19 = vector.multi_reduction <add>, %18, %cst_8 [1] : vector<4x256xf32> to vector<4xf32>
    %20 = vector.shape_cast %19 : vector<4xf32> to vector<4x1xf32>
    %cst_9 = arith.constant 0.000000e+00 : f32
    %21 = vector.broadcast %cst_9 : f32 to vector<4x1xf32>
    %22 = arith.addf %21, %20 : vector<4x1xf32>
    %23 = arith.mulf %10, %10 : vector<4x256xf32>
    %cst_10 = arith.constant dense<0.000000e+00> : vector<4xf32>
    %24 = vector.multi_reduction <add>, %23, %cst_10 [1] : vector<4x256xf32> to vector<4xf32>
    %25 = vector.shape_cast %24 : vector<4xf32> to vector<4x1xf32>
    %26 = arith.addf %22, %25 : vector<4x1xf32>
    %cst_11 = arith.constant 0.001953125 : f32
    %27 = vector.broadcast %cst_11 : f32 to vector<4x1xf32>
    %28 = arith.mulf %17, %27 : vector<4x1xf32>
    %cst_12 = arith.constant 0.001953125 : f32
    %29 = vector.broadcast %cst_12 : f32 to vector<4x1xf32>
    %30 = arith.mulf %26, %29 : vector<4x1xf32>
    %31 = arith.mulf %28, %28 : vector<4x1xf32>
    %32 = arith.subf %30, %31 : vector<4x1xf32>
    %cst_13 = arith.constant 9.99999974E-6 : f32
    %33 = vector.broadcast %cst_13 : f32 to vector<4x1xf32>
    %34 = arith.addf %32, %33 : vector<4x1xf32>
    %35 = math.rsqrt %34 : vector<4x1xf32>
    %c0_14 = arith.constant 0 : index
    %c0_15 = arith.constant 0 : index
    %c0_16 = arith.constant 0 : index
    %c0_17 = arith.constant 0 : index
    %36 = vector.load %arg1[%c0_14, %c0_15, %c0_16, %c0_17] : memref<3x2x4x1xf32, #tpu.memory_space<vmem>>, vector<1x1x4x1xf32>
    %37 = vector.shape_cast %36 : vector<1x1x4x1xf32> to vector<4x1xf32>
    %38 = arith.mulf %35, %37 : vector<4x1xf32>
    %c0_18 = arith.constant 0 : index
    %c0_19 = arith.constant 0 : index
    %c0_20 = arith.constant 0 : index
    %c0_21 = arith.constant 0 : index
    %39 = vector.load %arg2[%c0_18, %c0_19, %c0_20, %c0_21] : memref<3x2x4x1xf32, #tpu.memory_space<vmem>>, vector<1x1x4x1xf32>
    %40 = vector.shape_cast %39 : vector<1x1x4x1xf32> to vector<4x1xf32>
    %41 = arith.mulf %28, %38 : vector<4x1xf32>
    %42 = arith.subf %40, %41 : vector<4x1xf32>
    %43 = vector.broadcast %38 : vector<4x1xf32> to vector<4x256xf32>
    %44 = arith.mulf %8, %43 : vector<4x256xf32>
    %45 = vector.broadcast %42 : vector<4x1xf32> to vector<4x256xf32>
    %46 = arith.addf %44, %45 : vector<4x256xf32>
    %c2_i32 = arith.constant 2 : i32
    %47 = tpu.dynamic_rotate %46 by %c2_i32 dim 1 : vector<4x256xf32>, i32 -> vector<4x256xf32>
    %c254_i32 = arith.constant 254 : i32
    %48 = tpu.dynamic_rotate %46 by %c254_i32 dim 1 : vector<4x256xf32>, i32 -> vector<4x256xf32>
    %49 = vector.broadcast %6 : vector<1x1xf32> to vector<4x256xf32>
    %50 = arith.mulf %47, %49 : vector<4x256xf32>
    %cst_22 = arith.constant 1.000000e+00 : f32
    %51 = vector.broadcast %cst_22 : f32 to vector<1x1xf32>
    %52 = arith.subf %51, %6 : vector<1x1xf32>
    %53 = vector.broadcast %52 : vector<1x1xf32> to vector<4x256xf32>
    %54 = arith.mulf %48, %53 : vector<4x256xf32>
    %55 = arith.addf %50, %54 : vector<4x256xf32>
    %c0_23 = arith.constant 0 : index
    %c0_24 = arith.constant 0 : index
    %c0_25 = arith.constant 0 : index
    %56 = vector.load %arg5[%c0_23, %c0_24, %c0_25] : memref<5x1x256xf32, #tpu.memory_space<vmem>>, vector<1x1x256xf32>
    %57 = vector.shape_cast %56 : vector<1x1x256xf32> to vector<1x256xf32>
    %58 = vector.broadcast %57 : vector<1x256xf32> to vector<4x256xf32>
    %59 = arith.addf %55, %58 : vector<4x256xf32>
    %60 = arith.maximumf %46, %59 : vector<4x256xf32>
    %c1_i32_26 = arith.constant 1 : i32
    %61 = tpu.dynamic_rotate %46 by %c1_i32_26 dim 1 : vector<4x256xf32>, i32 -> vector<4x256xf32>
    %c255_i32_27 = arith.constant 255 : i32
    %62 = tpu.dynamic_rotate %46 by %c255_i32_27 dim 1 : vector<4x256xf32>, i32 -> vector<4x256xf32>
    %63 = vector.broadcast %6 : vector<1x1xf32> to vector<4x256xf32>
    %64 = arith.mulf %61, %63 : vector<4x256xf32>
    %cst_28 = arith.constant 1.000000e+00 : f32
    %65 = vector.broadcast %cst_28 : f32 to vector<1x1xf32>
    %66 = arith.subf %65, %6 : vector<1x1xf32>
    %67 = vector.broadcast %66 : vector<1x1xf32> to vector<4x256xf32>
    %68 = arith.mulf %62, %67 : vector<4x256xf32>
    %69 = arith.addf %64, %68 : vector<4x256xf32>
    %c1_29 = arith.constant 1 : index
    %c0_30 = arith.constant 0 : index
    %c0_31 = arith.constant 0 : index
    %70 = vector.load %arg5[%c1_29, %c0_30, %c0_31] : memref<5x1x256xf32, #tpu.memory_space<vmem>>, vector<1x1x256xf32>
    %71 = vector.shape_cast %70 : vector<1x1x256xf32> to vector<1x256xf32>
    %72 = vector.broadcast %71 : vector<1x256xf32> to vector<4x256xf32>
    %73 = arith.addf %69, %72 : vector<4x256xf32>
    %74 = arith.maximumf %60, %73 : vector<4x256xf32>
    %c255_i32_32 = arith.constant 255 : i32
    %75 = tpu.dynamic_rotate %46 by %c255_i32_32 dim 1 : vector<4x256xf32>, i32 -> vector<4x256xf32>
    %c1_i32_33 = arith.constant 1 : i32
    %76 = tpu.dynamic_rotate %46 by %c1_i32_33 dim 1 : vector<4x256xf32>, i32 -> vector<4x256xf32>
    %77 = vector.broadcast %6 : vector<1x1xf32> to vector<4x256xf32>
    %78 = arith.mulf %75, %77 : vector<4x256xf32>
    %cst_34 = arith.constant 1.000000e+00 : f32
    %79 = vector.broadcast %cst_34 : f32 to vector<1x1xf32>
    %80 = arith.subf %79, %6 : vector<1x1xf32>
    %81 = vector.broadcast %80 : vector<1x1xf32> to vector<4x256xf32>
    %82 = arith.mulf %76, %81 : vector<4x256xf32>
    %83 = arith.addf %78, %82 : vector<4x256xf32>
    %c3 = arith.constant 3 : index
    %c0_35 = arith.constant 0 : index
    %c0_36 = arith.constant 0 : index
    %84 = vector.load %arg5[%c3, %c0_35, %c0_36] : memref<5x1x256xf32, #tpu.memory_space<vmem>>, vector<1x1x256xf32>
    %85 = vector.shape_cast %84 : vector<1x1x256xf32> to vector<1x256xf32>
    %86 = vector.broadcast %85 : vector<1x256xf32> to vector<4x256xf32>
    %87 = arith.addf %83, %86 : vector<4x256xf32>
    %88 = arith.maximumf %74, %87 : vector<4x256xf32>
    %c254_i32_37 = arith.constant 254 : i32
    %89 = tpu.dynamic_rotate %46 by %c254_i32_37 dim 1 : vector<4x256xf32>, i32 -> vector<4x256xf32>
    %c2_i32_38 = arith.constant 2 : i32
    %90 = tpu.dynamic_rotate %46 by %c2_i32_38 dim 1 : vector<4x256xf32>, i32 -> vector<4x256xf32>
    %91 = vector.broadcast %6 : vector<1x1xf32> to vector<4x256xf32>
    %92 = arith.mulf %89, %91 : vector<4x256xf32>
    %cst_39 = arith.constant 1.000000e+00 : f32
    %93 = vector.broadcast %cst_39 : f32 to vector<1x1xf32>
    %94 = arith.subf %93, %6 : vector<1x1xf32>
    %95 = vector.broadcast %94 : vector<1x1xf32> to vector<4x256xf32>
    %96 = arith.mulf %90, %95 : vector<4x256xf32>
    %97 = arith.addf %92, %96 : vector<4x256xf32>
    %c4 = arith.constant 4 : index
    %c0_40 = arith.constant 0 : index
    %c0_41 = arith.constant 0 : index
    %98 = vector.load %arg5[%c4, %c0_40, %c0_41] : memref<5x1x256xf32, #tpu.memory_space<vmem>>, vector<1x1x256xf32>
    %99 = vector.shape_cast %98 : vector<1x1x256xf32> to vector<1x256xf32>
    %100 = vector.broadcast %99 : vector<1x256xf32> to vector<4x256xf32>
    %101 = arith.addf %97, %100 : vector<4x256xf32>
    %102 = arith.maximumf %88, %101 : vector<4x256xf32>
    %c32_i32 = arith.constant 32 : i32
    %103 = tpu.dynamic_rotate %102 by %c32_i32 dim 1 : vector<4x256xf32>, i32 -> vector<4x256xf32>
    %c224_i32 = arith.constant 224 : i32
    %104 = tpu.dynamic_rotate %102 by %c224_i32 dim 1 : vector<4x256xf32>, i32 -> vector<4x256xf32>
    %105 = vector.broadcast %6 : vector<1x1xf32> to vector<4x256xf32>
    %106 = arith.mulf %103, %105 : vector<4x256xf32>
    %cst_42 = arith.constant 1.000000e+00 : f32
    %107 = vector.broadcast %cst_42 : f32 to vector<1x1xf32>
    %108 = arith.subf %107, %6 : vector<1x1xf32>
    %109 = vector.broadcast %108 : vector<1x1xf32> to vector<4x256xf32>
    %110 = arith.mulf %104, %109 : vector<4x256xf32>
    %111 = arith.addf %106, %110 : vector<4x256xf32>
    %c0_43 = arith.constant 0 : index
    %c0_44 = arith.constant 0 : index
    %c0_45 = arith.constant 0 : index
    %112 = vector.load %arg6[%c0_43, %c0_44, %c0_45] : memref<5x1x256xf32, #tpu.memory_space<vmem>>, vector<1x1x256xf32>
    %113 = vector.shape_cast %112 : vector<1x1x256xf32> to vector<1x256xf32>
    %114 = vector.broadcast %113 : vector<1x256xf32> to vector<4x256xf32>
    %115 = arith.addf %111, %114 : vector<4x256xf32>
    %116 = arith.maximumf %102, %115 : vector<4x256xf32>
    %c16_i32 = arith.constant 16 : i32
    %117 = tpu.dynamic_rotate %102 by %c16_i32 dim 1 : vector<4x256xf32>, i32 -> vector<4x256xf32>
    %c240_i32 = arith.constant 240 : i32
    %118 = tpu.dynamic_rotate %102 by %c240_i32 dim 1 : vector<4x256xf32>, i32 -> vector<4x256xf32>
    %119 = vector.broadcast %6 : vector<1x1xf32> to vector<4x256xf32>
    %120 = arith.mulf %117, %119 : vector<4x256xf32>
    %cst_46 = arith.constant 1.000000e+00 : f32
    %121 = vector.broadcast %cst_46 : f32 to vector<1x1xf32>
    %122 = arith.subf %121, %6 : vector<1x1xf32>
    %123 = vector.broadcast %122 : vector<1x1xf32> to vector<4x256xf32>
    %124 = arith.mulf %118, %123 : vector<4x256xf32>
    %125 = arith.addf %120, %124 : vector<4x256xf32>
    %c1_47 = arith.constant 1 : index
    %c0_48 = arith.constant 0 : index
    %c0_49 = arith.constant 0 : index
    %126 = vector.load %arg6[%c1_47, %c0_48, %c0_49] : memref<5x1x256xf32, #tpu.memory_space<vmem>>, vector<1x1x256xf32>
    %127 = vector.shape_cast %126 : vector<1x1x256xf32> to vector<1x256xf32>
    %128 = vector.broadcast %127 : vector<1x256xf32> to vector<4x256xf32>
    %129 = arith.addf %125, %128 : vector<4x256xf32>
    %130 = arith.maximumf %116, %129 : vector<4x256xf32>
    %c240_i32_50 = arith.constant 240 : i32
    %131 = tpu.dynamic_rotate %102 by %c240_i32_50 dim 1 : vector<4x256xf32>, i32 -> vector<4x256xf32>
    %c16_i32_51 = arith.constant 16 : i32
    %132 = tpu.dynamic_rotate %102 by %c16_i32_51 dim 1 : vector<4x256xf32>, i32 -> vector<4x256xf32>
    %133 = vector.broadcast %6 : vector<1x1xf32> to vector<4x256xf32>
    %134 = arith.mulf %131, %133 : vector<4x256xf32>
    %cst_52 = arith.constant 1.000000e+00 : f32
    %135 = vector.broadcast %cst_52 : f32 to vector<1x1xf32>
    %136 = arith.subf %135, %6 : vector<1x1xf32>
    %137 = vector.broadcast %136 : vector<1x1xf32> to vector<4x256xf32>
    %138 = arith.mulf %132, %137 : vector<4x256xf32>
    %139 = arith.addf %134, %138 : vector<4x256xf32>
    %c3_53 = arith.constant 3 : index
    %c0_54 = arith.constant 0 : index
    %c0_55 = arith.constant 0 : index
    %140 = vector.load %arg6[%c3_53, %c0_54, %c0_55] : memref<5x1x256xf32, #tpu.memory_space<vmem>>, vector<1x1x256xf32>
    %141 = vector.shape_cast %140 : vector<1x1x256xf32> to vector<1x256xf32>
    %142 = vector.broadcast %141 : vector<1x256xf32> to vector<4x256xf32>
    %143 = arith.addf %139, %142 : vector<4x256xf32>
    %144 = arith.maximumf %130, %143 : vector<4x256xf32>
    %c224_i32_56 = arith.constant 224 : i32
    %145 = tpu.dynamic_rotate %102 by %c224_i32_56 dim 1 : vector<4x256xf32>, i32 -> vector<4x256xf32>
    %c32_i32_57 = arith.constant 32 : i32
    %146 = tpu.dynamic_rotate %102 by %c32_i32_57 dim 1 : vector<4x256xf32>, i32 -> vector<4x256xf32>
    %147 = vector.broadcast %6 : vector<1x1xf32> to vector<4x256xf32>
    %148 = arith.mulf %145, %147 : vector<4x256xf32>
    %cst_58 = arith.constant 1.000000e+00 : f32
    %149 = vector.broadcast %cst_58 : f32 to vector<1x1xf32>
    %150 = arith.subf %149, %6 : vector<1x1xf32>
    %151 = vector.broadcast %150 : vector<1x1xf32> to vector<4x256xf32>
    %152 = arith.mulf %146, %151 : vector<4x256xf32>
    %153 = arith.addf %148, %152 : vector<4x256xf32>
    %c4_59 = arith.constant 4 : index
    %c0_60 = arith.constant 0 : index
    %c0_61 = arith.constant 0 : index
    %154 = vector.load %arg6[%c4_59, %c0_60, %c0_61] : memref<5x1x256xf32, #tpu.memory_space<vmem>>, vector<1x1x256xf32>
    %155 = vector.shape_cast %154 : vector<1x1x256xf32> to vector<1x256xf32>
    %156 = vector.broadcast %155 : vector<1x256xf32> to vector<4x256xf32>
    %157 = arith.addf %153, %156 : vector<4x256xf32>
    %158 = arith.maximumf %144, %157 : vector<4x256xf32>
    %c0_62 = arith.constant 0 : index
    %c1_63 = arith.constant 1 : index
    %c1_64 = arith.constant 1 : index
    %c0_65 = arith.constant 0 : index
    %c0_66 = arith.constant 0 : index
    %159 = vector.load %arg3[%c0_62, %c1_63, %c1_64, %c0_65, %c0_66] : memref<3x3x3x4x4xf32, #tpu.memory_space<vmem>>, vector<1x1x1x4x4xf32>
    %160 = vector.shape_cast %159 : vector<1x1x1x4x4xf32> to vector<4x4xf32>
    %cst_67 = arith.constant dense<0.000000e+00> : vector<4x256xf32>
    %161 = tpu.matmul %160, %158, %cst_67 {dimension_numbers = #tpu.dot_dimension_numbers<[1], [0], [0], [1], [0, 0, 1, 1], [], []>} : vector<4x4xf32>, vector<4x256xf32>, vector<4x256xf32> -> vector<4x256xf32>
    %c17_i32 = arith.constant 17 : i32
    %162 = tpu.dynamic_rotate %158 by %c17_i32 dim 1 : vector<4x256xf32>, i32 -> vector<4x256xf32>
    %c239_i32 = arith.constant 239 : i32
    %163 = tpu.dynamic_rotate %158 by %c239_i32 dim 1 : vector<4x256xf32>, i32 -> vector<4x256xf32>
    %164 = vector.broadcast %6 : vector<1x1xf32> to vector<4x256xf32>
    %165 = arith.mulf %162, %164 : vector<4x256xf32>
    %cst_68 = arith.constant 1.000000e+00 : f32
    %166 = vector.broadcast %cst_68 : f32 to vector<1x1xf32>
    %167 = arith.subf %166, %6 : vector<1x1xf32>
    %168 = vector.broadcast %167 : vector<1x1xf32> to vector<4x256xf32>
    %169 = arith.mulf %163, %168 : vector<4x256xf32>
    %170 = arith.addf %165, %169 : vector<4x256xf32>
    %c0_69 = arith.constant 0 : index
    %c0_70 = arith.constant 0 : index
    %c0_71 = arith.constant 0 : index
    %c0_72 = arith.constant 0 : index
    %171 = vector.load %arg7[%c0_69, %c0_70, %c0_71, %c0_72] : memref<3x3x1x256xf32, #tpu.memory_space<vmem>>, vector<1x1x1x256xf32>
    %172 = vector.shape_cast %171 : vector<1x1x1x256xf32> to vector<1x256xf32>
    %173 = vector.broadcast %172 : vector<1x256xf32> to vector<4x256xf32>
    %174 = arith.mulf %170, %173 : vector<4x256xf32>
    %c0_73 = arith.constant 0 : index
    %c0_74 = arith.constant 0 : index
    %c0_75 = arith.constant 0 : index
    %c0_76 = arith.constant 0 : index
    %c0_77 = arith.constant 0 : index
    %175 = vector.load %arg3[%c0_73, %c0_74, %c0_75, %c0_76, %c0_77] : memref<3x3x3x4x4xf32, #tpu.memory_space<vmem>>, vector<1x1x1x4x4xf32>
    %176 = vector.shape_cast %175 : vector<1x1x1x4x4xf32> to vector<4x4xf32>
    %cst_78 = arith.constant dense<0.000000e+00> : vector<4x256xf32>
    %177 = tpu.matmul %176, %174, %cst_78 {dimension_numbers = #tpu.dot_dimension_numbers<[1], [0], [0], [1], [0, 0, 1, 1], [], []>} : vector<4x4xf32>, vector<4x256xf32>, vector<4x256xf32> -> vector<4x256xf32>
    %178 = arith.addf %161, %177 : vector<4x256xf32>
    %c16_i32_79 = arith.constant 16 : i32
    %179 = tpu.dynamic_rotate %158 by %c16_i32_79 dim 1 : vector<4x256xf32>, i32 -> vector<4x256xf32>
    %c240_i32_80 = arith.constant 240 : i32
    %180 = tpu.dynamic_rotate %158 by %c240_i32_80 dim 1 : vector<4x256xf32>, i32 -> vector<4x256xf32>
    %181 = vector.broadcast %6 : vector<1x1xf32> to vector<4x256xf32>
    %182 = arith.mulf %179, %181 : vector<4x256xf32>
    %cst_81 = arith.constant 1.000000e+00 : f32
    %183 = vector.broadcast %cst_81 : f32 to vector<1x1xf32>
    %184 = arith.subf %183, %6 : vector<1x1xf32>
    %185 = vector.broadcast %184 : vector<1x1xf32> to vector<4x256xf32>
    %186 = arith.mulf %180, %185 : vector<4x256xf32>
    %187 = arith.addf %182, %186 : vector<4x256xf32>
    %c0_82 = arith.constant 0 : index
    %c1_83 = arith.constant 1 : index
    %c0_84 = arith.constant 0 : index
    %c0_85 = arith.constant 0 : index
    %188 = vector.load %arg7[%c0_82, %c1_83, %c0_84, %c0_85] : memref<3x3x1x256xf32, #tpu.memory_space<vmem>>, vector<1x1x1x256xf32>
    %189 = vector.shape_cast %188 : vector<1x1x1x256xf32> to vector<1x256xf32>
    %190 = vector.broadcast %189 : vector<1x256xf32> to vector<4x256xf32>
    %191 = arith.mulf %187, %190 : vector<4x256xf32>
    %c0_86 = arith.constant 0 : index
    %c0_87 = arith.constant 0 : index
    %c1_88 = arith.constant 1 : index
    %c0_89 = arith.constant 0 : index
    %c0_90 = arith.constant 0 : index
    %192 = vector.load %arg3[%c0_86, %c0_87, %c1_88, %c0_89, %c0_90] : memref<3x3x3x4x4xf32, #tpu.memory_space<vmem>>, vector<1x1x1x4x4xf32>
    %193 = vector.shape_cast %192 : vector<1x1x1x4x4xf32> to vector<4x4xf32>
    %cst_91 = arith.constant dense<0.000000e+00> : vector<4x256xf32>
    %194 = tpu.matmul %193, %191, %cst_91 {dimension_numbers = #tpu.dot_dimension_numbers<[1], [0], [0], [1], [0, 0, 1, 1], [], []>} : vector<4x4xf32>, vector<4x256xf32>, vector<4x256xf32> -> vector<4x256xf32>
    %195 = arith.addf %178, %194 : vector<4x256xf32>
    %c15_i32 = arith.constant 15 : i32
    %196 = tpu.dynamic_rotate %158 by %c15_i32 dim 1 : vector<4x256xf32>, i32 -> vector<4x256xf32>
    %c241_i32 = arith.constant 241 : i32
    %197 = tpu.dynamic_rotate %158 by %c241_i32 dim 1 : vector<4x256xf32>, i32 -> vector<4x256xf32>
    %198 = vector.broadcast %6 : vector<1x1xf32> to vector<4x256xf32>
    %199 = arith.mulf %196, %198 : vector<4x256xf32>
    %cst_92 = arith.constant 1.000000e+00 : f32
    %200 = vector.broadcast %cst_92 : f32 to vector<1x1xf32>
    %201 = arith.subf %200, %6 : vector<1x1xf32>
    %202 = vector.broadcast %201 : vector<1x1xf32> to vector<4x256xf32>
    %203 = arith.mulf %197, %202 : vector<4x256xf32>
    %204 = arith.addf %199, %203 : vector<4x256xf32>
    %c0_93 = arith.constant 0 : index
    %c2 = arith.constant 2 : index
    %c0_94 = arith.constant 0 : index
    %c0_95 = arith.constant 0 : index
    %205 = vector.load %arg7[%c0_93, %c2, %c0_94, %c0_95] : memref<3x3x1x256xf32, #tpu.memory_space<vmem>>, vector<1x1x1x256xf32>
    %206 = vector.shape_cast %205 : vector<1x1x1x256xf32> to vector<1x256xf32>
    %207 = vector.broadcast %206 : vector<1x256xf32> to vector<4x256xf32>
    %208 = arith.mulf %204, %207 : vector<4x256xf32>
    %c0_96 = arith.constant 0 : index
    %c0_97 = arith.constant 0 : index
    %c2_98 = arith.constant 2 : index
    %c0_99 = arith.constant 0 : index
    %c0_100 = arith.constant 0 : index
    %209 = vector.load %arg3[%c0_96, %c0_97, %c2_98, %c0_99, %c0_100] : memref<3x3x3x4x4xf32, #tpu.memory_space<vmem>>, vector<1x1x1x4x4xf32>
    %210 = vector.shape_cast %209 : vector<1x1x1x4x4xf32> to vector<4x4xf32>
    %cst_101 = arith.constant dense<0.000000e+00> : vector<4x256xf32>
    %211 = tpu.matmul %210, %208, %cst_101 {dimension_numbers = #tpu.dot_dimension_numbers<[1], [0], [0], [1], [0, 0, 1, 1], [], []>} : vector<4x4xf32>, vector<4x256xf32>, vector<4x256xf32> -> vector<4x256xf32>
    %212 = arith.addf %195, %211 : vector<4x256xf32>
    %c1_i32_102 = arith.constant 1 : i32
    %213 = tpu.dynamic_rotate %158 by %c1_i32_102 dim 1 : vector<4x256xf32>, i32 -> vector<4x256xf32>
    %c255_i32_103 = arith.constant 255 : i32
    %214 = tpu.dynamic_rotate %158 by %c255_i32_103 dim 1 : vector<4x256xf32>, i32 -> vector<4x256xf32>
    %215 = vector.broadcast %6 : vector<1x1xf32> to vector<4x256xf32>
    %216 = arith.mulf %213, %215 : vector<4x256xf32>
    %cst_104 = arith.constant 1.000000e+00 : f32
    %217 = vector.broadcast %cst_104 : f32 to vector<1x1xf32>
    %218 = arith.subf %217, %6 : vector<1x1xf32>
    %219 = vector.broadcast %218 : vector<1x1xf32> to vector<4x256xf32>
    %220 = arith.mulf %214, %219 : vector<4x256xf32>
    %221 = arith.addf %216, %220 : vector<4x256xf32>
    %c1_105 = arith.constant 1 : index
    %c0_106 = arith.constant 0 : index
    %c0_107 = arith.constant 0 : index
    %c0_108 = arith.constant 0 : index
    %222 = vector.load %arg7[%c1_105, %c0_106, %c0_107, %c0_108] : memref<3x3x1x256xf32, #tpu.memory_space<vmem>>, vector<1x1x1x256xf32>
    %223 = vector.shape_cast %222 : vector<1x1x1x256xf32> to vector<1x256xf32>
    %224 = vector.broadcast %223 : vector<1x256xf32> to vector<4x256xf32>
    %225 = arith.mulf %221, %224 : vector<4x256xf32>
    %c0_109 = arith.constant 0 : index
    %c1_110 = arith.constant 1 : index
    %c0_111 = arith.constant 0 : index
    %c0_112 = arith.constant 0 : index
    %c0_113 = arith.constant 0 : index
    %226 = vector.load %arg3[%c0_109, %c1_110, %c0_111, %c0_112, %c0_113] : memref<3x3x3x4x4xf32, #tpu.memory_space<vmem>>, vector<1x1x1x4x4xf32>
    %227 = vector.shape_cast %226 : vector<1x1x1x4x4xf32> to vector<4x4xf32>
    %cst_114 = arith.constant dense<0.000000e+00> : vector<4x256xf32>
    %228 = tpu.matmul %227, %225, %cst_114 {dimension_numbers = #tpu.dot_dimension_numbers<[1], [0], [0], [1], [0, 0, 1, 1], [], []>} : vector<4x4xf32>, vector<4x256xf32>, vector<4x256xf32> -> vector<4x256xf32>
    %229 = arith.addf %212, %228 : vector<4x256xf32>
    %c255_i32_115 = arith.constant 255 : i32
    %230 = tpu.dynamic_rotate %158 by %c255_i32_115 dim 1 : vector<4x256xf32>, i32 -> vector<4x256xf32>
    %c1_i32_116 = arith.constant 1 : i32
    %231 = tpu.dynamic_rotate %158 by %c1_i32_116 dim 1 : vector<4x256xf32>, i32 -> vector<4x256xf32>
    %232 = vector.broadcast %6 : vector<1x1xf32> to vector<4x256xf32>
    %233 = arith.mulf %230, %232 : vector<4x256xf32>
    %cst_117 = arith.constant 1.000000e+00 : f32
    %234 = vector.broadcast %cst_117 : f32 to vector<1x1xf32>
    %235 = arith.subf %234, %6 : vector<1x1xf32>
    %236 = vector.broadcast %235 : vector<1x1xf32> to vector<4x256xf32>
    %237 = arith.mulf %231, %236 : vector<4x256xf32>
    %238 = arith.addf %233, %237 : vector<4x256xf32>
    %c1_118 = arith.constant 1 : index
    %c2_119 = arith.constant 2 : index
    %c0_120 = arith.constant 0 : index
    %c0_121 = arith.constant 0 : index
    %239 = vector.load %arg7[%c1_118, %c2_119, %c0_120, %c0_121] : memref<3x3x1x256xf32, #tpu.memory_space<vmem>>, vector<1x1x1x256xf32>
    %240 = vector.shape_cast %239 : vector<1x1x1x256xf32> to vector<1x256xf32>
    %241 = vector.broadcast %240 : vector<1x256xf32> to vector<4x256xf32>
    %242 = arith.mulf %238, %241 : vector<4x256xf32>
    %c0_122 = arith.constant 0 : index
    %c1_123 = arith.constant 1 : index
    %c2_124 = arith.constant 2 : index
    %c0_125 = arith.constant 0 : index
    %c0_126 = arith.constant 0 : index
    %243 = vector.load %arg3[%c0_122, %c1_123, %c2_124, %c0_125, %c0_126] : memref<3x3x3x4x4xf32, #tpu.memory_space<vmem>>, vector<1x1x1x4x4xf32>
    %244 = vector.shape_cast %243 : vector<1x1x1x4x4xf32> to vector<4x4xf32>
    %cst_127 = arith.constant dense<0.000000e+00> : vector<4x256xf32>
    %245 = tpu.matmul %244, %242, %cst_127 {dimension_numbers = #tpu.dot_dimension_numbers<[1], [0], [0], [1], [0, 0, 1, 1], [], []>} : vector<4x4xf32>, vector<4x256xf32>, vector<4x256xf32> -> vector<4x256xf32>
    %246 = arith.addf %229, %245 : vector<4x256xf32>
    %c241_i32_128 = arith.constant 241 : i32
    %247 = tpu.dynamic_rotate %158 by %c241_i32_128 dim 1 : vector<4x256xf32>, i32 -> vector<4x256xf32>
    %c15_i32_129 = arith.constant 15 : i32
    %248 = tpu.dynamic_rotate %158 by %c15_i32_129 dim 1 : vector<4x256xf32>, i32 -> vector<4x256xf32>
    %249 = vector.broadcast %6 : vector<1x1xf32> to vector<4x256xf32>
    %250 = arith.mulf %247, %249 : vector<4x256xf32>
    %cst_130 = arith.constant 1.000000e+00 : f32
    %251 = vector.broadcast %cst_130 : f32 to vector<1x1xf32>
    %252 = arith.subf %251, %6 : vector<1x1xf32>
    %253 = vector.broadcast %252 : vector<1x1xf32> to vector<4x256xf32>
    %254 = arith.mulf %248, %253 : vector<4x256xf32>
    %255 = arith.addf %250, %254 : vector<4x256xf32>
    %c2_131 = arith.constant 2 : index
    %c0_132 = arith.constant 0 : index
    %c0_133 = arith.constant 0 : index
    %c0_134 = arith.constant 0 : index
    %256 = vector.load %arg7[%c2_131, %c0_132, %c0_133, %c0_134] : memref<3x3x1x256xf32, #tpu.memory_space<vmem>>, vector<1x1x1x256xf32>
    %257 = vector.shape_cast %256 : vector<1x1x1x256xf32> to vector<1x256xf32>
    %258 = vector.broadcast %257 : vector<1x256xf32> to vector<4x256xf32>
    %259 = arith.mulf %255, %258 : vector<4x256xf32>
    %c0_135 = arith.constant 0 : index
    %c2_136 = arith.constant 2 : index
    %c0_137 = arith.constant 0 : index
    %c0_138 = arith.constant 0 : index
    %c0_139 = arith.constant 0 : index
    %260 = vector.load %arg3[%c0_135, %c2_136, %c0_137, %c0_138, %c0_139] : memref<3x3x3x4x4xf32, #tpu.memory_space<vmem>>, vector<1x1x1x4x4xf32>
    %261 = vector.shape_cast %260 : vector<1x1x1x4x4xf32> to vector<4x4xf32>
    %cst_140 = arith.constant dense<0.000000e+00> : vector<4x256xf32>
    %262 = tpu.matmul %261, %259, %cst_140 {dimension_numbers = #tpu.dot_dimension_numbers<[1], [0], [0], [1], [0, 0, 1, 1], [], []>} : vector<4x4xf32>, vector<4x256xf32>, vector<4x256xf32> -> vector<4x256xf32>
    %263 = arith.addf %246, %262 : vector<4x256xf32>
    %c240_i32_141 = arith.constant 240 : i32
    %264 = tpu.dynamic_rotate %158 by %c240_i32_141 dim 1 : vector<4x256xf32>, i32 -> vector<4x256xf32>
    %c16_i32_142 = arith.constant 16 : i32
    %265 = tpu.dynamic_rotate %158 by %c16_i32_142 dim 1 : vector<4x256xf32>, i32 -> vector<4x256xf32>
    %266 = vector.broadcast %6 : vector<1x1xf32> to vector<4x256xf32>
    %267 = arith.mulf %264, %266 : vector<4x256xf32>
    %cst_143 = arith.constant 1.000000e+00 : f32
    %268 = vector.broadcast %cst_143 : f32 to vector<1x1xf32>
    %269 = arith.subf %268, %6 : vector<1x1xf32>
    %270 = vector.broadcast %269 : vector<1x1xf32> to vector<4x256xf32>
    %271 = arith.mulf %265, %270 : vector<4x256xf32>
    %272 = arith.addf %267, %271 : vector<4x256xf32>
    %c2_144 = arith.constant 2 : index
    %c1_145 = arith.constant 1 : index
    %c0_146 = arith.constant 0 : index
    %c0_147 = arith.constant 0 : index
    %273 = vector.load %arg7[%c2_144, %c1_145, %c0_146, %c0_147] : memref<3x3x1x256xf32, #tpu.memory_space<vmem>>, vector<1x1x1x256xf32>
    %274 = vector.shape_cast %273 : vector<1x1x1x256xf32> to vector<1x256xf32>
    %275 = vector.broadcast %274 : vector<1x256xf32> to vector<4x256xf32>
    %276 = arith.mulf %272, %275 : vector<4x256xf32>
    %c0_148 = arith.constant 0 : index
    %c2_149 = arith.constant 2 : index
    %c1_150 = arith.constant 1 : index
    %c0_151 = arith.constant 0 : index
    %c0_152 = arith.constant 0 : index
    %277 = vector.load %arg3[%c0_148, %c2_149, %c1_150, %c0_151, %c0_152] : memref<3x3x3x4x4xf32, #tpu.memory_space<vmem>>, vector<1x1x1x4x4xf32>
    %278 = vector.shape_cast %277 : vector<1x1x1x4x4xf32> to vector<4x4xf32>
    %cst_153 = arith.constant dense<0.000000e+00> : vector<4x256xf32>
    %279 = tpu.matmul %278, %276, %cst_153 {dimension_numbers = #tpu.dot_dimension_numbers<[1], [0], [0], [1], [0, 0, 1, 1], [], []>} : vector<4x4xf32>, vector<4x256xf32>, vector<4x256xf32> -> vector<4x256xf32>
    %280 = arith.addf %263, %279 : vector<4x256xf32>
    %c239_i32_154 = arith.constant 239 : i32
    %281 = tpu.dynamic_rotate %158 by %c239_i32_154 dim 1 : vector<4x256xf32>, i32 -> vector<4x256xf32>
    %c17_i32_155 = arith.constant 17 : i32
    %282 = tpu.dynamic_rotate %158 by %c17_i32_155 dim 1 : vector<4x256xf32>, i32 -> vector<4x256xf32>
    %283 = vector.broadcast %6 : vector<1x1xf32> to vector<4x256xf32>
    %284 = arith.mulf %281, %283 : vector<4x256xf32>
    %cst_156 = arith.constant 1.000000e+00 : f32
    %285 = vector.broadcast %cst_156 : f32 to vector<1x1xf32>
    %286 = arith.subf %285, %6 : vector<1x1xf32>
    %287 = vector.broadcast %286 : vector<1x1xf32> to vector<4x256xf32>
    %288 = arith.mulf %282, %287 : vector<4x256xf32>
    %289 = arith.addf %284, %288 : vector<4x256xf32>
    %c2_157 = arith.constant 2 : index
    %c2_158 = arith.constant 2 : index
    %c0_159 = arith.constant 0 : index
    %c0_160 = arith.constant 0 : index
    %290 = vector.load %arg7[%c2_157, %c2_158, %c0_159, %c0_160] : memref<3x3x1x256xf32, #tpu.memory_space<vmem>>, vector<1x1x1x256xf32>
    %291 = vector.shape_cast %290 : vector<1x1x1x256xf32> to vector<1x256xf32>
    %292 = vector.broadcast %291 : vector<1x256xf32> to vector<4x256xf32>
    %293 = arith.mulf %289, %292 : vector<4x256xf32>
    %c0_161 = arith.constant 0 : index
    %c2_162 = arith.constant 2 : index
    %c2_163 = arith.constant 2 : index
    %c0_164 = arith.constant 0 : index
    %c0_165 = arith.constant 0 : index
    %294 = vector.load %arg3[%c0_161, %c2_162, %c2_163, %c0_164, %c0_165] : memref<3x3x3x4x4xf32, #tpu.memory_space<vmem>>, vector<1x1x1x4x4xf32>
    %295 = vector.shape_cast %294 : vector<1x1x1x4x4xf32> to vector<4x4xf32>
    %cst_166 = arith.constant dense<0.000000e+00> : vector<4x256xf32>
    %296 = tpu.matmul %295, %293, %cst_166 {dimension_numbers = #tpu.dot_dimension_numbers<[1], [0], [0], [1], [0, 0, 1, 1], [], []>} : vector<4x4xf32>, vector<4x256xf32>, vector<4x256xf32> -> vector<4x256xf32>
    %297 = arith.addf %280, %296 : vector<4x256xf32>
    %298 = arith.addf %8, %297 : vector<4x256xf32>
    %c0_167 = arith.constant 0 : index
    %c0_168 = arith.constant 0 : index
    %c0_169 = arith.constant 0 : index
    %299 = vector.load %arg4[%c0_167, %c0_168, %c0_169] : memref<3x4x1xf32, #tpu.memory_space<vmem>>, vector<1x4x1xf32>
    %300 = vector.shape_cast %299 : vector<1x4x1xf32> to vector<4x1xf32>
    %301 = vector.broadcast %300 : vector<4x1xf32> to vector<4x256xf32>
    %302 = arith.addf %298, %301 : vector<4x256xf32>
    %c0_170 = arith.constant 0 : index
    %c1_171 = arith.constant 1 : index
    %c0_172 = arith.constant 0 : index
    %c0_173 = arith.constant 0 : index
    %303 = vector.load %arg1[%c0_170, %c1_171, %c0_172, %c0_173] : memref<3x2x4x1xf32, #tpu.memory_space<vmem>>, vector<1x1x4x1xf32>
    %304 = vector.shape_cast %303 : vector<1x1x4x1xf32> to vector<4x1xf32>
    %305 = arith.mulf %35, %304 : vector<4x1xf32>
    %c0_174 = arith.constant 0 : index
    %c1_175 = arith.constant 1 : index
    %c0_176 = arith.constant 0 : index
    %c0_177 = arith.constant 0 : index
    %306 = vector.load %arg2[%c0_174, %c1_175, %c0_176, %c0_177] : memref<3x2x4x1xf32, #tpu.memory_space<vmem>>, vector<1x1x4x1xf32>
    %307 = vector.shape_cast %306 : vector<1x1x4x1xf32> to vector<4x1xf32>
    %308 = arith.mulf %28, %305 : vector<4x1xf32>
    %309 = arith.subf %307, %308 : vector<4x1xf32>
    %310 = vector.broadcast %305 : vector<4x1xf32> to vector<4x256xf32>
    %311 = arith.mulf %10, %310 : vector<4x256xf32>
    %312 = vector.broadcast %309 : vector<4x1xf32> to vector<4x256xf32>
    %313 = arith.addf %311, %312 : vector<4x256xf32>
    %c2_i32_178 = arith.constant 2 : i32
    %314 = tpu.dynamic_rotate %313 by %c2_i32_178 dim 1 : vector<4x256xf32>, i32 -> vector<4x256xf32>
    %c254_i32_179 = arith.constant 254 : i32
    %315 = tpu.dynamic_rotate %313 by %c254_i32_179 dim 1 : vector<4x256xf32>, i32 -> vector<4x256xf32>
    %316 = vector.broadcast %6 : vector<1x1xf32> to vector<4x256xf32>
    %317 = arith.mulf %314, %316 : vector<4x256xf32>
    %cst_180 = arith.constant 1.000000e+00 : f32
    %318 = vector.broadcast %cst_180 : f32 to vector<1x1xf32>
    %319 = arith.subf %318, %6 : vector<1x1xf32>
    %320 = vector.broadcast %319 : vector<1x1xf32> to vector<4x256xf32>
    %321 = arith.mulf %315, %320 : vector<4x256xf32>
    %322 = arith.addf %317, %321 : vector<4x256xf32>
    %c0_181 = arith.constant 0 : index
    %c0_182 = arith.constant 0 : index
    %c0_183 = arith.constant 0 : index
    %323 = vector.load %arg5[%c0_181, %c0_182, %c0_183] : memref<5x1x256xf32, #tpu.memory_space<vmem>>, vector<1x1x256xf32>
    %324 = vector.shape_cast %323 : vector<1x1x256xf32> to vector<1x256xf32>
    %325 = vector.broadcast %324 : vector<1x256xf32> to vector<4x256xf32>
    %326 = arith.addf %322, %325 : vector<4x256xf32>
    %327 = arith.maximumf %313, %326 : vector<4x256xf32>
    %c1_i32_184 = arith.constant 1 : i32
    %328 = tpu.dynamic_rotate %313 by %c1_i32_184 dim 1 : vector<4x256xf32>, i32 -> vector<4x256xf32>
    %c255_i32_185 = arith.constant 255 : i32
    %329 = tpu.dynamic_rotate %313 by %c255_i32_185 dim 1 : vector<4x256xf32>, i32 -> vector<4x256xf32>
    %330 = vector.broadcast %6 : vector<1x1xf32> to vector<4x256xf32>
    %331 = arith.mulf %328, %330 : vector<4x256xf32>
    %cst_186 = arith.constant 1.000000e+00 : f32
    %332 = vector.broadcast %cst_186 : f32 to vector<1x1xf32>
    %333 = arith.subf %332, %6 : vector<1x1xf32>
    %334 = vector.broadcast %333 : vector<1x1xf32> to vector<4x256xf32>
    %335 = arith.mulf %329, %334 : vector<4x256xf32>
    %336 = arith.addf %331, %335 : vector<4x256xf32>
    %c1_187 = arith.constant 1 : index
    %c0_188 = arith.constant 0 : index
    %c0_189 = arith.constant 0 : index
    %337 = vector.load %arg5[%c1_187, %c0_188, %c0_189] : memref<5x1x256xf32, #tpu.memory_space<vmem>>, vector<1x1x256xf32>
    %338 = vector.shape_cast %337 : vector<1x1x256xf32> to vector<1x256xf32>
    %339 = vector.broadcast %338 : vector<1x256xf32> to vector<4x256xf32>
    %340 = arith.addf %336, %339 : vector<4x256xf32>
    %341 = arith.maximumf %327, %340 : vector<4x256xf32>
    %c255_i32_190 = arith.constant 255 : i32
    %342 = tpu.dynamic_rotate %313 by %c255_i32_190 dim 1 : vector<4x256xf32>, i32 -> vector<4x256xf32>
    %c1_i32_191 = arith.constant 1 : i32
    %343 = tpu.dynamic_rotate %313 by %c1_i32_191 dim 1 : vector<4x256xf32>, i32 -> vector<4x256xf32>
    %344 = vector.broadcast %6 : vector<1x1xf32> to vector<4x256xf32>
    %345 = arith.mulf %342, %344 : vector<4x256xf32>
    %cst_192 = arith.constant 1.000000e+00 : f32
    %346 = vector.broadcast %cst_192 : f32 to vector<1x1xf32>
    %347 = arith.subf %346, %6 : vector<1x1xf32>
    %348 = vector.broadcast %347 : vector<1x1xf32> to vector<4x256xf32>
    %349 = arith.mulf %343, %348 : vector<4x256xf32>
    %350 = arith.addf %345, %349 : vector<4x256xf32>
    %c3_193 = arith.constant 3 : index
    %c0_194 = arith.constant 0 : index
    %c0_195 = arith.constant 0 : index
    %351 = vector.load %arg5[%c3_193, %c0_194, %c0_195] : memref<5x1x256xf32, #tpu.memory_space<vmem>>, vector<1x1x256xf32>
    %352 = vector.shape_cast %351 : vector<1x1x256xf32> to vector<1x256xf32>
    %353 = vector.broadcast %352 : vector<1x256xf32> to vector<4x256xf32>
    %354 = arith.addf %350, %353 : vector<4x256xf32>
    %355 = arith.maximumf %341, %354 : vector<4x256xf32>
    %c254_i32_196 = arith.constant 254 : i32
    %356 = tpu.dynamic_rotate %313 by %c254_i32_196 dim 1 : vector<4x256xf32>, i32 -> vector<4x256xf32>
    %c2_i32_197 = arith.constant 2 : i32
    %357 = tpu.dynamic_rotate %313 by %c2_i32_197 dim 1 : vector<4x256xf32>, i32 -> vector<4x256xf32>
    %358 = vector.broadcast %6 : vector<1x1xf32> to vector<4x256xf32>
    %359 = arith.mulf %356, %358 : vector<4x256xf32>
    %cst_198 = arith.constant 1.000000e+00 : f32
    %360 = vector.broadcast %cst_198 : f32 to vector<1x1xf32>
    %361 = arith.subf %360, %6 : vector<1x1xf32>
    %362 = vector.broadcast %361 : vector<1x1xf32> to vector<4x256xf32>
    %363 = arith.mulf %357, %362 : vector<4x256xf32>
    %364 = arith.addf %359, %363 : vector<4x256xf32>
    %c4_199 = arith.constant 4 : index
    %c0_200 = arith.constant 0 : index
    %c0_201 = arith.constant 0 : index
    %365 = vector.load %arg5[%c4_199, %c0_200, %c0_201] : memref<5x1x256xf32, #tpu.memory_space<vmem>>, vector<1x1x256xf32>
    %366 = vector.shape_cast %365 : vector<1x1x256xf32> to vector<1x256xf32>
    %367 = vector.broadcast %366 : vector<1x256xf32> to vector<4x256xf32>
    %368 = arith.addf %364, %367 : vector<4x256xf32>
    %369 = arith.maximumf %355, %368 : vector<4x256xf32>
    %c32_i32_202 = arith.constant 32 : i32
    %370 = tpu.dynamic_rotate %369 by %c32_i32_202 dim 1 : vector<4x256xf32>, i32 -> vector<4x256xf32>
    %c224_i32_203 = arith.constant 224 : i32
    %371 = tpu.dynamic_rotate %369 by %c224_i32_203 dim 1 : vector<4x256xf32>, i32 -> vector<4x256xf32>
    %372 = vector.broadcast %6 : vector<1x1xf32> to vector<4x256xf32>
    %373 = arith.mulf %370, %372 : vector<4x256xf32>
    %cst_204 = arith.constant 1.000000e+00 : f32
    %374 = vector.broadcast %cst_204 : f32 to vector<1x1xf32>
    %375 = arith.subf %374, %6 : vector<1x1xf32>
    %376 = vector.broadcast %375 : vector<1x1xf32> to vector<4x256xf32>
    %377 = arith.mulf %371, %376 : vector<4x256xf32>
    %378 = arith.addf %373, %377 : vector<4x256xf32>
    %c0_205 = arith.constant 0 : index
    %c0_206 = arith.constant 0 : index
    %c0_207 = arith.constant 0 : index
    %379 = vector.load %arg6[%c0_205, %c0_206, %c0_207] : memref<5x1x256xf32, #tpu.memory_space<vmem>>, vector<1x1x256xf32>
    %380 = vector.shape_cast %379 : vector<1x1x256xf32> to vector<1x256xf32>
    %381 = vector.broadcast %380 : vector<1x256xf32> to vector<4x256xf32>
    %382 = arith.addf %378, %381 : vector<4x256xf32>
    %383 = arith.maximumf %369, %382 : vector<4x256xf32>
    %c16_i32_208 = arith.constant 16 : i32
    %384 = tpu.dynamic_rotate %369 by %c16_i32_208 dim 1 : vector<4x256xf32>, i32 -> vector<4x256xf32>
    %c240_i32_209 = arith.constant 240 : i32
    %385 = tpu.dynamic_rotate %369 by %c240_i32_209 dim 1 : vector<4x256xf32>, i32 -> vector<4x256xf32>
    %386 = vector.broadcast %6 : vector<1x1xf32> to vector<4x256xf32>
    %387 = arith.mulf %384, %386 : vector<4x256xf32>
    %cst_210 = arith.constant 1.000000e+00 : f32
    %388 = vector.broadcast %cst_210 : f32 to vector<1x1xf32>
    %389 = arith.subf %388, %6 : vector<1x1xf32>
    %390 = vector.broadcast %389 : vector<1x1xf32> to vector<4x256xf32>
    %391 = arith.mulf %385, %390 : vector<4x256xf32>
    %392 = arith.addf %387, %391 : vector<4x256xf32>
    %c1_211 = arith.constant 1 : index
    %c0_212 = arith.constant 0 : index
    %c0_213 = arith.constant 0 : index
    %393 = vector.load %arg6[%c1_211, %c0_212, %c0_213] : memref<5x1x256xf32, #tpu.memory_space<vmem>>, vector<1x1x256xf32>
    %394 = vector.shape_cast %393 : vector<1x1x256xf32> to vector<1x256xf32>
    %395 = vector.broadcast %394 : vector<1x256xf32> to vector<4x256xf32>
    %396 = arith.addf %392, %395 : vector<4x256xf32>
    %397 = arith.maximumf %383, %396 : vector<4x256xf32>
    %c240_i32_214 = arith.constant 240 : i32
    %398 = tpu.dynamic_rotate %369 by %c240_i32_214 dim 1 : vector<4x256xf32>, i32 -> vector<4x256xf32>
    %c16_i32_215 = arith.constant 16 : i32
    %399 = tpu.dynamic_rotate %369 by %c16_i32_215 dim 1 : vector<4x256xf32>, i32 -> vector<4x256xf32>
    %400 = vector.broadcast %6 : vector<1x1xf32> to vector<4x256xf32>
    %401 = arith.mulf %398, %400 : vector<4x256xf32>
    %cst_216 = arith.constant 1.000000e+00 : f32
    %402 = vector.broadcast %cst_216 : f32 to vector<1x1xf32>
    %403 = arith.subf %402, %6 : vector<1x1xf32>
    %404 = vector.broadcast %403 : vector<1x1xf32> to vector<4x256xf32>
    %405 = arith.mulf %399, %404 : vector<4x256xf32>
    %406 = arith.addf %401, %405 : vector<4x256xf32>
    %c3_217 = arith.constant 3 : index
    %c0_218 = arith.constant 0 : index
    %c0_219 = arith.constant 0 : index
    %407 = vector.load %arg6[%c3_217, %c0_218, %c0_219] : memref<5x1x256xf32, #tpu.memory_space<vmem>>, vector<1x1x256xf32>
    %408 = vector.shape_cast %407 : vector<1x1x256xf32> to vector<1x256xf32>
    %409 = vector.broadcast %408 : vector<1x256xf32> to vector<4x256xf32>
    %410 = arith.addf %406, %409 : vector<4x256xf32>
    %411 = arith.maximumf %397, %410 : vector<4x256xf32>
    %c224_i32_220 = arith.constant 224 : i32
    %412 = tpu.dynamic_rotate %369 by %c224_i32_220 dim 1 : vector<4x256xf32>, i32 -> vector<4x256xf32>
    %c32_i32_221 = arith.constant 32 : i32
    %413 = tpu.dynamic_rotate %369 by %c32_i32_221 dim 1 : vector<4x256xf32>, i32 -> vector<4x256xf32>
    %414 = vector.broadcast %6 : vector<1x1xf32> to vector<4x256xf32>
    %415 = arith.mulf %412, %414 : vector<4x256xf32>
    %cst_222 = arith.constant 1.000000e+00 : f32
    %416 = vector.broadcast %cst_222 : f32 to vector<1x1xf32>
    %417 = arith.subf %416, %6 : vector<1x1xf32>
    %418 = vector.broadcast %417 : vector<1x1xf32> to vector<4x256xf32>
    %419 = arith.mulf %413, %418 : vector<4x256xf32>
    %420 = arith.addf %415, %419 : vector<4x256xf32>
    %c4_223 = arith.constant 4 : index
    %c0_224 = arith.constant 0 : index
    %c0_225 = arith.constant 0 : index
    %421 = vector.load %arg6[%c4_223, %c0_224, %c0_225] : memref<5x1x256xf32, #tpu.memory_space<vmem>>, vector<1x1x256xf32>
    %422 = vector.shape_cast %421 : vector<1x1x256xf32> to vector<1x256xf32>
    %423 = vector.broadcast %422 : vector<1x256xf32> to vector<4x256xf32>
    %424 = arith.addf %420, %423 : vector<4x256xf32>
    %425 = arith.maximumf %411, %424 : vector<4x256xf32>
    %c0_226 = arith.constant 0 : index
    %c1_227 = arith.constant 1 : index
    %c1_228 = arith.constant 1 : index
    %c0_229 = arith.constant 0 : index
    %c0_230 = arith.constant 0 : index
    %426 = vector.load %arg3[%c0_226, %c1_227, %c1_228, %c0_229, %c0_230] : memref<3x3x3x4x4xf32, #tpu.memory_space<vmem>>, vector<1x1x1x4x4xf32>
    %427 = vector.shape_cast %426 : vector<1x1x1x4x4xf32> to vector<4x4xf32>
    %cst_231 = arith.constant dense<0.000000e+00> : vector<4x256xf32>
    %428 = tpu.matmul %427, %425, %cst_231 {dimension_numbers = #tpu.dot_dimension_numbers<[1], [0], [0], [1], [0, 0, 1, 1], [], []>} : vector<4x4xf32>, vector<4x256xf32>, vector<4x256xf32> -> vector<4x256xf32>
    %c17_i32_232 = arith.constant 17 : i32
    %429 = tpu.dynamic_rotate %425 by %c17_i32_232 dim 1 : vector<4x256xf32>, i32 -> vector<4x256xf32>
    %c239_i32_233 = arith.constant 239 : i32
    %430 = tpu.dynamic_rotate %425 by %c239_i32_233 dim 1 : vector<4x256xf32>, i32 -> vector<4x256xf32>
    %431 = vector.broadcast %6 : vector<1x1xf32> to vector<4x256xf32>
    %432 = arith.mulf %429, %431 : vector<4x256xf32>
    %cst_234 = arith.constant 1.000000e+00 : f32
    %433 = vector.broadcast %cst_234 : f32 to vector<1x1xf32>
    %434 = arith.subf %433, %6 : vector<1x1xf32>
    %435 = vector.broadcast %434 : vector<1x1xf32> to vector<4x256xf32>
    %436 = arith.mulf %430, %435 : vector<4x256xf32>
    %437 = arith.addf %432, %436 : vector<4x256xf32>
    %c0_235 = arith.constant 0 : index
    %c0_236 = arith.constant 0 : index
    %c0_237 = arith.constant 0 : index
    %c0_238 = arith.constant 0 : index
    %438 = vector.load %arg7[%c0_235, %c0_236, %c0_237, %c0_238] : memref<3x3x1x256xf32, #tpu.memory_space<vmem>>, vector<1x1x1x256xf32>
    %439 = vector.shape_cast %438 : vector<1x1x1x256xf32> to vector<1x256xf32>
    %440 = vector.broadcast %439 : vector<1x256xf32> to vector<4x256xf32>
    %441 = arith.mulf %437, %440 : vector<4x256xf32>
    %c0_239 = arith.constant 0 : index
    %c0_240 = arith.constant 0 : index
    %c0_241 = arith.constant 0 : index
    %c0_242 = arith.constant 0 : index
    %c0_243 = arith.constant 0 : index
    %442 = vector.load %arg3[%c0_239, %c0_240, %c0_241, %c0_242, %c0_243] : memref<3x3x3x4x4xf32, #tpu.memory_space<vmem>>, vector<1x1x1x4x4xf32>
    %443 = vector.shape_cast %442 : vector<1x1x1x4x4xf32> to vector<4x4xf32>
    %cst_244 = arith.constant dense<0.000000e+00> : vector<4x256xf32>
    %444 = tpu.matmul %443, %441, %cst_244 {dimension_numbers = #tpu.dot_dimension_numbers<[1], [0], [0], [1], [0, 0, 1, 1], [], []>} : vector<4x4xf32>, vector<4x256xf32>, vector<4x256xf32> -> vector<4x256xf32>
    %445 = arith.addf %428, %444 : vector<4x256xf32>
    %c16_i32_245 = arith.constant 16 : i32
    %446 = tpu.dynamic_rotate %425 by %c16_i32_245 dim 1 : vector<4x256xf32>, i32 -> vector<4x256xf32>
    %c240_i32_246 = arith.constant 240 : i32
    %447 = tpu.dynamic_rotate %425 by %c240_i32_246 dim 1 : vector<4x256xf32>, i32 -> vector<4x256xf32>
    %448 = vector.broadcast %6 : vector<1x1xf32> to vector<4x256xf32>
    %449 = arith.mulf %446, %448 : vector<4x256xf32>
    %cst_247 = arith.constant 1.000000e+00 : f32
    %450 = vector.broadcast %cst_247 : f32 to vector<1x1xf32>
    %451 = arith.subf %450, %6 : vector<1x1xf32>
    %452 = vector.broadcast %451 : vector<1x1xf32> to vector<4x256xf32>
    %453 = arith.mulf %447, %452 : vector<4x256xf32>
    %454 = arith.addf %449, %453 : vector<4x256xf32>
    %c0_248 = arith.constant 0 : index
    %c1_249 = arith.constant 1 : index
    %c0_250 = arith.constant 0 : index
    %c0_251 = arith.constant 0 : index
    %455 = vector.load %arg7[%c0_248, %c1_249, %c0_250, %c0_251] : memref<3x3x1x256xf32, #tpu.memory_space<vmem>>, vector<1x1x1x256xf32>
    %456 = vector.shape_cast %455 : vector<1x1x1x256xf32> to vector<1x256xf32>
    %457 = vector.broadcast %456 : vector<1x256xf32> to vector<4x256xf32>
    %458 = arith.mulf %454, %457 : vector<4x256xf32>
    %c0_252 = arith.constant 0 : index
    %c0_253 = arith.constant 0 : index
    %c1_254 = arith.constant 1 : index
    %c0_255 = arith.constant 0 : index
    %c0_256 = arith.constant 0 : index
    %459 = vector.load %arg3[%c0_252, %c0_253, %c1_254, %c0_255, %c0_256] : memref<3x3x3x4x4xf32, #tpu.memory_space<vmem>>, vector<1x1x1x4x4xf32>
    %460 = vector.shape_cast %459 : vector<1x1x1x4x4xf32> to vector<4x4xf32>
    %cst_257 = arith.constant dense<0.000000e+00> : vector<4x256xf32>
    %461 = tpu.matmul %460, %458, %cst_257 {dimension_numbers = #tpu.dot_dimension_numbers<[1], [0], [0], [1], [0, 0, 1, 1], [], []>} : vector<4x4xf32>, vector<4x256xf32>, vector<4x256xf32> -> vector<4x256xf32>
    %462 = arith.addf %445, %461 : vector<4x256xf32>
    %c15_i32_258 = arith.constant 15 : i32
    %463 = tpu.dynamic_rotate %425 by %c15_i32_258 dim 1 : vector<4x256xf32>, i32 -> vector<4x256xf32>
    %c241_i32_259 = arith.constant 241 : i32
    %464 = tpu.dynamic_rotate %425 by %c241_i32_259 dim 1 : vector<4x256xf32>, i32 -> vector<4x256xf32>
    %465 = vector.broadcast %6 : vector<1x1xf32> to vector<4x256xf32>
    %466 = arith.mulf %463, %465 : vector<4x256xf32>
    %cst_260 = arith.constant 1.000000e+00 : f32
    %467 = vector.broadcast %cst_260 : f32 to vector<1x1xf32>
    %468 = arith.subf %467, %6 : vector<1x1xf32>
    %469 = vector.broadcast %468 : vector<1x1xf32> to vector<4x256xf32>
    %470 = arith.mulf %464, %469 : vector<4x256xf32>
    %471 = arith.addf %466, %470 : vector<4x256xf32>
    %c0_261 = arith.constant 0 : index
    %c2_262 = arith.constant 2 : index
    %c0_263 = arith.constant 0 : index
    %c0_264 = arith.constant 0 : index
    %472 = vector.load %arg7[%c0_261, %c2_262, %c0_263, %c0_264] : memref<3x3x1x256xf32, #tpu.memory_space<vmem>>, vector<1x1x1x256xf32>
    %473 = vector.shape_cast %472 : vector<1x1x1x256xf32> to vector<1x256xf32>
    %474 = vector.broadcast %473 : vector<1x256xf32> to vector<4x256xf32>
    %475 = arith.mulf %471, %474 : vector<4x256xf32>
    %c0_265 = arith.constant 0 : index
    %c0_266 = arith.constant 0 : index
    %c2_267 = arith.constant 2 : index
    %c0_268 = arith.constant 0 : index
    %c0_269 = arith.constant 0 : index
    %476 = vector.load %arg3[%c0_265, %c0_266, %c2_267, %c0_268, %c0_269] : memref<3x3x3x4x4xf32, #tpu.memory_space<vmem>>, vector<1x1x1x4x4xf32>
    %477 = vector.shape_cast %476 : vector<1x1x1x4x4xf32> to vector<4x4xf32>
    %cst_270 = arith.constant dense<0.000000e+00> : vector<4x256xf32>
    %478 = tpu.matmul %477, %475, %cst_270 {dimension_numbers = #tpu.dot_dimension_numbers<[1], [0], [0], [1], [0, 0, 1, 1], [], []>} : vector<4x4xf32>, vector<4x256xf32>, vector<4x256xf32> -> vector<4x256xf32>
    %479 = arith.addf %462, %478 : vector<4x256xf32>
    %c1_i32_271 = arith.constant 1 : i32
    %480 = tpu.dynamic_rotate %425 by %c1_i32_271 dim 1 : vector<4x256xf32>, i32 -> vector<4x256xf32>
    %c255_i32_272 = arith.constant 255 : i32
    %481 = tpu.dynamic_rotate %425 by %c255_i32_272 dim 1 : vector<4x256xf32>, i32 -> vector<4x256xf32>
    %482 = vector.broadcast %6 : vector<1x1xf32> to vector<4x256xf32>
    %483 = arith.mulf %480, %482 : vector<4x256xf32>
    %cst_273 = arith.constant 1.000000e+00 : f32
    %484 = vector.broadcast %cst_273 : f32 to vector<1x1xf32>
    %485 = arith.subf %484, %6 : vector<1x1xf32>
    %486 = vector.broadcast %485 : vector<1x1xf32> to vector<4x256xf32>
    %487 = arith.mulf %481, %486 : vector<4x256xf32>
    %488 = arith.addf %483, %487 : vector<4x256xf32>
    %c1_274 = arith.constant 1 : index
    %c0_275 = arith.constant 0 : index
    %c0_276 = arith.constant 0 : index
    %c0_277 = arith.constant 0 : index
    %489 = vector.load %arg7[%c1_274, %c0_275, %c0_276, %c0_277] : memref<3x3x1x256xf32, #tpu.memory_space<vmem>>, vector<1x1x1x256xf32>
    %490 = vector.shape_cast %489 : vector<1x1x1x256xf32> to vector<1x256xf32>
    %491 = vector.broadcast %490 : vector<1x256xf32> to vector<4x256xf32>
    %492 = arith.mulf %488, %491 : vector<4x256xf32>
    %c0_278 = arith.constant 0 : index
    %c1_279 = arith.constant 1 : index
    %c0_280 = arith.constant 0 : index
    %c0_281 = arith.constant 0 : index
    %c0_282 = arith.constant 0 : index
    %493 = vector.load %arg3[%c0_278, %c1_279, %c0_280, %c0_281, %c0_282] : memref<3x3x3x4x4xf32, #tpu.memory_space<vmem>>, vector<1x1x1x4x4xf32>
    %494 = vector.shape_cast %493 : vector<1x1x1x4x4xf32> to vector<4x4xf32>
    %cst_283 = arith.constant dense<0.000000e+00> : vector<4x256xf32>
    %495 = tpu.matmul %494, %492, %cst_283 {dimension_numbers = #tpu.dot_dimension_numbers<[1], [0], [0], [1], [0, 0, 1, 1], [], []>} : vector<4x4xf32>, vector<4x256xf32>, vector<4x256xf32> -> vector<4x256xf32>
    %496 = arith.addf %479, %495 : vector<4x256xf32>
    %c255_i32_284 = arith.constant 255 : i32
    %497 = tpu.dynamic_rotate %425 by %c255_i32_284 dim 1 : vector<4x256xf32>, i32 -> vector<4x256xf32>
    %c1_i32_285 = arith.constant 1 : i32
    %498 = tpu.dynamic_rotate %425 by %c1_i32_285 dim 1 : vector<4x256xf32>, i32 -> vector<4x256xf32>
    %499 = vector.broadcast %6 : vector<1x1xf32> to vector<4x256xf32>
    %500 = arith.mulf %497, %499 : vector<4x256xf32>
    %cst_286 = arith.constant 1.000000e+00 : f32
    %501 = vector.broadcast %cst_286 : f32 to vector<1x1xf32>
    %502 = arith.subf %501, %6 : vector<1x1xf32>
    %503 = vector.broadcast %502 : vector<1x1xf32> to vector<4x256xf32>
    %504 = arith.mulf %498, %503 : vector<4x256xf32>
    %505 = arith.addf %500, %504 : vector<4x256xf32>
    %c1_287 = arith.constant 1 : index
    %c2_288 = arith.constant 2 : index
    %c0_289 = arith.constant 0 : index
    %c0_290 = arith.constant 0 : index
    %506 = vector.load %arg7[%c1_287, %c2_288, %c0_289, %c0_290] : memref<3x3x1x256xf32, #tpu.memory_space<vmem>>, vector<1x1x1x256xf32>
    %507 = vector.shape_cast %506 : vector<1x1x1x256xf32> to vector<1x256xf32>
    %508 = vector.broadcast %507 : vector<1x256xf32> to vector<4x256xf32>
    %509 = arith.mulf %505, %508 : vector<4x256xf32>
    %c0_291 = arith.constant 0 : index
    %c1_292 = arith.constant 1 : index
    %c2_293 = arith.constant 2 : index
    %c0_294 = arith.constant 0 : index
    %c0_295 = arith.constant 0 : index
    %510 = vector.load %arg3[%c0_291, %c1_292, %c2_293, %c0_294, %c0_295] : memref<3x3x3x4x4xf32, #tpu.memory_space<vmem>>, vector<1x1x1x4x4xf32>
    %511 = vector.shape_cast %510 : vector<1x1x1x4x4xf32> to vector<4x4xf32>
    %cst_296 = arith.constant dense<0.000000e+00> : vector<4x256xf32>
    %512 = tpu.matmul %511, %509, %cst_296 {dimension_numbers = #tpu.dot_dimension_numbers<[1], [0], [0], [1], [0, 0, 1, 1], [], []>} : vector<4x4xf32>, vector<4x256xf32>, vector<4x256xf32> -> vector<4x256xf32>
    %513 = arith.addf %496, %512 : vector<4x256xf32>
    %c241_i32_297 = arith.constant 241 : i32
    %514 = tpu.dynamic_rotate %425 by %c241_i32_297 dim 1 : vector<4x256xf32>, i32 -> vector<4x256xf32>
    %c15_i32_298 = arith.constant 15 : i32
    %515 = tpu.dynamic_rotate %425 by %c15_i32_298 dim 1 : vector<4x256xf32>, i32 -> vector<4x256xf32>
    %516 = vector.broadcast %6 : vector<1x1xf32> to vector<4x256xf32>
    %517 = arith.mulf %514, %516 : vector<4x256xf32>
    %cst_299 = arith.constant 1.000000e+00 : f32
    %518 = vector.broadcast %cst_299 : f32 to vector<1x1xf32>
    %519 = arith.subf %518, %6 : vector<1x1xf32>
    %520 = vector.broadcast %519 : vector<1x1xf32> to vector<4x256xf32>
    %521 = arith.mulf %515, %520 : vector<4x256xf32>
    %522 = arith.addf %517, %521 : vector<4x256xf32>
    %c2_300 = arith.constant 2 : index
    %c0_301 = arith.constant 0 : index
    %c0_302 = arith.constant 0 : index
    %c0_303 = arith.constant 0 : index
    %523 = vector.load %arg7[%c2_300, %c0_301, %c0_302, %c0_303] : memref<3x3x1x256xf32, #tpu.memory_space<vmem>>, vector<1x1x1x256xf32>
    %524 = vector.shape_cast %523 : vector<1x1x1x256xf32> to vector<1x256xf32>
    %525 = vector.broadcast %524 : vector<1x256xf32> to vector<4x256xf32>
    %526 = arith.mulf %522, %525 : vector<4x256xf32>
    %c0_304 = arith.constant 0 : index
    %c2_305 = arith.constant 2 : index
    %c0_306 = arith.constant 0 : index
    %c0_307 = arith.constant 0 : index
    %c0_308 = arith.constant 0 : index
    %527 = vector.load %arg3[%c0_304, %c2_305, %c0_306, %c0_307, %c0_308] : memref<3x3x3x4x4xf32, #tpu.memory_space<vmem>>, vector<1x1x1x4x4xf32>
    %528 = vector.shape_cast %527 : vector<1x1x1x4x4xf32> to vector<4x4xf32>
    %cst_309 = arith.constant dense<0.000000e+00> : vector<4x256xf32>
    %529 = tpu.matmul %528, %526, %cst_309 {dimension_numbers = #tpu.dot_dimension_numbers<[1], [0], [0], [1], [0, 0, 1, 1], [], []>} : vector<4x4xf32>, vector<4x256xf32>, vector<4x256xf32> -> vector<4x256xf32>
    %530 = arith.addf %513, %529 : vector<4x256xf32>
    %c240_i32_310 = arith.constant 240 : i32
    %531 = tpu.dynamic_rotate %425 by %c240_i32_310 dim 1 : vector<4x256xf32>, i32 -> vector<4x256xf32>
    %c16_i32_311 = arith.constant 16 : i32
    %532 = tpu.dynamic_rotate %425 by %c16_i32_311 dim 1 : vector<4x256xf32>, i32 -> vector<4x256xf32>
    %533 = vector.broadcast %6 : vector<1x1xf32> to vector<4x256xf32>
    %534 = arith.mulf %531, %533 : vector<4x256xf32>
    %cst_312 = arith.constant 1.000000e+00 : f32
    %535 = vector.broadcast %cst_312 : f32 to vector<1x1xf32>
    %536 = arith.subf %535, %6 : vector<1x1xf32>
    %537 = vector.broadcast %536 : vector<1x1xf32> to vector<4x256xf32>
    %538 = arith.mulf %532, %537 : vector<4x256xf32>
    %539 = arith.addf %534, %538 : vector<4x256xf32>
    %c2_313 = arith.constant 2 : index
    %c1_314 = arith.constant 1 : index
    %c0_315 = arith.constant 0 : index
    %c0_316 = arith.constant 0 : index
    %540 = vector.load %arg7[%c2_313, %c1_314, %c0_315, %c0_316] : memref<3x3x1x256xf32, #tpu.memory_space<vmem>>, vector<1x1x1x256xf32>
    %541 = vector.shape_cast %540 : vector<1x1x1x256xf32> to vector<1x256xf32>
    %542 = vector.broadcast %541 : vector<1x256xf32> to vector<4x256xf32>
    %543 = arith.mulf %539, %542 : vector<4x256xf32>
    %c0_317 = arith.constant 0 : index
    %c2_318 = arith.constant 2 : index
    %c1_319 = arith.constant 1 : index
    %c0_320 = arith.constant 0 : index
    %c0_321 = arith.constant 0 : index
    %544 = vector.load %arg3[%c0_317, %c2_318, %c1_319, %c0_320, %c0_321] : memref<3x3x3x4x4xf32, #tpu.memory_space<vmem>>, vector<1x1x1x4x4xf32>
    %545 = vector.shape_cast %544 : vector<1x1x1x4x4xf32> to vector<4x4xf32>
    %cst_322 = arith.constant dense<0.000000e+00> : vector<4x256xf32>
    %546 = tpu.matmul %545, %543, %cst_322 {dimension_numbers = #tpu.dot_dimension_numbers<[1], [0], [0], [1], [0, 0, 1, 1], [], []>} : vector<4x4xf32>, vector<4x256xf32>, vector<4x256xf32> -> vector<4x256xf32>
    %547 = arith.addf %530, %546 : vector<4x256xf32>
    %c239_i32_323 = arith.constant 239 : i32
    %548 = tpu.dynamic_rotate %425 by %c239_i32_323 dim 1 : vector<4x256xf32>, i32 -> vector<4x256xf32>
    %c17_i32_324 = arith.constant 17 : i32
    %549 = tpu.dynamic_rotate %425 by %c17_i32_324 dim 1 : vector<4x256xf32>, i32 -> vector<4x256xf32>
    %550 = vector.broadcast %6 : vector<1x1xf32> to vector<4x256xf32>
    %551 = arith.mulf %548, %550 : vector<4x256xf32>
    %cst_325 = arith.constant 1.000000e+00 : f32
    %552 = vector.broadcast %cst_325 : f32 to vector<1x1xf32>
    %553 = arith.subf %552, %6 : vector<1x1xf32>
    %554 = vector.broadcast %553 : vector<1x1xf32> to vector<4x256xf32>
    %555 = arith.mulf %549, %554 : vector<4x256xf32>
    %556 = arith.addf %551, %555 : vector<4x256xf32>
    %c2_326 = arith.constant 2 : index
    %c2_327 = arith.constant 2 : index
    %c0_328 = arith.constant 0 : index
    %c0_329 = arith.constant 0 : index
    %557 = vector.load %arg7[%c2_326, %c2_327, %c0_328, %c0_329] : memref<3x3x1x256xf32, #tpu.memory_space<vmem>>, vector<1x1x1x256xf32>
    %558 = vector.shape_cast %557 : vector<1x1x1x256xf32> to vector<1x256xf32>
    %559 = vector.broadcast %558 : vector<1x256xf32> to vector<4x256xf32>
    %560 = arith.mulf %556, %559 : vector<4x256xf32>
    %c0_330 = arith.constant 0 : index
    %c2_331 = arith.constant 2 : index
    %c2_332 = arith.constant 2 : index
    %c0_333 = arith.constant 0 : index
    %c0_334 = arith.constant 0 : index
    %561 = vector.load %arg3[%c0_330, %c2_331, %c2_332, %c0_333, %c0_334] : memref<3x3x3x4x4xf32, #tpu.memory_space<vmem>>, vector<1x1x1x4x4xf32>
    %562 = vector.shape_cast %561 : vector<1x1x1x4x4xf32> to vector<4x4xf32>
    %cst_335 = arith.constant dense<0.000000e+00> : vector<4x256xf32>
    %563 = tpu.matmul %562, %560, %cst_335 {dimension_numbers = #tpu.dot_dimension_numbers<[1], [0], [0], [1], [0, 0, 1, 1], [], []>} : vector<4x4xf32>, vector<4x256xf32>, vector<4x256xf32> -> vector<4x256xf32>
    %564 = arith.addf %547, %563 : vector<4x256xf32>
    %565 = arith.addf %10, %564 : vector<4x256xf32>
    %c0_336 = arith.constant 0 : index
    %c0_337 = arith.constant 0 : index
    %c0_338 = arith.constant 0 : index
    %566 = vector.load %arg4[%c0_336, %c0_337, %c0_338] : memref<3x4x1xf32, #tpu.memory_space<vmem>>, vector<1x4x1xf32>
    %567 = vector.shape_cast %566 : vector<1x4x1xf32> to vector<4x1xf32>
    %568 = vector.broadcast %567 : vector<4x1xf32> to vector<4x256xf32>
    %569 = arith.addf %565, %568 : vector<4x256xf32>
    %cst_339 = arith.constant dense<0.000000e+00> : vector<4xf32>
    %570 = vector.multi_reduction <add>, %302, %cst_339 [1] : vector<4x256xf32> to vector<4xf32>
    %571 = vector.shape_cast %570 : vector<4xf32> to vector<4x1xf32>
    %cst_340 = arith.constant 0.000000e+00 : f32
    %572 = vector.broadcast %cst_340 : f32 to vector<4x1xf32>
    %573 = arith.addf %572, %571 : vector<4x1xf32>
    %cst_341 = arith.constant dense<0.000000e+00> : vector<4xf32>
    %574 = vector.multi_reduction <add>, %569, %cst_341 [1] : vector<4x256xf32> to vector<4xf32>
    %575 = vector.shape_cast %574 : vector<4xf32> to vector<4x1xf32>
    %576 = arith.addf %573, %575 : vector<4x1xf32>
    %577 = arith.mulf %302, %302 : vector<4x256xf32>
    %cst_342 = arith.constant dense<0.000000e+00> : vector<4xf32>
    %578 = vector.multi_reduction <add>, %577, %cst_342 [1] : vector<4x256xf32> to vector<4xf32>
    %579 = vector.shape_cast %578 : vector<4xf32> to vector<4x1xf32>
    %cst_343 = arith.constant 0.000000e+00 : f32
    %580 = vector.broadcast %cst_343 : f32 to vector<4x1xf32>
    %581 = arith.addf %580, %579 : vector<4x1xf32>
    %582 = arith.mulf %569, %569 : vector<4x256xf32>
    %cst_344 = arith.constant dense<0.000000e+00> : vector<4xf32>
    %583 = vector.multi_reduction <add>, %582, %cst_344 [1] : vector<4x256xf32> to vector<4xf32>
    %584 = vector.shape_cast %583 : vector<4xf32> to vector<4x1xf32>
    %585 = arith.addf %581, %584 : vector<4x1xf32>
    %cst_345 = arith.constant 0.001953125 : f32
    %586 = vector.broadcast %cst_345 : f32 to vector<4x1xf32>
    %587 = arith.mulf %576, %586 : vector<4x1xf32>
    %cst_346 = arith.constant 0.001953125 : f32
    %588 = vector.broadcast %cst_346 : f32 to vector<4x1xf32>
    %589 = arith.mulf %585, %588 : vector<4x1xf32>
    %590 = arith.mulf %587, %587 : vector<4x1xf32>
    %591 = arith.subf %589, %590 : vector<4x1xf32>
    %cst_347 = arith.constant 9.99999974E-6 : f32
    %592 = vector.broadcast %cst_347 : f32 to vector<4x1xf32>
    %593 = arith.addf %591, %592 : vector<4x1xf32>
    %594 = math.rsqrt %593 : vector<4x1xf32>
    %c1_348 = arith.constant 1 : index
    %c0_349 = arith.constant 0 : index
    %c0_350 = arith.constant 0 : index
    %c0_351 = arith.constant 0 : index
    %595 = vector.load %arg1[%c1_348, %c0_349, %c0_350, %c0_351] : memref<3x2x4x1xf32, #tpu.memory_space<vmem>>, vector<1x1x4x1xf32>
    %596 = vector.shape_cast %595 : vector<1x1x4x1xf32> to vector<4x1xf32>
    %597 = arith.mulf %594, %596 : vector<4x1xf32>
    %c1_352 = arith.constant 1 : index
    %c0_353 = arith.constant 0 : index
    %c0_354 = arith.constant 0 : index
    %c0_355 = arith.constant 0 : index
    %598 = vector.load %arg2[%c1_352, %c0_353, %c0_354, %c0_355] : memref<3x2x4x1xf32, #tpu.memory_space<vmem>>, vector<1x1x4x1xf32>
    %599 = vector.shape_cast %598 : vector<1x1x4x1xf32> to vector<4x1xf32>
    %600 = arith.mulf %587, %597 : vector<4x1xf32>
    %601 = arith.subf %599, %600 : vector<4x1xf32>
    %602 = vector.broadcast %597 : vector<4x1xf32> to vector<4x256xf32>
    %603 = arith.mulf %302, %602 : vector<4x256xf32>
    %604 = vector.broadcast %601 : vector<4x1xf32> to vector<4x256xf32>
    %605 = arith.addf %603, %604 : vector<4x256xf32>
    %c2_i32_356 = arith.constant 2 : i32
    %606 = tpu.dynamic_rotate %605 by %c2_i32_356 dim 1 : vector<4x256xf32>, i32 -> vector<4x256xf32>
    %c254_i32_357 = arith.constant 254 : i32
    %607 = tpu.dynamic_rotate %605 by %c254_i32_357 dim 1 : vector<4x256xf32>, i32 -> vector<4x256xf32>
    %608 = vector.broadcast %6 : vector<1x1xf32> to vector<4x256xf32>
    %609 = arith.mulf %606, %608 : vector<4x256xf32>
    %cst_358 = arith.constant 1.000000e+00 : f32
    %610 = vector.broadcast %cst_358 : f32 to vector<1x1xf32>
    %611 = arith.subf %610, %6 : vector<1x1xf32>
    %612 = vector.broadcast %611 : vector<1x1xf32> to vector<4x256xf32>
    %613 = arith.mulf %607, %612 : vector<4x256xf32>
    %614 = arith.addf %609, %613 : vector<4x256xf32>
    %c0_359 = arith.constant 0 : index
    %c0_360 = arith.constant 0 : index
    %c0_361 = arith.constant 0 : index
    %615 = vector.load %arg5[%c0_359, %c0_360, %c0_361] : memref<5x1x256xf32, #tpu.memory_space<vmem>>, vector<1x1x256xf32>
    %616 = vector.shape_cast %615 : vector<1x1x256xf32> to vector<1x256xf32>
    %617 = vector.broadcast %616 : vector<1x256xf32> to vector<4x256xf32>
    %618 = arith.addf %614, %617 : vector<4x256xf32>
    %619 = arith.maximumf %605, %618 : vector<4x256xf32>
    %c1_i32_362 = arith.constant 1 : i32
    %620 = tpu.dynamic_rotate %605 by %c1_i32_362 dim 1 : vector<4x256xf32>, i32 -> vector<4x256xf32>
    %c255_i32_363 = arith.constant 255 : i32
    %621 = tpu.dynamic_rotate %605 by %c255_i32_363 dim 1 : vector<4x256xf32>, i32 -> vector<4x256xf32>
    %622 = vector.broadcast %6 : vector<1x1xf32> to vector<4x256xf32>
    %623 = arith.mulf %620, %622 : vector<4x256xf32>
    %cst_364 = arith.constant 1.000000e+00 : f32
    %624 = vector.broadcast %cst_364 : f32 to vector<1x1xf32>
    %625 = arith.subf %624, %6 : vector<1x1xf32>
    %626 = vector.broadcast %625 : vector<1x1xf32> to vector<4x256xf32>
    %627 = arith.mulf %621, %626 : vector<4x256xf32>
    %628 = arith.addf %623, %627 : vector<4x256xf32>
    %c1_365 = arith.constant 1 : index
    %c0_366 = arith.constant 0 : index
    %c0_367 = arith.constant 0 : index
    %629 = vector.load %arg5[%c1_365, %c0_366, %c0_367] : memref<5x1x256xf32, #tpu.memory_space<vmem>>, vector<1x1x256xf32>
    %630 = vector.shape_cast %629 : vector<1x1x256xf32> to vector<1x256xf32>
    %631 = vector.broadcast %630 : vector<1x256xf32> to vector<4x256xf32>
    %632 = arith.addf %628, %631 : vector<4x256xf32>
    %633 = arith.maximumf %619, %632 : vector<4x256xf32>
    %c255_i32_368 = arith.constant 255 : i32
    %634 = tpu.dynamic_rotate %605 by %c255_i32_368 dim 1 : vector<4x256xf32>, i32 -> vector<4x256xf32>
    %c1_i32_369 = arith.constant 1 : i32
    %635 = tpu.dynamic_rotate %605 by %c1_i32_369 dim 1 : vector<4x256xf32>, i32 -> vector<4x256xf32>
    %636 = vector.broadcast %6 : vector<1x1xf32> to vector<4x256xf32>
    %637 = arith.mulf %634, %636 : vector<4x256xf32>
    %cst_370 = arith.constant 1.000000e+00 : f32
    %638 = vector.broadcast %cst_370 : f32 to vector<1x1xf32>
    %639 = arith.subf %638, %6 : vector<1x1xf32>
    %640 = vector.broadcast %639 : vector<1x1xf32> to vector<4x256xf32>
    %641 = arith.mulf %635, %640 : vector<4x256xf32>
    %642 = arith.addf %637, %641 : vector<4x256xf32>
    %c3_371 = arith.constant 3 : index
    %c0_372 = arith.constant 0 : index
    %c0_373 = arith.constant 0 : index
    %643 = vector.load %arg5[%c3_371, %c0_372, %c0_373] : memref<5x1x256xf32, #tpu.memory_space<vmem>>, vector<1x1x256xf32>
    %644 = vector.shape_cast %643 : vector<1x1x256xf32> to vector<1x256xf32>
    %645 = vector.broadcast %644 : vector<1x256xf32> to vector<4x256xf32>
    %646 = arith.addf %642, %645 : vector<4x256xf32>
    %647 = arith.maximumf %633, %646 : vector<4x256xf32>
    %c254_i32_374 = arith.constant 254 : i32
    %648 = tpu.dynamic_rotate %605 by %c254_i32_374 dim 1 : vector<4x256xf32>, i32 -> vector<4x256xf32>
    %c2_i32_375 = arith.constant 2 : i32
    %649 = tpu.dynamic_rotate %605 by %c2_i32_375 dim 1 : vector<4x256xf32>, i32 -> vector<4x256xf32>
    %650 = vector.broadcast %6 : vector<1x1xf32> to vector<4x256xf32>
    %651 = arith.mulf %648, %650 : vector<4x256xf32>
    %cst_376 = arith.constant 1.000000e+00 : f32
    %652 = vector.broadcast %cst_376 : f32 to vector<1x1xf32>
    %653 = arith.subf %652, %6 : vector<1x1xf32>
    %654 = vector.broadcast %653 : vector<1x1xf32> to vector<4x256xf32>
    %655 = arith.mulf %649, %654 : vector<4x256xf32>
    %656 = arith.addf %651, %655 : vector<4x256xf32>
    %c4_377 = arith.constant 4 : index
    %c0_378 = arith.constant 0 : index
    %c0_379 = arith.constant 0 : index
    %657 = vector.load %arg5[%c4_377, %c0_378, %c0_379] : memref<5x1x256xf32, #tpu.memory_space<vmem>>, vector<1x1x256xf32>
    %658 = vector.shape_cast %657 : vector<1x1x256xf32> to vector<1x256xf32>
    %659 = vector.broadcast %658 : vector<1x256xf32> to vector<4x256xf32>
    %660 = arith.addf %656, %659 : vector<4x256xf32>
    %661 = arith.maximumf %647, %660 : vector<4x256xf32>
    %c32_i32_380 = arith.constant 32 : i32
    %662 = tpu.dynamic_rotate %661 by %c32_i32_380 dim 1 : vector<4x256xf32>, i32 -> vector<4x256xf32>
    %c224_i32_381 = arith.constant 224 : i32
    %663 = tpu.dynamic_rotate %661 by %c224_i32_381 dim 1 : vector<4x256xf32>, i32 -> vector<4x256xf32>
    %664 = vector.broadcast %6 : vector<1x1xf32> to vector<4x256xf32>
    %665 = arith.mulf %662, %664 : vector<4x256xf32>
    %cst_382 = arith.constant 1.000000e+00 : f32
    %666 = vector.broadcast %cst_382 : f32 to vector<1x1xf32>
    %667 = arith.subf %666, %6 : vector<1x1xf32>
    %668 = vector.broadcast %667 : vector<1x1xf32> to vector<4x256xf32>
    %669 = arith.mulf %663, %668 : vector<4x256xf32>
    %670 = arith.addf %665, %669 : vector<4x256xf32>
    %c0_383 = arith.constant 0 : index
    %c0_384 = arith.constant 0 : index
    %c0_385 = arith.constant 0 : index
    %671 = vector.load %arg6[%c0_383, %c0_384, %c0_385] : memref<5x1x256xf32, #tpu.memory_space<vmem>>, vector<1x1x256xf32>
    %672 = vector.shape_cast %671 : vector<1x1x256xf32> to vector<1x256xf32>
    %673 = vector.broadcast %672 : vector<1x256xf32> to vector<4x256xf32>
    %674 = arith.addf %670, %673 : vector<4x256xf32>
    %675 = arith.maximumf %661, %674 : vector<4x256xf32>
    %c16_i32_386 = arith.constant 16 : i32
    %676 = tpu.dynamic_rotate %661 by %c16_i32_386 dim 1 : vector<4x256xf32>, i32 -> vector<4x256xf32>
    %c240_i32_387 = arith.constant 240 : i32
    %677 = tpu.dynamic_rotate %661 by %c240_i32_387 dim 1 : vector<4x256xf32>, i32 -> vector<4x256xf32>
    %678 = vector.broadcast %6 : vector<1x1xf32> to vector<4x256xf32>
    %679 = arith.mulf %676, %678 : vector<4x256xf32>
    %cst_388 = arith.constant 1.000000e+00 : f32
    %680 = vector.broadcast %cst_388 : f32 to vector<1x1xf32>
    %681 = arith.subf %680, %6 : vector<1x1xf32>
    %682 = vector.broadcast %681 : vector<1x1xf32> to vector<4x256xf32>
    %683 = arith.mulf %677, %682 : vector<4x256xf32>
    %684 = arith.addf %679, %683 : vector<4x256xf32>
    %c1_389 = arith.constant 1 : index
    %c0_390 = arith.constant 0 : index
    %c0_391 = arith.constant 0 : index
    %685 = vector.load %arg6[%c1_389, %c0_390, %c0_391] : memref<5x1x256xf32, #tpu.memory_space<vmem>>, vector<1x1x256xf32>
    %686 = vector.shape_cast %685 : vector<1x1x256xf32> to vector<1x256xf32>
    %687 = vector.broadcast %686 : vector<1x256xf32> to vector<4x256xf32>
    %688 = arith.addf %684, %687 : vector<4x256xf32>
    %689 = arith.maximumf %675, %688 : vector<4x256xf32>
    %c240_i32_392 = arith.constant 240 : i32
    %690 = tpu.dynamic_rotate %661 by %c240_i32_392 dim 1 : vector<4x256xf32>, i32 -> vector<4x256xf32>
    %c16_i32_393 = arith.constant 16 : i32
    %691 = tpu.dynamic_rotate %661 by %c16_i32_393 dim 1 : vector<4x256xf32>, i32 -> vector<4x256xf32>
    %692 = vector.broadcast %6 : vector<1x1xf32> to vector<4x256xf32>
    %693 = arith.mulf %690, %692 : vector<4x256xf32>
    %cst_394 = arith.constant 1.000000e+00 : f32
    %694 = vector.broadcast %cst_394 : f32 to vector<1x1xf32>
    %695 = arith.subf %694, %6 : vector<1x1xf32>
    %696 = vector.broadcast %695 : vector<1x1xf32> to vector<4x256xf32>
    %697 = arith.mulf %691, %696 : vector<4x256xf32>
    %698 = arith.addf %693, %697 : vector<4x256xf32>
    %c3_395 = arith.constant 3 : index
    %c0_396 = arith.constant 0 : index
    %c0_397 = arith.constant 0 : index
    %699 = vector.load %arg6[%c3_395, %c0_396, %c0_397] : memref<5x1x256xf32, #tpu.memory_space<vmem>>, vector<1x1x256xf32>
    %700 = vector.shape_cast %699 : vector<1x1x256xf32> to vector<1x256xf32>
    %701 = vector.broadcast %700 : vector<1x256xf32> to vector<4x256xf32>
    %702 = arith.addf %698, %701 : vector<4x256xf32>
    %703 = arith.maximumf %689, %702 : vector<4x256xf32>
    %c224_i32_398 = arith.constant 224 : i32
    %704 = tpu.dynamic_rotate %661 by %c224_i32_398 dim 1 : vector<4x256xf32>, i32 -> vector<4x256xf32>
    %c32_i32_399 = arith.constant 32 : i32
    %705 = tpu.dynamic_rotate %661 by %c32_i32_399 dim 1 : vector<4x256xf32>, i32 -> vector<4x256xf32>
    %706 = vector.broadcast %6 : vector<1x1xf32> to vector<4x256xf32>
    %707 = arith.mulf %704, %706 : vector<4x256xf32>
    %cst_400 = arith.constant 1.000000e+00 : f32
    %708 = vector.broadcast %cst_400 : f32 to vector<1x1xf32>
    %709 = arith.subf %708, %6 : vector<1x1xf32>
    %710 = vector.broadcast %709 : vector<1x1xf32> to vector<4x256xf32>
    %711 = arith.mulf %705, %710 : vector<4x256xf32>
    %712 = arith.addf %707, %711 : vector<4x256xf32>
    %c4_401 = arith.constant 4 : index
    %c0_402 = arith.constant 0 : index
    %c0_403 = arith.constant 0 : index
    %713 = vector.load %arg6[%c4_401, %c0_402, %c0_403] : memref<5x1x256xf32, #tpu.memory_space<vmem>>, vector<1x1x256xf32>
    %714 = vector.shape_cast %713 : vector<1x1x256xf32> to vector<1x256xf32>
    %715 = vector.broadcast %714 : vector<1x256xf32> to vector<4x256xf32>
    %716 = arith.addf %712, %715 : vector<4x256xf32>
    %717 = arith.maximumf %703, %716 : vector<4x256xf32>
    %c1_404 = arith.constant 1 : index
    %c1_405 = arith.constant 1 : index
    %c1_406 = arith.constant 1 : index
    %c0_407 = arith.constant 0 : index
    %c0_408 = arith.constant 0 : index
    %718 = vector.load %arg3[%c1_404, %c1_405, %c1_406, %c0_407, %c0_408] : memref<3x3x3x4x4xf32, #tpu.memory_space<vmem>>, vector<1x1x1x4x4xf32>
    %719 = vector.shape_cast %718 : vector<1x1x1x4x4xf32> to vector<4x4xf32>
    %cst_409 = arith.constant dense<0.000000e+00> : vector<4x256xf32>
    %720 = tpu.matmul %719, %717, %cst_409 {dimension_numbers = #tpu.dot_dimension_numbers<[1], [0], [0], [1], [0, 0, 1, 1], [], []>} : vector<4x4xf32>, vector<4x256xf32>, vector<4x256xf32> -> vector<4x256xf32>
    %c17_i32_410 = arith.constant 17 : i32
    %721 = tpu.dynamic_rotate %717 by %c17_i32_410 dim 1 : vector<4x256xf32>, i32 -> vector<4x256xf32>
    %c239_i32_411 = arith.constant 239 : i32
    %722 = tpu.dynamic_rotate %717 by %c239_i32_411 dim 1 : vector<4x256xf32>, i32 -> vector<4x256xf32>
    %723 = vector.broadcast %6 : vector<1x1xf32> to vector<4x256xf32>
    %724 = arith.mulf %721, %723 : vector<4x256xf32>
    %cst_412 = arith.constant 1.000000e+00 : f32
    %725 = vector.broadcast %cst_412 : f32 to vector<1x1xf32>
    %726 = arith.subf %725, %6 : vector<1x1xf32>
    %727 = vector.broadcast %726 : vector<1x1xf32> to vector<4x256xf32>
    %728 = arith.mulf %722, %727 : vector<4x256xf32>
    %729 = arith.addf %724, %728 : vector<4x256xf32>
    %c0_413 = arith.constant 0 : index
    %c0_414 = arith.constant 0 : index
    %c0_415 = arith.constant 0 : index
    %c0_416 = arith.constant 0 : index
    %730 = vector.load %arg7[%c0_413, %c0_414, %c0_415, %c0_416] : memref<3x3x1x256xf32, #tpu.memory_space<vmem>>, vector<1x1x1x256xf32>
    %731 = vector.shape_cast %730 : vector<1x1x1x256xf32> to vector<1x256xf32>
    %732 = vector.broadcast %731 : vector<1x256xf32> to vector<4x256xf32>
    %733 = arith.mulf %729, %732 : vector<4x256xf32>
    %c1_417 = arith.constant 1 : index
    %c0_418 = arith.constant 0 : index
    %c0_419 = arith.constant 0 : index
    %c0_420 = arith.constant 0 : index
    %c0_421 = arith.constant 0 : index
    %734 = vector.load %arg3[%c1_417, %c0_418, %c0_419, %c0_420, %c0_421] : memref<3x3x3x4x4xf32, #tpu.memory_space<vmem>>, vector<1x1x1x4x4xf32>
    %735 = vector.shape_cast %734 : vector<1x1x1x4x4xf32> to vector<4x4xf32>
    %cst_422 = arith.constant dense<0.000000e+00> : vector<4x256xf32>
    %736 = tpu.matmul %735, %733, %cst_422 {dimension_numbers = #tpu.dot_dimension_numbers<[1], [0], [0], [1], [0, 0, 1, 1], [], []>} : vector<4x4xf32>, vector<4x256xf32>, vector<4x256xf32> -> vector<4x256xf32>
    %737 = arith.addf %720, %736 : vector<4x256xf32>
    %c16_i32_423 = arith.constant 16 : i32
    %738 = tpu.dynamic_rotate %717 by %c16_i32_423 dim 1 : vector<4x256xf32>, i32 -> vector<4x256xf32>
    %c240_i32_424 = arith.constant 240 : i32
    %739 = tpu.dynamic_rotate %717 by %c240_i32_424 dim 1 : vector<4x256xf32>, i32 -> vector<4x256xf32>
    %740 = vector.broadcast %6 : vector<1x1xf32> to vector<4x256xf32>
    %741 = arith.mulf %738, %740 : vector<4x256xf32>
    %cst_425 = arith.constant 1.000000e+00 : f32
    %742 = vector.broadcast %cst_425 : f32 to vector<1x1xf32>
    %743 = arith.subf %742, %6 : vector<1x1xf32>
    %744 = vector.broadcast %743 : vector<1x1xf32> to vector<4x256xf32>
    %745 = arith.mulf %739, %744 : vector<4x256xf32>
    %746 = arith.addf %741, %745 : vector<4x256xf32>
    %c0_426 = arith.constant 0 : index
    %c1_427 = arith.constant 1 : index
    %c0_428 = arith.constant 0 : index
    %c0_429 = arith.constant 0 : index
    %747 = vector.load %arg7[%c0_426, %c1_427, %c0_428, %c0_429] : memref<3x3x1x256xf32, #tpu.memory_space<vmem>>, vector<1x1x1x256xf32>
    %748 = vector.shape_cast %747 : vector<1x1x1x256xf32> to vector<1x256xf32>
    %749 = vector.broadcast %748 : vector<1x256xf32> to vector<4x256xf32>
    %750 = arith.mulf %746, %749 : vector<4x256xf32>
    %c1_430 = arith.constant 1 : index
    %c0_431 = arith.constant 0 : index
    %c1_432 = arith.constant 1 : index
    %c0_433 = arith.constant 0 : index
    %c0_434 = arith.constant 0 : index
    %751 = vector.load %arg3[%c1_430, %c0_431, %c1_432, %c0_433, %c0_434] : memref<3x3x3x4x4xf32, #tpu.memory_space<vmem>>, vector<1x1x1x4x4xf32>
    %752 = vector.shape_cast %751 : vector<1x1x1x4x4xf32> to vector<4x4xf32>
    %cst_435 = arith.constant dense<0.000000e+00> : vector<4x256xf32>
    %753 = tpu.matmul %752, %750, %cst_435 {dimension_numbers = #tpu.dot_dimension_numbers<[1], [0], [0], [1], [0, 0, 1, 1], [], []>} : vector<4x4xf32>, vector<4x256xf32>, vector<4x256xf32> -> vector<4x256xf32>
    %754 = arith.addf %737, %753 : vector<4x256xf32>
    %c15_i32_436 = arith.constant 15 : i32
    %755 = tpu.dynamic_rotate %717 by %c15_i32_436 dim 1 : vector<4x256xf32>, i32 -> vector<4x256xf32>
    %c241_i32_437 = arith.constant 241 : i32
    %756 = tpu.dynamic_rotate %717 by %c241_i32_437 dim 1 : vector<4x256xf32>, i32 -> vector<4x256xf32>
    %757 = vector.broadcast %6 : vector<1x1xf32> to vector<4x256xf32>
    %758 = arith.mulf %755, %757 : vector<4x256xf32>
    %cst_438 = arith.constant 1.000000e+00 : f32
    %759 = vector.broadcast %cst_438 : f32 to vector<1x1xf32>
    %760 = arith.subf %759, %6 : vector<1x1xf32>
    %761 = vector.broadcast %760 : vector<1x1xf32> to vector<4x256xf32>
    %762 = arith.mulf %756, %761 : vector<4x256xf32>
    %763 = arith.addf %758, %762 : vector<4x256xf32>
    %c0_439 = arith.constant 0 : index
    %c2_440 = arith.constant 2 : index
    %c0_441 = arith.constant 0 : index
    %c0_442 = arith.constant 0 : index
    %764 = vector.load %arg7[%c0_439, %c2_440, %c0_441, %c0_442] : memref<3x3x1x256xf32, #tpu.memory_space<vmem>>, vector<1x1x1x256xf32>
    %765 = vector.shape_cast %764 : vector<1x1x1x256xf32> to vector<1x256xf32>
    %766 = vector.broadcast %765 : vector<1x256xf32> to vector<4x256xf32>
    %767 = arith.mulf %763, %766 : vector<4x256xf32>
    %c1_443 = arith.constant 1 : index
    %c0_444 = arith.constant 0 : index
    %c2_445 = arith.constant 2 : index
    %c0_446 = arith.constant 0 : index
    %c0_447 = arith.constant 0 : index
    %768 = vector.load %arg3[%c1_443, %c0_444, %c2_445, %c0_446, %c0_447] : memref<3x3x3x4x4xf32, #tpu.memory_space<vmem>>, vector<1x1x1x4x4xf32>
    %769 = vector.shape_cast %768 : vector<1x1x1x4x4xf32> to vector<4x4xf32>
    %cst_448 = arith.constant dense<0.000000e+00> : vector<4x256xf32>
    %770 = tpu.matmul %769, %767, %cst_448 {dimension_numbers = #tpu.dot_dimension_numbers<[1], [0], [0], [1], [0, 0, 1, 1], [], []>} : vector<4x4xf32>, vector<4x256xf32>, vector<4x256xf32> -> vector<4x256xf32>
    %771 = arith.addf %754, %770 : vector<4x256xf32>
    %c1_i32_449 = arith.constant 1 : i32
    %772 = tpu.dynamic_rotate %717 by %c1_i32_449 dim 1 : vector<4x256xf32>, i32 -> vector<4x256xf32>
    %c255_i32_450 = arith.constant 255 : i32
    %773 = tpu.dynamic_rotate %717 by %c255_i32_450 dim 1 : vector<4x256xf32>, i32 -> vector<4x256xf32>
    %774 = vector.broadcast %6 : vector<1x1xf32> to vector<4x256xf32>
    %775 = arith.mulf %772, %774 : vector<4x256xf32>
    %cst_451 = arith.constant 1.000000e+00 : f32
    %776 = vector.broadcast %cst_451 : f32 to vector<1x1xf32>
    %777 = arith.subf %776, %6 : vector<1x1xf32>
    %778 = vector.broadcast %777 : vector<1x1xf32> to vector<4x256xf32>
    %779 = arith.mulf %773, %778 : vector<4x256xf32>
    %780 = arith.addf %775, %779 : vector<4x256xf32>
    %c1_452 = arith.constant 1 : index
    %c0_453 = arith.constant 0 : index
    %c0_454 = arith.constant 0 : index
    %c0_455 = arith.constant 0 : index
    %781 = vector.load %arg7[%c1_452, %c0_453, %c0_454, %c0_455] : memref<3x3x1x256xf32, #tpu.memory_space<vmem>>, vector<1x1x1x256xf32>
    %782 = vector.shape_cast %781 : vector<1x1x1x256xf32> to vector<1x256xf32>
    %783 = vector.broadcast %782 : vector<1x256xf32> to vector<4x256xf32>
    %784 = arith.mulf %780, %783 : vector<4x256xf32>
    %c1_456 = arith.constant 1 : index
    %c1_457 = arith.constant 1 : index
    %c0_458 = arith.constant 0 : index
    %c0_459 = arith.constant 0 : index
    %c0_460 = arith.constant 0 : index
    %785 = vector.load %arg3[%c1_456, %c1_457, %c0_458, %c0_459, %c0_460] : memref<3x3x3x4x4xf32, #tpu.memory_space<vmem>>, vector<1x1x1x4x4xf32>
    %786 = vector.shape_cast %785 : vector<1x1x1x4x4xf32> to vector<4x4xf32>
    %cst_461 = arith.constant dense<0.000000e+00> : vector<4x256xf32>
    %787 = tpu.matmul %786, %784, %cst_461 {dimension_numbers = #tpu.dot_dimension_numbers<[1], [0], [0], [1], [0, 0, 1, 1], [], []>} : vector<4x4xf32>, vector<4x256xf32>, vector<4x256xf32> -> vector<4x256xf32>
    %788 = arith.addf %771, %787 : vector<4x256xf32>
    %c255_i32_462 = arith.constant 255 : i32
    %789 = tpu.dynamic_rotate %717 by %c255_i32_462 dim 1 : vector<4x256xf32>, i32 -> vector<4x256xf32>
    %c1_i32_463 = arith.constant 1 : i32
    %790 = tpu.dynamic_rotate %717 by %c1_i32_463 dim 1 : vector<4x256xf32>, i32 -> vector<4x256xf32>
    %791 = vector.broadcast %6 : vector<1x1xf32> to vector<4x256xf32>
    %792 = arith.mulf %789, %791 : vector<4x256xf32>
    %cst_464 = arith.constant 1.000000e+00 : f32
    %793 = vector.broadcast %cst_464 : f32 to vector<1x1xf32>
    %794 = arith.subf %793, %6 : vector<1x1xf32>
    %795 = vector.broadcast %794 : vector<1x1xf32> to vector<4x256xf32>
    %796 = arith.mulf %790, %795 : vector<4x256xf32>
    %797 = arith.addf %792, %796 : vector<4x256xf32>
    %c1_465 = arith.constant 1 : index
    %c2_466 = arith.constant 2 : index
    %c0_467 = arith.constant 0 : index
    %c0_468 = arith.constant 0 : index
    %798 = vector.load %arg7[%c1_465, %c2_466, %c0_467, %c0_468] : memref<3x3x1x256xf32, #tpu.memory_space<vmem>>, vector<1x1x1x256xf32>
    %799 = vector.shape_cast %798 : vector<1x1x1x256xf32> to vector<1x256xf32>
    %800 = vector.broadcast %799 : vector<1x256xf32> to vector<4x256xf32>
    %801 = arith.mulf %797, %800 : vector<4x256xf32>
    %c1_469 = arith.constant 1 : index
    %c1_470 = arith.constant 1 : index
    %c2_471 = arith.constant 2 : index
    %c0_472 = arith.constant 0 : index
    %c0_473 = arith.constant 0 : index
    %802 = vector.load %arg3[%c1_469, %c1_470, %c2_471, %c0_472, %c0_473] : memref<3x3x3x4x4xf32, #tpu.memory_space<vmem>>, vector<1x1x1x4x4xf32>
    %803 = vector.shape_cast %802 : vector<1x1x1x4x4xf32> to vector<4x4xf32>
    %cst_474 = arith.constant dense<0.000000e+00> : vector<4x256xf32>
    %804 = tpu.matmul %803, %801, %cst_474 {dimension_numbers = #tpu.dot_dimension_numbers<[1], [0], [0], [1], [0, 0, 1, 1], [], []>} : vector<4x4xf32>, vector<4x256xf32>, vector<4x256xf32> -> vector<4x256xf32>
    %805 = arith.addf %788, %804 : vector<4x256xf32>
    %c241_i32_475 = arith.constant 241 : i32
    %806 = tpu.dynamic_rotate %717 by %c241_i32_475 dim 1 : vector<4x256xf32>, i32 -> vector<4x256xf32>
    %c15_i32_476 = arith.constant 15 : i32
    %807 = tpu.dynamic_rotate %717 by %c15_i32_476 dim 1 : vector<4x256xf32>, i32 -> vector<4x256xf32>
    %808 = vector.broadcast %6 : vector<1x1xf32> to vector<4x256xf32>
    %809 = arith.mulf %806, %808 : vector<4x256xf32>
    %cst_477 = arith.constant 1.000000e+00 : f32
    %810 = vector.broadcast %cst_477 : f32 to vector<1x1xf32>
    %811 = arith.subf %810, %6 : vector<1x1xf32>
    %812 = vector.broadcast %811 : vector<1x1xf32> to vector<4x256xf32>
    %813 = arith.mulf %807, %812 : vector<4x256xf32>
    %814 = arith.addf %809, %813 : vector<4x256xf32>
    %c2_478 = arith.constant 2 : index
    %c0_479 = arith.constant 0 : index
    %c0_480 = arith.constant 0 : index
    %c0_481 = arith.constant 0 : index
    %815 = vector.load %arg7[%c2_478, %c0_479, %c0_480, %c0_481] : memref<3x3x1x256xf32, #tpu.memory_space<vmem>>, vector<1x1x1x256xf32>
    %816 = vector.shape_cast %815 : vector<1x1x1x256xf32> to vector<1x256xf32>
    %817 = vector.broadcast %816 : vector<1x256xf32> to vector<4x256xf32>
    %818 = arith.mulf %814, %817 : vector<4x256xf32>
    %c1_482 = arith.constant 1 : index
    %c2_483 = arith.constant 2 : index
    %c0_484 = arith.constant 0 : index
    %c0_485 = arith.constant 0 : index
    %c0_486 = arith.constant 0 : index
    %819 = vector.load %arg3[%c1_482, %c2_483, %c0_484, %c0_485, %c0_486] : memref<3x3x3x4x4xf32, #tpu.memory_space<vmem>>, vector<1x1x1x4x4xf32>
    %820 = vector.shape_cast %819 : vector<1x1x1x4x4xf32> to vector<4x4xf32>
    %cst_487 = arith.constant dense<0.000000e+00> : vector<4x256xf32>
    %821 = tpu.matmul %820, %818, %cst_487 {dimension_numbers = #tpu.dot_dimension_numbers<[1], [0], [0], [1], [0, 0, 1, 1], [], []>} : vector<4x4xf32>, vector<4x256xf32>, vector<4x256xf32> -> vector<4x256xf32>
    %822 = arith.addf %805, %821 : vector<4x256xf32>
    %c240_i32_488 = arith.constant 240 : i32
    %823 = tpu.dynamic_rotate %717 by %c240_i32_488 dim 1 : vector<4x256xf32>, i32 -> vector<4x256xf32>
    %c16_i32_489 = arith.constant 16 : i32
    %824 = tpu.dynamic_rotate %717 by %c16_i32_489 dim 1 : vector<4x256xf32>, i32 -> vector<4x256xf32>
    %825 = vector.broadcast %6 : vector<1x1xf32> to vector<4x256xf32>
    %826 = arith.mulf %823, %825 : vector<4x256xf32>
    %cst_490 = arith.constant 1.000000e+00 : f32
    %827 = vector.broadcast %cst_490 : f32 to vector<1x1xf32>
    %828 = arith.subf %827, %6 : vector<1x1xf32>
    %829 = vector.broadcast %828 : vector<1x1xf32> to vector<4x256xf32>
    %830 = arith.mulf %824, %829 : vector<4x256xf32>
    %831 = arith.addf %826, %830 : vector<4x256xf32>
    %c2_491 = arith.constant 2 : index
    %c1_492 = arith.constant 1 : index
    %c0_493 = arith.constant 0 : index
    %c0_494 = arith.constant 0 : index
    %832 = vector.load %arg7[%c2_491, %c1_492, %c0_493, %c0_494] : memref<3x3x1x256xf32, #tpu.memory_space<vmem>>, vector<1x1x1x256xf32>
    %833 = vector.shape_cast %832 : vector<1x1x1x256xf32> to vector<1x256xf32>
    %834 = vector.broadcast %833 : vector<1x256xf32> to vector<4x256xf32>
    %835 = arith.mulf %831, %834 : vector<4x256xf32>
    %c1_495 = arith.constant 1 : index
    %c2_496 = arith.constant 2 : index
    %c1_497 = arith.constant 1 : index
    %c0_498 = arith.constant 0 : index
    %c0_499 = arith.constant 0 : index
    %836 = vector.load %arg3[%c1_495, %c2_496, %c1_497, %c0_498, %c0_499] : memref<3x3x3x4x4xf32, #tpu.memory_space<vmem>>, vector<1x1x1x4x4xf32>
    %837 = vector.shape_cast %836 : vector<1x1x1x4x4xf32> to vector<4x4xf32>
    %cst_500 = arith.constant dense<0.000000e+00> : vector<4x256xf32>
    %838 = tpu.matmul %837, %835, %cst_500 {dimension_numbers = #tpu.dot_dimension_numbers<[1], [0], [0], [1], [0, 0, 1, 1], [], []>} : vector<4x4xf32>, vector<4x256xf32>, vector<4x256xf32> -> vector<4x256xf32>
    %839 = arith.addf %822, %838 : vector<4x256xf32>
    %c239_i32_501 = arith.constant 239 : i32
    %840 = tpu.dynamic_rotate %717 by %c239_i32_501 dim 1 : vector<4x256xf32>, i32 -> vector<4x256xf32>
    %c17_i32_502 = arith.constant 17 : i32
    %841 = tpu.dynamic_rotate %717 by %c17_i32_502 dim 1 : vector<4x256xf32>, i32 -> vector<4x256xf32>
    %842 = vector.broadcast %6 : vector<1x1xf32> to vector<4x256xf32>
    %843 = arith.mulf %840, %842 : vector<4x256xf32>
    %cst_503 = arith.constant 1.000000e+00 : f32
    %844 = vector.broadcast %cst_503 : f32 to vector<1x1xf32>
    %845 = arith.subf %844, %6 : vector<1x1xf32>
    %846 = vector.broadcast %845 : vector<1x1xf32> to vector<4x256xf32>
    %847 = arith.mulf %841, %846 : vector<4x256xf32>
    %848 = arith.addf %843, %847 : vector<4x256xf32>
    %c2_504 = arith.constant 2 : index
    %c2_505 = arith.constant 2 : index
    %c0_506 = arith.constant 0 : index
    %c0_507 = arith.constant 0 : index
    %849 = vector.load %arg7[%c2_504, %c2_505, %c0_506, %c0_507] : memref<3x3x1x256xf32, #tpu.memory_space<vmem>>, vector<1x1x1x256xf32>
    %850 = vector.shape_cast %849 : vector<1x1x1x256xf32> to vector<1x256xf32>
    %851 = vector.broadcast %850 : vector<1x256xf32> to vector<4x256xf32>
    %852 = arith.mulf %848, %851 : vector<4x256xf32>
    %c1_508 = arith.constant 1 : index
    %c2_509 = arith.constant 2 : index
    %c2_510 = arith.constant 2 : index
    %c0_511 = arith.constant 0 : index
    %c0_512 = arith.constant 0 : index
    %853 = vector.load %arg3[%c1_508, %c2_509, %c2_510, %c0_511, %c0_512] : memref<3x3x3x4x4xf32, #tpu.memory_space<vmem>>, vector<1x1x1x4x4xf32>
    %854 = vector.shape_cast %853 : vector<1x1x1x4x4xf32> to vector<4x4xf32>
    %cst_513 = arith.constant dense<0.000000e+00> : vector<4x256xf32>
    %855 = tpu.matmul %854, %852, %cst_513 {dimension_numbers = #tpu.dot_dimension_numbers<[1], [0], [0], [1], [0, 0, 1, 1], [], []>} : vector<4x4xf32>, vector<4x256xf32>, vector<4x256xf32> -> vector<4x256xf32>
    %856 = arith.addf %839, %855 : vector<4x256xf32>
    %857 = arith.addf %302, %856 : vector<4x256xf32>
    %c1_514 = arith.constant 1 : index
    %c0_515 = arith.constant 0 : index
    %c0_516 = arith.constant 0 : index
    %858 = vector.load %arg4[%c1_514, %c0_515, %c0_516] : memref<3x4x1xf32, #tpu.memory_space<vmem>>, vector<1x4x1xf32>
    %859 = vector.shape_cast %858 : vector<1x4x1xf32> to vector<4x1xf32>
    %860 = vector.broadcast %859 : vector<4x1xf32> to vector<4x256xf32>
    %861 = arith.addf %857, %860 : vector<4x256xf32>
    %c1_517 = arith.constant 1 : index
    %c1_518 = arith.constant 1 : index
    %c0_519 = arith.constant 0 : index
    %c0_520 = arith.constant 0 : index
    %862 = vector.load %arg1[%c1_517, %c1_518, %c0_519, %c0_520] : memref<3x2x4x1xf32, #tpu.memory_space<vmem>>, vector<1x1x4x1xf32>
    %863 = vector.shape_cast %862 : vector<1x1x4x1xf32> to vector<4x1xf32>
    %864 = arith.mulf %594, %863 : vector<4x1xf32>
    %c1_521 = arith.constant 1 : index
    %c1_522 = arith.constant 1 : index
    %c0_523 = arith.constant 0 : index
    %c0_524 = arith.constant 0 : index
    %865 = vector.load %arg2[%c1_521, %c1_522, %c0_523, %c0_524] : memref<3x2x4x1xf32, #tpu.memory_space<vmem>>, vector<1x1x4x1xf32>
    %866 = vector.shape_cast %865 : vector<1x1x4x1xf32> to vector<4x1xf32>
    %867 = arith.mulf %587, %864 : vector<4x1xf32>
    %868 = arith.subf %866, %867 : vector<4x1xf32>
    %869 = vector.broadcast %864 : vector<4x1xf32> to vector<4x256xf32>
    %870 = arith.mulf %569, %869 : vector<4x256xf32>
    %871 = vector.broadcast %868 : vector<4x1xf32> to vector<4x256xf32>
    %872 = arith.addf %870, %871 : vector<4x256xf32>
    %c2_i32_525 = arith.constant 2 : i32
    %873 = tpu.dynamic_rotate %872 by %c2_i32_525 dim 1 : vector<4x256xf32>, i32 -> vector<4x256xf32>
    %c254_i32_526 = arith.constant 254 : i32
    %874 = tpu.dynamic_rotate %872 by %c254_i32_526 dim 1 : vector<4x256xf32>, i32 -> vector<4x256xf32>
    %875 = vector.broadcast %6 : vector<1x1xf32> to vector<4x256xf32>
    %876 = arith.mulf %873, %875 : vector<4x256xf32>
    %cst_527 = arith.constant 1.000000e+00 : f32
    %877 = vector.broadcast %cst_527 : f32 to vector<1x1xf32>
    %878 = arith.subf %877, %6 : vector<1x1xf32>
    %879 = vector.broadcast %878 : vector<1x1xf32> to vector<4x256xf32>
    %880 = arith.mulf %874, %879 : vector<4x256xf32>
    %881 = arith.addf %876, %880 : vector<4x256xf32>
    %c0_528 = arith.constant 0 : index
    %c0_529 = arith.constant 0 : index
    %c0_530 = arith.constant 0 : index
    %882 = vector.load %arg5[%c0_528, %c0_529, %c0_530] : memref<5x1x256xf32, #tpu.memory_space<vmem>>, vector<1x1x256xf32>
    %883 = vector.shape_cast %882 : vector<1x1x256xf32> to vector<1x256xf32>
    %884 = vector.broadcast %883 : vector<1x256xf32> to vector<4x256xf32>
    %885 = arith.addf %881, %884 : vector<4x256xf32>
    %886 = arith.maximumf %872, %885 : vector<4x256xf32>
    %c1_i32_531 = arith.constant 1 : i32
    %887 = tpu.dynamic_rotate %872 by %c1_i32_531 dim 1 : vector<4x256xf32>, i32 -> vector<4x256xf32>
    %c255_i32_532 = arith.constant 255 : i32
    %888 = tpu.dynamic_rotate %872 by %c255_i32_532 dim 1 : vector<4x256xf32>, i32 -> vector<4x256xf32>
    %889 = vector.broadcast %6 : vector<1x1xf32> to vector<4x256xf32>
    %890 = arith.mulf %887, %889 : vector<4x256xf32>
    %cst_533 = arith.constant 1.000000e+00 : f32
    %891 = vector.broadcast %cst_533 : f32 to vector<1x1xf32>
    %892 = arith.subf %891, %6 : vector<1x1xf32>
    %893 = vector.broadcast %892 : vector<1x1xf32> to vector<4x256xf32>
    %894 = arith.mulf %888, %893 : vector<4x256xf32>
    %895 = arith.addf %890, %894 : vector<4x256xf32>
    %c1_534 = arith.constant 1 : index
    %c0_535 = arith.constant 0 : index
    %c0_536 = arith.constant 0 : index
    %896 = vector.load %arg5[%c1_534, %c0_535, %c0_536] : memref<5x1x256xf32, #tpu.memory_space<vmem>>, vector<1x1x256xf32>
    %897 = vector.shape_cast %896 : vector<1x1x256xf32> to vector<1x256xf32>
    %898 = vector.broadcast %897 : vector<1x256xf32> to vector<4x256xf32>
    %899 = arith.addf %895, %898 : vector<4x256xf32>
    %900 = arith.maximumf %886, %899 : vector<4x256xf32>
    %c255_i32_537 = arith.constant 255 : i32
    %901 = tpu.dynamic_rotate %872 by %c255_i32_537 dim 1 : vector<4x256xf32>, i32 -> vector<4x256xf32>
    %c1_i32_538 = arith.constant 1 : i32
    %902 = tpu.dynamic_rotate %872 by %c1_i32_538 dim 1 : vector<4x256xf32>, i32 -> vector<4x256xf32>
    %903 = vector.broadcast %6 : vector<1x1xf32> to vector<4x256xf32>
    %904 = arith.mulf %901, %903 : vector<4x256xf32>
    %cst_539 = arith.constant 1.000000e+00 : f32
    %905 = vector.broadcast %cst_539 : f32 to vector<1x1xf32>
    %906 = arith.subf %905, %6 : vector<1x1xf32>
    %907 = vector.broadcast %906 : vector<1x1xf32> to vector<4x256xf32>
    %908 = arith.mulf %902, %907 : vector<4x256xf32>
    %909 = arith.addf %904, %908 : vector<4x256xf32>
    %c3_540 = arith.constant 3 : index
    %c0_541 = arith.constant 0 : index
    %c0_542 = arith.constant 0 : index
    %910 = vector.load %arg5[%c3_540, %c0_541, %c0_542] : memref<5x1x256xf32, #tpu.memory_space<vmem>>, vector<1x1x256xf32>
    %911 = vector.shape_cast %910 : vector<1x1x256xf32> to vector<1x256xf32>
    %912 = vector.broadcast %911 : vector<1x256xf32> to vector<4x256xf32>
    %913 = arith.addf %909, %912 : vector<4x256xf32>
    %914 = arith.maximumf %900, %913 : vector<4x256xf32>
    %c254_i32_543 = arith.constant 254 : i32
    %915 = tpu.dynamic_rotate %872 by %c254_i32_543 dim 1 : vector<4x256xf32>, i32 -> vector<4x256xf32>
    %c2_i32_544 = arith.constant 2 : i32
    %916 = tpu.dynamic_rotate %872 by %c2_i32_544 dim 1 : vector<4x256xf32>, i32 -> vector<4x256xf32>
    %917 = vector.broadcast %6 : vector<1x1xf32> to vector<4x256xf32>
    %918 = arith.mulf %915, %917 : vector<4x256xf32>
    %cst_545 = arith.constant 1.000000e+00 : f32
    %919 = vector.broadcast %cst_545 : f32 to vector<1x1xf32>
    %920 = arith.subf %919, %6 : vector<1x1xf32>
    %921 = vector.broadcast %920 : vector<1x1xf32> to vector<4x256xf32>
    %922 = arith.mulf %916, %921 : vector<4x256xf32>
    %923 = arith.addf %918, %922 : vector<4x256xf32>
    %c4_546 = arith.constant 4 : index
    %c0_547 = arith.constant 0 : index
    %c0_548 = arith.constant 0 : index
    %924 = vector.load %arg5[%c4_546, %c0_547, %c0_548] : memref<5x1x256xf32, #tpu.memory_space<vmem>>, vector<1x1x256xf32>
    %925 = vector.shape_cast %924 : vector<1x1x256xf32> to vector<1x256xf32>
    %926 = vector.broadcast %925 : vector<1x256xf32> to vector<4x256xf32>
    %927 = arith.addf %923, %926 : vector<4x256xf32>
    %928 = arith.maximumf %914, %927 : vector<4x256xf32>
    %c32_i32_549 = arith.constant 32 : i32
    %929 = tpu.dynamic_rotate %928 by %c32_i32_549 dim 1 : vector<4x256xf32>, i32 -> vector<4x256xf32>
    %c224_i32_550 = arith.constant 224 : i32
    %930 = tpu.dynamic_rotate %928 by %c224_i32_550 dim 1 : vector<4x256xf32>, i32 -> vector<4x256xf32>
    %931 = vector.broadcast %6 : vector<1x1xf32> to vector<4x256xf32>
    %932 = arith.mulf %929, %931 : vector<4x256xf32>
    %cst_551 = arith.constant 1.000000e+00 : f32
    %933 = vector.broadcast %cst_551 : f32 to vector<1x1xf32>
    %934 = arith.subf %933, %6 : vector<1x1xf32>
    %935 = vector.broadcast %934 : vector<1x1xf32> to vector<4x256xf32>
    %936 = arith.mulf %930, %935 : vector<4x256xf32>
    %937 = arith.addf %932, %936 : vector<4x256xf32>
    %c0_552 = arith.constant 0 : index
    %c0_553 = arith.constant 0 : index
    %c0_554 = arith.constant 0 : index
    %938 = vector.load %arg6[%c0_552, %c0_553, %c0_554] : memref<5x1x256xf32, #tpu.memory_space<vmem>>, vector<1x1x256xf32>
    %939 = vector.shape_cast %938 : vector<1x1x256xf32> to vector<1x256xf32>
    %940 = vector.broadcast %939 : vector<1x256xf32> to vector<4x256xf32>
    %941 = arith.addf %937, %940 : vector<4x256xf32>
    %942 = arith.maximumf %928, %941 : vector<4x256xf32>
    %c16_i32_555 = arith.constant 16 : i32
    %943 = tpu.dynamic_rotate %928 by %c16_i32_555 dim 1 : vector<4x256xf32>, i32 -> vector<4x256xf32>
    %c240_i32_556 = arith.constant 240 : i32
    %944 = tpu.dynamic_rotate %928 by %c240_i32_556 dim 1 : vector<4x256xf32>, i32 -> vector<4x256xf32>
    %945 = vector.broadcast %6 : vector<1x1xf32> to vector<4x256xf32>
    %946 = arith.mulf %943, %945 : vector<4x256xf32>
    %cst_557 = arith.constant 1.000000e+00 : f32
    %947 = vector.broadcast %cst_557 : f32 to vector<1x1xf32>
    %948 = arith.subf %947, %6 : vector<1x1xf32>
    %949 = vector.broadcast %948 : vector<1x1xf32> to vector<4x256xf32>
    %950 = arith.mulf %944, %949 : vector<4x256xf32>
    %951 = arith.addf %946, %950 : vector<4x256xf32>
    %c1_558 = arith.constant 1 : index
    %c0_559 = arith.constant 0 : index
    %c0_560 = arith.constant 0 : index
    %952 = vector.load %arg6[%c1_558, %c0_559, %c0_560] : memref<5x1x256xf32, #tpu.memory_space<vmem>>, vector<1x1x256xf32>
    %953 = vector.shape_cast %952 : vector<1x1x256xf32> to vector<1x256xf32>
    %954 = vector.broadcast %953 : vector<1x256xf32> to vector<4x256xf32>
    %955 = arith.addf %951, %954 : vector<4x256xf32>
    %956 = arith.maximumf %942, %955 : vector<4x256xf32>
    %c240_i32_561 = arith.constant 240 : i32
    %957 = tpu.dynamic_rotate %928 by %c240_i32_561 dim 1 : vector<4x256xf32>, i32 -> vector<4x256xf32>
    %c16_i32_562 = arith.constant 16 : i32
    %958 = tpu.dynamic_rotate %928 by %c16_i32_562 dim 1 : vector<4x256xf32>, i32 -> vector<4x256xf32>
    %959 = vector.broadcast %6 : vector<1x1xf32> to vector<4x256xf32>
    %960 = arith.mulf %957, %959 : vector<4x256xf32>
    %cst_563 = arith.constant 1.000000e+00 : f32
    %961 = vector.broadcast %cst_563 : f32 to vector<1x1xf32>
    %962 = arith.subf %961, %6 : vector<1x1xf32>
    %963 = vector.broadcast %962 : vector<1x1xf32> to vector<4x256xf32>
    %964 = arith.mulf %958, %963 : vector<4x256xf32>
    %965 = arith.addf %960, %964 : vector<4x256xf32>
    %c3_564 = arith.constant 3 : index
    %c0_565 = arith.constant 0 : index
    %c0_566 = arith.constant 0 : index
    %966 = vector.load %arg6[%c3_564, %c0_565, %c0_566] : memref<5x1x256xf32, #tpu.memory_space<vmem>>, vector<1x1x256xf32>
    %967 = vector.shape_cast %966 : vector<1x1x256xf32> to vector<1x256xf32>
    %968 = vector.broadcast %967 : vector<1x256xf32> to vector<4x256xf32>
    %969 = arith.addf %965, %968 : vector<4x256xf32>
    %970 = arith.maximumf %956, %969 : vector<4x256xf32>
    %c224_i32_567 = arith.constant 224 : i32
    %971 = tpu.dynamic_rotate %928 by %c224_i32_567 dim 1 : vector<4x256xf32>, i32 -> vector<4x256xf32>
    %c32_i32_568 = arith.constant 32 : i32
    %972 = tpu.dynamic_rotate %928 by %c32_i32_568 dim 1 : vector<4x256xf32>, i32 -> vector<4x256xf32>
    %973 = vector.broadcast %6 : vector<1x1xf32> to vector<4x256xf32>
    %974 = arith.mulf %971, %973 : vector<4x256xf32>
    %cst_569 = arith.constant 1.000000e+00 : f32
    %975 = vector.broadcast %cst_569 : f32 to vector<1x1xf32>
    %976 = arith.subf %975, %6 : vector<1x1xf32>
    %977 = vector.broadcast %976 : vector<1x1xf32> to vector<4x256xf32>
    %978 = arith.mulf %972, %977 : vector<4x256xf32>
    %979 = arith.addf %974, %978 : vector<4x256xf32>
    %c4_570 = arith.constant 4 : index
    %c0_571 = arith.constant 0 : index
    %c0_572 = arith.constant 0 : index
    %980 = vector.load %arg6[%c4_570, %c0_571, %c0_572] : memref<5x1x256xf32, #tpu.memory_space<vmem>>, vector<1x1x256xf32>
    %981 = vector.shape_cast %980 : vector<1x1x256xf32> to vector<1x256xf32>
    %982 = vector.broadcast %981 : vector<1x256xf32> to vector<4x256xf32>
    %983 = arith.addf %979, %982 : vector<4x256xf32>
    %984 = arith.maximumf %970, %983 : vector<4x256xf32>
    %c1_573 = arith.constant 1 : index
    %c1_574 = arith.constant 1 : index
    %c1_575 = arith.constant 1 : index
    %c0_576 = arith.constant 0 : index
    %c0_577 = arith.constant 0 : index
    %985 = vector.load %arg3[%c1_573, %c1_574, %c1_575, %c0_576, %c0_577] : memref<3x3x3x4x4xf32, #tpu.memory_space<vmem>>, vector<1x1x1x4x4xf32>
    %986 = vector.shape_cast %985 : vector<1x1x1x4x4xf32> to vector<4x4xf32>
    %cst_578 = arith.constant dense<0.000000e+00> : vector<4x256xf32>
    %987 = tpu.matmul %986, %984, %cst_578 {dimension_numbers = #tpu.dot_dimension_numbers<[1], [0], [0], [1], [0, 0, 1, 1], [], []>} : vector<4x4xf32>, vector<4x256xf32>, vector<4x256xf32> -> vector<4x256xf32>
    %c17_i32_579 = arith.constant 17 : i32
    %988 = tpu.dynamic_rotate %984 by %c17_i32_579 dim 1 : vector<4x256xf32>, i32 -> vector<4x256xf32>
    %c239_i32_580 = arith.constant 239 : i32
    %989 = tpu.dynamic_rotate %984 by %c239_i32_580 dim 1 : vector<4x256xf32>, i32 -> vector<4x256xf32>
    %990 = vector.broadcast %6 : vector<1x1xf32> to vector<4x256xf32>
    %991 = arith.mulf %988, %990 : vector<4x256xf32>
    %cst_581 = arith.constant 1.000000e+00 : f32
    %992 = vector.broadcast %cst_581 : f32 to vector<1x1xf32>
    %993 = arith.subf %992, %6 : vector<1x1xf32>
    %994 = vector.broadcast %993 : vector<1x1xf32> to vector<4x256xf32>
    %995 = arith.mulf %989, %994 : vector<4x256xf32>
    %996 = arith.addf %991, %995 : vector<4x256xf32>
    %c0_582 = arith.constant 0 : index
    %c0_583 = arith.constant 0 : index
    %c0_584 = arith.constant 0 : index
    %c0_585 = arith.constant 0 : index
    %997 = vector.load %arg7[%c0_582, %c0_583, %c0_584, %c0_585] : memref<3x3x1x256xf32, #tpu.memory_space<vmem>>, vector<1x1x1x256xf32>
    %998 = vector.shape_cast %997 : vector<1x1x1x256xf32> to vector<1x256xf32>
    %999 = vector.broadcast %998 : vector<1x256xf32> to vector<4x256xf32>
    %1000 = arith.mulf %996, %999 : vector<4x256xf32>
    %c1_586 = arith.constant 1 : index
    %c0_587 = arith.constant 0 : index
    %c0_588 = arith.constant 0 : index
    %c0_589 = arith.constant 0 : index
    %c0_590 = arith.constant 0 : index
    %1001 = vector.load %arg3[%c1_586, %c0_587, %c0_588, %c0_589, %c0_590] : memref<3x3x3x4x4xf32, #tpu.memory_space<vmem>>, vector<1x1x1x4x4xf32>
    %1002 = vector.shape_cast %1001 : vector<1x1x1x4x4xf32> to vector<4x4xf32>
    %cst_591 = arith.constant dense<0.000000e+00> : vector<4x256xf32>
    %1003 = tpu.matmul %1002, %1000, %cst_591 {dimension_numbers = #tpu.dot_dimension_numbers<[1], [0], [0], [1], [0, 0, 1, 1], [], []>} : vector<4x4xf32>, vector<4x256xf32>, vector<4x256xf32> -> vector<4x256xf32>
    %1004 = arith.addf %987, %1003 : vector<4x256xf32>
    %c16_i32_592 = arith.constant 16 : i32
    %1005 = tpu.dynamic_rotate %984 by %c16_i32_592 dim 1 : vector<4x256xf32>, i32 -> vector<4x256xf32>
    %c240_i32_593 = arith.constant 240 : i32
    %1006 = tpu.dynamic_rotate %984 by %c240_i32_593 dim 1 : vector<4x256xf32>, i32 -> vector<4x256xf32>
    %1007 = vector.broadcast %6 : vector<1x1xf32> to vector<4x256xf32>
    %1008 = arith.mulf %1005, %1007 : vector<4x256xf32>
    %cst_594 = arith.constant 1.000000e+00 : f32
    %1009 = vector.broadcast %cst_594 : f32 to vector<1x1xf32>
    %1010 = arith.subf %1009, %6 : vector<1x1xf32>
    %1011 = vector.broadcast %1010 : vector<1x1xf32> to vector<4x256xf32>
    %1012 = arith.mulf %1006, %1011 : vector<4x256xf32>
    %1013 = arith.addf %1008, %1012 : vector<4x256xf32>
    %c0_595 = arith.constant 0 : index
    %c1_596 = arith.constant 1 : index
    %c0_597 = arith.constant 0 : index
    %c0_598 = arith.constant 0 : index
    %1014 = vector.load %arg7[%c0_595, %c1_596, %c0_597, %c0_598] : memref<3x3x1x256xf32, #tpu.memory_space<vmem>>, vector<1x1x1x256xf32>
    %1015 = vector.shape_cast %1014 : vector<1x1x1x256xf32> to vector<1x256xf32>
    %1016 = vector.broadcast %1015 : vector<1x256xf32> to vector<4x256xf32>
    %1017 = arith.mulf %1013, %1016 : vector<4x256xf32>
    %c1_599 = arith.constant 1 : index
    %c0_600 = arith.constant 0 : index
    %c1_601 = arith.constant 1 : index
    %c0_602 = arith.constant 0 : index
    %c0_603 = arith.constant 0 : index
    %1018 = vector.load %arg3[%c1_599, %c0_600, %c1_601, %c0_602, %c0_603] : memref<3x3x3x4x4xf32, #tpu.memory_space<vmem>>, vector<1x1x1x4x4xf32>
    %1019 = vector.shape_cast %1018 : vector<1x1x1x4x4xf32> to vector<4x4xf32>
    %cst_604 = arith.constant dense<0.000000e+00> : vector<4x256xf32>
    %1020 = tpu.matmul %1019, %1017, %cst_604 {dimension_numbers = #tpu.dot_dimension_numbers<[1], [0], [0], [1], [0, 0, 1, 1], [], []>} : vector<4x4xf32>, vector<4x256xf32>, vector<4x256xf32> -> vector<4x256xf32>
    %1021 = arith.addf %1004, %1020 : vector<4x256xf32>
    %c15_i32_605 = arith.constant 15 : i32
    %1022 = tpu.dynamic_rotate %984 by %c15_i32_605 dim 1 : vector<4x256xf32>, i32 -> vector<4x256xf32>
    %c241_i32_606 = arith.constant 241 : i32
    %1023 = tpu.dynamic_rotate %984 by %c241_i32_606 dim 1 : vector<4x256xf32>, i32 -> vector<4x256xf32>
    %1024 = vector.broadcast %6 : vector<1x1xf32> to vector<4x256xf32>
    %1025 = arith.mulf %1022, %1024 : vector<4x256xf32>
    %cst_607 = arith.constant 1.000000e+00 : f32
    %1026 = vector.broadcast %cst_607 : f32 to vector<1x1xf32>
    %1027 = arith.subf %1026, %6 : vector<1x1xf32>
    %1028 = vector.broadcast %1027 : vector<1x1xf32> to vector<4x256xf32>
    %1029 = arith.mulf %1023, %1028 : vector<4x256xf32>
    %1030 = arith.addf %1025, %1029 : vector<4x256xf32>
    %c0_608 = arith.constant 0 : index
    %c2_609 = arith.constant 2 : index
    %c0_610 = arith.constant 0 : index
    %c0_611 = arith.constant 0 : index
    %1031 = vector.load %arg7[%c0_608, %c2_609, %c0_610, %c0_611] : memref<3x3x1x256xf32, #tpu.memory_space<vmem>>, vector<1x1x1x256xf32>
    %1032 = vector.shape_cast %1031 : vector<1x1x1x256xf32> to vector<1x256xf32>
    %1033 = vector.broadcast %1032 : vector<1x256xf32> to vector<4x256xf32>
    %1034 = arith.mulf %1030, %1033 : vector<4x256xf32>
    %c1_612 = arith.constant 1 : index
    %c0_613 = arith.constant 0 : index
    %c2_614 = arith.constant 2 : index
    %c0_615 = arith.constant 0 : index
    %c0_616 = arith.constant 0 : index
    %1035 = vector.load %arg3[%c1_612, %c0_613, %c2_614, %c0_615, %c0_616] : memref<3x3x3x4x4xf32, #tpu.memory_space<vmem>>, vector<1x1x1x4x4xf32>
    %1036 = vector.shape_cast %1035 : vector<1x1x1x4x4xf32> to vector<4x4xf32>
    %cst_617 = arith.constant dense<0.000000e+00> : vector<4x256xf32>
    %1037 = tpu.matmul %1036, %1034, %cst_617 {dimension_numbers = #tpu.dot_dimension_numbers<[1], [0], [0], [1], [0, 0, 1, 1], [], []>} : vector<4x4xf32>, vector<4x256xf32>, vector<4x256xf32> -> vector<4x256xf32>
    %1038 = arith.addf %1021, %1037 : vector<4x256xf32>
    %c1_i32_618 = arith.constant 1 : i32
    %1039 = tpu.dynamic_rotate %984 by %c1_i32_618 dim 1 : vector<4x256xf32>, i32 -> vector<4x256xf32>
    %c255_i32_619 = arith.constant 255 : i32
    %1040 = tpu.dynamic_rotate %984 by %c255_i32_619 dim 1 : vector<4x256xf32>, i32 -> vector<4x256xf32>
    %1041 = vector.broadcast %6 : vector<1x1xf32> to vector<4x256xf32>
    %1042 = arith.mulf %1039, %1041 : vector<4x256xf32>
    %cst_620 = arith.constant 1.000000e+00 : f32
    %1043 = vector.broadcast %cst_620 : f32 to vector<1x1xf32>
    %1044 = arith.subf %1043, %6 : vector<1x1xf32>
    %1045 = vector.broadcast %1044 : vector<1x1xf32> to vector<4x256xf32>
    %1046 = arith.mulf %1040, %1045 : vector<4x256xf32>
    %1047 = arith.addf %1042, %1046 : vector<4x256xf32>
    %c1_621 = arith.constant 1 : index
    %c0_622 = arith.constant 0 : index
    %c0_623 = arith.constant 0 : index
    %c0_624 = arith.constant 0 : index
    %1048 = vector.load %arg7[%c1_621, %c0_622, %c0_623, %c0_624] : memref<3x3x1x256xf32, #tpu.memory_space<vmem>>, vector<1x1x1x256xf32>
    %1049 = vector.shape_cast %1048 : vector<1x1x1x256xf32> to vector<1x256xf32>
    %1050 = vector.broadcast %1049 : vector<1x256xf32> to vector<4x256xf32>
    %1051 = arith.mulf %1047, %1050 : vector<4x256xf32>
    %c1_625 = arith.constant 1 : index
    %c1_626 = arith.constant 1 : index
    %c0_627 = arith.constant 0 : index
    %c0_628 = arith.constant 0 : index
    %c0_629 = arith.constant 0 : index
    %1052 = vector.load %arg3[%c1_625, %c1_626, %c0_627, %c0_628, %c0_629] : memref<3x3x3x4x4xf32, #tpu.memory_space<vmem>>, vector<1x1x1x4x4xf32>
    %1053 = vector.shape_cast %1052 : vector<1x1x1x4x4xf32> to vector<4x4xf32>
    %cst_630 = arith.constant dense<0.000000e+00> : vector<4x256xf32>
    %1054 = tpu.matmul %1053, %1051, %cst_630 {dimension_numbers = #tpu.dot_dimension_numbers<[1], [0], [0], [1], [0, 0, 1, 1], [], []>} : vector<4x4xf32>, vector<4x256xf32>, vector<4x256xf32> -> vector<4x256xf32>
    %1055 = arith.addf %1038, %1054 : vector<4x256xf32>
    %c255_i32_631 = arith.constant 255 : i32
    %1056 = tpu.dynamic_rotate %984 by %c255_i32_631 dim 1 : vector<4x256xf32>, i32 -> vector<4x256xf32>
    %c1_i32_632 = arith.constant 1 : i32
    %1057 = tpu.dynamic_rotate %984 by %c1_i32_632 dim 1 : vector<4x256xf32>, i32 -> vector<4x256xf32>
    %1058 = vector.broadcast %6 : vector<1x1xf32> to vector<4x256xf32>
    %1059 = arith.mulf %1056, %1058 : vector<4x256xf32>
    %cst_633 = arith.constant 1.000000e+00 : f32
    %1060 = vector.broadcast %cst_633 : f32 to vector<1x1xf32>
    %1061 = arith.subf %1060, %6 : vector<1x1xf32>
    %1062 = vector.broadcast %1061 : vector<1x1xf32> to vector<4x256xf32>
    %1063 = arith.mulf %1057, %1062 : vector<4x256xf32>
    %1064 = arith.addf %1059, %1063 : vector<4x256xf32>
    %c1_634 = arith.constant 1 : index
    %c2_635 = arith.constant 2 : index
    %c0_636 = arith.constant 0 : index
    %c0_637 = arith.constant 0 : index
    %1065 = vector.load %arg7[%c1_634, %c2_635, %c0_636, %c0_637] : memref<3x3x1x256xf32, #tpu.memory_space<vmem>>, vector<1x1x1x256xf32>
    %1066 = vector.shape_cast %1065 : vector<1x1x1x256xf32> to vector<1x256xf32>
    %1067 = vector.broadcast %1066 : vector<1x256xf32> to vector<4x256xf32>
    %1068 = arith.mulf %1064, %1067 : vector<4x256xf32>
    %c1_638 = arith.constant 1 : index
    %c1_639 = arith.constant 1 : index
    %c2_640 = arith.constant 2 : index
    %c0_641 = arith.constant 0 : index
    %c0_642 = arith.constant 0 : index
    %1069 = vector.load %arg3[%c1_638, %c1_639, %c2_640, %c0_641, %c0_642] : memref<3x3x3x4x4xf32, #tpu.memory_space<vmem>>, vector<1x1x1x4x4xf32>
    %1070 = vector.shape_cast %1069 : vector<1x1x1x4x4xf32> to vector<4x4xf32>
    %cst_643 = arith.constant dense<0.000000e+00> : vector<4x256xf32>
    %1071 = tpu.matmul %1070, %1068, %cst_643 {dimension_numbers = #tpu.dot_dimension_numbers<[1], [0], [0], [1], [0, 0, 1, 1], [], []>} : vector<4x4xf32>, vector<4x256xf32>, vector<4x256xf32> -> vector<4x256xf32>
    %1072 = arith.addf %1055, %1071 : vector<4x256xf32>
    %c241_i32_644 = arith.constant 241 : i32
    %1073 = tpu.dynamic_rotate %984 by %c241_i32_644 dim 1 : vector<4x256xf32>, i32 -> vector<4x256xf32>
    %c15_i32_645 = arith.constant 15 : i32
    %1074 = tpu.dynamic_rotate %984 by %c15_i32_645 dim 1 : vector<4x256xf32>, i32 -> vector<4x256xf32>
    %1075 = vector.broadcast %6 : vector<1x1xf32> to vector<4x256xf32>
    %1076 = arith.mulf %1073, %1075 : vector<4x256xf32>
    %cst_646 = arith.constant 1.000000e+00 : f32
    %1077 = vector.broadcast %cst_646 : f32 to vector<1x1xf32>
    %1078 = arith.subf %1077, %6 : vector<1x1xf32>
    %1079 = vector.broadcast %1078 : vector<1x1xf32> to vector<4x256xf32>
    %1080 = arith.mulf %1074, %1079 : vector<4x256xf32>
    %1081 = arith.addf %1076, %1080 : vector<4x256xf32>
    %c2_647 = arith.constant 2 : index
    %c0_648 = arith.constant 0 : index
    %c0_649 = arith.constant 0 : index
    %c0_650 = arith.constant 0 : index
    %1082 = vector.load %arg7[%c2_647, %c0_648, %c0_649, %c0_650] : memref<3x3x1x256xf32, #tpu.memory_space<vmem>>, vector<1x1x1x256xf32>
    %1083 = vector.shape_cast %1082 : vector<1x1x1x256xf32> to vector<1x256xf32>
    %1084 = vector.broadcast %1083 : vector<1x256xf32> to vector<4x256xf32>
    %1085 = arith.mulf %1081, %1084 : vector<4x256xf32>
    %c1_651 = arith.constant 1 : index
    %c2_652 = arith.constant 2 : index
    %c0_653 = arith.constant 0 : index
    %c0_654 = arith.constant 0 : index
    %c0_655 = arith.constant 0 : index
    %1086 = vector.load %arg3[%c1_651, %c2_652, %c0_653, %c0_654, %c0_655] : memref<3x3x3x4x4xf32, #tpu.memory_space<vmem>>, vector<1x1x1x4x4xf32>
    %1087 = vector.shape_cast %1086 : vector<1x1x1x4x4xf32> to vector<4x4xf32>
    %cst_656 = arith.constant dense<0.000000e+00> : vector<4x256xf32>
    %1088 = tpu.matmul %1087, %1085, %cst_656 {dimension_numbers = #tpu.dot_dimension_numbers<[1], [0], [0], [1], [0, 0, 1, 1], [], []>} : vector<4x4xf32>, vector<4x256xf32>, vector<4x256xf32> -> vector<4x256xf32>
    %1089 = arith.addf %1072, %1088 : vector<4x256xf32>
    %c240_i32_657 = arith.constant 240 : i32
    %1090 = tpu.dynamic_rotate %984 by %c240_i32_657 dim 1 : vector<4x256xf32>, i32 -> vector<4x256xf32>
    %c16_i32_658 = arith.constant 16 : i32
    %1091 = tpu.dynamic_rotate %984 by %c16_i32_658 dim 1 : vector<4x256xf32>, i32 -> vector<4x256xf32>
    %1092 = vector.broadcast %6 : vector<1x1xf32> to vector<4x256xf32>
    %1093 = arith.mulf %1090, %1092 : vector<4x256xf32>
    %cst_659 = arith.constant 1.000000e+00 : f32
    %1094 = vector.broadcast %cst_659 : f32 to vector<1x1xf32>
    %1095 = arith.subf %1094, %6 : vector<1x1xf32>
    %1096 = vector.broadcast %1095 : vector<1x1xf32> to vector<4x256xf32>
    %1097 = arith.mulf %1091, %1096 : vector<4x256xf32>
    %1098 = arith.addf %1093, %1097 : vector<4x256xf32>
    %c2_660 = arith.constant 2 : index
    %c1_661 = arith.constant 1 : index
    %c0_662 = arith.constant 0 : index
    %c0_663 = arith.constant 0 : index
    %1099 = vector.load %arg7[%c2_660, %c1_661, %c0_662, %c0_663] : memref<3x3x1x256xf32, #tpu.memory_space<vmem>>, vector<1x1x1x256xf32>
    %1100 = vector.shape_cast %1099 : vector<1x1x1x256xf32> to vector<1x256xf32>
    %1101 = vector.broadcast %1100 : vector<1x256xf32> to vector<4x256xf32>
    %1102 = arith.mulf %1098, %1101 : vector<4x256xf32>
    %c1_664 = arith.constant 1 : index
    %c2_665 = arith.constant 2 : index
    %c1_666 = arith.constant 1 : index
    %c0_667 = arith.constant 0 : index
    %c0_668 = arith.constant 0 : index
    %1103 = vector.load %arg3[%c1_664, %c2_665, %c1_666, %c0_667, %c0_668] : memref<3x3x3x4x4xf32, #tpu.memory_space<vmem>>, vector<1x1x1x4x4xf32>
    %1104 = vector.shape_cast %1103 : vector<1x1x1x4x4xf32> to vector<4x4xf32>
    %cst_669 = arith.constant dense<0.000000e+00> : vector<4x256xf32>
    %1105 = tpu.matmul %1104, %1102, %cst_669 {dimension_numbers = #tpu.dot_dimension_numbers<[1], [0], [0], [1], [0, 0, 1, 1], [], []>} : vector<4x4xf32>, vector<4x256xf32>, vector<4x256xf32> -> vector<4x256xf32>
    %1106 = arith.addf %1089, %1105 : vector<4x256xf32>
    %c239_i32_670 = arith.constant 239 : i32
    %1107 = tpu.dynamic_rotate %984 by %c239_i32_670 dim 1 : vector<4x256xf32>, i32 -> vector<4x256xf32>
    %c17_i32_671 = arith.constant 17 : i32
    %1108 = tpu.dynamic_rotate %984 by %c17_i32_671 dim 1 : vector<4x256xf32>, i32 -> vector<4x256xf32>
    %1109 = vector.broadcast %6 : vector<1x1xf32> to vector<4x256xf32>
    %1110 = arith.mulf %1107, %1109 : vector<4x256xf32>
    %cst_672 = arith.constant 1.000000e+00 : f32
    %1111 = vector.broadcast %cst_672 : f32 to vector<1x1xf32>
    %1112 = arith.subf %1111, %6 : vector<1x1xf32>
    %1113 = vector.broadcast %1112 : vector<1x1xf32> to vector<4x256xf32>
    %1114 = arith.mulf %1108, %1113 : vector<4x256xf32>
    %1115 = arith.addf %1110, %1114 : vector<4x256xf32>
    %c2_673 = arith.constant 2 : index
    %c2_674 = arith.constant 2 : index
    %c0_675 = arith.constant 0 : index
    %c0_676 = arith.constant 0 : index
    %1116 = vector.load %arg7[%c2_673, %c2_674, %c0_675, %c0_676] : memref<3x3x1x256xf32, #tpu.memory_space<vmem>>, vector<1x1x1x256xf32>
    %1117 = vector.shape_cast %1116 : vector<1x1x1x256xf32> to vector<1x256xf32>
    %1118 = vector.broadcast %1117 : vector<1x256xf32> to vector<4x256xf32>
    %1119 = arith.mulf %1115, %1118 : vector<4x256xf32>
    %c1_677 = arith.constant 1 : index
    %c2_678 = arith.constant 2 : index
    %c2_679 = arith.constant 2 : index
    %c0_680 = arith.constant 0 : index
    %c0_681 = arith.constant 0 : index
    %1120 = vector.load %arg3[%c1_677, %c2_678, %c2_679, %c0_680, %c0_681] : memref<3x3x3x4x4xf32, #tpu.memory_space<vmem>>, vector<1x1x1x4x4xf32>
    %1121 = vector.shape_cast %1120 : vector<1x1x1x4x4xf32> to vector<4x4xf32>
    %cst_682 = arith.constant dense<0.000000e+00> : vector<4x256xf32>
    %1122 = tpu.matmul %1121, %1119, %cst_682 {dimension_numbers = #tpu.dot_dimension_numbers<[1], [0], [0], [1], [0, 0, 1, 1], [], []>} : vector<4x4xf32>, vector<4x256xf32>, vector<4x256xf32> -> vector<4x256xf32>
    %1123 = arith.addf %1106, %1122 : vector<4x256xf32>
    %1124 = arith.addf %569, %1123 : vector<4x256xf32>
    %c1_683 = arith.constant 1 : index
    %c0_684 = arith.constant 0 : index
    %c0_685 = arith.constant 0 : index
    %1125 = vector.load %arg4[%c1_683, %c0_684, %c0_685] : memref<3x4x1xf32, #tpu.memory_space<vmem>>, vector<1x4x1xf32>
    %1126 = vector.shape_cast %1125 : vector<1x4x1xf32> to vector<4x1xf32>
    %1127 = vector.broadcast %1126 : vector<4x1xf32> to vector<4x256xf32>
    %1128 = arith.addf %1124, %1127 : vector<4x256xf32>
    %cst_686 = arith.constant dense<0.000000e+00> : vector<4xf32>
    %1129 = vector.multi_reduction <add>, %861, %cst_686 [1] : vector<4x256xf32> to vector<4xf32>
    %1130 = vector.shape_cast %1129 : vector<4xf32> to vector<4x1xf32>
    %cst_687 = arith.constant 0.000000e+00 : f32
    %1131 = vector.broadcast %cst_687 : f32 to vector<4x1xf32>
    %1132 = arith.addf %1131, %1130 : vector<4x1xf32>
    %cst_688 = arith.constant dense<0.000000e+00> : vector<4xf32>
    %1133 = vector.multi_reduction <add>, %1128, %cst_688 [1] : vector<4x256xf32> to vector<4xf32>
    %1134 = vector.shape_cast %1133 : vector<4xf32> to vector<4x1xf32>
    %1135 = arith.addf %1132, %1134 : vector<4x1xf32>
    %1136 = arith.mulf %861, %861 : vector<4x256xf32>
    %cst_689 = arith.constant dense<0.000000e+00> : vector<4xf32>
    %1137 = vector.multi_reduction <add>, %1136, %cst_689 [1] : vector<4x256xf32> to vector<4xf32>
    %1138 = vector.shape_cast %1137 : vector<4xf32> to vector<4x1xf32>
    %cst_690 = arith.constant 0.000000e+00 : f32
    %1139 = vector.broadcast %cst_690 : f32 to vector<4x1xf32>
    %1140 = arith.addf %1139, %1138 : vector<4x1xf32>
    %1141 = arith.mulf %1128, %1128 : vector<4x256xf32>
    %cst_691 = arith.constant dense<0.000000e+00> : vector<4xf32>
    %1142 = vector.multi_reduction <add>, %1141, %cst_691 [1] : vector<4x256xf32> to vector<4xf32>
    %1143 = vector.shape_cast %1142 : vector<4xf32> to vector<4x1xf32>
    %1144 = arith.addf %1140, %1143 : vector<4x1xf32>
    %cst_692 = arith.constant 0.001953125 : f32
    %1145 = vector.broadcast %cst_692 : f32 to vector<4x1xf32>
    %1146 = arith.mulf %1135, %1145 : vector<4x1xf32>
    %cst_693 = arith.constant 0.001953125 : f32
    %1147 = vector.broadcast %cst_693 : f32 to vector<4x1xf32>
    %1148 = arith.mulf %1144, %1147 : vector<4x1xf32>
    %1149 = arith.mulf %1146, %1146 : vector<4x1xf32>
    %1150 = arith.subf %1148, %1149 : vector<4x1xf32>
    %cst_694 = arith.constant 9.99999974E-6 : f32
    %1151 = vector.broadcast %cst_694 : f32 to vector<4x1xf32>
    %1152 = arith.addf %1150, %1151 : vector<4x1xf32>
    %1153 = math.rsqrt %1152 : vector<4x1xf32>
    %c2_695 = arith.constant 2 : index
    %c0_696 = arith.constant 0 : index
    %c0_697 = arith.constant 0 : index
    %c0_698 = arith.constant 0 : index
    %1154 = vector.load %arg1[%c2_695, %c0_696, %c0_697, %c0_698] : memref<3x2x4x1xf32, #tpu.memory_space<vmem>>, vector<1x1x4x1xf32>
    %1155 = vector.shape_cast %1154 : vector<1x1x4x1xf32> to vector<4x1xf32>
    %1156 = arith.mulf %1153, %1155 : vector<4x1xf32>
    %c2_699 = arith.constant 2 : index
    %c0_700 = arith.constant 0 : index
    %c0_701 = arith.constant 0 : index
    %c0_702 = arith.constant 0 : index
    %1157 = vector.load %arg2[%c2_699, %c0_700, %c0_701, %c0_702] : memref<3x2x4x1xf32, #tpu.memory_space<vmem>>, vector<1x1x4x1xf32>
    %1158 = vector.shape_cast %1157 : vector<1x1x4x1xf32> to vector<4x1xf32>
    %1159 = arith.mulf %1146, %1156 : vector<4x1xf32>
    %1160 = arith.subf %1158, %1159 : vector<4x1xf32>
    %1161 = vector.broadcast %1156 : vector<4x1xf32> to vector<4x256xf32>
    %1162 = arith.mulf %861, %1161 : vector<4x256xf32>
    %1163 = vector.broadcast %1160 : vector<4x1xf32> to vector<4x256xf32>
    %1164 = arith.addf %1162, %1163 : vector<4x256xf32>
    %c2_i32_703 = arith.constant 2 : i32
    %1165 = tpu.dynamic_rotate %1164 by %c2_i32_703 dim 1 : vector<4x256xf32>, i32 -> vector<4x256xf32>
    %c254_i32_704 = arith.constant 254 : i32
    %1166 = tpu.dynamic_rotate %1164 by %c254_i32_704 dim 1 : vector<4x256xf32>, i32 -> vector<4x256xf32>
    %1167 = vector.broadcast %6 : vector<1x1xf32> to vector<4x256xf32>
    %1168 = arith.mulf %1165, %1167 : vector<4x256xf32>
    %cst_705 = arith.constant 1.000000e+00 : f32
    %1169 = vector.broadcast %cst_705 : f32 to vector<1x1xf32>
    %1170 = arith.subf %1169, %6 : vector<1x1xf32>
    %1171 = vector.broadcast %1170 : vector<1x1xf32> to vector<4x256xf32>
    %1172 = arith.mulf %1166, %1171 : vector<4x256xf32>
    %1173 = arith.addf %1168, %1172 : vector<4x256xf32>
    %c0_706 = arith.constant 0 : index
    %c0_707 = arith.constant 0 : index
    %c0_708 = arith.constant 0 : index
    %1174 = vector.load %arg5[%c0_706, %c0_707, %c0_708] : memref<5x1x256xf32, #tpu.memory_space<vmem>>, vector<1x1x256xf32>
    %1175 = vector.shape_cast %1174 : vector<1x1x256xf32> to vector<1x256xf32>
    %1176 = vector.broadcast %1175 : vector<1x256xf32> to vector<4x256xf32>
    %1177 = arith.addf %1173, %1176 : vector<4x256xf32>
    %1178 = arith.maximumf %1164, %1177 : vector<4x256xf32>
    %c1_i32_709 = arith.constant 1 : i32
    %1179 = tpu.dynamic_rotate %1164 by %c1_i32_709 dim 1 : vector<4x256xf32>, i32 -> vector<4x256xf32>
    %c255_i32_710 = arith.constant 255 : i32
    %1180 = tpu.dynamic_rotate %1164 by %c255_i32_710 dim 1 : vector<4x256xf32>, i32 -> vector<4x256xf32>
    %1181 = vector.broadcast %6 : vector<1x1xf32> to vector<4x256xf32>
    %1182 = arith.mulf %1179, %1181 : vector<4x256xf32>
    %cst_711 = arith.constant 1.000000e+00 : f32
    %1183 = vector.broadcast %cst_711 : f32 to vector<1x1xf32>
    %1184 = arith.subf %1183, %6 : vector<1x1xf32>
    %1185 = vector.broadcast %1184 : vector<1x1xf32> to vector<4x256xf32>
    %1186 = arith.mulf %1180, %1185 : vector<4x256xf32>
    %1187 = arith.addf %1182, %1186 : vector<4x256xf32>
    %c1_712 = arith.constant 1 : index
    %c0_713 = arith.constant 0 : index
    %c0_714 = arith.constant 0 : index
    %1188 = vector.load %arg5[%c1_712, %c0_713, %c0_714] : memref<5x1x256xf32, #tpu.memory_space<vmem>>, vector<1x1x256xf32>
    %1189 = vector.shape_cast %1188 : vector<1x1x256xf32> to vector<1x256xf32>
    %1190 = vector.broadcast %1189 : vector<1x256xf32> to vector<4x256xf32>
    %1191 = arith.addf %1187, %1190 : vector<4x256xf32>
    %1192 = arith.maximumf %1178, %1191 : vector<4x256xf32>
    %c255_i32_715 = arith.constant 255 : i32
    %1193 = tpu.dynamic_rotate %1164 by %c255_i32_715 dim 1 : vector<4x256xf32>, i32 -> vector<4x256xf32>
    %c1_i32_716 = arith.constant 1 : i32
    %1194 = tpu.dynamic_rotate %1164 by %c1_i32_716 dim 1 : vector<4x256xf32>, i32 -> vector<4x256xf32>
    %1195 = vector.broadcast %6 : vector<1x1xf32> to vector<4x256xf32>
    %1196 = arith.mulf %1193, %1195 : vector<4x256xf32>
    %cst_717 = arith.constant 1.000000e+00 : f32
    %1197 = vector.broadcast %cst_717 : f32 to vector<1x1xf32>
    %1198 = arith.subf %1197, %6 : vector<1x1xf32>
    %1199 = vector.broadcast %1198 : vector<1x1xf32> to vector<4x256xf32>
    %1200 = arith.mulf %1194, %1199 : vector<4x256xf32>
    %1201 = arith.addf %1196, %1200 : vector<4x256xf32>
    %c3_718 = arith.constant 3 : index
    %c0_719 = arith.constant 0 : index
    %c0_720 = arith.constant 0 : index
    %1202 = vector.load %arg5[%c3_718, %c0_719, %c0_720] : memref<5x1x256xf32, #tpu.memory_space<vmem>>, vector<1x1x256xf32>
    %1203 = vector.shape_cast %1202 : vector<1x1x256xf32> to vector<1x256xf32>
    %1204 = vector.broadcast %1203 : vector<1x256xf32> to vector<4x256xf32>
    %1205 = arith.addf %1201, %1204 : vector<4x256xf32>
    %1206 = arith.maximumf %1192, %1205 : vector<4x256xf32>
    %c254_i32_721 = arith.constant 254 : i32
    %1207 = tpu.dynamic_rotate %1164 by %c254_i32_721 dim 1 : vector<4x256xf32>, i32 -> vector<4x256xf32>
    %c2_i32_722 = arith.constant 2 : i32
    %1208 = tpu.dynamic_rotate %1164 by %c2_i32_722 dim 1 : vector<4x256xf32>, i32 -> vector<4x256xf32>
    %1209 = vector.broadcast %6 : vector<1x1xf32> to vector<4x256xf32>
    %1210 = arith.mulf %1207, %1209 : vector<4x256xf32>
    %cst_723 = arith.constant 1.000000e+00 : f32
    %1211 = vector.broadcast %cst_723 : f32 to vector<1x1xf32>
    %1212 = arith.subf %1211, %6 : vector<1x1xf32>
    %1213 = vector.broadcast %1212 : vector<1x1xf32> to vector<4x256xf32>
    %1214 = arith.mulf %1208, %1213 : vector<4x256xf32>
    %1215 = arith.addf %1210, %1214 : vector<4x256xf32>
    %c4_724 = arith.constant 4 : index
    %c0_725 = arith.constant 0 : index
    %c0_726 = arith.constant 0 : index
    %1216 = vector.load %arg5[%c4_724, %c0_725, %c0_726] : memref<5x1x256xf32, #tpu.memory_space<vmem>>, vector<1x1x256xf32>
    %1217 = vector.shape_cast %1216 : vector<1x1x256xf32> to vector<1x256xf32>
    %1218 = vector.broadcast %1217 : vector<1x256xf32> to vector<4x256xf32>
    %1219 = arith.addf %1215, %1218 : vector<4x256xf32>
    %1220 = arith.maximumf %1206, %1219 : vector<4x256xf32>
    %c32_i32_727 = arith.constant 32 : i32
    %1221 = tpu.dynamic_rotate %1220 by %c32_i32_727 dim 1 : vector<4x256xf32>, i32 -> vector<4x256xf32>
    %c224_i32_728 = arith.constant 224 : i32
    %1222 = tpu.dynamic_rotate %1220 by %c224_i32_728 dim 1 : vector<4x256xf32>, i32 -> vector<4x256xf32>
    %1223 = vector.broadcast %6 : vector<1x1xf32> to vector<4x256xf32>
    %1224 = arith.mulf %1221, %1223 : vector<4x256xf32>
    %cst_729 = arith.constant 1.000000e+00 : f32
    %1225 = vector.broadcast %cst_729 : f32 to vector<1x1xf32>
    %1226 = arith.subf %1225, %6 : vector<1x1xf32>
    %1227 = vector.broadcast %1226 : vector<1x1xf32> to vector<4x256xf32>
    %1228 = arith.mulf %1222, %1227 : vector<4x256xf32>
    %1229 = arith.addf %1224, %1228 : vector<4x256xf32>
    %c0_730 = arith.constant 0 : index
    %c0_731 = arith.constant 0 : index
    %c0_732 = arith.constant 0 : index
    %1230 = vector.load %arg6[%c0_730, %c0_731, %c0_732] : memref<5x1x256xf32, #tpu.memory_space<vmem>>, vector<1x1x256xf32>
    %1231 = vector.shape_cast %1230 : vector<1x1x256xf32> to vector<1x256xf32>
    %1232 = vector.broadcast %1231 : vector<1x256xf32> to vector<4x256xf32>
    %1233 = arith.addf %1229, %1232 : vector<4x256xf32>
    %1234 = arith.maximumf %1220, %1233 : vector<4x256xf32>
    %c16_i32_733 = arith.constant 16 : i32
    %1235 = tpu.dynamic_rotate %1220 by %c16_i32_733 dim 1 : vector<4x256xf32>, i32 -> vector<4x256xf32>
    %c240_i32_734 = arith.constant 240 : i32
    %1236 = tpu.dynamic_rotate %1220 by %c240_i32_734 dim 1 : vector<4x256xf32>, i32 -> vector<4x256xf32>
    %1237 = vector.broadcast %6 : vector<1x1xf32> to vector<4x256xf32>
    %1238 = arith.mulf %1235, %1237 : vector<4x256xf32>
    %cst_735 = arith.constant 1.000000e+00 : f32
    %1239 = vector.broadcast %cst_735 : f32 to vector<1x1xf32>
    %1240 = arith.subf %1239, %6 : vector<1x1xf32>
    %1241 = vector.broadcast %1240 : vector<1x1xf32> to vector<4x256xf32>
    %1242 = arith.mulf %1236, %1241 : vector<4x256xf32>
    %1243 = arith.addf %1238, %1242 : vector<4x256xf32>
    %c1_736 = arith.constant 1 : index
    %c0_737 = arith.constant 0 : index
    %c0_738 = arith.constant 0 : index
    %1244 = vector.load %arg6[%c1_736, %c0_737, %c0_738] : memref<5x1x256xf32, #tpu.memory_space<vmem>>, vector<1x1x256xf32>
    %1245 = vector.shape_cast %1244 : vector<1x1x256xf32> to vector<1x256xf32>
    %1246 = vector.broadcast %1245 : vector<1x256xf32> to vector<4x256xf32>
    %1247 = arith.addf %1243, %1246 : vector<4x256xf32>
    %1248 = arith.maximumf %1234, %1247 : vector<4x256xf32>
    %c240_i32_739 = arith.constant 240 : i32
    %1249 = tpu.dynamic_rotate %1220 by %c240_i32_739 dim 1 : vector<4x256xf32>, i32 -> vector<4x256xf32>
    %c16_i32_740 = arith.constant 16 : i32
    %1250 = tpu.dynamic_rotate %1220 by %c16_i32_740 dim 1 : vector<4x256xf32>, i32 -> vector<4x256xf32>
    %1251 = vector.broadcast %6 : vector<1x1xf32> to vector<4x256xf32>
    %1252 = arith.mulf %1249, %1251 : vector<4x256xf32>
    %cst_741 = arith.constant 1.000000e+00 : f32
    %1253 = vector.broadcast %cst_741 : f32 to vector<1x1xf32>
    %1254 = arith.subf %1253, %6 : vector<1x1xf32>
    %1255 = vector.broadcast %1254 : vector<1x1xf32> to vector<4x256xf32>
    %1256 = arith.mulf %1250, %1255 : vector<4x256xf32>
    %1257 = arith.addf %1252, %1256 : vector<4x256xf32>
    %c3_742 = arith.constant 3 : index
    %c0_743 = arith.constant 0 : index
    %c0_744 = arith.constant 0 : index
    %1258 = vector.load %arg6[%c3_742, %c0_743, %c0_744] : memref<5x1x256xf32, #tpu.memory_space<vmem>>, vector<1x1x256xf32>
    %1259 = vector.shape_cast %1258 : vector<1x1x256xf32> to vector<1x256xf32>
    %1260 = vector.broadcast %1259 : vector<1x256xf32> to vector<4x256xf32>
    %1261 = arith.addf %1257, %1260 : vector<4x256xf32>
    %1262 = arith.maximumf %1248, %1261 : vector<4x256xf32>
    %c224_i32_745 = arith.constant 224 : i32
    %1263 = tpu.dynamic_rotate %1220 by %c224_i32_745 dim 1 : vector<4x256xf32>, i32 -> vector<4x256xf32>
    %c32_i32_746 = arith.constant 32 : i32
    %1264 = tpu.dynamic_rotate %1220 by %c32_i32_746 dim 1 : vector<4x256xf32>, i32 -> vector<4x256xf32>
    %1265 = vector.broadcast %6 : vector<1x1xf32> to vector<4x256xf32>
    %1266 = arith.mulf %1263, %1265 : vector<4x256xf32>
    %cst_747 = arith.constant 1.000000e+00 : f32
    %1267 = vector.broadcast %cst_747 : f32 to vector<1x1xf32>
    %1268 = arith.subf %1267, %6 : vector<1x1xf32>
    %1269 = vector.broadcast %1268 : vector<1x1xf32> to vector<4x256xf32>
    %1270 = arith.mulf %1264, %1269 : vector<4x256xf32>
    %1271 = arith.addf %1266, %1270 : vector<4x256xf32>
    %c4_748 = arith.constant 4 : index
    %c0_749 = arith.constant 0 : index
    %c0_750 = arith.constant 0 : index
    %1272 = vector.load %arg6[%c4_748, %c0_749, %c0_750] : memref<5x1x256xf32, #tpu.memory_space<vmem>>, vector<1x1x256xf32>
    %1273 = vector.shape_cast %1272 : vector<1x1x256xf32> to vector<1x256xf32>
    %1274 = vector.broadcast %1273 : vector<1x256xf32> to vector<4x256xf32>
    %1275 = arith.addf %1271, %1274 : vector<4x256xf32>
    %1276 = arith.maximumf %1262, %1275 : vector<4x256xf32>
    %c2_751 = arith.constant 2 : index
    %c1_752 = arith.constant 1 : index
    %c1_753 = arith.constant 1 : index
    %c0_754 = arith.constant 0 : index
    %c0_755 = arith.constant 0 : index
    %1277 = vector.load %arg3[%c2_751, %c1_752, %c1_753, %c0_754, %c0_755] : memref<3x3x3x4x4xf32, #tpu.memory_space<vmem>>, vector<1x1x1x4x4xf32>
    %1278 = vector.shape_cast %1277 : vector<1x1x1x4x4xf32> to vector<4x4xf32>
    %cst_756 = arith.constant dense<0.000000e+00> : vector<4x256xf32>
    %1279 = tpu.matmul %1278, %1276, %cst_756 {dimension_numbers = #tpu.dot_dimension_numbers<[1], [0], [0], [1], [0, 0, 1, 1], [], []>} : vector<4x4xf32>, vector<4x256xf32>, vector<4x256xf32> -> vector<4x256xf32>
    %c17_i32_757 = arith.constant 17 : i32
    %1280 = tpu.dynamic_rotate %1276 by %c17_i32_757 dim 1 : vector<4x256xf32>, i32 -> vector<4x256xf32>
    %c239_i32_758 = arith.constant 239 : i32
    %1281 = tpu.dynamic_rotate %1276 by %c239_i32_758 dim 1 : vector<4x256xf32>, i32 -> vector<4x256xf32>
    %1282 = vector.broadcast %6 : vector<1x1xf32> to vector<4x256xf32>
    %1283 = arith.mulf %1280, %1282 : vector<4x256xf32>
    %cst_759 = arith.constant 1.000000e+00 : f32
    %1284 = vector.broadcast %cst_759 : f32 to vector<1x1xf32>
    %1285 = arith.subf %1284, %6 : vector<1x1xf32>
    %1286 = vector.broadcast %1285 : vector<1x1xf32> to vector<4x256xf32>
    %1287 = arith.mulf %1281, %1286 : vector<4x256xf32>
    %1288 = arith.addf %1283, %1287 : vector<4x256xf32>
    %c0_760 = arith.constant 0 : index
    %c0_761 = arith.constant 0 : index
    %c0_762 = arith.constant 0 : index
    %c0_763 = arith.constant 0 : index
    %1289 = vector.load %arg7[%c0_760, %c0_761, %c0_762, %c0_763] : memref<3x3x1x256xf32, #tpu.memory_space<vmem>>, vector<1x1x1x256xf32>
    %1290 = vector.shape_cast %1289 : vector<1x1x1x256xf32> to vector<1x256xf32>
    %1291 = vector.broadcast %1290 : vector<1x256xf32> to vector<4x256xf32>
    %1292 = arith.mulf %1288, %1291 : vector<4x256xf32>
    %c2_764 = arith.constant 2 : index
    %c0_765 = arith.constant 0 : index
    %c0_766 = arith.constant 0 : index
    %c0_767 = arith.constant 0 : index
    %c0_768 = arith.constant 0 : index
    %1293 = vector.load %arg3[%c2_764, %c0_765, %c0_766, %c0_767, %c0_768] : memref<3x3x3x4x4xf32, #tpu.memory_space<vmem>>, vector<1x1x1x4x4xf32>
    %1294 = vector.shape_cast %1293 : vector<1x1x1x4x4xf32> to vector<4x4xf32>
    %cst_769 = arith.constant dense<0.000000e+00> : vector<4x256xf32>
    %1295 = tpu.matmul %1294, %1292, %cst_769 {dimension_numbers = #tpu.dot_dimension_numbers<[1], [0], [0], [1], [0, 0, 1, 1], [], []>} : vector<4x4xf32>, vector<4x256xf32>, vector<4x256xf32> -> vector<4x256xf32>
    %1296 = arith.addf %1279, %1295 : vector<4x256xf32>
    %c16_i32_770 = arith.constant 16 : i32
    %1297 = tpu.dynamic_rotate %1276 by %c16_i32_770 dim 1 : vector<4x256xf32>, i32 -> vector<4x256xf32>
    %c240_i32_771 = arith.constant 240 : i32
    %1298 = tpu.dynamic_rotate %1276 by %c240_i32_771 dim 1 : vector<4x256xf32>, i32 -> vector<4x256xf32>
    %1299 = vector.broadcast %6 : vector<1x1xf32> to vector<4x256xf32>
    %1300 = arith.mulf %1297, %1299 : vector<4x256xf32>
    %cst_772 = arith.constant 1.000000e+00 : f32
    %1301 = vector.broadcast %cst_772 : f32 to vector<1x1xf32>
    %1302 = arith.subf %1301, %6 : vector<1x1xf32>
    %1303 = vector.broadcast %1302 : vector<1x1xf32> to vector<4x256xf32>
    %1304 = arith.mulf %1298, %1303 : vector<4x256xf32>
    %1305 = arith.addf %1300, %1304 : vector<4x256xf32>
    %c0_773 = arith.constant 0 : index
    %c1_774 = arith.constant 1 : index
    %c0_775 = arith.constant 0 : index
    %c0_776 = arith.constant 0 : index
    %1306 = vector.load %arg7[%c0_773, %c1_774, %c0_775, %c0_776] : memref<3x3x1x256xf32, #tpu.memory_space<vmem>>, vector<1x1x1x256xf32>
    %1307 = vector.shape_cast %1306 : vector<1x1x1x256xf32> to vector<1x256xf32>
    %1308 = vector.broadcast %1307 : vector<1x256xf32> to vector<4x256xf32>
    %1309 = arith.mulf %1305, %1308 : vector<4x256xf32>
    %c2_777 = arith.constant 2 : index
    %c0_778 = arith.constant 0 : index
    %c1_779 = arith.constant 1 : index
    %c0_780 = arith.constant 0 : index
    %c0_781 = arith.constant 0 : index
    %1310 = vector.load %arg3[%c2_777, %c0_778, %c1_779, %c0_780, %c0_781] : memref<3x3x3x4x4xf32, #tpu.memory_space<vmem>>, vector<1x1x1x4x4xf32>
    %1311 = vector.shape_cast %1310 : vector<1x1x1x4x4xf32> to vector<4x4xf32>
    %cst_782 = arith.constant dense<0.000000e+00> : vector<4x256xf32>
    %1312 = tpu.matmul %1311, %1309, %cst_782 {dimension_numbers = #tpu.dot_dimension_numbers<[1], [0], [0], [1], [0, 0, 1, 1], [], []>} : vector<4x4xf32>, vector<4x256xf32>, vector<4x256xf32> -> vector<4x256xf32>
    %1313 = arith.addf %1296, %1312 : vector<4x256xf32>
    %c15_i32_783 = arith.constant 15 : i32
    %1314 = tpu.dynamic_rotate %1276 by %c15_i32_783 dim 1 : vector<4x256xf32>, i32 -> vector<4x256xf32>
    %c241_i32_784 = arith.constant 241 : i32
    %1315 = tpu.dynamic_rotate %1276 by %c241_i32_784 dim 1 : vector<4x256xf32>, i32 -> vector<4x256xf32>
    %1316 = vector.broadcast %6 : vector<1x1xf32> to vector<4x256xf32>
    %1317 = arith.mulf %1314, %1316 : vector<4x256xf32>
    %cst_785 = arith.constant 1.000000e+00 : f32
    %1318 = vector.broadcast %cst_785 : f32 to vector<1x1xf32>
    %1319 = arith.subf %1318, %6 : vector<1x1xf32>
    %1320 = vector.broadcast %1319 : vector<1x1xf32> to vector<4x256xf32>
    %1321 = arith.mulf %1315, %1320 : vector<4x256xf32>
    %1322 = arith.addf %1317, %1321 : vector<4x256xf32>
    %c0_786 = arith.constant 0 : index
    %c2_787 = arith.constant 2 : index
    %c0_788 = arith.constant 0 : index
    %c0_789 = arith.constant 0 : index
    %1323 = vector.load %arg7[%c0_786, %c2_787, %c0_788, %c0_789] : memref<3x3x1x256xf32, #tpu.memory_space<vmem>>, vector<1x1x1x256xf32>
    %1324 = vector.shape_cast %1323 : vector<1x1x1x256xf32> to vector<1x256xf32>
    %1325 = vector.broadcast %1324 : vector<1x256xf32> to vector<4x256xf32>
    %1326 = arith.mulf %1322, %1325 : vector<4x256xf32>
    %c2_790 = arith.constant 2 : index
    %c0_791 = arith.constant 0 : index
    %c2_792 = arith.constant 2 : index
    %c0_793 = arith.constant 0 : index
    %c0_794 = arith.constant 0 : index
    %1327 = vector.load %arg3[%c2_790, %c0_791, %c2_792, %c0_793, %c0_794] : memref<3x3x3x4x4xf32, #tpu.memory_space<vmem>>, vector<1x1x1x4x4xf32>
    %1328 = vector.shape_cast %1327 : vector<1x1x1x4x4xf32> to vector<4x4xf32>
    %cst_795 = arith.constant dense<0.000000e+00> : vector<4x256xf32>
    %1329 = tpu.matmul %1328, %1326, %cst_795 {dimension_numbers = #tpu.dot_dimension_numbers<[1], [0], [0], [1], [0, 0, 1, 1], [], []>} : vector<4x4xf32>, vector<4x256xf32>, vector<4x256xf32> -> vector<4x256xf32>
    %1330 = arith.addf %1313, %1329 : vector<4x256xf32>
    %c1_i32_796 = arith.constant 1 : i32
    %1331 = tpu.dynamic_rotate %1276 by %c1_i32_796 dim 1 : vector<4x256xf32>, i32 -> vector<4x256xf32>
    %c255_i32_797 = arith.constant 255 : i32
    %1332 = tpu.dynamic_rotate %1276 by %c255_i32_797 dim 1 : vector<4x256xf32>, i32 -> vector<4x256xf32>
    %1333 = vector.broadcast %6 : vector<1x1xf32> to vector<4x256xf32>
    %1334 = arith.mulf %1331, %1333 : vector<4x256xf32>
    %cst_798 = arith.constant 1.000000e+00 : f32
    %1335 = vector.broadcast %cst_798 : f32 to vector<1x1xf32>
    %1336 = arith.subf %1335, %6 : vector<1x1xf32>
    %1337 = vector.broadcast %1336 : vector<1x1xf32> to vector<4x256xf32>
    %1338 = arith.mulf %1332, %1337 : vector<4x256xf32>
    %1339 = arith.addf %1334, %1338 : vector<4x256xf32>
    %c1_799 = arith.constant 1 : index
    %c0_800 = arith.constant 0 : index
    %c0_801 = arith.constant 0 : index
    %c0_802 = arith.constant 0 : index
    %1340 = vector.load %arg7[%c1_799, %c0_800, %c0_801, %c0_802] : memref<3x3x1x256xf32, #tpu.memory_space<vmem>>, vector<1x1x1x256xf32>
    %1341 = vector.shape_cast %1340 : vector<1x1x1x256xf32> to vector<1x256xf32>
    %1342 = vector.broadcast %1341 : vector<1x256xf32> to vector<4x256xf32>
    %1343 = arith.mulf %1339, %1342 : vector<4x256xf32>
    %c2_803 = arith.constant 2 : index
    %c1_804 = arith.constant 1 : index
    %c0_805 = arith.constant 0 : index
    %c0_806 = arith.constant 0 : index
    %c0_807 = arith.constant 0 : index
    %1344 = vector.load %arg3[%c2_803, %c1_804, %c0_805, %c0_806, %c0_807] : memref<3x3x3x4x4xf32, #tpu.memory_space<vmem>>, vector<1x1x1x4x4xf32>
    %1345 = vector.shape_cast %1344 : vector<1x1x1x4x4xf32> to vector<4x4xf32>
    %cst_808 = arith.constant dense<0.000000e+00> : vector<4x256xf32>
    %1346 = tpu.matmul %1345, %1343, %cst_808 {dimension_numbers = #tpu.dot_dimension_numbers<[1], [0], [0], [1], [0, 0, 1, 1], [], []>} : vector<4x4xf32>, vector<4x256xf32>, vector<4x256xf32> -> vector<4x256xf32>
    %1347 = arith.addf %1330, %1346 : vector<4x256xf32>
    %c255_i32_809 = arith.constant 255 : i32
    %1348 = tpu.dynamic_rotate %1276 by %c255_i32_809 dim 1 : vector<4x256xf32>, i32 -> vector<4x256xf32>
    %c1_i32_810 = arith.constant 1 : i32
    %1349 = tpu.dynamic_rotate %1276 by %c1_i32_810 dim 1 : vector<4x256xf32>, i32 -> vector<4x256xf32>
    %1350 = vector.broadcast %6 : vector<1x1xf32> to vector<4x256xf32>
    %1351 = arith.mulf %1348, %1350 : vector<4x256xf32>
    %cst_811 = arith.constant 1.000000e+00 : f32
    %1352 = vector.broadcast %cst_811 : f32 to vector<1x1xf32>
    %1353 = arith.subf %1352, %6 : vector<1x1xf32>
    %1354 = vector.broadcast %1353 : vector<1x1xf32> to vector<4x256xf32>
    %1355 = arith.mulf %1349, %1354 : vector<4x256xf32>
    %1356 = arith.addf %1351, %1355 : vector<4x256xf32>
    %c1_812 = arith.constant 1 : index
    %c2_813 = arith.constant 2 : index
    %c0_814 = arith.constant 0 : index
    %c0_815 = arith.constant 0 : index
    %1357 = vector.load %arg7[%c1_812, %c2_813, %c0_814, %c0_815] : memref<3x3x1x256xf32, #tpu.memory_space<vmem>>, vector<1x1x1x256xf32>
    %1358 = vector.shape_cast %1357 : vector<1x1x1x256xf32> to vector<1x256xf32>
    %1359 = vector.broadcast %1358 : vector<1x256xf32> to vector<4x256xf32>
    %1360 = arith.mulf %1356, %1359 : vector<4x256xf32>
    %c2_816 = arith.constant 2 : index
    %c1_817 = arith.constant 1 : index
    %c2_818 = arith.constant 2 : index
    %c0_819 = arith.constant 0 : index
    %c0_820 = arith.constant 0 : index
    %1361 = vector.load %arg3[%c2_816, %c1_817, %c2_818, %c0_819, %c0_820] : memref<3x3x3x4x4xf32, #tpu.memory_space<vmem>>, vector<1x1x1x4x4xf32>
    %1362 = vector.shape_cast %1361 : vector<1x1x1x4x4xf32> to vector<4x4xf32>
    %cst_821 = arith.constant dense<0.000000e+00> : vector<4x256xf32>
    %1363 = tpu.matmul %1362, %1360, %cst_821 {dimension_numbers = #tpu.dot_dimension_numbers<[1], [0], [0], [1], [0, 0, 1, 1], [], []>} : vector<4x4xf32>, vector<4x256xf32>, vector<4x256xf32> -> vector<4x256xf32>
    %1364 = arith.addf %1347, %1363 : vector<4x256xf32>
    %c241_i32_822 = arith.constant 241 : i32
    %1365 = tpu.dynamic_rotate %1276 by %c241_i32_822 dim 1 : vector<4x256xf32>, i32 -> vector<4x256xf32>
    %c15_i32_823 = arith.constant 15 : i32
    %1366 = tpu.dynamic_rotate %1276 by %c15_i32_823 dim 1 : vector<4x256xf32>, i32 -> vector<4x256xf32>
    %1367 = vector.broadcast %6 : vector<1x1xf32> to vector<4x256xf32>
    %1368 = arith.mulf %1365, %1367 : vector<4x256xf32>
    %cst_824 = arith.constant 1.000000e+00 : f32
    %1369 = vector.broadcast %cst_824 : f32 to vector<1x1xf32>
    %1370 = arith.subf %1369, %6 : vector<1x1xf32>
    %1371 = vector.broadcast %1370 : vector<1x1xf32> to vector<4x256xf32>
    %1372 = arith.mulf %1366, %1371 : vector<4x256xf32>
    %1373 = arith.addf %1368, %1372 : vector<4x256xf32>
    %c2_825 = arith.constant 2 : index
    %c0_826 = arith.constant 0 : index
    %c0_827 = arith.constant 0 : index
    %c0_828 = arith.constant 0 : index
    %1374 = vector.load %arg7[%c2_825, %c0_826, %c0_827, %c0_828] : memref<3x3x1x256xf32, #tpu.memory_space<vmem>>, vector<1x1x1x256xf32>
    %1375 = vector.shape_cast %1374 : vector<1x1x1x256xf32> to vector<1x256xf32>
    %1376 = vector.broadcast %1375 : vector<1x256xf32> to vector<4x256xf32>
    %1377 = arith.mulf %1373, %1376 : vector<4x256xf32>
    %c2_829 = arith.constant 2 : index
    %c2_830 = arith.constant 2 : index
    %c0_831 = arith.constant 0 : index
    %c0_832 = arith.constant 0 : index
    %c0_833 = arith.constant 0 : index
    %1378 = vector.load %arg3[%c2_829, %c2_830, %c0_831, %c0_832, %c0_833] : memref<3x3x3x4x4xf32, #tpu.memory_space<vmem>>, vector<1x1x1x4x4xf32>
    %1379 = vector.shape_cast %1378 : vector<1x1x1x4x4xf32> to vector<4x4xf32>
    %cst_834 = arith.constant dense<0.000000e+00> : vector<4x256xf32>
    %1380 = tpu.matmul %1379, %1377, %cst_834 {dimension_numbers = #tpu.dot_dimension_numbers<[1], [0], [0], [1], [0, 0, 1, 1], [], []>} : vector<4x4xf32>, vector<4x256xf32>, vector<4x256xf32> -> vector<4x256xf32>
    %1381 = arith.addf %1364, %1380 : vector<4x256xf32>
    %c240_i32_835 = arith.constant 240 : i32
    %1382 = tpu.dynamic_rotate %1276 by %c240_i32_835 dim 1 : vector<4x256xf32>, i32 -> vector<4x256xf32>
    %c16_i32_836 = arith.constant 16 : i32
    %1383 = tpu.dynamic_rotate %1276 by %c16_i32_836 dim 1 : vector<4x256xf32>, i32 -> vector<4x256xf32>
    %1384 = vector.broadcast %6 : vector<1x1xf32> to vector<4x256xf32>
    %1385 = arith.mulf %1382, %1384 : vector<4x256xf32>
    %cst_837 = arith.constant 1.000000e+00 : f32
    %1386 = vector.broadcast %cst_837 : f32 to vector<1x1xf32>
    %1387 = arith.subf %1386, %6 : vector<1x1xf32>
    %1388 = vector.broadcast %1387 : vector<1x1xf32> to vector<4x256xf32>
    %1389 = arith.mulf %1383, %1388 : vector<4x256xf32>
    %1390 = arith.addf %1385, %1389 : vector<4x256xf32>
    %c2_838 = arith.constant 2 : index
    %c1_839 = arith.constant 1 : index
    %c0_840 = arith.constant 0 : index
    %c0_841 = arith.constant 0 : index
    %1391 = vector.load %arg7[%c2_838, %c1_839, %c0_840, %c0_841] : memref<3x3x1x256xf32, #tpu.memory_space<vmem>>, vector<1x1x1x256xf32>
    %1392 = vector.shape_cast %1391 : vector<1x1x1x256xf32> to vector<1x256xf32>
    %1393 = vector.broadcast %1392 : vector<1x256xf32> to vector<4x256xf32>
    %1394 = arith.mulf %1390, %1393 : vector<4x256xf32>
    %c2_842 = arith.constant 2 : index
    %c2_843 = arith.constant 2 : index
    %c1_844 = arith.constant 1 : index
    %c0_845 = arith.constant 0 : index
    %c0_846 = arith.constant 0 : index
    %1395 = vector.load %arg3[%c2_842, %c2_843, %c1_844, %c0_845, %c0_846] : memref<3x3x3x4x4xf32, #tpu.memory_space<vmem>>, vector<1x1x1x4x4xf32>
    %1396 = vector.shape_cast %1395 : vector<1x1x1x4x4xf32> to vector<4x4xf32>
    %cst_847 = arith.constant dense<0.000000e+00> : vector<4x256xf32>
    %1397 = tpu.matmul %1396, %1394, %cst_847 {dimension_numbers = #tpu.dot_dimension_numbers<[1], [0], [0], [1], [0, 0, 1, 1], [], []>} : vector<4x4xf32>, vector<4x256xf32>, vector<4x256xf32> -> vector<4x256xf32>
    %1398 = arith.addf %1381, %1397 : vector<4x256xf32>
    %c239_i32_848 = arith.constant 239 : i32
    %1399 = tpu.dynamic_rotate %1276 by %c239_i32_848 dim 1 : vector<4x256xf32>, i32 -> vector<4x256xf32>
    %c17_i32_849 = arith.constant 17 : i32
    %1400 = tpu.dynamic_rotate %1276 by %c17_i32_849 dim 1 : vector<4x256xf32>, i32 -> vector<4x256xf32>
    %1401 = vector.broadcast %6 : vector<1x1xf32> to vector<4x256xf32>
    %1402 = arith.mulf %1399, %1401 : vector<4x256xf32>
    %cst_850 = arith.constant 1.000000e+00 : f32
    %1403 = vector.broadcast %cst_850 : f32 to vector<1x1xf32>
    %1404 = arith.subf %1403, %6 : vector<1x1xf32>
    %1405 = vector.broadcast %1404 : vector<1x1xf32> to vector<4x256xf32>
    %1406 = arith.mulf %1400, %1405 : vector<4x256xf32>
    %1407 = arith.addf %1402, %1406 : vector<4x256xf32>
    %c2_851 = arith.constant 2 : index
    %c2_852 = arith.constant 2 : index
    %c0_853 = arith.constant 0 : index
    %c0_854 = arith.constant 0 : index
    %1408 = vector.load %arg7[%c2_851, %c2_852, %c0_853, %c0_854] : memref<3x3x1x256xf32, #tpu.memory_space<vmem>>, vector<1x1x1x256xf32>
    %1409 = vector.shape_cast %1408 : vector<1x1x1x256xf32> to vector<1x256xf32>
    %1410 = vector.broadcast %1409 : vector<1x256xf32> to vector<4x256xf32>
    %1411 = arith.mulf %1407, %1410 : vector<4x256xf32>
    %c2_855 = arith.constant 2 : index
    %c2_856 = arith.constant 2 : index
    %c2_857 = arith.constant 2 : index
    %c0_858 = arith.constant 0 : index
    %c0_859 = arith.constant 0 : index
    %1412 = vector.load %arg3[%c2_855, %c2_856, %c2_857, %c0_858, %c0_859] : memref<3x3x3x4x4xf32, #tpu.memory_space<vmem>>, vector<1x1x1x4x4xf32>
    %1413 = vector.shape_cast %1412 : vector<1x1x1x4x4xf32> to vector<4x4xf32>
    %cst_860 = arith.constant dense<0.000000e+00> : vector<4x256xf32>
    %1414 = tpu.matmul %1413, %1411, %cst_860 {dimension_numbers = #tpu.dot_dimension_numbers<[1], [0], [0], [1], [0, 0, 1, 1], [], []>} : vector<4x4xf32>, vector<4x256xf32>, vector<4x256xf32> -> vector<4x256xf32>
    %1415 = arith.addf %1398, %1414 : vector<4x256xf32>
    %1416 = arith.addf %861, %1415 : vector<4x256xf32>
    %c2_861 = arith.constant 2 : index
    %c0_862 = arith.constant 0 : index
    %c0_863 = arith.constant 0 : index
    %1417 = vector.load %arg4[%c2_861, %c0_862, %c0_863] : memref<3x4x1xf32, #tpu.memory_space<vmem>>, vector<1x4x1xf32>
    %1418 = vector.shape_cast %1417 : vector<1x4x1xf32> to vector<4x1xf32>
    %1419 = vector.broadcast %1418 : vector<4x1xf32> to vector<4x256xf32>
    %1420 = arith.addf %1416, %1419 : vector<4x256xf32>
    %c2_864 = arith.constant 2 : index
    %c1_865 = arith.constant 1 : index
    %c0_866 = arith.constant 0 : index
    %c0_867 = arith.constant 0 : index
    %1421 = vector.load %arg1[%c2_864, %c1_865, %c0_866, %c0_867] : memref<3x2x4x1xf32, #tpu.memory_space<vmem>>, vector<1x1x4x1xf32>
    %1422 = vector.shape_cast %1421 : vector<1x1x4x1xf32> to vector<4x1xf32>
    %1423 = arith.mulf %1153, %1422 : vector<4x1xf32>
    %c2_868 = arith.constant 2 : index
    %c1_869 = arith.constant 1 : index
    %c0_870 = arith.constant 0 : index
    %c0_871 = arith.constant 0 : index
    %1424 = vector.load %arg2[%c2_868, %c1_869, %c0_870, %c0_871] : memref<3x2x4x1xf32, #tpu.memory_space<vmem>>, vector<1x1x4x1xf32>
    %1425 = vector.shape_cast %1424 : vector<1x1x4x1xf32> to vector<4x1xf32>
    %1426 = arith.mulf %1146, %1423 : vector<4x1xf32>
    %1427 = arith.subf %1425, %1426 : vector<4x1xf32>
    %1428 = vector.broadcast %1423 : vector<4x1xf32> to vector<4x256xf32>
    %1429 = arith.mulf %1128, %1428 : vector<4x256xf32>
    %1430 = vector.broadcast %1427 : vector<4x1xf32> to vector<4x256xf32>
    %1431 = arith.addf %1429, %1430 : vector<4x256xf32>
    %c2_i32_872 = arith.constant 2 : i32
    %1432 = tpu.dynamic_rotate %1431 by %c2_i32_872 dim 1 : vector<4x256xf32>, i32 -> vector<4x256xf32>
    %c254_i32_873 = arith.constant 254 : i32
    %1433 = tpu.dynamic_rotate %1431 by %c254_i32_873 dim 1 : vector<4x256xf32>, i32 -> vector<4x256xf32>
    %1434 = vector.broadcast %6 : vector<1x1xf32> to vector<4x256xf32>
    %1435 = arith.mulf %1432, %1434 : vector<4x256xf32>
    %cst_874 = arith.constant 1.000000e+00 : f32
    %1436 = vector.broadcast %cst_874 : f32 to vector<1x1xf32>
    %1437 = arith.subf %1436, %6 : vector<1x1xf32>
    %1438 = vector.broadcast %1437 : vector<1x1xf32> to vector<4x256xf32>
    %1439 = arith.mulf %1433, %1438 : vector<4x256xf32>
    %1440 = arith.addf %1435, %1439 : vector<4x256xf32>
    %c0_875 = arith.constant 0 : index
    %c0_876 = arith.constant 0 : index
    %c0_877 = arith.constant 0 : index
    %1441 = vector.load %arg5[%c0_875, %c0_876, %c0_877] : memref<5x1x256xf32, #tpu.memory_space<vmem>>, vector<1x1x256xf32>
    %1442 = vector.shape_cast %1441 : vector<1x1x256xf32> to vector<1x256xf32>
    %1443 = vector.broadcast %1442 : vector<1x256xf32> to vector<4x256xf32>
    %1444 = arith.addf %1440, %1443 : vector<4x256xf32>
    %1445 = arith.maximumf %1431, %1444 : vector<4x256xf32>
    %c1_i32_878 = arith.constant 1 : i32
    %1446 = tpu.dynamic_rotate %1431 by %c1_i32_878 dim 1 : vector<4x256xf32>, i32 -> vector<4x256xf32>
    %c255_i32_879 = arith.constant 255 : i32
    %1447 = tpu.dynamic_rotate %1431 by %c255_i32_879 dim 1 : vector<4x256xf32>, i32 -> vector<4x256xf32>
    %1448 = vector.broadcast %6 : vector<1x1xf32> to vector<4x256xf32>
    %1449 = arith.mulf %1446, %1448 : vector<4x256xf32>
    %cst_880 = arith.constant 1.000000e+00 : f32
    %1450 = vector.broadcast %cst_880 : f32 to vector<1x1xf32>
    %1451 = arith.subf %1450, %6 : vector<1x1xf32>
    %1452 = vector.broadcast %1451 : vector<1x1xf32> to vector<4x256xf32>
    %1453 = arith.mulf %1447, %1452 : vector<4x256xf32>
    %1454 = arith.addf %1449, %1453 : vector<4x256xf32>
    %c1_881 = arith.constant 1 : index
    %c0_882 = arith.constant 0 : index
    %c0_883 = arith.constant 0 : index
    %1455 = vector.load %arg5[%c1_881, %c0_882, %c0_883] : memref<5x1x256xf32, #tpu.memory_space<vmem>>, vector<1x1x256xf32>
    %1456 = vector.shape_cast %1455 : vector<1x1x256xf32> to vector<1x256xf32>
    %1457 = vector.broadcast %1456 : vector<1x256xf32> to vector<4x256xf32>
    %1458 = arith.addf %1454, %1457 : vector<4x256xf32>
    %1459 = arith.maximumf %1445, %1458 : vector<4x256xf32>
    %c255_i32_884 = arith.constant 255 : i32
    %1460 = tpu.dynamic_rotate %1431 by %c255_i32_884 dim 1 : vector<4x256xf32>, i32 -> vector<4x256xf32>
    %c1_i32_885 = arith.constant 1 : i32
    %1461 = tpu.dynamic_rotate %1431 by %c1_i32_885 dim 1 : vector<4x256xf32>, i32 -> vector<4x256xf32>
    %1462 = vector.broadcast %6 : vector<1x1xf32> to vector<4x256xf32>
    %1463 = arith.mulf %1460, %1462 : vector<4x256xf32>
    %cst_886 = arith.constant 1.000000e+00 : f32
    %1464 = vector.broadcast %cst_886 : f32 to vector<1x1xf32>
    %1465 = arith.subf %1464, %6 : vector<1x1xf32>
    %1466 = vector.broadcast %1465 : vector<1x1xf32> to vector<4x256xf32>
    %1467 = arith.mulf %1461, %1466 : vector<4x256xf32>
    %1468 = arith.addf %1463, %1467 : vector<4x256xf32>
    %c3_887 = arith.constant 3 : index
    %c0_888 = arith.constant 0 : index
    %c0_889 = arith.constant 0 : index
    %1469 = vector.load %arg5[%c3_887, %c0_888, %c0_889] : memref<5x1x256xf32, #tpu.memory_space<vmem>>, vector<1x1x256xf32>
    %1470 = vector.shape_cast %1469 : vector<1x1x256xf32> to vector<1x256xf32>
    %1471 = vector.broadcast %1470 : vector<1x256xf32> to vector<4x256xf32>
    %1472 = arith.addf %1468, %1471 : vector<4x256xf32>
    %1473 = arith.maximumf %1459, %1472 : vector<4x256xf32>
    %c254_i32_890 = arith.constant 254 : i32
    %1474 = tpu.dynamic_rotate %1431 by %c254_i32_890 dim 1 : vector<4x256xf32>, i32 -> vector<4x256xf32>
    %c2_i32_891 = arith.constant 2 : i32
    %1475 = tpu.dynamic_rotate %1431 by %c2_i32_891 dim 1 : vector<4x256xf32>, i32 -> vector<4x256xf32>
    %1476 = vector.broadcast %6 : vector<1x1xf32> to vector<4x256xf32>
    %1477 = arith.mulf %1474, %1476 : vector<4x256xf32>
    %cst_892 = arith.constant 1.000000e+00 : f32
    %1478 = vector.broadcast %cst_892 : f32 to vector<1x1xf32>
    %1479 = arith.subf %1478, %6 : vector<1x1xf32>
    %1480 = vector.broadcast %1479 : vector<1x1xf32> to vector<4x256xf32>
    %1481 = arith.mulf %1475, %1480 : vector<4x256xf32>
    %1482 = arith.addf %1477, %1481 : vector<4x256xf32>
    %c4_893 = arith.constant 4 : index
    %c0_894 = arith.constant 0 : index
    %c0_895 = arith.constant 0 : index
    %1483 = vector.load %arg5[%c4_893, %c0_894, %c0_895] : memref<5x1x256xf32, #tpu.memory_space<vmem>>, vector<1x1x256xf32>
    %1484 = vector.shape_cast %1483 : vector<1x1x256xf32> to vector<1x256xf32>
    %1485 = vector.broadcast %1484 : vector<1x256xf32> to vector<4x256xf32>
    %1486 = arith.addf %1482, %1485 : vector<4x256xf32>
    %1487 = arith.maximumf %1473, %1486 : vector<4x256xf32>
    %c32_i32_896 = arith.constant 32 : i32
    %1488 = tpu.dynamic_rotate %1487 by %c32_i32_896 dim 1 : vector<4x256xf32>, i32 -> vector<4x256xf32>
    %c224_i32_897 = arith.constant 224 : i32
    %1489 = tpu.dynamic_rotate %1487 by %c224_i32_897 dim 1 : vector<4x256xf32>, i32 -> vector<4x256xf32>
    %1490 = vector.broadcast %6 : vector<1x1xf32> to vector<4x256xf32>
    %1491 = arith.mulf %1488, %1490 : vector<4x256xf32>
    %cst_898 = arith.constant 1.000000e+00 : f32
    %1492 = vector.broadcast %cst_898 : f32 to vector<1x1xf32>
    %1493 = arith.subf %1492, %6 : vector<1x1xf32>
    %1494 = vector.broadcast %1493 : vector<1x1xf32> to vector<4x256xf32>
    %1495 = arith.mulf %1489, %1494 : vector<4x256xf32>
    %1496 = arith.addf %1491, %1495 : vector<4x256xf32>
    %c0_899 = arith.constant 0 : index
    %c0_900 = arith.constant 0 : index
    %c0_901 = arith.constant 0 : index
    %1497 = vector.load %arg6[%c0_899, %c0_900, %c0_901] : memref<5x1x256xf32, #tpu.memory_space<vmem>>, vector<1x1x256xf32>
    %1498 = vector.shape_cast %1497 : vector<1x1x256xf32> to vector<1x256xf32>
    %1499 = vector.broadcast %1498 : vector<1x256xf32> to vector<4x256xf32>
    %1500 = arith.addf %1496, %1499 : vector<4x256xf32>
    %1501 = arith.maximumf %1487, %1500 : vector<4x256xf32>
    %c16_i32_902 = arith.constant 16 : i32
    %1502 = tpu.dynamic_rotate %1487 by %c16_i32_902 dim 1 : vector<4x256xf32>, i32 -> vector<4x256xf32>
    %c240_i32_903 = arith.constant 240 : i32
    %1503 = tpu.dynamic_rotate %1487 by %c240_i32_903 dim 1 : vector<4x256xf32>, i32 -> vector<4x256xf32>
    %1504 = vector.broadcast %6 : vector<1x1xf32> to vector<4x256xf32>
    %1505 = arith.mulf %1502, %1504 : vector<4x256xf32>
    %cst_904 = arith.constant 1.000000e+00 : f32
    %1506 = vector.broadcast %cst_904 : f32 to vector<1x1xf32>
    %1507 = arith.subf %1506, %6 : vector<1x1xf32>
    %1508 = vector.broadcast %1507 : vector<1x1xf32> to vector<4x256xf32>
    %1509 = arith.mulf %1503, %1508 : vector<4x256xf32>
    %1510 = arith.addf %1505, %1509 : vector<4x256xf32>
    %c1_905 = arith.constant 1 : index
    %c0_906 = arith.constant 0 : index
    %c0_907 = arith.constant 0 : index
    %1511 = vector.load %arg6[%c1_905, %c0_906, %c0_907] : memref<5x1x256xf32, #tpu.memory_space<vmem>>, vector<1x1x256xf32>
    %1512 = vector.shape_cast %1511 : vector<1x1x256xf32> to vector<1x256xf32>
    %1513 = vector.broadcast %1512 : vector<1x256xf32> to vector<4x256xf32>
    %1514 = arith.addf %1510, %1513 : vector<4x256xf32>
    %1515 = arith.maximumf %1501, %1514 : vector<4x256xf32>
    %c240_i32_908 = arith.constant 240 : i32
    %1516 = tpu.dynamic_rotate %1487 by %c240_i32_908 dim 1 : vector<4x256xf32>, i32 -> vector<4x256xf32>
    %c16_i32_909 = arith.constant 16 : i32
    %1517 = tpu.dynamic_rotate %1487 by %c16_i32_909 dim 1 : vector<4x256xf32>, i32 -> vector<4x256xf32>
    %1518 = vector.broadcast %6 : vector<1x1xf32> to vector<4x256xf32>
    %1519 = arith.mulf %1516, %1518 : vector<4x256xf32>
    %cst_910 = arith.constant 1.000000e+00 : f32
    %1520 = vector.broadcast %cst_910 : f32 to vector<1x1xf32>
    %1521 = arith.subf %1520, %6 : vector<1x1xf32>
    %1522 = vector.broadcast %1521 : vector<1x1xf32> to vector<4x256xf32>
    %1523 = arith.mulf %1517, %1522 : vector<4x256xf32>
    %1524 = arith.addf %1519, %1523 : vector<4x256xf32>
    %c3_911 = arith.constant 3 : index
    %c0_912 = arith.constant 0 : index
    %c0_913 = arith.constant 0 : index
    %1525 = vector.load %arg6[%c3_911, %c0_912, %c0_913] : memref<5x1x256xf32, #tpu.memory_space<vmem>>, vector<1x1x256xf32>
    %1526 = vector.shape_cast %1525 : vector<1x1x256xf32> to vector<1x256xf32>
    %1527 = vector.broadcast %1526 : vector<1x256xf32> to vector<4x256xf32>
    %1528 = arith.addf %1524, %1527 : vector<4x256xf32>
    %1529 = arith.maximumf %1515, %1528 : vector<4x256xf32>
    %c224_i32_914 = arith.constant 224 : i32
    %1530 = tpu.dynamic_rotate %1487 by %c224_i32_914 dim 1 : vector<4x256xf32>, i32 -> vector<4x256xf32>
    %c32_i32_915 = arith.constant 32 : i32
    %1531 = tpu.dynamic_rotate %1487 by %c32_i32_915 dim 1 : vector<4x256xf32>, i32 -> vector<4x256xf32>
    %1532 = vector.broadcast %6 : vector<1x1xf32> to vector<4x256xf32>
    %1533 = arith.mulf %1530, %1532 : vector<4x256xf32>
    %cst_916 = arith.constant 1.000000e+00 : f32
    %1534 = vector.broadcast %cst_916 : f32 to vector<1x1xf32>
    %1535 = arith.subf %1534, %6 : vector<1x1xf32>
    %1536 = vector.broadcast %1535 : vector<1x1xf32> to vector<4x256xf32>
    %1537 = arith.mulf %1531, %1536 : vector<4x256xf32>
    %1538 = arith.addf %1533, %1537 : vector<4x256xf32>
    %c4_917 = arith.constant 4 : index
    %c0_918 = arith.constant 0 : index
    %c0_919 = arith.constant 0 : index
    %1539 = vector.load %arg6[%c4_917, %c0_918, %c0_919] : memref<5x1x256xf32, #tpu.memory_space<vmem>>, vector<1x1x256xf32>
    %1540 = vector.shape_cast %1539 : vector<1x1x256xf32> to vector<1x256xf32>
    %1541 = vector.broadcast %1540 : vector<1x256xf32> to vector<4x256xf32>
    %1542 = arith.addf %1538, %1541 : vector<4x256xf32>
    %1543 = arith.maximumf %1529, %1542 : vector<4x256xf32>
    %c2_920 = arith.constant 2 : index
    %c1_921 = arith.constant 1 : index
    %c1_922 = arith.constant 1 : index
    %c0_923 = arith.constant 0 : index
    %c0_924 = arith.constant 0 : index
    %1544 = vector.load %arg3[%c2_920, %c1_921, %c1_922, %c0_923, %c0_924] : memref<3x3x3x4x4xf32, #tpu.memory_space<vmem>>, vector<1x1x1x4x4xf32>
    %1545 = vector.shape_cast %1544 : vector<1x1x1x4x4xf32> to vector<4x4xf32>
    %cst_925 = arith.constant dense<0.000000e+00> : vector<4x256xf32>
    %1546 = tpu.matmul %1545, %1543, %cst_925 {dimension_numbers = #tpu.dot_dimension_numbers<[1], [0], [0], [1], [0, 0, 1, 1], [], []>} : vector<4x4xf32>, vector<4x256xf32>, vector<4x256xf32> -> vector<4x256xf32>
    %c17_i32_926 = arith.constant 17 : i32
    %1547 = tpu.dynamic_rotate %1543 by %c17_i32_926 dim 1 : vector<4x256xf32>, i32 -> vector<4x256xf32>
    %c239_i32_927 = arith.constant 239 : i32
    %1548 = tpu.dynamic_rotate %1543 by %c239_i32_927 dim 1 : vector<4x256xf32>, i32 -> vector<4x256xf32>
    %1549 = vector.broadcast %6 : vector<1x1xf32> to vector<4x256xf32>
    %1550 = arith.mulf %1547, %1549 : vector<4x256xf32>
    %cst_928 = arith.constant 1.000000e+00 : f32
    %1551 = vector.broadcast %cst_928 : f32 to vector<1x1xf32>
    %1552 = arith.subf %1551, %6 : vector<1x1xf32>
    %1553 = vector.broadcast %1552 : vector<1x1xf32> to vector<4x256xf32>
    %1554 = arith.mulf %1548, %1553 : vector<4x256xf32>
    %1555 = arith.addf %1550, %1554 : vector<4x256xf32>
    %c0_929 = arith.constant 0 : index
    %c0_930 = arith.constant 0 : index
    %c0_931 = arith.constant 0 : index
    %c0_932 = arith.constant 0 : index
    %1556 = vector.load %arg7[%c0_929, %c0_930, %c0_931, %c0_932] : memref<3x3x1x256xf32, #tpu.memory_space<vmem>>, vector<1x1x1x256xf32>
    %1557 = vector.shape_cast %1556 : vector<1x1x1x256xf32> to vector<1x256xf32>
    %1558 = vector.broadcast %1557 : vector<1x256xf32> to vector<4x256xf32>
    %1559 = arith.mulf %1555, %1558 : vector<4x256xf32>
    %c2_933 = arith.constant 2 : index
    %c0_934 = arith.constant 0 : index
    %c0_935 = arith.constant 0 : index
    %c0_936 = arith.constant 0 : index
    %c0_937 = arith.constant 0 : index
    %1560 = vector.load %arg3[%c2_933, %c0_934, %c0_935, %c0_936, %c0_937] : memref<3x3x3x4x4xf32, #tpu.memory_space<vmem>>, vector<1x1x1x4x4xf32>
    %1561 = vector.shape_cast %1560 : vector<1x1x1x4x4xf32> to vector<4x4xf32>
    %cst_938 = arith.constant dense<0.000000e+00> : vector<4x256xf32>
    %1562 = tpu.matmul %1561, %1559, %cst_938 {dimension_numbers = #tpu.dot_dimension_numbers<[1], [0], [0], [1], [0, 0, 1, 1], [], []>} : vector<4x4xf32>, vector<4x256xf32>, vector<4x256xf32> -> vector<4x256xf32>
    %1563 = arith.addf %1546, %1562 : vector<4x256xf32>
    %c16_i32_939 = arith.constant 16 : i32
    %1564 = tpu.dynamic_rotate %1543 by %c16_i32_939 dim 1 : vector<4x256xf32>, i32 -> vector<4x256xf32>
    %c240_i32_940 = arith.constant 240 : i32
    %1565 = tpu.dynamic_rotate %1543 by %c240_i32_940 dim 1 : vector<4x256xf32>, i32 -> vector<4x256xf32>
    %1566 = vector.broadcast %6 : vector<1x1xf32> to vector<4x256xf32>
    %1567 = arith.mulf %1564, %1566 : vector<4x256xf32>
    %cst_941 = arith.constant 1.000000e+00 : f32
    %1568 = vector.broadcast %cst_941 : f32 to vector<1x1xf32>
    %1569 = arith.subf %1568, %6 : vector<1x1xf32>
    %1570 = vector.broadcast %1569 : vector<1x1xf32> to vector<4x256xf32>
    %1571 = arith.mulf %1565, %1570 : vector<4x256xf32>
    %1572 = arith.addf %1567, %1571 : vector<4x256xf32>
    %c0_942 = arith.constant 0 : index
    %c1_943 = arith.constant 1 : index
    %c0_944 = arith.constant 0 : index
    %c0_945 = arith.constant 0 : index
    %1573 = vector.load %arg7[%c0_942, %c1_943, %c0_944, %c0_945] : memref<3x3x1x256xf32, #tpu.memory_space<vmem>>, vector<1x1x1x256xf32>
    %1574 = vector.shape_cast %1573 : vector<1x1x1x256xf32> to vector<1x256xf32>
    %1575 = vector.broadcast %1574 : vector<1x256xf32> to vector<4x256xf32>
    %1576 = arith.mulf %1572, %1575 : vector<4x256xf32>
    %c2_946 = arith.constant 2 : index
    %c0_947 = arith.constant 0 : index
    %c1_948 = arith.constant 1 : index
    %c0_949 = arith.constant 0 : index
    %c0_950 = arith.constant 0 : index
    %1577 = vector.load %arg3[%c2_946, %c0_947, %c1_948, %c0_949, %c0_950] : memref<3x3x3x4x4xf32, #tpu.memory_space<vmem>>, vector<1x1x1x4x4xf32>
    %1578 = vector.shape_cast %1577 : vector<1x1x1x4x4xf32> to vector<4x4xf32>
    %cst_951 = arith.constant dense<0.000000e+00> : vector<4x256xf32>
    %1579 = tpu.matmul %1578, %1576, %cst_951 {dimension_numbers = #tpu.dot_dimension_numbers<[1], [0], [0], [1], [0, 0, 1, 1], [], []>} : vector<4x4xf32>, vector<4x256xf32>, vector<4x256xf32> -> vector<4x256xf32>
    %1580 = arith.addf %1563, %1579 : vector<4x256xf32>
    %c15_i32_952 = arith.constant 15 : i32
    %1581 = tpu.dynamic_rotate %1543 by %c15_i32_952 dim 1 : vector<4x256xf32>, i32 -> vector<4x256xf32>
    %c241_i32_953 = arith.constant 241 : i32
    %1582 = tpu.dynamic_rotate %1543 by %c241_i32_953 dim 1 : vector<4x256xf32>, i32 -> vector<4x256xf32>
    %1583 = vector.broadcast %6 : vector<1x1xf32> to vector<4x256xf32>
    %1584 = arith.mulf %1581, %1583 : vector<4x256xf32>
    %cst_954 = arith.constant 1.000000e+00 : f32
    %1585 = vector.broadcast %cst_954 : f32 to vector<1x1xf32>
    %1586 = arith.subf %1585, %6 : vector<1x1xf32>
    %1587 = vector.broadcast %1586 : vector<1x1xf32> to vector<4x256xf32>
    %1588 = arith.mulf %1582, %1587 : vector<4x256xf32>
    %1589 = arith.addf %1584, %1588 : vector<4x256xf32>
    %c0_955 = arith.constant 0 : index
    %c2_956 = arith.constant 2 : index
    %c0_957 = arith.constant 0 : index
    %c0_958 = arith.constant 0 : index
    %1590 = vector.load %arg7[%c0_955, %c2_956, %c0_957, %c0_958] : memref<3x3x1x256xf32, #tpu.memory_space<vmem>>, vector<1x1x1x256xf32>
    %1591 = vector.shape_cast %1590 : vector<1x1x1x256xf32> to vector<1x256xf32>
    %1592 = vector.broadcast %1591 : vector<1x256xf32> to vector<4x256xf32>
    %1593 = arith.mulf %1589, %1592 : vector<4x256xf32>
    %c2_959 = arith.constant 2 : index
    %c0_960 = arith.constant 0 : index
    %c2_961 = arith.constant 2 : index
    %c0_962 = arith.constant 0 : index
    %c0_963 = arith.constant 0 : index
    %1594 = vector.load %arg3[%c2_959, %c0_960, %c2_961, %c0_962, %c0_963] : memref<3x3x3x4x4xf32, #tpu.memory_space<vmem>>, vector<1x1x1x4x4xf32>
    %1595 = vector.shape_cast %1594 : vector<1x1x1x4x4xf32> to vector<4x4xf32>
    %cst_964 = arith.constant dense<0.000000e+00> : vector<4x256xf32>
    %1596 = tpu.matmul %1595, %1593, %cst_964 {dimension_numbers = #tpu.dot_dimension_numbers<[1], [0], [0], [1], [0, 0, 1, 1], [], []>} : vector<4x4xf32>, vector<4x256xf32>, vector<4x256xf32> -> vector<4x256xf32>
    %1597 = arith.addf %1580, %1596 : vector<4x256xf32>
    %c1_i32_965 = arith.constant 1 : i32
    %1598 = tpu.dynamic_rotate %1543 by %c1_i32_965 dim 1 : vector<4x256xf32>, i32 -> vector<4x256xf32>
    %c255_i32_966 = arith.constant 255 : i32
    %1599 = tpu.dynamic_rotate %1543 by %c255_i32_966 dim 1 : vector<4x256xf32>, i32 -> vector<4x256xf32>
    %1600 = vector.broadcast %6 : vector<1x1xf32> to vector<4x256xf32>
    %1601 = arith.mulf %1598, %1600 : vector<4x256xf32>
    %cst_967 = arith.constant 1.000000e+00 : f32
    %1602 = vector.broadcast %cst_967 : f32 to vector<1x1xf32>
    %1603 = arith.subf %1602, %6 : vector<1x1xf32>
    %1604 = vector.broadcast %1603 : vector<1x1xf32> to vector<4x256xf32>
    %1605 = arith.mulf %1599, %1604 : vector<4x256xf32>
    %1606 = arith.addf %1601, %1605 : vector<4x256xf32>
    %c1_968 = arith.constant 1 : index
    %c0_969 = arith.constant 0 : index
    %c0_970 = arith.constant 0 : index
    %c0_971 = arith.constant 0 : index
    %1607 = vector.load %arg7[%c1_968, %c0_969, %c0_970, %c0_971] : memref<3x3x1x256xf32, #tpu.memory_space<vmem>>, vector<1x1x1x256xf32>
    %1608 = vector.shape_cast %1607 : vector<1x1x1x256xf32> to vector<1x256xf32>
    %1609 = vector.broadcast %1608 : vector<1x256xf32> to vector<4x256xf32>
    %1610 = arith.mulf %1606, %1609 : vector<4x256xf32>
    %c2_972 = arith.constant 2 : index
    %c1_973 = arith.constant 1 : index
    %c0_974 = arith.constant 0 : index
    %c0_975 = arith.constant 0 : index
    %c0_976 = arith.constant 0 : index
    %1611 = vector.load %arg3[%c2_972, %c1_973, %c0_974, %c0_975, %c0_976] : memref<3x3x3x4x4xf32, #tpu.memory_space<vmem>>, vector<1x1x1x4x4xf32>
    %1612 = vector.shape_cast %1611 : vector<1x1x1x4x4xf32> to vector<4x4xf32>
    %cst_977 = arith.constant dense<0.000000e+00> : vector<4x256xf32>
    %1613 = tpu.matmul %1612, %1610, %cst_977 {dimension_numbers = #tpu.dot_dimension_numbers<[1], [0], [0], [1], [0, 0, 1, 1], [], []>} : vector<4x4xf32>, vector<4x256xf32>, vector<4x256xf32> -> vector<4x256xf32>
    %1614 = arith.addf %1597, %1613 : vector<4x256xf32>
    %c255_i32_978 = arith.constant 255 : i32
    %1615 = tpu.dynamic_rotate %1543 by %c255_i32_978 dim 1 : vector<4x256xf32>, i32 -> vector<4x256xf32>
    %c1_i32_979 = arith.constant 1 : i32
    %1616 = tpu.dynamic_rotate %1543 by %c1_i32_979 dim 1 : vector<4x256xf32>, i32 -> vector<4x256xf32>
    %1617 = vector.broadcast %6 : vector<1x1xf32> to vector<4x256xf32>
    %1618 = arith.mulf %1615, %1617 : vector<4x256xf32>
    %cst_980 = arith.constant 1.000000e+00 : f32
    %1619 = vector.broadcast %cst_980 : f32 to vector<1x1xf32>
    %1620 = arith.subf %1619, %6 : vector<1x1xf32>
    %1621 = vector.broadcast %1620 : vector<1x1xf32> to vector<4x256xf32>
    %1622 = arith.mulf %1616, %1621 : vector<4x256xf32>
    %1623 = arith.addf %1618, %1622 : vector<4x256xf32>
    %c1_981 = arith.constant 1 : index
    %c2_982 = arith.constant 2 : index
    %c0_983 = arith.constant 0 : index
    %c0_984 = arith.constant 0 : index
    %1624 = vector.load %arg7[%c1_981, %c2_982, %c0_983, %c0_984] : memref<3x3x1x256xf32, #tpu.memory_space<vmem>>, vector<1x1x1x256xf32>
    %1625 = vector.shape_cast %1624 : vector<1x1x1x256xf32> to vector<1x256xf32>
    %1626 = vector.broadcast %1625 : vector<1x256xf32> to vector<4x256xf32>
    %1627 = arith.mulf %1623, %1626 : vector<4x256xf32>
    %c2_985 = arith.constant 2 : index
    %c1_986 = arith.constant 1 : index
    %c2_987 = arith.constant 2 : index
    %c0_988 = arith.constant 0 : index
    %c0_989 = arith.constant 0 : index
    %1628 = vector.load %arg3[%c2_985, %c1_986, %c2_987, %c0_988, %c0_989] : memref<3x3x3x4x4xf32, #tpu.memory_space<vmem>>, vector<1x1x1x4x4xf32>
    %1629 = vector.shape_cast %1628 : vector<1x1x1x4x4xf32> to vector<4x4xf32>
    %cst_990 = arith.constant dense<0.000000e+00> : vector<4x256xf32>
    %1630 = tpu.matmul %1629, %1627, %cst_990 {dimension_numbers = #tpu.dot_dimension_numbers<[1], [0], [0], [1], [0, 0, 1, 1], [], []>} : vector<4x4xf32>, vector<4x256xf32>, vector<4x256xf32> -> vector<4x256xf32>
    %1631 = arith.addf %1614, %1630 : vector<4x256xf32>
    %c241_i32_991 = arith.constant 241 : i32
    %1632 = tpu.dynamic_rotate %1543 by %c241_i32_991 dim 1 : vector<4x256xf32>, i32 -> vector<4x256xf32>
    %c15_i32_992 = arith.constant 15 : i32
    %1633 = tpu.dynamic_rotate %1543 by %c15_i32_992 dim 1 : vector<4x256xf32>, i32 -> vector<4x256xf32>
    %1634 = vector.broadcast %6 : vector<1x1xf32> to vector<4x256xf32>
    %1635 = arith.mulf %1632, %1634 : vector<4x256xf32>
    %cst_993 = arith.constant 1.000000e+00 : f32
    %1636 = vector.broadcast %cst_993 : f32 to vector<1x1xf32>
    %1637 = arith.subf %1636, %6 : vector<1x1xf32>
    %1638 = vector.broadcast %1637 : vector<1x1xf32> to vector<4x256xf32>
    %1639 = arith.mulf %1633, %1638 : vector<4x256xf32>
    %1640 = arith.addf %1635, %1639 : vector<4x256xf32>
    %c2_994 = arith.constant 2 : index
    %c0_995 = arith.constant 0 : index
    %c0_996 = arith.constant 0 : index
    %c0_997 = arith.constant 0 : index
    %1641 = vector.load %arg7[%c2_994, %c0_995, %c0_996, %c0_997] : memref<3x3x1x256xf32, #tpu.memory_space<vmem>>, vector<1x1x1x256xf32>
    %1642 = vector.shape_cast %1641 : vector<1x1x1x256xf32> to vector<1x256xf32>
    %1643 = vector.broadcast %1642 : vector<1x256xf32> to vector<4x256xf32>
    %1644 = arith.mulf %1640, %1643 : vector<4x256xf32>
    %c2_998 = arith.constant 2 : index
    %c2_999 = arith.constant 2 : index
    %c0_1000 = arith.constant 0 : index
    %c0_1001 = arith.constant 0 : index
    %c0_1002 = arith.constant 0 : index
    %1645 = vector.load %arg3[%c2_998, %c2_999, %c0_1000, %c0_1001, %c0_1002] : memref<3x3x3x4x4xf32, #tpu.memory_space<vmem>>, vector<1x1x1x4x4xf32>
    %1646 = vector.shape_cast %1645 : vector<1x1x1x4x4xf32> to vector<4x4xf32>
    %cst_1003 = arith.constant dense<0.000000e+00> : vector<4x256xf32>
    %1647 = tpu.matmul %1646, %1644, %cst_1003 {dimension_numbers = #tpu.dot_dimension_numbers<[1], [0], [0], [1], [0, 0, 1, 1], [], []>} : vector<4x4xf32>, vector<4x256xf32>, vector<4x256xf32> -> vector<4x256xf32>
    %1648 = arith.addf %1631, %1647 : vector<4x256xf32>
    %c240_i32_1004 = arith.constant 240 : i32
    %1649 = tpu.dynamic_rotate %1543 by %c240_i32_1004 dim 1 : vector<4x256xf32>, i32 -> vector<4x256xf32>
    %c16_i32_1005 = arith.constant 16 : i32
    %1650 = tpu.dynamic_rotate %1543 by %c16_i32_1005 dim 1 : vector<4x256xf32>, i32 -> vector<4x256xf32>
    %1651 = vector.broadcast %6 : vector<1x1xf32> to vector<4x256xf32>
    %1652 = arith.mulf %1649, %1651 : vector<4x256xf32>
    %cst_1006 = arith.constant 1.000000e+00 : f32
    %1653 = vector.broadcast %cst_1006 : f32 to vector<1x1xf32>
    %1654 = arith.subf %1653, %6 : vector<1x1xf32>
    %1655 = vector.broadcast %1654 : vector<1x1xf32> to vector<4x256xf32>
    %1656 = arith.mulf %1650, %1655 : vector<4x256xf32>
    %1657 = arith.addf %1652, %1656 : vector<4x256xf32>
    %c2_1007 = arith.constant 2 : index
    %c1_1008 = arith.constant 1 : index
    %c0_1009 = arith.constant 0 : index
    %c0_1010 = arith.constant 0 : index
    %1658 = vector.load %arg7[%c2_1007, %c1_1008, %c0_1009, %c0_1010] : memref<3x3x1x256xf32, #tpu.memory_space<vmem>>, vector<1x1x1x256xf32>
    %1659 = vector.shape_cast %1658 : vector<1x1x1x256xf32> to vector<1x256xf32>
    %1660 = vector.broadcast %1659 : vector<1x256xf32> to vector<4x256xf32>
    %1661 = arith.mulf %1657, %1660 : vector<4x256xf32>
    %c2_1011 = arith.constant 2 : index
    %c2_1012 = arith.constant 2 : index
    %c1_1013 = arith.constant 1 : index
    %c0_1014 = arith.constant 0 : index
    %c0_1015 = arith.constant 0 : index
    %1662 = vector.load %arg3[%c2_1011, %c2_1012, %c1_1013, %c0_1014, %c0_1015] : memref<3x3x3x4x4xf32, #tpu.memory_space<vmem>>, vector<1x1x1x4x4xf32>
    %1663 = vector.shape_cast %1662 : vector<1x1x1x4x4xf32> to vector<4x4xf32>
    %cst_1016 = arith.constant dense<0.000000e+00> : vector<4x256xf32>
    %1664 = tpu.matmul %1663, %1661, %cst_1016 {dimension_numbers = #tpu.dot_dimension_numbers<[1], [0], [0], [1], [0, 0, 1, 1], [], []>} : vector<4x4xf32>, vector<4x256xf32>, vector<4x256xf32> -> vector<4x256xf32>
    %1665 = arith.addf %1648, %1664 : vector<4x256xf32>
    %c239_i32_1017 = arith.constant 239 : i32
    %1666 = tpu.dynamic_rotate %1543 by %c239_i32_1017 dim 1 : vector<4x256xf32>, i32 -> vector<4x256xf32>
    %c17_i32_1018 = arith.constant 17 : i32
    %1667 = tpu.dynamic_rotate %1543 by %c17_i32_1018 dim 1 : vector<4x256xf32>, i32 -> vector<4x256xf32>
    %1668 = vector.broadcast %6 : vector<1x1xf32> to vector<4x256xf32>
    %1669 = arith.mulf %1666, %1668 : vector<4x256xf32>
    %cst_1019 = arith.constant 1.000000e+00 : f32
    %1670 = vector.broadcast %cst_1019 : f32 to vector<1x1xf32>
    %1671 = arith.subf %1670, %6 : vector<1x1xf32>
    %1672 = vector.broadcast %1671 : vector<1x1xf32> to vector<4x256xf32>
    %1673 = arith.mulf %1667, %1672 : vector<4x256xf32>
    %1674 = arith.addf %1669, %1673 : vector<4x256xf32>
    %c2_1020 = arith.constant 2 : index
    %c2_1021 = arith.constant 2 : index
    %c0_1022 = arith.constant 0 : index
    %c0_1023 = arith.constant 0 : index
    %1675 = vector.load %arg7[%c2_1020, %c2_1021, %c0_1022, %c0_1023] : memref<3x3x1x256xf32, #tpu.memory_space<vmem>>, vector<1x1x1x256xf32>
    %1676 = vector.shape_cast %1675 : vector<1x1x1x256xf32> to vector<1x256xf32>
    %1677 = vector.broadcast %1676 : vector<1x256xf32> to vector<4x256xf32>
    %1678 = arith.mulf %1674, %1677 : vector<4x256xf32>
    %c2_1024 = arith.constant 2 : index
    %c2_1025 = arith.constant 2 : index
    %c2_1026 = arith.constant 2 : index
    %c0_1027 = arith.constant 0 : index
    %c0_1028 = arith.constant 0 : index
    %1679 = vector.load %arg3[%c2_1024, %c2_1025, %c2_1026, %c0_1027, %c0_1028] : memref<3x3x3x4x4xf32, #tpu.memory_space<vmem>>, vector<1x1x1x4x4xf32>
    %1680 = vector.shape_cast %1679 : vector<1x1x1x4x4xf32> to vector<4x4xf32>
    %cst_1029 = arith.constant dense<0.000000e+00> : vector<4x256xf32>
    %1681 = tpu.matmul %1680, %1678, %cst_1029 {dimension_numbers = #tpu.dot_dimension_numbers<[1], [0], [0], [1], [0, 0, 1, 1], [], []>} : vector<4x4xf32>, vector<4x256xf32>, vector<4x256xf32> -> vector<4x256xf32>
    %1682 = arith.addf %1665, %1681 : vector<4x256xf32>
    %1683 = arith.addf %1128, %1682 : vector<4x256xf32>
    %c2_1030 = arith.constant 2 : index
    %c0_1031 = arith.constant 0 : index
    %c0_1032 = arith.constant 0 : index
    %1684 = vector.load %arg4[%c2_1030, %c0_1031, %c0_1032] : memref<3x4x1xf32, #tpu.memory_space<vmem>>, vector<1x4x1xf32>
    %1685 = vector.shape_cast %1684 : vector<1x4x1xf32> to vector<4x1xf32>
    %1686 = vector.broadcast %1685 : vector<4x1xf32> to vector<4x256xf32>
    %1687 = arith.addf %1683, %1686 : vector<4x256xf32>
    %c0_1033 = arith.constant 0 : index
    %c0_1034 = arith.constant 0 : index
    %c0_1035 = arith.constant 0 : index
    %1688 = vector.load %arg9[%c0_1033, %c0_1034, %c0_1035] : memref<2x4x256xf32, #tpu.memory_space<vmem>>, vector<1x4x256xf32>
    %1689 = vector.shape_cast %1688 : vector<1x4x256xf32> to vector<4x256xf32>
    %1690 = vector.shape_cast %1420 : vector<4x256xf32> to vector<1x4x256xf32>
    tpu.vector_store %arg9[%c0_1033, %c0_1034, %c0_1035], %1690 {strides = array<i32>} : memref<2x4x256xf32, #tpu.memory_space<vmem>>, vector<1x4x256xf32>,
    %c1_1036 = arith.constant 1 : index
    %c0_1037 = arith.constant 0 : index
    %c0_1038 = arith.constant 0 : index
    %1691 = vector.load %arg9[%c1_1036, %c0_1037, %c0_1038] : memref<2x4x256xf32, #tpu.memory_space<vmem>>, vector<1x4x256xf32>
    %1692 = vector.shape_cast %1691 : vector<1x4x256xf32> to vector<4x256xf32>
    %1693 = vector.shape_cast %1687 : vector<4x256xf32> to vector<1x4x256xf32>
    tpu.vector_store %arg9[%c1_1036, %c0_1037, %c0_1038], %1693 {strides = array<i32>} : memref<2x4x256xf32, #tpu.memory_space<vmem>>, vector<1x4x256xf32>,
    return
  }
}

</mosaic_0001>

<bundles_post_ra>
// kernel: pool_block_forward.1
= control target key start
LH: loop header
LB: loop body
LE: loop exit
PB: predicated region body
PF: predicated region fallthrough
CT: control target
= control target key end

     0   :  { %vm55_vm0 = vcmask 1043456   ;;  %v5752_v25 = vmov 0   ;;  %s5753_s14 = smov 127   ;;  %v5754_v54 = vmov 839922192   ;;  %s5755_s20 = smov 2   ;;  %s8205_s0 = inlined_call_operand.vmem [shape: f32[2,4,256], index: 0, kind: input, shape index: {}]   ;;  %s8206_s8 = inlined_call_operand.vmem [shape: s32[1,256], index: 8, kind: input, shape index: {}]   ;;  %s8207_s1 = inlined_call_operand.vmem [shape: f32[3,2,4,1], index: 1, kind: input, shape index: {}]   ;;  %s8208_s2 = inlined_call_operand.vmem [shape: f32[3,2,4,1], index: 2, kind: input, shape index: {}]   ;;  %s8209_s5 = inlined_call_operand.vmem [shape: f32[5,1,256], index: 5, kind: input, shape index: {}]   ;;  %s8210_s6 = inlined_call_operand.vmem [shape: f32[5,1,256], index: 6, kind: input, shape index: {}]   ;;  %s8211_s7 = inlined_call_operand.vmem [shape: f32[3,3,1,256], index: 7, kind: input, shape index: {}]   ;;  %s8212_s3 = inlined_call_operand.vmem [shape: f32[3,3,3,4,4], index: 3, kind: input, shape index: {}]   ;;  %s8213_s4 = inlined_call_operand.vmem [shape: f32[3,4,1], index: 4, kind: input, shape index: {}]   ;;  %s8214_s9 = inlined_call_operand.vmem [shape: f32[2,4,256], index: 9, kind: output, shape index: {}]  }
   0x1   :  { %v5820_v0 = vld [vmem:[%s8205_s0] sm:$0xff]  ;;  %v5826_v1 = vld [vmem:[%s8205_s0 + $0x8] sm:$0xff]  ;;  %5743 = vset.pattern.permute.xlu2 %v5752_v25  ;;  %5744 = vset.pattern.permute.xlu1 %v5752_v25  ;;  %v125_v55 = vunpack.c.l.s4 %v5754_v54  ;;  %s5756_s21 = smov 126   ;;  %s5758_s22 = smov 1   ;;  %vm454_vm15 = vcmask 31744  }
   0x2   :  { %50 = vst [vmem:[#allocation1] ss:$2 sm:$0xff] %v5820_v0  ;;  %v74_v7 = vmul.f32 %v5820_v0, %v5820_v0  ;;  %v87_v13 = vmul.f32 %v5826_v1, %v5826_v1  ;;  %5745 = vset.pattern.permute.xlu0 %v5752_v25  ;;  %v32_v35 = vld [vmem:[%s8206_s8] sm:$0x3]  ;;  %v5513_v46 = vld [vmem:[%s8207_s1 + $0x4] sm:$0xf] }
   0x3   :  { %v34_v36 = vperm.slane %v32_v35, 1  ;;  %v33_v37 = vperm.slane %v32_v35, 0  ;;  %v115_v45 = vld [vmem:[%s8207_s1] sm:$0xf]  ;;  %v5860_v57 = vunpack.c.0.s8 %v125_v55  ;;  %v5458_v35 = vld [vmem:[%s8209_s5 + $0x8] sm:$0x3] }
   0x4   :  { %v117_v52 = vld [vmem:[%s8208_s2] sm:$0xf]  ;;  %s5760_s12 = smov 96   ;;  %s5761_s0 = smov 16  }
   0x5   :  { %8287 = vst [vmem:[#allocation2_spill] sm:$0xff] %v5860_v57  ;;  %s5762_s13 = smov 112   ;;  %s5764_s27 = smov 111  }
   0x6   :  { %s5765_s28 = smov 113   ;;  %s5766_s29 = smov 15  }
   0x9   :  { %v51_v2 = vld.sshfl [vmem:[#allocation1] sm:$0xff pattern:$0x75316420]  ;;  %v52_v3 = vld.sshfl [vmem:[#allocation1 + $0x8] sm:$0xff pattern:$0x75316420] }
   0xa   :  { %v56_v4 = vsel %vm55_vm0, %v51_v2, 0.0  ;;  %v57_v5 = vsel %vm55_vm0, %v52_v3, 0.0  ;;  %63 = vst [vmem:[#allocation1] ss:$2 sm:$0xff] %v5826_v1  ;;  %v39_v3 = vlaneseq }
   0xb   :  { %v58_v6 = vadd.f32 %v57_v5, %v56_v4 }
   0xd   :  { %59 = vadd.xlane.f32.xlu0 %v58_v6  ;;  %v5870_v6 = vand.u32 127, %v39_v3 }
   0xf   :  { %vm41_vm4 = vcmp.lt.s32.totalorder %v5870_v6, 127  ;;  %vm162_vm6 = vcmp.lt.s32.totalorder %v5870_v6, 126  ;;  %vm150_vm7 = vcmp.lt.s32.totalorder %v5870_v6, 2  ;;  %vm203_vm8 = vcmp.lt.s32.totalorder %v5870_v6, 1 }
  0x10   :  { %vm302_vm9 = vcmp.lt.s32.totalorder %v5870_v6, 96  ;;  %vm290_vm10 = vcmp.lt.s32.totalorder %v5870_v6, 32  ;;  %vm334_vm11 = vcmp.lt.s32.totalorder %v5870_v6, 16  ;;  %vm346_vm12 = vcmp.lt.s32.totalorder %v5870_v6, 112 }
  0x11   :  { %v64_v8 = vld.sshfl [vmem:[#allocation1] sm:$0xff pattern:$0x75316420]  ;;  %v65_v9 = vld.sshfl [vmem:[#allocation1 + $0x8] sm:$0xff pattern:$0x75316420] }
  0x12   :  { %v68_v10 = vsel %vm55_vm0, %v64_v8, 0.0  ;;  %v69_v11 = vsel %vm55_vm0, %v65_v9, 0.0  ;;  %76 = vst [vmem:[#allocation1] ss:$2 sm:$0xff] %v74_v7  ;;  %vm436_vm13 = vcmp.lt.s32.totalorder %v5870_v6, 111  ;;  %vm424_vm14 = vcmp.lt.s32.totalorder %v5870_v6, 17 }
  0x13   :  { %v70_v12 = vadd.f32 %v69_v11, %v68_v10  ;;  %v5757_v10 = vmov 0.0  }
  0x15   :  { %71 = vadd.xlane.f32.xlu0 %v70_v12 }
  0x19   :  { %v77_v14 = vld.sshfl [vmem:[#allocation1] sm:$0xff pattern:$0x75316420]  ;;  %v78_v15 = vld.sshfl [vmem:[#allocation1 + $0x8] sm:$0xff pattern:$0x75316420] }
  0x1a   :  { %v81_v16 = vsel %vm55_vm0, %v77_v14, 0.0  ;;  %v82_v17 = vsel %vm55_vm0, %v78_v15, 0.0  ;;  %89 = vst [vmem:[#allocation1] ss:$2 sm:$0xff] %v87_v13 }
  0x1b   :  { %v83_v18 = vadd.f32 %v82_v17, %v81_v16 }
  0x1d   :  { %84 = vadd.xlane.f32.xlu1 %v83_v18 }
  0x21   :  { %v90_v19 = vld.sshfl [vmem:[#allocation1] sm:$0xff pattern:$0x75316420]  ;;  %v91_v20 = vld.sshfl [vmem:[#allocation1 + $0x8] sm:$0xff pattern:$0x75316420] }
  0x22   :  { %v94_v21 = vsel %vm55_vm0, %v90_v19, 0.0  ;;  %v95_v22 = vsel %vm55_vm0, %v91_v20, 0.0 }
  0x23   :  { %v96_v23 = vadd.f32 %v95_v22, %v94_v21 }
  0x25   :  { %97 = vadd.xlane.f32.xlu1 %v96_v23 }
  0x29   :  { %35 = vrot.lane.b32.xlu0 %v33_v37, %s5753_s14 }
  0x3e   :  { %37 = vrot.lane.b32.xlu1 %v34_v36, %s5753_s14 }
  0x80   :  { %v60_v24 = vpop.xlane.xlu0 %59 }
  0x88   :  { %v72_v26 = vpop.xlane.xlu0 %71 }
  0x89   :  { %v73_v28 = vadd.f32 %v72_v26, %v60_v24  ;;  %v180_v26 = vld [vmem:[%s8209_s5] sm:$0x3] }
  0x8b   :  { %v100_v29 = vmul.f32 0.001953125, %v73_v28 }
  0x8d   :  { %v102_v33 = vmul.f32 %v100_v29, %v100_v29 }
  0x90   :  { %v85_v27 = vpop.xlane.xlu1 %84 }
  0x98   :  { %v98_v30 = vpop.xlane.xlu1 %97 }
  0x99   :  { %v99_v31 = vadd.f32 %v98_v30, %v85_v27 }
  0x9b   :  { %v101_v32 = vmul.f32 0.001953125, %v99_v31  ;;  %v36_v5 = vpop.permute.xlu0 %35 }
  0x9d   :  { %v103_v34 = vsub.f32 %v101_v32, %v102_v33 }
  0x9f   :  { %v104_v38 = vadd.f32 1e-05, %v103_v34 }
  0xa1   :  { %5746 = vrsqrt.f32 %v104_v38  ;;  %vm111_vm2 = vweird.f32 %v104_v38 }
  0xa7   :  { %v5747_v39 = vpop.eup %5746 }
  0xa8   :  { %v106_v40 = vmul.f32 %v5747_v39, %v104_v38  ;;  %vm112_vm1 = vweird.f32 %v5747_v39  ;;  %v5456_v38 = vld [vmem:[%s8209_s5 + $0x2] sm:$0x3] }
  0xa9   :  { %vm113_vm3 = vmor %vm111_vm2, %vm112_vm1  ;;  %vm8233_vm1 = vcmp.lt.s32.totalorder %v5870_v6, 15  ;;  %vm665_vm2 = vcmp.lt.s32.totalorder %v5870_v6, 113 }
  0xaa   :  { %v107_v41 = vmul.f32 %v5747_v39, %v106_v40 }
  0xac   :  { %v108_v42 = vmul.f32 0.5, %v107_v41  ;;  %v5457_v41 = vld [vmem:[%s8209_s5 + $0x6] sm:$0x3]  ;;  %s5759_s5 = smov 32  }
  0xad   :  { %v5931_v54 = vperm.slane %v5457_v41, 1 }
  0xae   :  { %v109_v43 = vsub.f32 1.5, %v108_v42 }
  0xb0   :  { %v110_v44 = vmul.f32 %v5747_v39, %v109_v43  ;;  %v38_v4 = vpop.permute.xlu1 %37 }
  0xb1   :  { %v42_v7 = vsel %vm41_vm4, %v36_v5, %v38_v4 }
  0xb2   :  { %v114_v47 = vsel %vm113_vm3, %v5747_v39, %v110_v44  ;;  %vm43_vm5 = vcmp.eq.s32.totalorder %v42_v7, 1  ;;  %v5924_v44 = vperm.slane %v180_v26, 0  ;;  %v5945_v7 = vperm.slane %v5456_v38, 0 }
  0xb3   :  { %v116_v48 = vmul.f32 %v115_v45, %v114_v47  ;;  %v5852_v49 = vmul.f32 %v5513_v46, %v114_v47  ;;  %v5454_v11 = vsel %vm43_vm5, 1.0, %v5757_v10  ;;  %v5926_v45 = vperm.slane %v5458_v35, 1 }
  0xb4   :  { %5724 = vpush %v5454_v11  ;;  %v171_v12 = vsub.f32 1.0, %v5454_v11  ;;  %v5928_v47 = vperm.slane %v5456_v38, 1 }
  0xb5   :  { %v5855_v50 = vmul.f32 %v5852_v49, %v100_v29  ;;  %122 = vperm.xlu2 %5743, %v116_v48   ;;  %v118_v51 = vmul.f32 %v116_v48, %v100_v29  ;;  %v5899_v29 = vperm.slane %v180_v26, 1  ;;  %8289 = vst [vmem:[#allocation4_spill] sm:$0xff] %v5924_v44 }
  0xb6   :  { %5726 = vpush %v171_v12 }
  0xb7   :  { %v119_v53 = vsub.f32 %v117_v52, %v118_v51  ;;  %8288 = vst [vmem:[#allocation3_spill] sm:$0xff] %v5899_v29 }
  0xbd   :  { %132 = vperm.xlu2 %5743, %v119_v53  }
  0xe5   :  { %s5725_s23 = spop %5724 }
  0xe6   :  { %v5890_v23 = vstv %s5725_s23 }
  0xe7   :  { %s5727_s24 = spop %5726 }
  0xe8   :  { %v5892_v24 = vstv %s5727_s24 }
 0x10f   :  { %v123_v56 = vpop.permute.xlu2 %122 }
 0x110   :  { %v127_v58 = vperm.slane %v123_v56, %v5860_v57 }
 0x112   :  { %v129_v60 = vmul.f32 %v127_v58, %v5820_v0 }
 0x117   :  { %v133_v59 = vpop.permute.xlu2 %132 }
 0x118   :  { %v137_v61 = vperm.slane %v133_v59, %v5860_v57 }
 0x11a   :  { %v5865_v62 = vadd.f32 %v137_v61, %v129_v60 }
 0x11c   :  { %141 = vst [vmem:[#allocation1] ss:$2 sm:$0xff] %v5865_v62 }
 0x123   :  { %v142_v63 = vld.sshfl [vmem:[#allocation1] sm:$0xff pattern:$0x75316420]  ;;  %v143_v2 = vld.sshfl [vmem:[#allocation1 + $0x8] sm:$0xff pattern:$0x75316420] }
 0x124   :  { %153 = vst [vmem:[#allocation1] ss:$2 sm:$0xff] %v5865_v62  ;;  %146 = vrot.lane.b32.xlu2 %v142_v63, %s5755_s20 }
 0x12b   :  { %v154_v8 = vld.sshfl [vmem:[#allocation1] sm:$0xff pattern:$0x75316420]  ;;  %v155_v9 = vld.sshfl [vmem:[#allocation1 + $0x8] sm:$0xff pattern:$0x75316420] }
 0x12c   :  { %194 = vst [vmem:[#allocation1] ss:$2 sm:$0xff] %v5865_v62  ;;  %148 = vrot.lane.b32.xlu2 %v143_v2, %s5755_s20  ;;  %160 = vrot.lane.b32.xlu0 %v155_v9, %s5756_s21 }
 0x133   :  { %v195_v13 = vld.sshfl [vmem:[#allocation1] sm:$0xff pattern:$0x75316420]  ;;  %v196_v14 = vld.sshfl [vmem:[#allocation1 + $0x8] sm:$0xff pattern:$0x75316420] }
 0x134   :  { %206 = vst [vmem:[#allocation1] ss:$2 sm:$0xff] %v5865_v62  ;;  %158 = vrot.lane.b32.xlu2 %v154_v8, %s5756_s21  ;;  %201 = vrot.lane.b32.xlu1 %v196_v14, %s5758_s22  ;;  %v5950_v14 = vperm.slane %v5457_v41, 0 }
 0x13b   :  { %v207_v15 = vld.sshfl [vmem:[#allocation1] sm:$0xff pattern:$0x75316420]  ;;  %v208_v16 = vld.sshfl [vmem:[#allocation1 + $0x8] sm:$0xff pattern:$0x75316420] }
 0x13c   :  { %199 = vrot.lane.b32.xlu2 %v195_v13, %s5758_s22  ;;  %211 = vrot.lane.b32.xlu0 %v207_v15, %s5753_s14 }
 0x144   :  { %213 = vrot.lane.b32.xlu2 %v208_v16, %s5753_s14 }
 0x17e   :  { %v147_v17 = vpop.permute.xlu2 %146 }
 0x186   :  { %v149_v18 = vpop.permute.xlu2 %148 }
 0x187   :  { %v151_v22 = vsel %vm150_vm7, %v147_v17, %v149_v18  ;;  %v152_v32 = vsel %vm150_vm7, %v149_v18, %v147_v17 }
 0x188   :  { %v170_v27 = vmul.f32 %v5890_v23, %v151_v22  ;;  %v169_v39 = vmul.f32 %v5890_v23, %v152_v32  ;;  %v262_v42 = vmul.f32 %v5892_v24, %v151_v22  ;;  %v261_v12 = vmul.f32 %v5892_v24, %v152_v32 }
 0x18e   :  { %v159_v19 = vpop.permute.xlu2 %158 }
 0x196   :  { %v200_v28 = vpop.permute.xlu2 %199 }
 0x19e   :  { %v161_v20 = vpop.permute.xlu0 %160  ;;  %v214_v48 = vpop.permute.xlu2 %213 }
 0x19f   :  { %v164_v21 = vsel %vm162_vm6, %v161_v20, %v159_v19  ;;  %v163_v30 = vsel %vm162_vm6, %v159_v19, %v161_v20  ;;  %v5955_v19 = vperm.slane %v5458_v35, 0 }
 0x1a0   :  { %v177_v25 = vmul.f32 %v5892_v24, %v164_v21  ;;  %v176_v34 = vmul.f32 %v5892_v24, %v163_v30  ;;  %v260_v37 = vmul.f32 %v5890_v23, %v164_v21  ;;  %v259_v5 = vmul.f32 %v5890_v23, %v163_v30 }
 0x1a2   :  { %v179_v31 = vadd.f32 %v177_v25, %v170_v27  ;;  %v178_v46 = vadd.f32 %v176_v34, %v169_v39  ;;  %v264_v52 = vadd.f32 %v262_v42, %v260_v37  ;;  %v263_v20 = vadd.f32 %v261_v12, %v259_v5 }
 0x1a4   :  { %v187_v36 = vadd.f32 %v5899_v29, %v179_v31  ;;  %v186_v4 = vadd.f32 %v5924_v44, %v178_v46  ;;  %v273_v13 = vadd.f32 %v5926_v45, %v264_v52  ;;  %v272_v32 = vadd.f32 %v5955_v19, %v263_v20  ;;  %v5514_v46 = vld [vmem:[%s8208_s2 + $0x4] sm:$0xf] }
 0x1a6   :  { %v202_v33 = vpop.permute.xlu1 %201  ;;  %v190_v51 = vrot.slane %v187_v36, 4  ;;  %v276_v27 = vrot.slane %v273_v13, 4 }
 0x1a7   :  { %v205_v40 = vsel %vm203_vm8, %v202_v33, %v200_v28  ;;  %v204_v43 = vsel %vm203_vm8, %v200_v28, %v202_v33 }
 0x1a8   :  { %v217_v53 = vmul.f32 %v205_v40, %v5890_v23  ;;  %v218_v56 = vmul.f32 %v204_v43, %v5890_v23  ;;  %v241_v58 = vmul.f32 %v204_v43, %v5892_v24  ;;  %v240_v8 = vmul.f32 %v205_v40, %v5892_v24 }
 0x1a9   :  { %v191_v15 = vsel %vm55_vm0, %v186_v4, %v190_v51  ;;  %v277_v35 = vsel %vm55_vm0, %v272_v32, %v276_v27 }
 0x1aa   :  { %v193_v26 = vmax.f32 %v5865_v62, %v191_v15  ;;  %v5460_v15 = vld [vmem:[%s8210_s6 + $0x6] sm:$0x3] }
 0x1ae   :  { %v212_v55 = vpop.permute.xlu0 %211 }
 0x1af   :  { %v215_v59 = vsel %vm41_vm4, %v212_v55, %v214_v48  ;;  %v216_v60 = vsel %vm41_vm4, %v214_v48, %v212_v55  ;;  %v1121_v48 = vsub.f32 %v5514_v46, %v5855_v50  ;;  %v311_v50 = vld [vmem:[%s8210_s6] sm:$0x3] }
 0x1b0   :  { %v219_v61 = vmul.f32 %v215_v59, %v5892_v24  ;;  %v220_v63 = vmul.f32 %v216_v60, %v5892_v24  ;;  %v238_v2 = vmul.f32 %v215_v59, %v5890_v23  ;;  %v239_v3 = vmul.f32 %v216_v60, %v5890_v23 }
 0x1b2   :  { %v221_v9 = vadd.f32 %v219_v61, %v217_v53  ;;  %v222_v10 = vadd.f32 %v220_v63, %v218_v56  ;;  %v243_v11 = vadd.f32 %v241_v58, %v239_v3  ;;  %v242_v17 = vadd.f32 %v240_v8, %v238_v2  ;;  %v5461_v8 = vld [vmem:[%s8210_s6 + $0x8] sm:$0x3] }
 0x1b3   :  { %v5994_v61 = vperm.slane %v311_v50, 1  ;;  %v6022_v20 = vperm.slane %v5461_v8, 1 }
 0x1b4   :  { %v231_v16 = vadd.f32 %v5928_v47, %v222_v10  ;;  %v252_v18 = vadd.f32 %v5931_v54, %v243_v11  ;;  %v230_v21 = vadd.f32 %v5945_v7, %v221_v9  ;;  %v251_v30 = vadd.f32 %v5950_v14, %v242_v17  ;;  %v5459_v11 = vld [vmem:[%s8210_s6 + $0x2] sm:$0x3]  ;;  %s5763_s6 = smov 17  }
 0x1b5   :  { %8291 = vst [vmem:[#allocation6_spill] sm:$0xff] %v6022_v20 }
 0x1b6   :  { %v234_v22 = vrot.slane %v231_v16, 4  ;;  %v255_v25 = vrot.slane %v252_v18, 4  ;;  %v6020_v18 = vperm.slane %v311_v50, 0 }
 0x1b8   :  { %v235_v28 = vsel %vm55_vm0, %v230_v21, %v234_v22  ;;  %v256_v33 = vsel %vm55_vm0, %v251_v30, %v255_v25  ;;  %8290 = vst [vmem:[#allocation5_spill] sm:$0xff] %v6020_v18  ;;  %v6024_v25 = vperm.slane %v5459_v11, 1  ;;  %v6027_v30 = vperm.slane %v5460_v15, 1 }
 0x1b9   :  { %v237_v31 = vmax.f32 %v193_v26, %v235_v28 }
 0x1ba   :  { %8292 = vst [vmem:[#allocation7_spill] sm:$0xff] %v6024_v25 }
 0x1bb   :  { %v258_v34 = vmax.f32 %v237_v31, %v256_v33  ;;  %8293 = vst [vmem:[#allocation8_spill] sm:$0xff] %v6027_v30 }
 0x1bd   :  { %v5964_v36 = vmax.f32 %v258_v34, %v277_v35 }
 0x1bf   :  { %281 = vst [vmem:[#allocation1] ss:$2 sm:$0xff] %v5964_v36 }
 0x1c6   :  { %v282_v37 = vld.sshfl [vmem:[#allocation1] sm:$0xff pattern:$0x75316420]  ;;  %v283_v38 = vld.sshfl [vmem:[#allocation1 + $0x8] sm:$0xff pattern:$0x75316420] }
 0x1c7   :  { %293 = vst [vmem:[#allocation1] ss:$2 sm:$0xff] %v5964_v36  ;;  %288 = vrot.lane.b32.xlu0 %v283_v38, %s5759_s5  ;;  %286 = vrot.lane.b32.xlu1 %v282_v37, %s5759_s5 }
 0x1ce   :  { %v294_v62 = vld.sshfl [vmem:[#allocation1] sm:$0xff pattern:$0x75316420]  ;;  %v295_v39 = vld.sshfl [vmem:[#allocation1 + $0x8] sm:$0xff pattern:$0x75316420] }
 0x1cf   :  { %325 = vst [vmem:[#allocation1] ss:$2 sm:$0xff] %v5964_v36  ;;  %300 = vrot.lane.b32.xlu1 %v295_v39, %s5760_s12  ;;  %298 = vrot.lane.b32.xlu2 %v294_v62, %s5760_s12 }
 0x1d6   :  { %v326_v40 = vld.sshfl [vmem:[#allocation1] sm:$0xff pattern:$0x75316420]  ;;  %v327_v41 = vld.sshfl [vmem:[#allocation1 + $0x8] sm:$0xff pattern:$0x75316420] }
 0x1d7   :  { %337 = vst [vmem:[#allocation1] ss:$2 sm:$0xff] %v5964_v36  ;;  %332 = vrot.lane.b32.xlu2 %v327_v41, %s5761_s0  ;;  %330 = vrot.lane.b32.xlu0 %v326_v40, %s5761_s0 }
 0x1de   :  { %v338_v42 = vld.sshfl [vmem:[#allocation1] sm:$0xff pattern:$0x75316420]  ;;  %v339_v43 = vld.sshfl [vmem:[#allocation1 + $0x8] sm:$0xff pattern:$0x75316420] }
 0x1df   :  { %1124 = vperm.xlu2 %5743, %v5852_v49   ;;  %344 = vrot.lane.b32.xlu0 %v339_v43, %s5762_s13 }
 0x1e0   :  { %342 = vrot.lane.b32.xlu1 %v338_v42, %s5762_s13  ;;  %v6041_v42 = vperm.slane %v5459_v11, 0 }
 0x1e2   :  { %8294 = vst [vmem:[#allocation9_spill] sm:$0xff] %v6041_v42 }
 0x1e8   :  { %1134 = vperm.xlu1 %5744, %v1121_v48  }
 0x229   :  { %v299_v55 = vpop.permute.xlu2 %298 }
 0x231   :  { %v333_v5 = vpop.permute.xlu2 %332 }
 0x239   :  { %v287_v51 = vpop.permute.xlu1 %286  ;;  %v289_v52 = vpop.permute.xlu0 %288 }
 0x23a   :  { %v291_v56 = vsel %vm290_vm10, %v287_v51, %v289_v52  ;;  %v292_v3 = vsel %vm290_vm10, %v289_v52, %v287_v51 }
 0x23b   :  { %v306_v59 = vmul.f32 %v291_v56, %v5890_v23  ;;  %v305_v12 = vmul.f32 %v292_v3, %v5890_v23  ;;  %v394_v16 = vmul.f32 %v291_v56, %v5892_v24  ;;  %v393_v52 = vmul.f32 %v292_v3, %v5892_v24 }
 0x241   :  { %v301_v53 = vpop.permute.xlu1 %300 }
 0x242   :  { %v304_v49 = vsel %vm302_vm9, %v301_v53, %v299_v55  ;;  %v303_v63 = vsel %vm302_vm9, %v299_v55, %v301_v53  ;;  %v6046_v55 = vperm.slane %v5460_v15, 0 }
 0x243   :  { %v308_v58 = vmul.f32 %v304_v49, %v5892_v24  ;;  %v307_v4 = vmul.f32 %v303_v63, %v5892_v24  ;;  %v392_v10 = vmul.f32 %v304_v49, %v5890_v23  ;;  %v391_v41 = vmul.f32 %v303_v63, %v5890_v23 }
 0x244   :  { %8295 = vst [vmem:[#allocation10_spill] sm:$0xff] %v6046_v55 }
 0x245   :  { %v310_v2 = vadd.f32 %v308_v58, %v306_v59  ;;  %v309_v21 = vadd.f32 %v307_v4, %v305_v12  ;;  %v396_v27 = vadd.f32 %v394_v16, %v392_v10  ;;  %v6051_v59 = vperm.slane %v5461_v8, 0 }
 0x247   :  { %v318_v9 = vadd.f32 %v5994_v61, %v310_v2  ;;  %v317_v40 = vadd.f32 %v6020_v18, %v309_v21  ;;  %v405_v53 = vadd.f32 %v6022_v20, %v396_v27  ;;  %8296 = vst [vmem:[#allocation11_spill] sm:$0xff] %v6051_v59 }
 0x249   :  { %v331_v60 = vpop.permute.xlu0 %330  ;;  %v321_v26 = vrot.slane %v318_v9, 4 }
 0x24a   :  { %v336_v13 = vsel %vm334_vm11, %v333_v5, %v331_v60  ;;  %v335_v17 = vsel %vm334_vm11, %v331_v60, %v333_v5  ;;  %v395_v60 = vadd.f32 %v393_v52, %v391_v41  ;;  %v408_v5 = vrot.slane %v405_v53, 4 }
 0x24b   :  { %v349_v28 = vmul.f32 %v336_v13, %v5890_v23  ;;  %v350_v32 = vmul.f32 %v335_v17, %v5890_v23  ;;  %v373_v33 = vmul.f32 %v335_v17, %v5892_v24  ;;  %v372_v43 = vmul.f32 %v336_v13, %v5892_v24 }
 0x24c   :  { %v322_v49 = vsel %vm55_vm0, %v317_v40, %v321_v26  ;;  %v404_v12 = vadd.f32 %v6051_v59, %v395_v60 }
 0x24d   :  { %v324_v3 = vmax.f32 %v5964_v36, %v322_v49 }
 0x24e   :  { %v409_v8 = vsel %vm55_vm0, %v404_v12, %v408_v5 }
 0x251   :  { %v345_v22 = vpop.permute.xlu0 %344 }
 0x252   :  { %v343_v31 = vpop.permute.xlu1 %342 }
 0x253   :  { %v347_v34 = vsel %vm346_vm12, %v343_v31, %v345_v22  ;;  %v348_v35 = vsel %vm346_vm12, %v345_v22, %v343_v31 }
 0x254   :  { %v351_v37 = vmul.f32 %v347_v34, %v5892_v24  ;;  %v352_v38 = vmul.f32 %v348_v35, %v5892_v24  ;;  %v370_v62 = vmul.f32 %v347_v34, %v5890_v23  ;;  %v371_v39 = vmul.f32 %v348_v35, %v5890_v23 }
 0x256   :  { %v353_v46 = vadd.f32 %v351_v37, %v349_v28  ;;  %v354_v48 = vadd.f32 %v352_v38, %v350_v32  ;;  %v375_v51 = vadd.f32 %v373_v33, %v371_v39  ;;  %v374_v58 = vadd.f32 %v372_v43, %v370_v62  ;;  %v1125_v62 = vpop.permute.xlu2 %1124 }
 0x257   :  { %v1129_v43 = vperm.slane %v1125_v62, %v5860_v57 }
 0x258   :  { %v363_v56 = vadd.f32 %v6024_v25, %v354_v48  ;;  %v384_v50 = vadd.f32 %v6027_v30, %v375_v51  ;;  %v362_v63 = vadd.f32 %v6041_v42, %v353_v46  ;;  %v383_v10 = vadd.f32 %v6046_v55, %v374_v58 }
 0x259   :  { %v1131_v48 = vmul.f32 %v5826_v1, %v1129_v43 }
 0x25a   :  { %v366_v2 = vrot.slane %v363_v56, 4  ;;  %v387_v4 = vrot.slane %v384_v50, 4  ;;  %v1135_v41 = vpop.permute.xlu1 %1134 }
 0x25b   :  { %v1139_v46 = vperm.slane %v1135_v41, %v5860_v57 }
 0x25c   :  { %v367_v9 = vsel %vm55_vm0, %v362_v63, %v366_v2  ;;  %v388_v13 = vsel %vm55_vm0, %v383_v10, %v387_v4 }
 0x25d   :  { %v369_v11 = vmax.f32 %v324_v3, %v367_v9  ;;  %v6093_v51 = vadd.f32 %v1139_v46, %v1131_v48 }
 0x25f   :  { %v390_v15 = vmax.f32 %v369_v11, %v388_v13 }
 0x261   :  { %v411_v16 = vmax.f32 %v390_v15, %v409_v8 }
 0x263   :  { %415 = vst [vmem:[#allocation1] ss:$2 sm:$0xff] %v411_v16 }
 0x26a   :  { %v6060_v17 = vld.sshfl [vmem:[#allocation1] sm:$0xff pattern:$0x75316420]  ;;  %v6062_v21 = vld.sshfl [vmem:[#allocation1 + $0x8] sm:$0xff pattern:$0x75316420] }
 0x26b   :  { %427 = vst [vmem:[#allocation1] ss:$2 sm:$0xff] %v411_v16 }
 0x272   :  { %v6064_v36 = vld.sshfl [vmem:[#allocation1] sm:$0xff pattern:$0x75316420]  ;;  %v6066_v22 = vld.sshfl [vmem:[#allocation1 + $0x8] sm:$0xff pattern:$0x75316420] }
 0x273   :  { %504 = vst [vmem:[#allocation1] ss:$2 sm:$0xff] %v411_v16 }
 0x27a   :  { %v505_v26 = vld.sshfl [vmem:[#allocation1] sm:$0xff pattern:$0x75316420]  ;;  %v506_v27 = vld.sshfl [vmem:[#allocation1 + $0x8] sm:$0xff pattern:$0x75316420] }
 0x27b   :  { %554 = vst [vmem:[#allocation1] ss:$2 sm:$0xff] %v411_v16  ;;  %5467 = vmatpush.msk.msra.mxu2 %vm55_vm0, %v505_v26  ;;  %5469 = vmatpush.msk.msra.mxu3 %vm55_vm0, %v506_v27 }
 0x282   :  { %v6070_v28 = vld.sshfl [vmem:[#allocation1] sm:$0xff pattern:$0x75316420]  ;;  %v6072_v31 = vld.sshfl [vmem:[#allocation1 + $0x8] sm:$0xff pattern:$0x75316420] }
 0x283   :  { %565 = vst [vmem:[#allocation1] ss:$2 sm:$0xff] %v411_v16 }
 0x28a   :  { %v6074_v32 = vld.sshfl [vmem:[#allocation1] sm:$0xff pattern:$0x75316420]  ;;  %v6076_v33 = vld.sshfl [vmem:[#allocation1 + $0x8] sm:$0xff pattern:$0x75316420] }
 0x28b   :  { %644 = vst [vmem:[#allocation1] ss:$2 sm:$0xff] %v411_v16 }
 0x292   :  { %v6078_v34 = vld.sshfl [vmem:[#allocation1] sm:$0xff pattern:$0x75316420]  ;;  %v6080_v35 = vld.sshfl [vmem:[#allocation1 + $0x8] sm:$0xff pattern:$0x75316420] }
 0x293   :  { %656 = vst [vmem:[#allocation1] ss:$2 sm:$0xff] %v411_v16 }
 0x29a   :  { %v6082_v37 = vld.sshfl [vmem:[#allocation1] sm:$0xff pattern:$0x75316420]  ;;  %v6084_v38 = vld.sshfl [vmem:[#allocation1 + $0x8] sm:$0xff pattern:$0x75316420] }
 0x29b   :  { %736 = vst [vmem:[#allocation1] ss:$2 sm:$0xff] %v411_v16 }
 0x2a2   :  { %v6086_v39 = vld.sshfl [vmem:[#allocation1] sm:$0xff pattern:$0x75316420]  ;;  %v6088_v40 = vld.sshfl [vmem:[#allocation1 + $0x8] sm:$0xff pattern:$0x75316420] }
 0x2a3   :  { %747 = vst [vmem:[#allocation1] ss:$2 sm:$0xff] %v411_v16 }
 0x2aa   :  { %v6095_v52 = vld.sshfl [vmem:[#allocation1] sm:$0xff pattern:$0x75316420]  ;;  %v6097_v53 = vld.sshfl [vmem:[#allocation1 + $0x8] sm:$0xff pattern:$0x75316420] }
 0x2ab   :  { %1143 = vst [vmem:[#allocation1] ss:$2 sm:$0xff] %v6093_v51 }
 0x2b2   :  { %v1144_v49 = vld.sshfl [vmem:[#allocation1] sm:$0xff pattern:$0x75316420]  ;;  %v1145_v56 = vld.sshfl [vmem:[#allocation1 + $0x8] sm:$0xff pattern:$0x75316420] }
 0x2b3   :  { %1154 = vst [vmem:[#allocation1] ss:$2 sm:$0xff] %v6093_v51  ;;  %1150 = vrot.lane.b32.xlu2 %v1145_v56, %s5755_s20  ;;  %1148 = vrot.lane.b32.xlu0 %v1144_v49, %s5755_s20 }
 0x2ba   :  { %v1155_v58 = vld.sshfl [vmem:[#allocation1] sm:$0xff pattern:$0x75316420]  ;;  %v1156_v50 = vld.sshfl [vmem:[#allocation1 + $0x8] sm:$0xff pattern:$0x75316420] }
 0x2bb   :  { %1179 = vst [vmem:[#allocation1] ss:$2 sm:$0xff] %v6093_v51  ;;  %1161 = vrot.lane.b32.xlu0 %v1156_v50, %s5756_s21  ;;  %1159 = vrot.lane.b32.xlu1 %v1155_v58, %s5756_s21 }
 0x2c2   :  { %v1180_v60 = vld.sshfl [vmem:[#allocation1] sm:$0xff pattern:$0x75316420]  ;;  %v1181_v63 = vld.sshfl [vmem:[#allocation1 + $0x8] sm:$0xff pattern:$0x75316420] }
 0x2c3   :  { %1190 = vst [vmem:[#allocation1] ss:$2 sm:$0xff] %v6093_v51  ;;  %1186 = vrot.lane.b32.xlu1 %v1181_v63, %s5758_s22  ;;  %1184 = vrot.lane.b32.xlu2 %v1180_v60, %s5758_s22 }
 0x2ca   :  { %v1191_v2 = vld.sshfl [vmem:[#allocation1] sm:$0xff pattern:$0x75316420]  ;;  %v1192_v4 = vld.sshfl [vmem:[#allocation1 + $0x8] sm:$0xff pattern:$0x75316420] }
 0x2cb   :  { %1197 = vrot.lane.b32.xlu2 %v1192_v4, %s5753_s14  ;;  %1195 = vrot.lane.b32.xlu0 %v1191_v2, %s5753_s14 }
 0x30d   :  { %v1151_v5 = vpop.permute.xlu2 %1150 }
 0x31d   :  { %v1185_v15 = vpop.permute.xlu2 %1184 }
 0x325   :  { %v1149_v3 = vpop.permute.xlu0 %1148  ;;  %v1198_v60 = vpop.permute.xlu2 %1197 }
 0x326   :  { %v1152_v12 = vsel %vm150_vm7, %v1149_v3, %v1151_v5  ;;  %v1153_v27 = vsel %vm150_vm7, %v1151_v5, %v1149_v3 }
 0x327   :  { %v1166_v8 = vmul.f32 %v1152_v12, %v5890_v23  ;;  %v1165_v48 = vmul.f32 %v1153_v27, %v5890_v23  ;;  %v1232_v56 = vmul.f32 %v1152_v12, %v5892_v24 }
 0x32d   :  { %v1162_v9 = vpop.permute.xlu0 %1161  ;;  %v1160_v10 = vpop.permute.xlu1 %1159 }
 0x32e   :  { %v1164_v11 = vsel %vm162_vm6, %v1162_v9, %v1160_v10  ;;  %v1163_v16 = vsel %vm162_vm6, %v1160_v10, %v1162_v9 }
 0x32f   :  { %v1168_v13 = vmul.f32 %v1164_v11, %v5892_v24  ;;  %v1167_v41 = vmul.f32 %v1163_v16, %v5892_v24  ;;  %v1230_v46 = vmul.f32 %v1164_v11, %v5890_v23 }
 0x331   :  { %v1170_v26 = vadd.f32 %v1168_v13, %v1166_v8  ;;  %v1169_v50 = vadd.f32 %v1167_v41, %v1165_v48  ;;  %v1234_v2 = vadd.f32 %v1232_v56, %v1230_v46  ;;  %v1231_v56 = vmul.f32 %v1153_v27, %v5892_v24 }
 0x333   :  { %v1172_v43 = vadd.f32 %v1170_v26, %v5899_v29  ;;  %v1171_v26 = vadd.f32 %v1169_v50, %v5924_v44 }
 0x335   :  { %v1187_v62 = vpop.permute.xlu1 %1186  ;;  %v1175_v63 = vrot.slane %v1172_v43, 4 }
 0x336   :  { %v1189_v49 = vsel %vm203_vm8, %v1187_v62, %v1185_v15  ;;  %v1188_v58 = vsel %vm203_vm8, %v1185_v15, %v1187_v62  ;;  %v1229_v62 = vmul.f32 %v1163_v16, %v5890_v23 }
 0x337   :  { %v1201_v4 = vmul.f32 %v1189_v49, %v5890_v23  ;;  %v1202_v5 = vmul.f32 %v1188_v58, %v5890_v23  ;;  %v1218_v9 = vmul.f32 %v1188_v58, %v5892_v24  ;;  %v1217_v41 = vmul.f32 %v1189_v49, %v5892_v24 }
 0x338   :  { %v1236_v58 = vadd.f32 %v1234_v2, %v5926_v45  ;;  %v1233_v29 = vadd.f32 %v1231_v56, %v1229_v62 }
 0x33d   :  { %v1196_v3 = vpop.permute.xlu0 %1195 }
 0x33e   :  { %v1199_v10 = vsel %vm41_vm4, %v1196_v3, %v1198_v60  ;;  %v1200_v11 = vsel %vm41_vm4, %v1198_v60, %v1196_v3  ;;  %v1176_v60 = vsel %vm55_vm0, %v1171_v26, %v1175_v63  ;;  %v1235_v63 = vadd.f32 %v1233_v29, %v5955_v19 }
 0x33f   :  { %v1203_v12 = vmul.f32 %v1199_v10, %v5892_v24  ;;  %v1204_v13 = vmul.f32 %v1200_v11, %v5892_v24  ;;  %v1215_v15 = vmul.f32 %v1199_v10, %v5890_v23  ;;  %v1216_v8 = vmul.f32 %v1200_v11, %v5890_v23 }
 0x340   :  { %v1178_v49 = vmax.f32 %v6093_v51, %v1176_v60 }
 0x341   :  { %v1205_v43 = vadd.f32 %v1203_v12, %v1201_v4  ;;  %v1206_v46 = vadd.f32 %v1204_v13, %v1202_v5  ;;  %v1220_v48 = vadd.f32 %v1218_v9, %v1216_v8  ;;  %v1219_v10 = vadd.f32 %v1217_v41, %v1215_v15 }
 0x342   :  { %v1239_v4 = vrot.slane %v1236_v58, 4 }
 0x343   :  { %v1208_v3 = vadd.f32 %v1206_v46, %v5928_v47  ;;  %v1222_v11 = vadd.f32 %v1220_v48, %v5931_v54  ;;  %v1207_v50 = vadd.f32 %v1205_v43, %v5945_v7  ;;  %v1221_v27 = vadd.f32 %v1219_v10, %v5950_v14 }
 0x344   :  { %v1240_v13 = vsel %vm55_vm0, %v1235_v63, %v1239_v4 }
 0x345   :  { %v1211_v16 = vrot.slane %v1208_v3, 4  ;;  %v1225_v44 = vrot.slane %v1222_v11, 4 }
 0x347   :  { %v1212_v5 = vsel %vm55_vm0, %v1207_v50, %v1211_v16  ;;  %v1226_v9 = vsel %vm55_vm0, %v1221_v27, %v1225_v44 }
 0x348   :  { %v1214_v2 = vmax.f32 %v1178_v49, %v1212_v5 }
 0x34a   :  { %v1228_v12 = vmax.f32 %v1214_v2, %v1226_v9 }
 0x34c   :  { %v6156_v15 = vmax.f32 %v1228_v12, %v1240_v13 }
 0x34e   :  { %1244 = vst [vmem:[#allocation1] ss:$2 sm:$0xff] %v6156_v15 }
 0x355   :  { %v1245_v8 = vld.sshfl [vmem:[#allocation1] sm:$0xff pattern:$0x75316420]  ;;  %v1246_v26 = vld.sshfl [vmem:[#allocation1 + $0x8] sm:$0xff pattern:$0x75316420] }
 0x356   :  { %1255 = vst [vmem:[#allocation1] ss:$2 sm:$0xff] %v6156_v15  ;;  %1251 = vrot.lane.b32.xlu0 %v1246_v26, %s5759_s5  ;;  %1249 = vrot.lane.b32.xlu1 %v1245_v8, %s5759_s5 }
 0x35d   :  { %v1256_v51 = vld.sshfl [vmem:[#allocation1] sm:$0xff pattern:$0x75316420]  ;;  %v1257_v62 = vld.sshfl [vmem:[#allocation1 + $0x8] sm:$0xff pattern:$0x75316420] }
 0x35e   :  { %1280 = vst [vmem:[#allocation1] ss:$2 sm:$0xff] %v6156_v15  ;;  %1262 = vrot.lane.b32.xlu1 %v1257_v62, %s5760_s12  ;;  %1260 = vrot.lane.b32.xlu2 %v1256_v51, %s5760_s12 }
 0x365   :  { %v1281_v29 = vld.sshfl [vmem:[#allocation1] sm:$0xff pattern:$0x75316420]  ;;  %v1282_v44 = vld.sshfl [vmem:[#allocation1 + $0x8] sm:$0xff pattern:$0x75316420] }
 0x366   :  { %1291 = vst [vmem:[#allocation1] ss:$2 sm:$0xff] %v6156_v15  ;;  %1287 = vrot.lane.b32.xlu2 %v1282_v44, %s5761_s0  ;;  %1285 = vrot.lane.b32.xlu0 %v1281_v29, %s5761_s0 }
 0x36d   :  { %v1292_v41 = vld.sshfl [vmem:[#allocation1] sm:$0xff pattern:$0x75316420]  ;;  %v1293_v43 = vld.sshfl [vmem:[#allocation1 + $0x8] sm:$0xff pattern:$0x75316420] }
 0x36e   :  { %420 = vrot.lane.b32.xlu2 %v6060_v17, %s5763_s6  ;;  %1298 = vrot.lane.b32.xlu0 %v1293_v43, %s5762_s13 }
 0x36f   :  { %1296 = vrot.lane.b32.xlu1 %v1292_v41, %s5762_s13 }
 0x376   :  { %434 = vrot.lane.b32.xlu2 %v6066_v22, %s5764_s27  ;;  %432 = vrot.lane.b32.xlu0 %v6064_v36, %s5764_s27 }
 0x377   :  { %422 = vrot.lane.b32.xlu1 %v6062_v21, %s5763_s6 }
 0x37e   :  { %661 = vrot.lane.b32.xlu2 %v6082_v37, %s5765_s28  ;;  %651 = vrot.lane.b32.xlu0 %v6080_v35, %s5766_s29 }
 0x37f   :  { %649 = vrot.lane.b32.xlu1 %v6078_v34, %s5766_s29 }
 0x386   :  { %561 = vrot.lane.b32.xlu2 %v6072_v31, %s5761_s0  ;;  %559 = vrot.lane.b32.xlu0 %v6070_v28, %s5761_s0 }
 0x387   :  { %663 = vrot.lane.b32.xlu1 %v6084_v38, %s5765_s28 }
 0x38e   :  { %741 = vrot.lane.b32.xlu2 %v6086_v39, %s5758_s22  ;;  %572 = vrot.lane.b32.xlu0 %v6076_v33, %s5762_s13 }
 0x38f   :  { %570 = vrot.lane.b32.xlu1 %v6074_v32, %s5762_s13 }
 0x396   :  { %754 = vrot.lane.b32.xlu2 %v6097_v53, %s5753_s14  ;;  %752 = vrot.lane.b32.xlu0 %v6095_v52, %s5753_s14 }
 0x397   :  { %743 = vrot.lane.b32.xlu1 %v6088_v40, %s5758_s22 }
 0x3b8   :  { %v1261_v17 = vpop.permute.xlu2 %1260 }
 0x3c0   :  { %v1288_v36 = vpop.permute.xlu2 %1287 }
 0x3c8   :  { %v1250_v21 = vpop.permute.xlu1 %1249  ;;  %v1252_v22 = vpop.permute.xlu0 %1251 }
 0x3c9   :  { %v1253_v32 = vsel %vm290_vm10, %v1250_v21, %v1252_v22  ;;  %v6207_v34 = vpop.permute.xlu2 %420  ;;  %v1254_v40 = vsel %vm290_vm10, %v1252_v22, %v1250_v21 }
 0x3ca   :  { %v1267_v35 = vmul.f32 %v1253_v32, %v5890_v23  ;;  %v1266_v48 = vmul.f32 %v1254_v40, %v5890_v23  ;;  %v1333_v56 = vmul.f32 %v1253_v32, %v5892_v24  ;;  %v1332_v21 = vmul.f32 %v1254_v40, %v5892_v24 }
 0x3d0   :  { %v1263_v28 = vpop.permute.xlu1 %1262 }
 0x3d1   :  { %v1265_v31 = vsel %vm302_vm9, %v1263_v28, %v1261_v17  ;;  %v1264_v38 = vsel %vm302_vm9, %v1261_v17, %v1263_v28  ;;  %v435_v11 = vpop.permute.xlu2 %434  ;;  %v445_v17 = vld [vmem:[%s8211_s7] sm:$0x3] }
 0x3d2   :  { %v1269_v33 = vmul.f32 %v1265_v31, %v5892_v24  ;;  %v1268_v52 = vmul.f32 %v1264_v38, %v5892_v24  ;;  %v1331_v53 = vmul.f32 %v1265_v31, %v5890_v23  ;;  %v1330_v51 = vmul.f32 %v1264_v38, %v5890_v23 }
 0x3d3   :  { %v6248_v38 = vperm.slane %v445_v17, 0 }
 0x3d4   :  { %v1271_v39 = vadd.f32 %v1269_v33, %v1267_v35  ;;  %v1270_v3 = vadd.f32 %v1268_v52, %v1266_v48  ;;  %v1335_v10 = vadd.f32 %v1333_v56, %v1331_v53  ;;  %v1334_v32 = vadd.f32 %v1332_v21, %v1330_v51 }
 0x3d5   :  { %8297 = vst [vmem:[#allocation12_spill] sm:$0xff] %v6248_v38 }
 0x3d6   :  { %v1273_v46 = vadd.f32 %v1271_v39, %v5994_v61  ;;  %v1272_v26 = vadd.f32 %v1270_v3, %v6020_v18  ;;  %v1337_v62 = vadd.f32 %v1335_v10, %v6022_v20 }
 0x3d8   :  { %v1286_v37 = vpop.permute.xlu0 %1285  ;;  %v1276_v16 = vrot.slane %v1273_v46, 4  ;;  %v1340_v33 = vrot.slane %v1337_v62, 4  ;;  %v6300_v62 = vld [vmem:[%s8212_s3] sm:$0xf] }
 0x3d9   :  { %v1290_v58 = vsel %vm334_vm11, %v1288_v36, %v1286_v37  ;;  %v1289_v60 = vsel %vm334_vm11, %v1286_v37, %v1288_v36  ;;  %v662_v56 = vpop.permute.xlu2 %661 }
 0x3da   :  { %v1302_v49 = vmul.f32 %v1290_v58, %v5890_v23  ;;  %v1303_v5 = vmul.f32 %v1289_v60, %v5890_v23  ;;  %v1319_v27 = vmul.f32 %v1289_v60, %v5892_v24  ;;  %v1318_v29 = vmul.f32 %v1290_v58, %v5892_v24 }
 0x3db   :  { %v1277_v36 = vsel %vm55_vm0, %v1272_v26, %v1276_v16 }
 0x3dc   :  { %v1279_v48 = vmax.f32 %v6156_v15, %v1277_v36 }
 0x3e0   :  { %v1299_v50 = vpop.permute.xlu0 %1298 }
 0x3e1   :  { %v1297_v4 = vpop.permute.xlu1 %1296 }
 0x3e2   :  { %v1300_v2 = vsel %vm346_vm12, %v1297_v4, %v1299_v50  ;;  %v1301_v63 = vsel %vm346_vm12, %v1299_v50, %v1297_v4  ;;  %v6278_v50 = vld [vmem:[%s8212_s3 + $0x10] sm:$0xf] }
 0x3e3   :  { %v1304_v9 = vmul.f32 %v1300_v2, %v5892_v24  ;;  %v1305_v12 = vmul.f32 %v1301_v63, %v5892_v24  ;;  %v1316_v13 = vmul.f32 %v1300_v2, %v5890_v23  ;;  %v1317_v8 = vmul.f32 %v1301_v63, %v5890_v23  ;;  %5468 = vmatmul.msk.f32.vlgmr.msra.gmra.mxu2 %vm454_vm15, %v6278_v50 }
 0x3e4   :  { %5470 = vmatmul.msk.f32.vlgmr.msra.gmra.mxu3 %vm454_vm15, %v6278_v50 }
 0x3e5   :  { %v1306_v44 = vadd.f32 %v1304_v9, %v1302_v49  ;;  %v1307_v41 = vadd.f32 %v1305_v12, %v1303_v5  ;;  %v1321_v43 = vadd.f32 %v1319_v27, %v1317_v8  ;;  %v1320_v28 = vadd.f32 %v1318_v29, %v1316_v13 }
 0x3e6   :  { %v6284_v5 = vperm.slane %v445_v17, 1 }
 0x3e7   :  { %v1309_v22 = vadd.f32 %v1307_v41, %v6024_v25  ;;  %v1323_v31 = vadd.f32 %v1321_v43, %v6027_v30  ;;  %v1308_v35 = vadd.f32 %v1306_v44, %v6041_v42  ;;  %v1322_v10 = vadd.f32 %v1320_v28, %v6046_v55  ;;  %v562_v44 = vpop.permute.xlu2 %561  ;;  %v5477_v43 = vld [vmem:[%s8211_s7 + $0x4] sm:$0x3]  ;;  %v5501_v55 = vld [vmem:[%s8211_s7 + $0xe] sm:$0x3]  ;;  %v5507_v25 = vld [vmem:[%s8211_s7 + $0x10] sm:$0x3] }
 0x3e8   :  { %v433_v37 = vpop.permute.xlu0 %432  ;;  %8298 = vst [vmem:[#allocation13_spill] sm:$0xff] %v6284_v5 }
 0x3e9   :  { %v1312_v39 = vrot.slane %v1309_v22, 4  ;;  %v1326_v40 = vrot.slane %v1323_v31, 4  ;;  %v6252_v52 = vsel %vm436_vm13, %v433_v37, %v435_v11  ;;  %v6256_v53 = vsel %vm436_vm13, %v435_v11, %v433_v37  ;;  %v423_v46 = vpop.permute.xlu1 %422 }
 0x3ea   :  { %v441_v58 = vmul.f32 %v6252_v52, %v5892_v24  ;;  %v442_v60 = vmul.f32 %v6256_v53, %v5892_v24  ;;  %v6268_v11 = vsel %vm424_vm14, %v6207_v34, %v423_v46  ;;  %v6273_v15 = vsel %vm424_vm14, %v423_v46, %v6207_v34 }
 0x3eb   :  { %v1313_v3 = vsel %vm55_vm0, %v1308_v35, %v1312_v39  ;;  %v439_v49 = vmul.f32 %v6273_v15, %v5890_v23  ;;  %v440_v4 = vmul.f32 %v6268_v11, %v5890_v23  ;;  %v1336_v34 = vadd.f32 %v1334_v32, %v6051_v59 }
 0x3ec   :  { %v1315_v16 = vmax.f32 %v1279_v48, %v1313_v3  ;;  %v1327_v27 = vsel %vm55_vm0, %v1322_v10, %v1326_v40  ;;  %v6335_v35 = vperm.slane %v5477_v43, 1 }
 0x3ed   :  { %v443_v63 = vadd.f32 %v441_v58, %v439_v49  ;;  %v444_v9 = vadd.f32 %v442_v60, %v440_v4  ;;  %v1341_v12 = vsel %vm55_vm0, %v1336_v34, %v1340_v33  ;;  %v6333_v33 = vperm.slane %v5477_v43, 0  ;;  %v5471_v60 = vld [vmem:[%s8211_s7 + $0x2] sm:$0x3] }
 0x3ee   :  { %v1329_v2 = vmax.f32 %v1315_v16, %v1327_v27  ;;  %8299 = vst [vmem:[#allocation14_spill] sm:$0xff] %v6335_v35  ;;  %v6358_v27 = vperm.slane %v5471_v60, 0 }
 0x3ef   :  { %v451_v26 = vmul.f32 %v6248_v38, %v443_v63  ;;  %v452_v51 = vmul.f32 %v6284_v5, %v444_v9  ;;  %v742_v48 = vpop.permute.xlu2 %741  ;;  %v6365_v63 = vld [vmem:[%s8212_s3 + $0x8] sm:$0xf] }
 0x3f0   :  { %v6293_v13 = vmax.f32 %v1329_v2, %v1341_v12  ;;  %v652_v8 = vpop.permute.xlu0 %651  ;;  %8300 = vst [vmem:[#allocation15_spill] sm:$0xff] %v6358_v27  ;;  %v6360_v2 = vperm.slane %v5471_v60, 1 }
 0x3f1   :  { %v650_v29 = vpop.permute.xlu1 %649  ;;  %5463 = vmatpush.msk.msra.mxu0 %vm55_vm0, %v451_v26  ;;  %5465 = vmatpush.msk.msra.mxu1 %vm55_vm0, %v452_v51 }
 0x3f2   :  { %1345 = vst [vmem:[#allocation1] ss:$2 sm:$0xff] %v6293_v13  ;;  %5464 = vmatmul.msk.f32.vlgmr.msra.gmra.mxu0 %vm454_vm15, %v6300_v62  ;;  %5466 = vmatmul.msk.f32.vlgmr.msra.gmra.mxu1 %vm454_vm15, %v6300_v62  ;;  %v6316_v17 = vsel %vm8233_vm1, %v650_v29, %v652_v8  ;;  %v6320_v21 = vsel %vm8233_vm1, %v652_v8, %v650_v29 }
 0x3f3   :  { %v668_v37 = vmul.f32 %v6320_v21, %v5890_v23  ;;  %v669_v39 = vmul.f32 %v6316_v17, %v5890_v23  ;;  %8301 = vst [vmem:[#allocation16_spill] sm:$0xff] %v6360_v2 }
 0x3f8   :  { %v560_v41 = vpop.permute.xlu0 %559 }
 0x3f9   :  { %v664_v36 = vpop.permute.xlu1 %663  ;;  %v1347_v22 = vld.sshfl [vmem:[#allocation1 + $0x8] sm:$0xff pattern:$0x75316420]  ;;  %v1346_v28 = vld.sshfl [vmem:[#allocation1] sm:$0xff pattern:$0x75316420]  ;;  %v6350_v3 = vsel %vm334_vm11, %v560_v41, %v562_v44  ;;  %v6354_v10 = vsel %vm334_vm11, %v562_v44, %v560_v41 }
 0x3fa   :  { %1352 = vrot.lane.b32.xlu0 %v1347_v22, %s5763_s6  ;;  %v6325_v31 = vsel %vm665_vm2, %v662_v56, %v664_v36  ;;  %v6329_v32 = vsel %vm665_vm2, %v664_v36, %v662_v56  ;;  %1350 = vrot.lane.b32.xlu1 %v1346_v28, %s5763_s6  ;;  %1356 = vst [vmem:[#allocation1] ss:$2 sm:$0xff] %v6293_v13  ;;  %v5495_v44 = vld [vmem:[%s8211_s7 + $0xc] sm:$0x3]  ;;  %v5483_v28 = vld [vmem:[%s8211_s7 + $0x6] sm:$0x3] }
 0x3fb   :  { %v670_v40 = vmul.f32 %v6325_v31, %v5892_v24  ;;  %v671_v46 = vmul.f32 %v6329_v32, %v5892_v24  ;;  %v576_v51 = vmul.f32 %v6354_v10, %v5890_v23  ;;  %v577_v29 = vmul.f32 %v6350_v3, %v5890_v23 }
 0x3fd   :  { %v672_v56 = vadd.f32 %v670_v40, %v668_v37  ;;  %v673_v58 = vadd.f32 %v671_v46, %v669_v39  ;;  %v6392_v37 = vperm.slane %v5495_v44, 0  ;;  %v6394_v39 = vperm.slane %v5495_v44, 1  ;;  %v5489_v40 = vld [vmem:[%s8211_s7 + $0xa] sm:$0x3] }
 0x3fe   :  { %v1030_v46 = vmul.f32 %v6252_v52, %v5890_v23 }
 0x3ff   :  { %v681_v49 = vmul.f32 %v6333_v33, %v672_v56  ;;  %v682_v4 = vmul.f32 %v6335_v35, %v673_v58  ;;  %8302 = vst [vmem:[#allocation17_spill] sm:$0xff] %v6392_v37  ;;  %v1031_v56 = vmul.f32 %v6256_v53, %v5890_v23  ;;  %v6416_v53 = vperm.slane %v5483_v28, 1 }
 0x400   :  { %v573_v16 = vpop.permute.xlu0 %572  ;;  %8303 = vst [vmem:[#allocation18_spill] sm:$0xff] %v6394_v39 }
 0x401   :  { %v571_v34 = vpop.permute.xlu1 %570  ;;  %5479 = vmatpush.msk.msrb.mxu2 %vm55_vm0, %v681_v49  ;;  %5481 = vmatpush.msk.msrb.mxu3 %vm55_vm0, %v682_v4  ;;  %v1358_v8 = vld.sshfl [vmem:[#allocation1 + $0x8] sm:$0xff pattern:$0x75316420]  ;;  %v1357_v26 = vld.sshfl [vmem:[#allocation1] sm:$0xff pattern:$0x75316420]  ;;  %v1032_v49 = vmul.f32 %v6273_v15, %v5892_v24  ;;  %v1033_v4 = vmul.f32 %v6268_v11, %v5892_v24 }
 0x402   :  { %v574_v9 = vsel %vm346_vm12, %v571_v34, %v573_v16  ;;  %v575_v12 = vsel %vm346_vm12, %v573_v16, %v571_v34  ;;  %1363 = vrot.lane.b32.xlu1 %v1358_v8, %s5764_s27  ;;  %1361 = vrot.lane.b32.xlu2 %v1357_v26, %s5764_s27  ;;  %1421 = vst [vmem:[#allocation1] ss:$2 sm:$0xff] %v6293_v13  ;;  %v6408_v16 = vld [vmem:[%s8212_s3 + $0x4] sm:$0xf]  ;;  %v755_v34 = vpop.permute.xlu2 %754  ;;  %v6414_v8 = vperm.slane %v5483_v28, 0  ;;  %v6424_v15 = vperm.slane %v5489_v40, 0 }
 0x403   :  { %v578_v41 = vmul.f32 %v574_v9, %v5892_v24  ;;  %v579_v43 = vmul.f32 %v575_v12, %v5892_v24  ;;  %5480 = vmatmul.msk.f32.vlgmr.msrb.gmra.mxu2 %vm454_vm15, %v6365_v63  ;;  %5482 = vmatmul.msk.f32.vlgmr.msrb.gmra.mxu3 %vm454_vm15, %v6365_v63  ;;  %8305 = vst [vmem:[#allocation20_spill] sm:$0xff] %v6416_v53 }
 0x404   :  { %8304 = vst [vmem:[#allocation19_spill] sm:$0xff] %v6414_v8  ;;  %v895_v28 = vmul.f32 %v6329_v32, %v5890_v23  ;;  %v963_v59 = vmul.f32 %v575_v12, %v5890_v23 }
 0x405   :  { %v580_v36 = vadd.f32 %v578_v41, %v576_v51  ;;  %v581_v22 = vadd.f32 %v579_v43, %v577_v29  ;;  %8306 = vst [vmem:[#allocation21_spill] sm:$0xff] %v6424_v15  ;;  %v6426_v29 = vperm.slane %v5489_v40, 1 }
 0x407   :  { %v589_v58 = vmul.f32 %v6358_v27, %v580_v36  ;;  %v590_v60 = vmul.f32 %v6360_v2, %v581_v22  ;;  %8307 = vst [vmem:[#allocation22_spill] sm:$0xff] %v6426_v29  ;;  %v894_v22 = vmul.f32 %v6325_v31, %v5890_v23 }
 0x408   :  { %v753_v52 = vpop.permute.xlu0 %752 }
 0x409   :  { %v756_v26 = vsel %vm41_vm4, %v753_v52, %v755_v34  ;;  %v757_v51 = vsel %vm41_vm4, %v755_v34, %v753_v52  ;;  %5473 = vmatpush.msk.msrb.mxu0 %vm55_vm0, %v589_v58  ;;  %5475 = vmatpush.msk.msrb.mxu1 %vm55_vm0, %v590_v60  ;;  %v744_v11 = vpop.permute.xlu1 %743  ;;  %v6444_v60 = vld.sshfl [vmem:[#allocation1] sm:$0xff pattern:$0x75316420]  ;;  %v6446_v34 = vld.sshfl [vmem:[#allocation1 + $0x8] sm:$0xff pattern:$0x75316420] }
 0x40a   :  { %v760_v44 = vmul.f32 %v756_v26, %v5892_v24  ;;  %v761_v41 = vmul.f32 %v757_v51, %v5892_v24  ;;  %v826_v43 = vmul.f32 %v756_v26, %v5890_v23  ;;  %v827_v36 = vmul.f32 %v757_v51, %v5890_v23  ;;  %5474 = vmatmul.msk.f32.vlgmr.msrb.gmra.mxu0 %vm454_vm15, %v6408_v16 }
 0x40b   :  { %v745_v40 = vsel %vm203_vm8, %v742_v48, %v744_v11  ;;  %v746_v58 = vsel %vm203_vm8, %v744_v11, %v742_v48  ;;  %5476 = vmatmul.msk.f32.vlgmr.msrb.gmra.mxu1 %vm454_vm15, %v6408_v16  ;;  %1468 = vst [vmem:[#allocation1] ss:$2 sm:$0xff] %v6293_v13  ;;  %v896_v48 = vmul.f32 %v6320_v21, %v5892_v24 }
 0x40c   :  { %v758_v52 = vmul.f32 %v746_v58, %v5890_v23  ;;  %v759_v31 = vmul.f32 %v745_v40, %v5890_v23  ;;  %v828_v26 = vmul.f32 %v746_v58, %v5892_v24  ;;  %v829_v32 = vmul.f32 %v745_v40, %v5892_v24 }
 0x40d   :  { %v897_v51 = vmul.f32 %v6316_v17, %v5892_v24  ;;  %v962_v11 = vmul.f32 %v574_v9, %v5890_v23  ;;  %v964_v21 = vmul.f32 %v6354_v10, %v5892_v24  ;;  %v965_v17 = vmul.f32 %v6350_v3, %v5892_v24 }
 0x40e   :  { %v762_v42 = vadd.f32 %v760_v44, %v758_v52  ;;  %v763_v58 = vadd.f32 %v761_v41, %v759_v31  ;;  %v830_v30 = vadd.f32 %v828_v26, %v826_v43  ;;  %v831_v40 = vadd.f32 %v829_v32, %v827_v36 }
 0x40f   :  { %v898_v9 = vadd.f32 %v896_v48, %v894_v22  ;;  %v899_v12 = vadd.f32 %v897_v51, %v895_v28  ;;  %v6473_v43 = vperm.slane %v5501_v55, 0  ;;  %v6475_v36 = vperm.slane %v5501_v55, 1 }
 0x410   :  { %v771_v20 = vmul.f32 %v6414_v8, %v762_v42  ;;  %v772_v18 = vmul.f32 %v6416_v53, %v763_v58  ;;  %v839_v44 = vmul.f32 %v6424_v15, %v830_v30  ;;  %v840_v41 = vmul.f32 %v6426_v29, %v831_v40  ;;  %v6486_v30 = vld [vmem:[%s8212_s3 + $0xc] sm:$0xf] }
 0x411   :  { %8308 = vst [vmem:[#allocation23_spill] sm:$0xff] %v6473_v43  ;;  %v966_v52 = vadd.f32 %v964_v21, %v962_v11  ;;  %v967_v31 = vadd.f32 %v965_v17, %v963_v59  ;;  %v6477_v10 = vperm.slane %v5507_v25, 0  ;;  %v6479_v26 = vperm.slane %v5507_v25, 1  ;;  %v6539_v21 = vld [vmem:[%s8212_s3 + $0x14] sm:$0xf] }
 0x412   :  { %8309 = vst [vmem:[#allocation24_spill] sm:$0xff] %v6475_v36  ;;  %v1034_v3 = vadd.f32 %v1032_v49, %v1030_v46  ;;  %v1035_v22 = vadd.f32 %v1033_v4, %v1031_v56  ;;  %5485 = vmatpush.msk.msra.mxu0 %vm55_vm0, %v771_v20  ;;  %5487 = vmatpush.msk.msra.mxu1 %vm55_vm0, %v772_v18  ;;  %v1470_v42 = vld.sshfl [vmem:[#allocation1 + $0x8] sm:$0xff pattern:$0x75316420]  ;;  %v6512_v49 = vld [vmem:[%s8212_s3 + $0x18] sm:$0xf] }
 0x413   :  { %8310 = vst [vmem:[#allocation25_spill] sm:$0xff] %v6477_v10  ;;  %5491 = vmatpush.msk.msra.mxu2 %vm55_vm0, %v839_v44  ;;  %5493 = vmatpush.msk.msra.mxu3 %vm55_vm0, %v840_v41  ;;  %v1469_v55 = vld.sshfl [vmem:[#allocation1] sm:$0xff pattern:$0x75316420]  ;;  %v907_v25 = vmul.f32 %v6392_v37, %v898_v9  ;;  %v908_v59 = vmul.f32 %v6394_v39, %v899_v12 }
 0x414   :  { %8311 = vst [vmem:[#allocation26_spill] sm:$0xff] %v6479_v26  ;;  %1475 = vrot.lane.b32.xlu2 %v1470_v42, %s5761_s0  ;;  %1473 = vrot.lane.b32.xlu0 %v1469_v55, %s5761_s0  ;;  %v975_v18 = vmul.f32 %v6473_v43, %v966_v52  ;;  %v976_v20 = vmul.f32 %v6475_v36, %v967_v31 }
 0x415   :  { %1479 = vst [vmem:[#allocation1] ss:$2 sm:$0xff] %v6293_v13  ;;  %5486 = vmatmul.msk.f32.vlgmr.msra.gmra.mxu0 %vm454_vm15, %v6486_v30  ;;  %5488 = vmatmul.msk.f32.vlgmr.msra.gmra.mxu1 %vm454_vm15, %v6486_v30  ;;  %v1043_v46 = vmul.f32 %v6477_v10, %v1034_v3  ;;  %v1044_v56 = vmul.f32 %v6479_v26, %v1035_v22  ;;  %v6555_v22 = vld [vmem:[%s8212_s3 + $0x1c] sm:$0xf] }
 0x416   :  { %5497 = vmatpush.msk.msrb.mxu0 %vm55_vm0, %v907_v25  ;;  %5499 = vmatpush.msk.msrb.mxu1 %vm55_vm0, %v908_v59 }
 0x417   :  { %5503 = vmatpush.msk.msrb.mxu2 %vm55_vm0, %v975_v18  ;;  %5505 = vmatpush.msk.msrb.mxu3 %vm55_vm0, %v976_v20 }
 0x418   :  { %5509 = vmatpush.msk.msra.mxu0 %vm55_vm0, %v1043_v46  ;;  %5511 = vmatpush.msk.msra.mxu1 %vm55_vm0, %v1044_v56  ;;  %v6573_v56 = vld [vmem:[%s8212_s3 + $0x20] sm:$0xf] }
 0x419   :  { %5492 = vmatmul.msk.f32.vlgmr.msra.gmra.mxu2 %vm454_vm15, %v6539_v21  ;;  %5494 = vmatmul.msk.f32.vlgmr.msra.gmra.mxu3 %vm454_vm15, %v6539_v21 }
 0x41c   :  { %v1481_v4 = vld.sshfl [vmem:[#allocation1 + $0x8] sm:$0xff pattern:$0x75316420]  ;;  %v1480_v28 = vld.sshfl [vmem:[#allocation1] sm:$0xff pattern:$0x75316420] }
 0x41d   :  { %1486 = vrot.lane.b32.xlu0 %v1481_v4, %s5762_s13  ;;  %1484 = vrot.lane.b32.xlu1 %v1480_v28, %s5762_s13  ;;  %1546 = vst [vmem:[#allocation1] ss:$2 sm:$0xff] %v6293_v13 }
 0x41e   :  { %5498 = vmatmul.msk.f32.vlgmr.msrb.gmra.mxu0 %vm454_vm15, %v6512_v49  ;;  %5500 = vmatmul.msk.f32.vlgmr.msrb.gmra.mxu1 %vm454_vm15, %v6512_v49 }
 0x41f   :  { %5519 = vmatpush.msk.msrb.mxu0 %vm55_vm0, %v6444_v60  ;;  %5521 = vmatpush.msk.msrb.mxu1 %vm55_vm0, %v6446_v34 }
 0x421   :  { %5506 = vmatmul.msk.f32.vlgmr.msrb.gmra.mxu3 %vm454_vm15, %v6555_v22  ;;  %5504 = vmatmul.msk.f32.vlgmr.msrb.gmra.mxu2 %vm454_vm15, %v6555_v22 }
 0x424   :  { %v1547_v32 = vld.sshfl [vmem:[#allocation1] sm:$0xff pattern:$0x75316420]  ;;  %v1548_v48 = vld.sshfl [vmem:[#allocation1 + $0x8] sm:$0xff pattern:$0x75316420] }
 0x425   :  { %1551 = vrot.lane.b32.xlu1 %v1547_v32, %s5766_s29  ;;  %1557 = vst [vmem:[#allocation1] ss:$2 sm:$0xff] %v6293_v13 }
 0x426   :  { %5512 = vmatmul.msk.f32.vlgmr.msra.gmra.mxu1 %vm454_vm15, %v6573_v56  ;;  %5510 = vmatmul.msk.f32.vlgmr.msra.gmra.mxu0 %vm454_vm15, %v6573_v56 }
 0x42c   :  { %v1558_v51 = vld.sshfl [vmem:[#allocation1] sm:$0xff pattern:$0x75316420]  ;;  %v1559_v11 = vld.sshfl [vmem:[#allocation1 + $0x8] sm:$0xff pattern:$0x75316420] }
 0x42d   :  { %1624 = vst [vmem:[#allocation1] ss:$2 sm:$0xff] %v6293_v13 }
 0x42e   :  { %5522 = vmatmul.msk.f32.vlgmr.msrb.gmra.mxu1 %vm454_vm15, %v6278_v50  ;;  %5520 = vmatmul.msk.f32.vlgmr.msrb.gmra.mxu0 %vm454_vm15, %v6278_v50 }
 0x434   :  { %v1626_v58 = vld.sshfl [vmem:[#allocation1 + $0x8] sm:$0xff pattern:$0x75316420]  ;;  %v1625_v40 = vld.sshfl [vmem:[#allocation1] sm:$0xff pattern:$0x75316420] }
 0x435   :  { %1631 = vrot.lane.b32.xlu1 %v1626_v58, %s5758_s22  ;;  %1629 = vrot.lane.b32.xlu2 %v1625_v40, %s5758_s22  ;;  %1635 = vst [vmem:[#allocation1] ss:$2 sm:$0xff] %v6293_v13  ;;  %v1104_v40 = vld [vmem:[%s8213_s4] sm:$0xf] }
 0x43c   :  { %v1637_v60 = vld.sshfl [vmem:[#allocation1 + $0x8] sm:$0xff pattern:$0x75316420]  ;;  %v1636_v34 = vld.sshfl [vmem:[#allocation1] sm:$0xff pattern:$0x75316420] }
 0x43d   :  { %1564 = vrot.lane.b32.xlu1 %v1559_v11, %s5765_s28  ;;  %1642 = vrot.lane.b32.xlu2 %v1637_v60, %s5753_s14 }
 0x43e   :  { %1640 = vrot.lane.b32.xlu0 %v1636_v34, %s5753_s14 }
 0x445   :  { %1562 = vrot.lane.b32.xlu2 %v1558_v51, %s5765_s28 }
 0x446   :  { %1553 = vrot.lane.b32.xlu0 %v1548_v48, %s5766_s29 }
 0x44e   :  { %1107 = vperm.xlu0 %5745, %v1104_v40  }
 0x45c   :  { %v1362_v44 = vpop.permute.xlu2 %1361 }
 0x46c   :  { %v1351_v13 = vpop.permute.xlu1 %1350  ;;  %v1353_v17 = vpop.permute.xlu0 %1352 }
 0x46d   :  { %v1354_v9 = vsel %vm424_vm14, %v1351_v13, %v1353_v17  ;;  %v1355_v12 = vsel %vm424_vm14, %v1353_v17, %v1351_v13 }
 0x46e   :  { %v1367_v41 = vmul.f32 %v1355_v12, %v5890_v23  ;;  %v1368_v52 = vmul.f32 %v1354_v9, %v5890_v23  ;;  %v1872_v31 = vmul.f32 %v1355_v12, %v5892_v24  ;;  %v1873_v42 = vmul.f32 %v1354_v9, %v5892_v24  ;;  %v1476_v60 = vpop.permute.xlu2 %1475 }
 0x474   :  { %v1364_v3 = vpop.permute.xlu1 %1363 }
 0x475   :  { %v1365_v55 = vsel %vm436_vm13, %v1362_v44, %v1364_v3  ;;  %v1366_v25 = vsel %vm436_vm13, %v1364_v3, %v1362_v44 }
 0x476   :  { %v1369_v59 = vmul.f32 %v1365_v55, %v5892_v24  ;;  %v1370_v18 = vmul.f32 %v1366_v25, %v5892_v24  ;;  %v1870_v20 = vmul.f32 %v1365_v55, %v5890_v23  ;;  %v1871_v46 = vmul.f32 %v1366_v25, %v5890_v23 }
 0x478   :  { %v1371_v4 = vadd.f32 %v1369_v59, %v1367_v41  ;;  %v1372_v28 = vadd.f32 %v1370_v18, %v1368_v52  ;;  %v6579_v32 = vadd.f32 %v1872_v31, %v1870_v20  ;;  %v6581_v48 = vadd.f32 %v1873_v42, %v1871_v46 }
 0x47a   :  { %v1373_v51 = vmul.f32 %v1371_v4, %v6248_v38  ;;  %v1374_v11 = vmul.f32 %v1372_v28, %v6284_v5 }
 0x47c   :  { %5515 = vmatpush.msk.msra.mxu2 %vm55_vm0, %v1373_v51  ;;  %5517 = vmatpush.msk.msra.mxu3 %vm55_vm0, %v1374_v11 }
 0x47d   :  { %5518 = vmatmul.msk.f32.vlgmr.msra.gmra.mxu3 %vm454_vm15, %v6300_v62  ;;  %5516 = vmatmul.msk.f32.vlgmr.msra.gmra.mxu2 %vm454_vm15, %v6300_v62 }
 0x486   :  { %v1474_v58 = vpop.permute.xlu0 %1473 }
 0x487   :  { %v6600_v34 = vsel %vm334_vm11, %v1474_v58, %v1476_v60  ;;  %v6604_v62 = vsel %vm334_vm11, %v1476_v60, %v1474_v58 }
 0x488   :  { %v1490_v12 = vmul.f32 %v6604_v62, %v5890_v23  ;;  %v1491_v44 = vmul.f32 %v6600_v34, %v5890_v23 }
 0x48f   :  { %v1487_v13 = vpop.permute.xlu0 %1486  ;;  %v1485_v17 = vpop.permute.xlu1 %1484 }
 0x490   :  { %v1488_v50 = vsel %vm346_vm12, %v1485_v17, %v1487_v13  ;;  %v1489_v9 = vsel %vm346_vm12, %v1487_v13, %v1485_v17  ;;  %v1630_v25 = vpop.permute.xlu2 %1629 }
 0x491   :  { %v1492_v41 = vmul.f32 %v1488_v50, %v5892_v24  ;;  %v1493_v52 = vmul.f32 %v1489_v9, %v5892_v24 }
 0x493   :  { %v1494_v31 = vadd.f32 %v1492_v41, %v1490_v12  ;;  %v1495_v3 = vadd.f32 %v1493_v52, %v1491_v44 }
 0x495   :  { %v1496_v42 = vmul.f32 %v1494_v31, %v6358_v27  ;;  %v1497_v55 = vmul.f32 %v1495_v3, %v6360_v2 }
 0x497   :  { %5523 = vmatpush.msk.msrb.mxu2 %vm55_vm0, %v1496_v42  ;;  %5525 = vmatpush.msk.msrb.mxu3 %vm55_vm0, %v1497_v55  ;;  %v1552_v59 = vpop.permute.xlu1 %1551 }
 0x498   :  { %5526 = vmatmul.msk.f32.vlgmr.msrb.gmra.mxu3 %vm454_vm15, %v6408_v16  ;;  %5524 = vmatmul.msk.f32.vlgmr.msrb.gmra.mxu2 %vm454_vm15, %v6408_v16  ;;  %v1643_v20 = vpop.permute.xlu2 %1642 }
 0x4a0   :  { %v1563_v17 = vpop.permute.xlu2 %1562 }
 0x4a7   :  { %v1632_v18 = vpop.permute.xlu1 %1631 }
 0x4a8   :  { %v1633_v46 = vsel %vm203_vm8, %v1630_v25, %v1632_v18  ;;  %v1634_v4 = vsel %vm203_vm8, %v1632_v18, %v1630_v25 }
 0x4a9   :  { %v1646_v16 = vmul.f32 %v1634_v4, %v5890_v23  ;;  %v1647_v40 = vmul.f32 %v1633_v46, %v5890_v23 }
 0x4af   :  { %v1565_v58 = vpop.permute.xlu1 %1564 }
 0x4b0   :  { %v1641_v28 = vpop.permute.xlu0 %1640  ;;  %v1566_v41 = vsel %vm665_vm2, %v1563_v17, %v1565_v58  ;;  %v1567_v52 = vsel %vm665_vm2, %v1565_v58, %v1563_v17  ;;  %v1814_v17 = vmul.f32 %v1488_v50, %v5890_v23 }
 0x4b1   :  { %v1644_v51 = vsel %vm41_vm4, %v1641_v28, %v1643_v20  ;;  %v1645_v11 = vsel %vm41_vm4, %v1643_v20, %v1641_v28  ;;  %v1570_v42 = vmul.f32 %v1566_v41, %v5892_v24  ;;  %v1571_v55 = vmul.f32 %v1567_v52, %v5892_v24 }
 0x4b2   :  { %v1648_v60 = vmul.f32 %v1644_v51, %v5892_v24  ;;  %v1649_v13 = vmul.f32 %v1645_v11, %v5892_v24  ;;  %v1702_v25 = vmul.f32 %v1644_v51, %v5890_v23  ;;  %v1703_v18 = vmul.f32 %v1645_v11, %v5890_v23 }
 0x4b3   :  { %v1758_v20 = vmul.f32 %v1566_v41, %v5890_v23  ;;  %v1759_v58 = vmul.f32 %v1567_v52, %v5890_v23 }
 0x4b4   :  { %v1650_v12 = vadd.f32 %v1648_v60, %v1646_v16  ;;  %v1651_v44 = vadd.f32 %v1649_v13, %v1647_v40 }
 0x4b6   :  { %v1652_v31 = vmul.f32 %v1650_v12, %v6414_v8  ;;  %v1653_v3 = vmul.f32 %v1651_v44, %v6416_v53  ;;  %v1815_v12 = vmul.f32 %v1489_v9, %v5890_v23  ;;  %v1705_v44 = vmul.f32 %v1633_v46, %v5892_v24 }
 0x4b8   :  { %v1554_v28 = vpop.permute.xlu0 %1553  ;;  %5531 = vmatpush.msk.msra.mxu2 %vm55_vm0, %v1652_v31  ;;  %5533 = vmatpush.msk.msra.mxu3 %vm55_vm0, %v1653_v3  ;;  %v1816_v3 = vmul.f32 %v6604_v62, %v5892_v24 }
 0x4b9   :  { %v1555_v16 = vsel %vm8233_vm1, %v1552_v59, %v1554_v28  ;;  %v1556_v40 = vsel %vm8233_vm1, %v1554_v28, %v1552_v59  ;;  %5532 = vmatmul.msk.f32.vlgmr.msra.gmra.mxu2 %vm454_vm15, %v6486_v30  ;;  %5534 = vmatmul.msk.f32.vlgmr.msra.gmra.mxu3 %vm454_vm15, %v6486_v30  ;;  %v1704_v59 = vmul.f32 %v1634_v4, %v5892_v24 }
 0x4ba   :  { %v1568_v51 = vmul.f32 %v1556_v40, %v5890_v23  ;;  %v1569_v11 = vmul.f32 %v1555_v16, %v5890_v23  ;;  %v1760_v60 = vmul.f32 %v1556_v40, %v5892_v24  ;;  %v1761_v13 = vmul.f32 %v1555_v16, %v5892_v24 }
 0x4bb   :  { %v1817_v28 = vmul.f32 %v6600_v34, %v5892_v24  ;;  %v1706_v40 = vadd.f32 %v1704_v59, %v1702_v25  ;;  %v1707_v16 = vadd.f32 %v1705_v44, %v1703_v18  ;;  %v1876_v25 = vmul.f32 %v6579_v32, %v6477_v10  ;;  %v481_v32 = vpop.f32.mrf.mxu0 }
 0x4bc   :  { %v1572_v41 = vadd.f32 %v1570_v42, %v1568_v51  ;;  %v1573_v52 = vadd.f32 %v1571_v55, %v1569_v11  ;;  %v1762_v31 = vadd.f32 %v1760_v60, %v1758_v20  ;;  %v1763_v30 = vadd.f32 %v1761_v13, %v1759_v58  ;;  %v551_v51 = vpop.f32.mrf.mxu3  ;;  %v531_v11 = vpop.f32.mrf.mxu2 }
 0x4bd   :  { %v1818_v42 = vadd.f32 %v1816_v3, %v1814_v17  ;;  %v1819_v55 = vadd.f32 %v1817_v28, %v1815_v12  ;;  %v1708_v62 = vmul.f32 %v1706_v40, %v6424_v15  ;;  %v1709_v34 = vmul.f32 %v1707_v16, %v6426_v29 }
 0x4be   :  { %v1574_v50 = vmul.f32 %v1572_v41, %v6333_v33  ;;  %v1575_v9 = vmul.f32 %v1573_v52, %v6335_v35  ;;  %v1764_v4 = vmul.f32 %v1762_v31, %v6392_v37  ;;  %v1765_v46 = vmul.f32 %v1763_v30, %v6394_v39 }
 0x4bf   :  { %v1877_v18 = vmul.f32 %v6581_v48, %v6479_v26  ;;  %v1820_v20 = vmul.f32 %v1818_v42, %v6473_v43  ;;  %v1821_v58 = vmul.f32 %v1819_v55, %v6475_v36 }
 0x4c0   :  { %5527 = vmatpush.msk.msra.mxu0 %vm55_vm0, %v1574_v50  ;;  %5529 = vmatpush.msk.msra.mxu1 %vm55_vm0, %v1575_v9 }
 0x4c1   :  { %5539 = vmatpush.msk.msrb.mxu2 %vm55_vm0, %v1764_v4  ;;  %5541 = vmatpush.msk.msrb.mxu3 %vm55_vm0, %v1765_v46 }
 0x4c2   :  { %5528 = vmatmul.msk.f32.vlgmr.msra.gmra.mxu0 %vm454_vm15, %v6365_v63  ;;  %5530 = vmatmul.msk.f32.vlgmr.msra.gmra.mxu1 %vm454_vm15, %v6365_v63  ;;  %v501_v63 = vpop.f32.mrf.mxu1 }
 0x4c3   :  { %5535 = vmatpush.msk.msrb.mxu0 %vm55_vm0, %v1708_v62  ;;  %5537 = vmatpush.msk.msrb.mxu1 %vm55_vm0, %v1709_v34  ;;  %v619_v48 = vpop.f32.mrf.mxu0  ;;  %v552_v60 = vadd.f32 %v551_v51, %v501_v63 }
 0x4c4   :  { %5547 = vmatpush.msk.msra.mxu2 %vm55_vm0, %v1876_v25  ;;  %5549 = vmatpush.msk.msra.mxu3 %vm55_vm0, %v1877_v18  ;;  %v731_v12 = vpop.f32.mrf.mxu3  ;;  %v711_v59 = vpop.f32.mrf.mxu2 }
 0x4c5   :  { %5543 = vmatpush.msk.msra.mxu0 %vm55_vm0, %v1820_v20  ;;  %5545 = vmatpush.msk.msra.mxu1 %vm55_vm0, %v1821_v58  ;;  %v1108_v58 = vpop.permute.xlu0 %1107 }
 0x4c6   :  { %5540 = vmatmul.msk.f32.vlgmr.msrb.gmra.mxu2 %vm454_vm15, %v6512_v49  ;;  %5542 = vmatmul.msk.f32.vlgmr.msrb.gmra.mxu3 %vm454_vm15, %v6512_v49 }
 0x4ca   :  { %5536 = vmatmul.msk.f32.vlgmr.msrb.gmra.mxu0 %vm454_vm15, %v6539_v21  ;;  %5538 = vmatmul.msk.f32.vlgmr.msrb.gmra.mxu1 %vm454_vm15, %v6539_v21  ;;  %v639_v49 = vpop.f32.mrf.mxu1  ;;  %v532_v21 = vadd.f32 %v531_v11, %v481_v32  ;;  %v1112_v32 = vperm.slane %v1108_v58, %v5860_v57 }
 0x4cb   :  { %v801_v17 = vpop.f32.mrf.mxu0  ;;  %v643_v44 = vadd.f32 %v639_v49, %v552_v60 }
 0x4cc   :  { %v889_v40 = vpop.f32.mrf.mxu3 }
 0x4cd   :  { %v735_v41 = vadd.f32 %v731_v12, %v643_v44 }
 0x4ce   :  { %5548 = vmatmul.msk.f32.vlgmr.msra.gmra.mxu2 %vm454_vm15, %v6573_v56  ;;  %5550 = vmatmul.msk.f32.vlgmr.msra.gmra.mxu3 %vm454_vm15, %v6573_v56  ;;  %v642_v56 = vadd.f32 %v619_v48, %v532_v21 }
 0x4d0   :  { %v734_v52 = vadd.f32 %v711_v59, %v642_v56 }
 0x4d2   :  { %5544 = vmatmul.msk.f32.vlgmr.msra.gmra.mxu0 %vm454_vm15, %v6555_v22  ;;  %5546 = vmatmul.msk.f32.vlgmr.msra.gmra.mxu1 %vm454_vm15, %v6555_v22  ;;  %v821_v13 = vpop.f32.mrf.mxu1  ;;  %v824_v30 = vadd.f32 %v801_v17, %v734_v52  ;;  %v869_v22 = vpop.f32.mrf.mxu2 }
 0x4d3   :  { %v825_v31 = vadd.f32 %v821_v13, %v735_v41  ;;  %v937_v28 = vpop.f32.mrf.mxu0 }
 0x4d4   :  { %v892_v50 = vadd.f32 %v869_v22, %v824_v30  ;;  %v1025_v55 = vpop.f32.mrf.mxu3 }
 0x4d5   :  { %v893_v16 = vadd.f32 %v889_v40, %v825_v31 }
 0x4d6   :  { %v960_v4 = vadd.f32 %v937_v28, %v892_v50 }
 0x4da   :  { %v957_v3 = vpop.f32.mrf.mxu1  ;;  %v1005_v62 = vpop.f32.mrf.mxu2 }
 0x4db   :  { %v961_v9 = vadd.f32 %v957_v3, %v893_v16  ;;  %v1073_v42 = vpop.f32.mrf.mxu0  ;;  %v1028_v25 = vadd.f32 %v1005_v62, %v960_v4 }
 0x4dd   :  { %v1029_v34 = vadd.f32 %v1025_v55, %v961_v9  ;;  %v1096_v20 = vadd.f32 %v1073_v42, %v1028_v25 }
 0x4e2   :  { %v1093_v46 = vpop.f32.mrf.mxu1 }
 0x4e3   :  { %v1097_v18 = vadd.f32 %v1093_v46, %v1029_v34  ;;  %v1445_v52 = vpop.f32.mrf.mxu0 }
 0x4e5   :  { %v1100_v63 = vrot.slane %v1097_v18, 4 }
 0x4e7   :  { %v1101_v49 = vsel %vm55_vm0, %v1096_v20, %v1100_v63 }
 0x4e8   :  { %v1103_v48 = vadd.f32 %v1101_v49, %v5820_v0 }
 0x4ea   :  { %v6715_v51 = vadd.f32 %v1112_v32, %v1103_v48  ;;  %v1465_v41 = vpop.f32.mrf.mxu1 }
 0x4ec   :  { %8312 = vst [vmem:[#allocation27_spill] sm:$0xff] %v6715_v51 }
 0x4ed   :  { %1934 = vst [vmem:[#allocation1] ss:$2 sm:$0xff] %v6715_v51 }
 0x4f4   :  { %v1935_v11 = vld.sshfl [vmem:[#allocation1] sm:$0xff pattern:$0x75316420]  ;;  %v1936_v60 = vld.sshfl [vmem:[#allocation1 + $0x8] sm:$0xff pattern:$0x75316420] }
 0x4f5   :  { %v1939_v21 = vsel %vm55_vm0, %v1935_v11, 0.0  ;;  %v1940_v13 = vsel %vm55_vm0, %v1936_v60, 0.0 }
 0x4f6   :  { %v1941_v17 = vadd.f32 %v1940_v13, %v1939_v21 }
 0x4f8   :  { %1942 = vadd.xlane.f32.xlu2 %v1941_v17 }
 0x500   :  { %v1418_v12 = vpop.f32.mrf.mxu3  ;;  %v1398_v59 = vpop.f32.mrf.mxu2 }
 0x501   :  { %v1466_v31 = vadd.f32 %v1465_v41, %v1418_v12  ;;  %v1446_v0 = vadd.f32 %v1445_v52, %v1398_v59  ;;  %v1957_v41 = vmul.f32 %v6715_v51, %v6715_v51 }
 0x51b   :  { %v1541_v44 = vpop.f32.mrf.mxu3  ;;  %v1521_v56 = vpop.f32.mrf.mxu2 }
 0x51c   :  { %v1545_v22 = vadd.f32 %v1541_v44, %v1466_v31  ;;  %v1544_v16 = vadd.f32 %v1521_v56, %v1446_v0 }
 0x53c   :  { %v1677_v30 = vpop.f32.mrf.mxu2  ;;  %v1697_v3 = vpop.f32.mrf.mxu3 }
 0x53f   :  { %v1599_v28 = vpop.f32.mrf.mxu0  ;;  %v1619_v40 = vpop.f32.mrf.mxu1 }
 0x540   :  { %v1622_v50 = vadd.f32 %v1599_v28, %v1544_v16  ;;  %v1623_v9 = vadd.f32 %v1619_v40, %v1545_v22 }
 0x542   :  { %v1700_v42 = vadd.f32 %v1677_v30, %v1622_v50  ;;  %v1701_v55 = vadd.f32 %v1697_v3, %v1623_v9 }
 0x547   :  { %v1733_v4 = vpop.f32.mrf.mxu0  ;;  %v1753_v46 = vpop.f32.mrf.mxu1 }
 0x548   :  { %v1756_v25 = vadd.f32 %v1733_v4, %v1700_v42  ;;  %v1757_v18 = vadd.f32 %v1753_v46, %v1701_v55 }
 0x549   :  { %v1789_v62 = vpop.f32.mrf.mxu2  ;;  %v1809_v34 = vpop.f32.mrf.mxu3 }
 0x54a   :  { %v1812_v20 = vadd.f32 %v1789_v62, %v1756_v25  ;;  %v1813_v58 = vadd.f32 %v1809_v34, %v1757_v18 }
 0x54f   :  { %v1845_v63 = vpop.f32.mrf.mxu0  ;;  %v1865_v49 = vpop.f32.mrf.mxu1 }
 0x550   :  { %v1868_v48 = vadd.f32 %v1845_v63, %v1812_v20  ;;  %v1869_v11 = vadd.f32 %v1865_v49, %v1813_v58 }
 0x551   :  { %v1901_v60 = vpop.f32.mrf.mxu2  ;;  %v1921_v21 = vpop.f32.mrf.mxu3 }
 0x552   :  { %v1925_v13 = vadd.f32 %v1921_v21, %v1869_v11  ;;  %v1924_v17 = vadd.f32 %v1901_v60, %v1868_v48 }
 0x554   :  { %v1928_v12 = vrot.slane %v1925_v13, 4 }
 0x556   :  { %v1929_v59 = vsel %vm55_vm0, %v1924_v17, %v1928_v12 }
 0x557   :  { %v1931_v44 = vadd.f32 %v5826_v1, %v1929_v59 }
 0x559   :  { %v6722_v56 = vadd.f32 %v1931_v44, %v1112_v32  ;;  %v5551_v44 = vld [vmem:[%s8207_s1 + $0x8] sm:$0xf] }
 0x55b   :  { %8313 = vst [vmem:[#allocation28_spill] sm:$0xff] %v6722_v56  ;;  %v1970_v28 = vmul.f32 %v6722_v56, %v6722_v56 }
 0x55c   :  { %1946 = vst [vmem:[#allocation1] ss:$2 sm:$0xff] %v6722_v56 }
 0x563   :  { %v1947_v52 = vld.sshfl [vmem:[#allocation1] sm:$0xff pattern:$0x75316420]  ;;  %v1948_v31 = vld.sshfl [vmem:[#allocation1 + $0x8] sm:$0xff pattern:$0x75316420] }
 0x564   :  { %v1951_v0 = vsel %vm55_vm0, %v1947_v52, 0.0  ;;  %v1952_v30 = vsel %vm55_vm0, %v1948_v31, 0.0  ;;  %1959 = vst [vmem:[#allocation1] ss:$2 sm:$0xff] %v1957_v41  ;;  %v5599_v41 = vld [vmem:[%s8207_s1 + $0xc] sm:$0xf] }
 0x565   :  { %v1953_v3 = vadd.f32 %v1952_v30, %v1951_v0  ;;  %v5552_v30 = vld [vmem:[%s8208_s2 + $0x8] sm:$0xf] }
 0x567   :  { %1954 = vadd.xlane.f32.xlu1 %v1953_v3 }
 0x56b   :  { %v1960_v1 = vld.sshfl [vmem:[#allocation1] sm:$0xff pattern:$0x75316420]  ;;  %v1961_v32 = vld.sshfl [vmem:[#allocation1 + $0x8] sm:$0xff pattern:$0x75316420]  ;;  %v1943_v55 = vpop.xlane.xlu2 %1942 }
 0x56c   :  { %v1964_v40 = vsel %vm55_vm0, %v1960_v1, 0.0  ;;  %v1965_v22 = vsel %vm55_vm0, %v1961_v32, 0.0  ;;  %1972 = vst [vmem:[#allocation1] ss:$2 sm:$0xff] %v1970_v28 }
 0x56d   :  { %v1966_v16 = vadd.f32 %v1965_v22, %v1964_v40 }
 0x56f   :  { %1967 = vadd.xlane.f32.xlu0 %v1966_v16 }
 0x573   :  { %v1973_v50 = vld.sshfl [vmem:[#allocation1] sm:$0xff pattern:$0x75316420]  ;;  %v1974_v9 = vld.sshfl [vmem:[#allocation1 + $0x8] sm:$0xff pattern:$0x75316420] }
 0x574   :  { %v1977_v4 = vsel %vm55_vm0, %v1973_v50, 0.0  ;;  %v1978_v46 = vsel %vm55_vm0, %v1974_v9, 0.0 }
 0x575   :  { %v1979_v42 = vadd.f32 %v1978_v46, %v1977_v4 }
 0x577   :  { %1980 = vadd.xlane.f32.xlu2 %v1979_v42 }
 0x5da   :  { %v1955_v62 = vpop.xlane.xlu1 %1954 }
 0x5db   :  { %v1956_v34 = vadd.f32 %v1955_v62, %v1943_v55 }
 0x5dd   :  { %v1983_v25 = vmul.f32 0.001953125, %v1956_v34 }
 0x5df   :  { %v1985_v49 = vmul.f32 %v1983_v25, %v1983_v25 }
 0x5e2   :  { %v1968_v18 = vpop.xlane.xlu0 %1967 }
 0x5ea   :  { %v1981_v20 = vpop.xlane.xlu2 %1980 }
 0x5eb   :  { %v1982_v58 = vadd.f32 %v1981_v20, %v1968_v18 }
 0x5ed   :  { %v1984_v63 = vmul.f32 0.001953125, %v1982_v58 }
 0x5ef   :  { %v1986_v48 = vsub.f32 %v1984_v63, %v1985_v49 }
 0x5f1   :  { %v1987_v11 = vadd.f32 1e-05, %v1986_v48 }
 0x5f3   :  { %5748 = vrsqrt.f32 %v1987_v11  ;;  %vm1994_vm5 = vweird.f32 %v1987_v11 }
 0x5f9   :  { %v5749_v60 = vpop.eup %5748 }
 0x5fa   :  { %v1989_v21 = vmul.f32 %v5749_v60, %v1987_v11  ;;  %vm1995_vm3 = vweird.f32 %v5749_v60 }
 0x5fb   :  { %vm1996_vm1 = vmor %vm1994_vm5, %vm1995_vm3 }
 0x5fc   :  { %v1990_v13 = vmul.f32 %v5749_v60, %v1989_v21 }
 0x5fe   :  { %v1991_v17 = vmul.f32 0.5, %v1990_v13 }
 0x600   :  { %v1992_v12 = vsub.f32 1.5, %v1991_v17 }
 0x602   :  { %v1993_v59 = vmul.f32 %v5749_v60, %v1992_v12 }
 0x604   :  { %v1997_v52 = vsel %vm1996_vm1, %v5749_v60, %v1993_v59  ;;  %vm8323_vm1 = vcmp.lt.s32.totalorder %v5870_v6, 15 }
 0x605   :  { %v2000_v31 = vmul.f32 %v5551_v44, %v1997_v52  ;;  %v6741_v0 = vmul.f32 %v5599_v41, %v1997_v52  ;;  %v8314_v52 = vld [vmem:[#allocation3_spill] sm:$0xff]  ;;  %vm8324_vm3 = vmmov %vm8323_vm1 }
 0x606   :  { %vm8338_vm5 = vmmov %vm8323_vm1 }
 0x607   :  { %2007 = vperm.xlu1 %5744, %v2000_v31   ;;  %v2003_v3 = vmul.f32 %v2000_v31, %v1983_v25  ;;  %v6747_v28 = vmul.f32 %v6741_v0, %v1983_v25 }
 0x609   :  { %v2004_v1 = vsub.f32 %v5552_v30, %v2003_v3 }
 0x60b   :  { %2017 = vperm.xlu2 %5743, %v2004_v1  }
 0x665   :  { %v2018_v32 = vpop.permute.xlu2 %2017 }
 0x666   :  { %v2022_v16 = vperm.slane %v2018_v32, %v5860_v57 }
 0x679   :  { %v2008_v40 = vpop.permute.xlu1 %2007 }
 0x67a   :  { %v2012_v22 = vperm.slane %v2008_v40, %v5860_v57 }
 0x67c   :  { %v2014_v50 = vmul.f32 %v2012_v22, %v6715_v51 }
 0x67e   :  { %v6752_v9 = vadd.f32 %v2022_v16, %v2014_v50 }
 0x680   :  { %2026 = vst [vmem:[#allocation1] ss:$2 sm:$0xff] %v6752_v9 }
 0x687   :  { %v2028_v4 = vld.sshfl [vmem:[#allocation1 + $0x8] sm:$0xff pattern:$0x75316420]  ;;  %v2027_v46 = vld.sshfl [vmem:[#allocation1] sm:$0xff pattern:$0x75316420] }
 0x688   :  { %2033 = vrot.lane.b32.xlu1 %v2028_v4, %s5755_s20  ;;  %2031 = vrot.lane.b32.xlu0 %v2027_v46, %s5755_s20  ;;  %2037 = vst [vmem:[#allocation1] ss:$2 sm:$0xff] %v6752_v9 }
 0x68f   :  { %v2039_v42 = vld.sshfl [vmem:[#allocation1 + $0x8] sm:$0xff pattern:$0x75316420]  ;;  %v2038_v55 = vld.sshfl [vmem:[#allocation1] sm:$0xff pattern:$0x75316420] }
 0x690   :  { %2044 = vrot.lane.b32.xlu0 %v2039_v42, %s5756_s21  ;;  %2042 = vrot.lane.b32.xlu2 %v2038_v55, %s5756_s21  ;;  %2062 = vst [vmem:[#allocation1] ss:$2 sm:$0xff] %v6752_v9 }
 0x697   :  { %v2064_v62 = vld.sshfl [vmem:[#allocation1 + $0x8] sm:$0xff pattern:$0x75316420]  ;;  %v2063_v34 = vld.sshfl [vmem:[#allocation1] sm:$0xff pattern:$0x75316420] }
 0x698   :  { %2069 = vrot.lane.b32.xlu2 %v2064_v62, %s5758_s22  ;;  %2067 = vrot.lane.b32.xlu1 %v2063_v34, %s5758_s22  ;;  %2073 = vst [vmem:[#allocation1] ss:$2 sm:$0xff] %v6752_v9 }
 0x69f   :  { %v2075_v25 = vld.sshfl [vmem:[#allocation1 + $0x8] sm:$0xff pattern:$0x75316420]  ;;  %v2074_v18 = vld.sshfl [vmem:[#allocation1] sm:$0xff pattern:$0x75316420] }
 0x6a0   :  { %2080 = vrot.lane.b32.xlu1 %v2075_v25, %s5753_s14  ;;  %2078 = vrot.lane.b32.xlu0 %v2074_v18, %s5753_s14 }
 0x6ea   :  { %v2043_v58 = vpop.permute.xlu2 %2042 }
 0x6f2   :  { %v2070_v41 = vpop.permute.xlu2 %2069 }
 0x6fa   :  { %v2032_v20 = vpop.permute.xlu0 %2031  ;;  %v2034_v63 = vpop.permute.xlu1 %2033 }
 0x6fb   :  { %v2035_v11 = vsel %vm150_vm7, %v2032_v20, %v2034_v63  ;;  %v2036_v59 = vsel %vm150_vm7, %v2034_v63, %v2032_v20 }
 0x6fc   :  { %v2049_v21 = vmul.f32 %v2035_v11, %v5890_v23  ;;  %v2048_v3 = vmul.f32 %v2036_v59, %v5890_v23  ;;  %v2115_v32 = vmul.f32 %v2035_v11, %v5892_v24 }
 0x702   :  { %v2045_v49 = vpop.permute.xlu0 %2044 }
 0x703   :  { %v2047_v48 = vsel %vm162_vm6, %v2045_v49, %v2043_v58  ;;  %v2046_v13 = vsel %vm162_vm6, %v2043_v58, %v2045_v49  ;;  %v8315_v49 = vld [vmem:[#allocation4_spill] sm:$0xff] }
 0x704   :  { %v2051_v60 = vmul.f32 %v2047_v48, %v5892_v24  ;;  %v2050_v44 = vmul.f32 %v2046_v13, %v5892_v24  ;;  %v2113_v30 = vmul.f32 %v2047_v48, %v5890_v23  ;;  %v2112_v11 = vmul.f32 %v2046_v13, %v5890_v23 }
 0x706   :  { %v2053_v17 = vadd.f32 %v2051_v60, %v2049_v21  ;;  %v2052_v22 = vadd.f32 %v2050_v44, %v2048_v3  ;;  %v2117_v50 = vadd.f32 %v2115_v32, %v2113_v30  ;;  %v2114_v44 = vmul.f32 %v2036_v59, %v5892_v24 }
 0x708   :  { %v2055_v31 = vadd.f32 %v2053_v17, %v8314_v52  ;;  %v2054_v48 = vadd.f32 %v2052_v22, %v8315_v49 }
 0x70a   :  { %v2068_v12 = vpop.permute.xlu1 %2067  ;;  %v2058_v16 = vrot.slane %v2055_v31, 4 }
 0x70b   :  { %v2072_v1 = vsel %vm203_vm8, %v2070_v41, %v2068_v12  ;;  %v2071_v40 = vsel %vm203_vm8, %v2068_v12, %v2070_v41  ;;  %v2119_v41 = vadd.f32 %v2117_v50, %v5926_v45 }
 0x70c   :  { %v2084_v4 = vmul.f32 %v2072_v1, %v5890_v23  ;;  %v2085_v55 = vmul.f32 %v2071_v40, %v5890_v23  ;;  %v2101_v62 = vmul.f32 %v2071_v40, %v5892_v24  ;;  %v2100_v60 = vmul.f32 %v2072_v1, %v5892_v24 }
 0x70d   :  { %v2059_v31 = vsel %vm55_vm0, %v2054_v48, %v2058_v16  ;;  %v2116_v40 = vadd.f32 %v2114_v44, %v2112_v11 }
 0x70e   :  { %v2061_v1 = vmax.f32 %v6752_v9, %v2059_v31 }
 0x70f   :  { %v2118_v16 = vadd.f32 %v2116_v40, %v5955_v19 }
 0x712   :  { %v2081_v46 = vpop.permute.xlu1 %2080  ;;  %v2079_v42 = vpop.permute.xlu0 %2078 }
 0x713   :  { %v2082_v34 = vsel %vm41_vm4, %v2079_v42, %v2081_v46  ;;  %v2083_v25 = vsel %vm41_vm4, %v2081_v46, %v2079_v42 }
 0x714   :  { %v2086_v18 = vmul.f32 %v2082_v34, %v5892_v24  ;;  %v2087_v20 = vmul.f32 %v2083_v25, %v5892_v24  ;;  %v2098_v58 = vmul.f32 %v2082_v34, %v5890_v23  ;;  %v2099_v63 = vmul.f32 %v2083_v25, %v5890_v23 }
 0x716   :  { %v2088_v21 = vadd.f32 %v2086_v18, %v2084_v4  ;;  %v2089_v17 = vadd.f32 %v2087_v20, %v2085_v55  ;;  %v2103_v12 = vadd.f32 %v2101_v62, %v2099_v63  ;;  %v2102_v3 = vadd.f32 %v2100_v60, %v2098_v58 }
 0x717   :  { %v2122_v4 = vrot.slane %v2119_v41, 4 }
 0x718   :  { %v2091_v30 = vadd.f32 %v2089_v17, %v5928_v47  ;;  %v2105_v32 = vadd.f32 %v2103_v12, %v5931_v54  ;;  %v2090_v22 = vadd.f32 %v2088_v21, %v5945_v7  ;;  %v2104_v59 = vadd.f32 %v2102_v3, %v5950_v14  ;;  %v5600_v21 = vld [vmem:[%s8208_s2 + $0xc] sm:$0xf] }
 0x719   :  { %v2123_v34 = vsel %vm55_vm0, %v2118_v16, %v2122_v4  ;;  %v2878_v17 = vsub.f32 %v5600_v21, %v6747_v28 }
 0x71a   :  { %v2094_v13 = vrot.slane %v2091_v30, 4  ;;  %v2108_v46 = vrot.slane %v2105_v32, 4 }
 0x71c   :  { %v2095_v42 = vsel %vm55_vm0, %v2090_v22, %v2094_v13  ;;  %v2109_v55 = vsel %vm55_vm0, %v2104_v59, %v2108_v46 }
 0x71d   :  { %v2097_v50 = vmax.f32 %v2061_v1, %v2095_v42 }
 0x71f   :  { %v2111_v62 = vmax.f32 %v2097_v50, %v2109_v55 }
 0x721   :  { %v6811_v25 = vmax.f32 %v2111_v62, %v2123_v34 }
 0x723   :  { %2127 = vst [vmem:[#allocation1] ss:$2 sm:$0xff] %v6811_v25 }
 0x72a   :  { %v2129_v18 = vld.sshfl [vmem:[#allocation1 + $0x8] sm:$0xff pattern:$0x75316420]  ;;  %v2128_v20 = vld.sshfl [vmem:[#allocation1] sm:$0xff pattern:$0x75316420] }
 0x72b   :  { %2134 = vrot.lane.b32.xlu0 %v2129_v18, %s5759_s5  ;;  %2132 = vrot.lane.b32.xlu2 %v2128_v20, %s5759_s5  ;;  %2138 = vst [vmem:[#allocation1] ss:$2 sm:$0xff] %v6811_v25 }
 0x732   :  { %v2140_v9 = vld.sshfl [vmem:[#allocation1 + $0x8] sm:$0xff pattern:$0x75316420]  ;;  %v2139_v58 = vld.sshfl [vmem:[#allocation1] sm:$0xff pattern:$0x75316420] }
 0x733   :  { %2145 = vrot.lane.b32.xlu2 %v2140_v9, %s5760_s12  ;;  %2143 = vrot.lane.b32.xlu1 %v2139_v58, %s5760_s12  ;;  %2163 = vst [vmem:[#allocation1] ss:$2 sm:$0xff] %v6811_v25 }
 0x73a   :  { %v2165_v63 = vld.sshfl [vmem:[#allocation1 + $0x8] sm:$0xff pattern:$0x75316420]  ;;  %v2164_v48 = vld.sshfl [vmem:[#allocation1] sm:$0xff pattern:$0x75316420] }
 0x73b   :  { %2170 = vrot.lane.b32.xlu1 %v2165_v63, %s5761_s0  ;;  %2168 = vrot.lane.b32.xlu0 %v2164_v48, %s5761_s0  ;;  %2174 = vst [vmem:[#allocation1] ss:$2 sm:$0xff] %v6811_v25 }
 0x742   :  { %v2176_v11 = vld.sshfl [vmem:[#allocation1 + $0x8] sm:$0xff pattern:$0x75316420]  ;;  %v2175_v60 = vld.sshfl [vmem:[#allocation1] sm:$0xff pattern:$0x75316420] }
 0x743   :  { %2881 = vperm.xlu1 %5744, %v6741_v0   ;;  %2181 = vrot.lane.b32.xlu0 %v2176_v11, %s5762_s13 }
 0x744   :  { %2179 = vrot.lane.b32.xlu2 %v2175_v60, %s5762_s13 }
 0x74c   :  { %2891 = vperm.xlu2 %5743, %v2878_v17  }
 0x785   :  { %v2133_v12 = vpop.permute.xlu2 %2132 }
 0x78d   :  { %v2146_v44 = vpop.permute.xlu2 %2145 }
 0x79d   :  { %v2135_v41 = vpop.permute.xlu0 %2134 }
 0x79e   :  { %v2136_v0 = vsel %vm290_vm10, %v2133_v12, %v2135_v41  ;;  %v2137_v13 = vsel %vm290_vm10, %v2135_v41, %v2133_v12  ;;  %v2180_v34 = vpop.permute.xlu2 %2179  ;;  %v8316_v41 = vld [vmem:[#allocation5_spill] sm:$0xff] }
 0x79f   :  { %v2150_v32 = vmul.f32 %v2136_v0, %v5890_v23  ;;  %v2149_v59 = vmul.f32 %v2137_v13, %v5890_v23  ;;  %v2216_v16 = vmul.f32 %v2136_v0, %v5892_v24 }
 0x7a5   :  { %v2144_v31 = vpop.permute.xlu1 %2143 }
 0x7a6   :  { %v2148_v30 = vsel %vm302_vm9, %v2146_v44, %v2144_v31  ;;  %v2147_v40 = vsel %vm302_vm9, %v2144_v31, %v2146_v44 }
 0x7a7   :  { %v2152_v3 = vmul.f32 %v2148_v30, %v5892_v24  ;;  %v2151_v1 = vmul.f32 %v2147_v40, %v5892_v24  ;;  %v2214_v42 = vmul.f32 %v2148_v30, %v5890_v23  ;;  %v2213_v30 = vmul.f32 %v2147_v40, %v5890_v23 }
 0x7a9   :  { %v2154_v22 = vadd.f32 %v2152_v3, %v2150_v32  ;;  %v2153_v62 = vadd.f32 %v2151_v1, %v2149_v59  ;;  %v2218_v20 = vadd.f32 %v2216_v16, %v2214_v42  ;;  %v8318_v42 = vld [vmem:[#allocation7_spill] sm:$0xff] }
 0x7ab   :  { %v2156_v4 = vadd.f32 %v2154_v22, %v5994_v61  ;;  %v2155_v31 = vadd.f32 %v2153_v62, %v8316_v41  ;;  %v8320_v62 = vld [vmem:[#allocation9_spill] sm:$0xff] }
 0x7ad   :  { %v2169_v28 = vpop.permute.xlu0 %2168  ;;  %v2171_v46 = vpop.permute.xlu1 %2170  ;;  %v2159_v18 = vrot.slane %v2156_v4, 4 }
 0x7ae   :  { %v2173_v50 = vsel %vm334_vm11, %v2171_v46, %v2169_v28  ;;  %v2172_v55 = vsel %vm334_vm11, %v2169_v28, %v2171_v46  ;;  %v2215_v28 = vmul.f32 %v2137_v13, %v5892_v24  ;;  %v8317_v46 = vld [vmem:[#allocation6_spill] sm:$0xff] }
 0x7af   :  { %v2185_v9 = vmul.f32 %v2173_v50, %v5890_v23  ;;  %v2186_v63 = vmul.f32 %v2172_v55, %v5890_v23  ;;  %v2202_v48 = vmul.f32 %v2172_v55, %v5892_v24  ;;  %v2201_v0 = vmul.f32 %v2173_v50, %v5892_v24  ;;  %v8319_v55 = vld [vmem:[#allocation8_spill] sm:$0xff]  ;;  %v8321_v13 = vld [vmem:[#allocation10_spill] sm:$0xff] }
 0x7b0   :  { %v2220_v1 = vadd.f32 %v2218_v20, %v8317_v46  ;;  %v2160_v4 = vsel %vm55_vm0, %v2155_v31, %v2159_v18 }
 0x7b1   :  { %v2162_v50 = vmax.f32 %v6811_v25, %v2160_v4 }
 0x7b5   :  { %v2182_v58 = vpop.permute.xlu0 %2181 }
 0x7b6   :  { %v2183_v11 = vsel %vm346_vm12, %v2180_v34, %v2182_v58  ;;  %v2184_v60 = vsel %vm346_vm12, %v2182_v58, %v2180_v34  ;;  %v2217_v58 = vadd.f32 %v2215_v28, %v2213_v30 }
 0x7b7   :  { %v2187_v21 = vmul.f32 %v2183_v11, %v5892_v24  ;;  %v2188_v17 = vmul.f32 %v2184_v60, %v5892_v24  ;;  %v2199_v12 = vmul.f32 %v2183_v11, %v5890_v23  ;;  %v2200_v44 = vmul.f32 %v2184_v60, %v5890_v23 }
 0x7b9   :  { %v2189_v3 = vadd.f32 %v2187_v21, %v2185_v9  ;;  %v2190_v32 = vadd.f32 %v2188_v17, %v2186_v63  ;;  %v2204_v22 = vadd.f32 %v2202_v48, %v2200_v44  ;;  %v2203_v16 = vadd.f32 %v2201_v0, %v2199_v12  ;;  %v8322_v21 = vld [vmem:[#allocation11_spill] sm:$0xff] }
 0x7ba   :  { %v2223_v9 = vrot.slane %v2220_v1, 4  ;;  %v2219_v18 = vadd.f32 %v2217_v58, %v8322_v21 }
 0x7bb   :  { %v2192_v59 = vadd.f32 %v2190_v32, %v8318_v42  ;;  %v2206_v34 = vadd.f32 %v2204_v22, %v8319_v55  ;;  %v2191_v11 = vadd.f32 %v2189_v3, %v8320_v62  ;;  %v2205_v48 = vadd.f32 %v2203_v16, %v8321_v13 }
 0x7bc   :  { %v2224_v44 = vsel %vm55_vm0, %v2219_v18, %v2223_v9 }
 0x7bd   :  { %v2195_v40 = vrot.slane %v2192_v59, 4  ;;  %v2209_v60 = vrot.slane %v2206_v34, 4 }
 0x7bf   :  { %v2196_v63 = vsel %vm55_vm0, %v2191_v11, %v2195_v40  ;;  %v2210_v17 = vsel %vm55_vm0, %v2205_v48, %v2209_v60  ;;  %v2882_v40 = vpop.permute.xlu1 %2881 }
 0x7c0   :  { %v2198_v20 = vmax.f32 %v2162_v50, %v2196_v63  ;;  %v2886_v60 = vperm.slane %v2882_v40, %v5860_v57  ;;  %v2892_v63 = vpop.permute.xlu2 %2891 }
 0x7c2   :  { %v2212_v12 = vmax.f32 %v2198_v20, %v2210_v17  ;;  %v2888_v48 = vmul.f32 %v2886_v60, %v6722_v56  ;;  %v2896_v20 = vperm.slane %v2892_v63, %v5860_v57 }
 0x7c4   :  { %v2226_v31 = vmax.f32 %v2212_v12, %v2224_v44  ;;  %v6908_v18 = vadd.f32 %v2896_v20, %v2888_v48 }
 0x7c6   :  { %2230 = vst [vmem:[#allocation1] ss:$2 sm:$0xff] %v2226_v31 }
 0x7cd   :  { %v6875_v30 = vld.sshfl [vmem:[#allocation1] sm:$0xff pattern:$0x75316420]  ;;  %v6877_v0 = vld.sshfl [vmem:[#allocation1 + $0x8] sm:$0xff pattern:$0x75316420] }
 0x7ce   :  { %2241 = vst [vmem:[#allocation1] ss:$2 sm:$0xff] %v2226_v31 }
 0x7d5   :  { %v6879_v25 = vld.sshfl [vmem:[#allocation1] sm:$0xff pattern:$0x75316420]  ;;  %v6881_v3 = vld.sshfl [vmem:[#allocation1 + $0x8] sm:$0xff pattern:$0x75316420] }
 0x7d6   :  { %2311 = vst [vmem:[#allocation1] ss:$2 sm:$0xff] %v2226_v31 }
 0x7dd   :  { %v2312_v32 = vld.sshfl [vmem:[#allocation1] sm:$0xff pattern:$0x75316420]  ;;  %v2313_v22 = vld.sshfl [vmem:[#allocation1 + $0x8] sm:$0xff pattern:$0x75316420] }
 0x7de   :  { %5559 = vmatpush.msk.msrb.mxu2 %vm55_vm0, %v2312_v32  ;;  %2361 = vst [vmem:[#allocation1] ss:$2 sm:$0xff] %v2226_v31  ;;  %5561 = vmatpush.msk.msrb.mxu3 %vm55_vm0, %v2313_v22 }
 0x7e5   :  { %v6885_v28 = vld.sshfl [vmem:[#allocation1] sm:$0xff pattern:$0x75316420]  ;;  %v6887_v1 = vld.sshfl [vmem:[#allocation1 + $0x8] sm:$0xff pattern:$0x75316420] }
 0x7e6   :  { %2372 = vst [vmem:[#allocation1] ss:$2 sm:$0xff] %v2226_v31 }
 0x7ed   :  { %v6889_v4 = vld.sshfl [vmem:[#allocation1] sm:$0xff pattern:$0x75316420]  ;;  %v6891_v59 = vld.sshfl [vmem:[#allocation1 + $0x8] sm:$0xff pattern:$0x75316420] }
 0x7ee   :  { %2444 = vst [vmem:[#allocation1] ss:$2 sm:$0xff] %v2226_v31 }
 0x7f5   :  { %v6893_v16 = vld.sshfl [vmem:[#allocation1] sm:$0xff pattern:$0x75316420]  ;;  %v6895_v34 = vld.sshfl [vmem:[#allocation1 + $0x8] sm:$0xff pattern:$0x75316420] }
 0x7f6   :  { %2455 = vst [vmem:[#allocation1] ss:$2 sm:$0xff] %v2226_v31 }
 0x7fd   :  { %v6897_v58 = vld.sshfl [vmem:[#allocation1] sm:$0xff pattern:$0x75316420]  ;;  %v6899_v11 = vld.sshfl [vmem:[#allocation1 + $0x8] sm:$0xff pattern:$0x75316420] }
 0x7fe   :  { %2527 = vst [vmem:[#allocation1] ss:$2 sm:$0xff] %v2226_v31 }
 0x805   :  { %v6902_v50 = vld.sshfl [vmem:[#allocation1] sm:$0xff pattern:$0x75316420]  ;;  %v6904_v9 = vld.sshfl [vmem:[#allocation1 + $0x8] sm:$0xff pattern:$0x75316420] }
 0x806   :  { %2538 = vst [vmem:[#allocation1] ss:$2 sm:$0xff] %v2226_v31 }
 0x80d   :  { %v6910_v17 = vld.sshfl [vmem:[#allocation1] sm:$0xff pattern:$0x75316420]  ;;  %v6912_v12 = vld.sshfl [vmem:[#allocation1 + $0x8] sm:$0xff pattern:$0x75316420] }
 0x80e   :  { %2900 = vst [vmem:[#allocation1] ss:$2 sm:$0xff] %v6908_v18 }
 0x815   :  { %v2902_v44 = vld.sshfl [vmem:[#allocation1 + $0x8] sm:$0xff pattern:$0x75316420]  ;;  %v2901_v32 = vld.sshfl [vmem:[#allocation1] sm:$0xff pattern:$0x75316420] }
 0x816   :  { %2907 = vrot.lane.b32.xlu1 %v2902_v44, %s5755_s20  ;;  %2905 = vrot.lane.b32.xlu0 %v2901_v32, %s5755_s20  ;;  %2911 = vst [vmem:[#allocation1] ss:$2 sm:$0xff] %v6908_v18 }
 0x81d   :  { %v2913_v31 = vld.sshfl [vmem:[#allocation1 + $0x8] sm:$0xff pattern:$0x75316420]  ;;  %v2912_v22 = vld.sshfl [vmem:[#allocation1] sm:$0xff pattern:$0x75316420] }
 0x81e   :  { %2918 = vrot.lane.b32.xlu0 %v2913_v31, %s5756_s21  ;;  %2916 = vrot.lane.b32.xlu2 %v2912_v22, %s5756_s21  ;;  %2936 = vst [vmem:[#allocation1] ss:$2 sm:$0xff] %v6908_v18 }
 0x825   :  { %v2938_v40 = vld.sshfl [vmem:[#allocation1 + $0x8] sm:$0xff pattern:$0x75316420]  ;;  %v2937_v60 = vld.sshfl [vmem:[#allocation1] sm:$0xff pattern:$0x75316420] }
 0x826   :  { %2943 = vrot.lane.b32.xlu2 %v2938_v40, %s5758_s22  ;;  %2941 = vrot.lane.b32.xlu1 %v2937_v60, %s5758_s22  ;;  %2947 = vst [vmem:[#allocation1] ss:$2 sm:$0xff] %v6908_v18 }
 0x82d   :  { %v2949_v63 = vld.sshfl [vmem:[#allocation1 + $0x8] sm:$0xff pattern:$0x75316420]  ;;  %v2948_v48 = vld.sshfl [vmem:[#allocation1] sm:$0xff pattern:$0x75316420] }
 0x82e   :  { %2954 = vrot.lane.b32.xlu1 %v2949_v63, %s5753_s14  ;;  %2952 = vrot.lane.b32.xlu0 %v2948_v48, %s5753_s14 }
 0x878   :  { %v2917_v44 = vpop.permute.xlu2 %2916 }
 0x880   :  { %v2944_v36 = vpop.permute.xlu2 %2943 }
 0x888   :  { %v2906_v20 = vpop.permute.xlu0 %2905  ;;  %v2908_v32 = vpop.permute.xlu1 %2907 }
 0x889   :  { %v2909_v40 = vsel %vm150_vm7, %v2906_v20, %v2908_v32  ;;  %v2910_v48 = vsel %vm150_vm7, %v2908_v32, %v2906_v20 }
 0x88a   :  { %v2923_v56 = vmul.f32 %v2909_v40, %v5890_v23  ;;  %v2922_v39 = vmul.f32 %v2910_v48, %v5890_v23  ;;  %v2989_v29 = vmul.f32 %v2909_v40, %v5892_v24  ;;  %v2988_v2 = vmul.f32 %v2910_v48, %v5892_v24 }
 0x890   :  { %v2919_v31 = vpop.permute.xlu0 %2918 }
 0x891   :  { %v2921_v22 = vsel %vm162_vm6, %v2919_v31, %v2917_v44  ;;  %v2920_v57 = vsel %vm162_vm6, %v2917_v44, %v2919_v31 }
 0x892   :  { %v2925_v60 = vmul.f32 %v2921_v22, %v5892_v24  ;;  %v2924_v26 = vmul.f32 %v2920_v57, %v5892_v24  ;;  %v2987_v43 = vmul.f32 %v2921_v22, %v5890_v23 }
 0x894   :  { %v2927_v63 = vadd.f32 %v2925_v60, %v2923_v56  ;;  %v2926_v44 = vadd.f32 %v2924_v26, %v2922_v39  ;;  %v2991_v20 = vadd.f32 %v2989_v29, %v2987_v43 }
 0x896   :  { %v2929_v10 = vadd.f32 %v2927_v63, %v8314_v52 }
 0x898   :  { %v2942_v51 = vpop.permute.xlu1 %2941  ;;  %v2932_v31 = vrot.slane %v2929_v10, 4  ;;  %v2986_v10 = vmul.f32 %v2920_v57, %v5890_v23 }
 0x899   :  { %v2946_v37 = vsel %vm203_vm8, %v2944_v36, %v2942_v51  ;;  %v2945_v56 = vsel %vm203_vm8, %v2942_v51, %v2944_v36  ;;  %v2928_v36 = vadd.f32 %v2926_v44, %v8315_v49 }
 0x89a   :  { %v2958_v32 = vmul.f32 %v2946_v37, %v5890_v23  ;;  %v2959_v63 = vmul.f32 %v2945_v56, %v5890_v23  ;;  %v2975_v22 = vmul.f32 %v2945_v56, %v5892_v24  ;;  %v2974_v26 = vmul.f32 %v2946_v37, %v5892_v24 }
 0x89b   :  { %v2990_v35 = vadd.f32 %v2988_v2, %v2986_v10 }
 0x8a0   :  { %v2955_v60 = vpop.permute.xlu1 %2954  ;;  %v2953_v15 = vpop.permute.xlu0 %2952 }
 0x8a1   :  { %v2956_v52 = vsel %vm41_vm4, %v2953_v15, %v2955_v60  ;;  %v2957_v40 = vsel %vm41_vm4, %v2955_v60, %v2953_v15  ;;  %v2993_v15 = vadd.f32 %v2991_v20, %v5926_v45  ;;  %v2933_v60 = vsel %vm55_vm0, %v2928_v36, %v2932_v31 }
 0x8a2   :  { %v2960_v53 = vmul.f32 %v2956_v52, %v5892_v24  ;;  %v2961_v39 = vmul.f32 %v2957_v40, %v5892_v24  ;;  %v2972_v29 = vmul.f32 %v2956_v52, %v5890_v23  ;;  %v2973_v43 = vmul.f32 %v2957_v40, %v5890_v23 }
 0x8a3   :  { %v2935_v37 = vmax.f32 %v6908_v18, %v2933_v60  ;;  %v2992_v31 = vadd.f32 %v2990_v35, %v5955_v19 }
 0x8a4   :  { %v2962_v51 = vadd.f32 %v2960_v53, %v2958_v32  ;;  %v2963_v56 = vadd.f32 %v2961_v39, %v2959_v63  ;;  %v2977_v8 = vadd.f32 %v2975_v22, %v2973_v43  ;;  %v2976_v52 = vadd.f32 %v2974_v26, %v2972_v29 }
 0x8a5   :  { %v2996_v53 = vrot.slane %v2993_v15, 4 }
 0x8a6   :  { %v2965_v27 = vadd.f32 %v2963_v56, %v5928_v47  ;;  %v2979_v40 = vadd.f32 %v2977_v8, %v5931_v54  ;;  %v2964_v44 = vadd.f32 %v2962_v51, %v5945_v7  ;;  %v2978_v48 = vadd.f32 %v2976_v52, %v5950_v14 }
 0x8a7   :  { %v2997_v8 = vsel %vm55_vm0, %v2992_v31, %v2996_v53 }
 0x8a8   :  { %v2968_v57 = vrot.slane %v2965_v27, 4  ;;  %v2982_v49 = vrot.slane %v2979_v40, 4 }
 0x8aa   :  { %v2969_v32 = vsel %vm55_vm0, %v2964_v44, %v2968_v57  ;;  %v2983_v63 = vsel %vm55_vm0, %v2978_v48, %v2982_v49 }
 0x8ab   :  { %v2971_v20 = vmax.f32 %v2935_v37, %v2969_v32 }
 0x8ad   :  { %v2985_v22 = vmax.f32 %v2971_v20, %v2983_v63 }
 0x8af   :  { %v6971_v2 = vmax.f32 %v2985_v22, %v2997_v8  ;;  %v7047_v22 = vld [vmem:[%s8212_s3 + $0x34] sm:$0xf] }
 0x8b0   :  { %5562 = vmatmul.msk.f32.vlgmr.msrb.gmra.mxu3 %vm454_vm15, %v7047_v22  ;;  %5560 = vmatmul.msk.f32.vlgmr.msrb.gmra.mxu2 %vm454_vm15, %v7047_v22 }
 0x8b1   :  { %3001 = vst [vmem:[#allocation1] ss:$2 sm:$0xff] %v6971_v2 }
 0x8b8   :  { %v3003_v27 = vld.sshfl [vmem:[#allocation1 + $0x8] sm:$0xff pattern:$0x75316420]  ;;  %v3002_v39 = vld.sshfl [vmem:[#allocation1] sm:$0xff pattern:$0x75316420] }
 0x8b9   :  { %3008 = vrot.lane.b32.xlu0 %v3003_v27, %s5759_s5  ;;  %3006 = vrot.lane.b32.xlu2 %v3002_v39, %s5759_s5  ;;  %3012 = vst [vmem:[#allocation1] ss:$2 sm:$0xff] %v6971_v2 }
 0x8c0   :  { %v3014_v18 = vld.sshfl [vmem:[#allocation1 + $0x8] sm:$0xff pattern:$0x75316420]  ;;  %v3013_v29 = vld.sshfl [vmem:[#allocation1] sm:$0xff pattern:$0x75316420] }
 0x8c1   :  { %3019 = vrot.lane.b32.xlu2 %v3014_v18, %s5760_s12  ;;  %3017 = vrot.lane.b32.xlu1 %v3013_v29, %s5760_s12  ;;  %3037 = vst [vmem:[#allocation1] ss:$2 sm:$0xff] %v6971_v2 }
 0x8c8   :  { %v3039_v35 = vld.sshfl [vmem:[#allocation1 + $0x8] sm:$0xff pattern:$0x75316420]  ;;  %v3038_v49 = vld.sshfl [vmem:[#allocation1] sm:$0xff pattern:$0x75316420] }
 0x8c9   :  { %3044 = vrot.lane.b32.xlu1 %v3039_v35, %s5761_s0  ;;  %3042 = vrot.lane.b32.xlu0 %v3038_v49, %s5761_s0  ;;  %3048 = vst [vmem:[#allocation1] ss:$2 sm:$0xff] %v6971_v2 }
 0x8d0   :  { %v3050_v43 = vld.sshfl [vmem:[#allocation1 + $0x8] sm:$0xff pattern:$0x75316420]  ;;  %v3049_v36 = vld.sshfl [vmem:[#allocation1] sm:$0xff pattern:$0x75316420] }
 0x8d1   :  { %2235 = vrot.lane.b32.xlu1 %v6875_v30, %s5763_s6  ;;  %3055 = vrot.lane.b32.xlu0 %v3050_v43, %s5762_s13 }
 0x8d2   :  { %3053 = vrot.lane.b32.xlu2 %v3049_v36, %s5762_s13 }
 0x8d9   :  { %2248 = vrot.lane.b32.xlu1 %v6881_v3, %s5764_s27  ;;  %2246 = vrot.lane.b32.xlu0 %v6879_v25, %s5764_s27 }
 0x8da   :  { %2237 = vrot.lane.b32.xlu2 %v6877_v0, %s5763_s6 }
 0x8e1   :  { %2460 = vrot.lane.b32.xlu1 %v6897_v58, %s5765_s28  ;;  %2451 = vrot.lane.b32.xlu0 %v6895_v34, %s5766_s29 }
 0x8e2   :  { %2449 = vrot.lane.b32.xlu2 %v6893_v16, %s5766_s29 }
 0x8e9   :  { %2368 = vrot.lane.b32.xlu1 %v6887_v1, %s5761_s0  ;;  %2366 = vrot.lane.b32.xlu0 %v6885_v28, %s5761_s0 }
 0x8ea   :  { %2462 = vrot.lane.b32.xlu2 %v6899_v11, %s5765_s28 }
 0x8f1   :  { %2532 = vrot.lane.b32.xlu1 %v6902_v50, %s5758_s22  ;;  %2379 = vrot.lane.b32.xlu0 %v6891_v59, %s5762_s13 }
 0x8f2   :  { %2377 = vrot.lane.b32.xlu2 %v6889_v4, %s5762_s13 }
 0x8f9   :  { %2545 = vrot.lane.b32.xlu1 %v6912_v12, %s5753_s14  ;;  %2543 = vrot.lane.b32.xlu0 %v6910_v17, %s5753_s14 }
 0x8fa   :  { %2534 = vrot.lane.b32.xlu2 %v6904_v9, %s5758_s22 }
 0x913   :  { %v3007_v30 = vpop.permute.xlu2 %3006 }
 0x91b   :  { %v3020_v0 = vpop.permute.xlu2 %3019 }
 0x92b   :  { %v3009_v25 = vpop.permute.xlu0 %3008 }
 0x92c   :  { %v3054_v28 = vpop.permute.xlu2 %3053  ;;  %v3010_v4 = vsel %vm290_vm10, %v3007_v30, %v3009_v25  ;;  %v3011_v9 = vsel %vm290_vm10, %v3009_v25, %v3007_v30 }
 0x92d   :  { %v3024_v16 = vmul.f32 %v3010_v4, %v5890_v23  ;;  %v3023_v10 = vmul.f32 %v3011_v9, %v5890_v23  ;;  %v3090_v15 = vmul.f32 %v3010_v4, %v5892_v24  ;;  %v3089_v25 = vmul.f32 %v3011_v9, %v5892_v24 }
 0x933   :  { %v3018_v3 = vpop.permute.xlu1 %3017 }
 0x934   :  { %v3022_v1 = vsel %vm302_vm9, %v3020_v0, %v3018_v3  ;;  %v3021_v34 = vsel %vm302_vm9, %v3018_v3, %v3020_v0  ;;  %v2238_v12 = vpop.permute.xlu2 %2237 }
 0x935   :  { %v3026_v59 = vmul.f32 %v3022_v1, %v5892_v24  ;;  %v3025_v17 = vmul.f32 %v3021_v34, %v5892_v24  ;;  %v3088_v51 = vmul.f32 %v3022_v1, %v5890_v23  ;;  %v3087_v35 = vmul.f32 %v3021_v34, %v5890_v23 }
 0x937   :  { %v3028_v58 = vadd.f32 %v3026_v59, %v3024_v16  ;;  %v3027_v56 = vadd.f32 %v3025_v17, %v3023_v10  ;;  %v3092_v37 = vadd.f32 %v3090_v15, %v3088_v51 }
 0x939   :  { %v3030_v26 = vadd.f32 %v3028_v58, %v5994_v61  ;;  %v3029_v48 = vadd.f32 %v3027_v56, %v8316_v41  ;;  %v3094_v3 = vadd.f32 %v3092_v37, %v8317_v46  ;;  %v3091_v58 = vadd.f32 %v3089_v25, %v3087_v35 }
 0x93b   :  { %v3045_v11 = vpop.permute.xlu1 %3044  ;;  %v3043_v50 = vpop.permute.xlu0 %3042  ;;  %v3033_v40 = vrot.slane %v3030_v26, 4 }
 0x93c   :  { %v3046_v60 = vsel %vm334_vm11, %v3043_v50, %v3045_v11  ;;  %v3047_v52 = vsel %vm334_vm11, %v3045_v11, %v3043_v50  ;;  %v2450_v43 = vpop.permute.xlu2 %2449 }
 0x93d   :  { %v3059_v20 = vmul.f32 %v3047_v52, %v5890_v23  ;;  %v3060_v31 = vmul.f32 %v3046_v60, %v5890_v23  ;;  %v3076_v63 = vmul.f32 %v3046_v60, %v5892_v24  ;;  %v3034_v29 = vsel %vm55_vm0, %v3029_v48, %v3033_v40 }
 0x93e   :  { %v3075_v49 = vmul.f32 %v3047_v52, %v5892_v24  ;;  %v3036_v34 = vmax.f32 %v6971_v2, %v3034_v29  ;;  %v3097_v60 = vrot.slane %v3094_v3, 4 }
 0x943   :  { %v2236_v44 = vpop.permute.xlu1 %2235  ;;  %v3056_v57 = vpop.permute.xlu0 %3055 }
 0x944   :  { %v3057_v53 = vsel %vm346_vm12, %v3054_v28, %v3056_v57  ;;  %v3058_v32 = vsel %vm346_vm12, %v3056_v57, %v3054_v28  ;;  %v7064_v28 = vsel %vm424_vm14, %v2236_v44, %v2238_v12  ;;  %v7068_v1 = vsel %vm424_vm14, %v2238_v12, %v2236_v44 }
 0x945   :  { %v3061_v8 = vmul.f32 %v3057_v53, %v5892_v24  ;;  %v3062_v27 = vmul.f32 %v3058_v32, %v5892_v24  ;;  %v3073_v39 = vmul.f32 %v3057_v53, %v5890_v23  ;;  %v3074_v18 = vmul.f32 %v3058_v32, %v5890_v23 }
 0x946   :  { %v2252_v51 = vmul.f32 %v7068_v1, %v5890_v23  ;;  %v2253_v2 = vmul.f32 %v7064_v28, %v5890_v23  ;;  %v3093_v53 = vadd.f32 %v3091_v58, %v8322_v21  ;;  %v8331_v21 = vld [vmem:[#allocation22_spill] sm:$0xff] }
 0x947   :  { %v3063_v36 = vadd.f32 %v3061_v8, %v3059_v20  ;;  %v3064_v30 = vadd.f32 %v3062_v27, %v3060_v31  ;;  %v3078_v0 = vadd.f32 %v3076_v63, %v3074_v18  ;;  %v3077_v59 = vadd.f32 %v3075_v49, %v3073_v39  ;;  %v7099_v63 = vld [vmem:[%s8212_s3 + $0x24] sm:$0xf]  ;;  %v2463_v27 = vpop.permute.xlu2 %2462 }
 0x948   :  { %v3098_v8 = vsel %vm55_vm0, %v3093_v53, %v3097_v60 }
 0x949   :  { %v3066_v4 = vadd.f32 %v3064_v30, %v8318_v42  ;;  %v3080_v16 = vadd.f32 %v3078_v0, %v8319_v55  ;;  %v3065_v11 = vadd.f32 %v3063_v36, %v8320_v62  ;;  %v3079_v40 = vadd.f32 %v3077_v59, %v8321_v13 }
 0x94b   :  { %v2249_v50 = vpop.permute.xlu1 %2248  ;;  %v2247_v9 = vpop.permute.xlu0 %2246  ;;  %v3069_v17 = vrot.slane %v3066_v4, 4  ;;  %v3083_v10 = vrot.slane %v3080_v16, 4 }
 0x94c   :  { %v7076_v26 = vsel %vm436_vm13, %v2247_v9, %v2249_v50  ;;  %v7080_v12 = vsel %vm436_vm13, %v2249_v50, %v2247_v9  ;;  %v7134_v9 = vld [vmem:[%s8212_s3 + $0x2c] sm:$0xf] }
 0x94d   :  { %v2254_v56 = vmul.f32 %v7076_v26, %v5892_v24  ;;  %v2255_v15 = vmul.f32 %v7080_v12, %v5892_v24  ;;  %v3070_v52 = vsel %vm55_vm0, %v3065_v11, %v3069_v17  ;;  %v3084_v32 = vsel %vm55_vm0, %v3079_v40, %v3083_v10 }
 0x94e   :  { %v3072_v44 = vmax.f32 %v3036_v34, %v3070_v52  ;;  %v8325_v34 = vld [vmem:[#allocation14_spill] sm:$0xff] }
 0x94f   :  { %v2256_v57 = vadd.f32 %v2254_v56, %v2252_v51  ;;  %v2257_v37 = vadd.f32 %v2255_v15, %v2253_v2  ;;  %v2378_v51 = vpop.permute.xlu2 %2377 }
 0x950   :  { %v3086_v48 = vmax.f32 %v3072_v44, %v3084_v32 }
 0x951   :  { %v2258_v20 = vmul.f32 %v2256_v57, %v6248_v38  ;;  %v2259_v31 = vmul.f32 %v2257_v37, %v6284_v5 }
 0x952   :  { %v7102_v39 = vmax.f32 %v3086_v48, %v3098_v8 }
 0x953   :  { %v2461_v18 = vpop.permute.xlu1 %2460  ;;  %v2452_v29 = vpop.permute.xlu0 %2451  ;;  %5555 = vmatpush.msk.msrb.mxu0 %vm55_vm0, %v2258_v20  ;;  %5557 = vmatpush.msk.msrb.mxu1 %vm55_vm0, %v2259_v31 }
 0x954   :  { %v2464_v35 = vsel %vm665_vm2, %v2461_v18, %v2463_v27  ;;  %v7110_v49 = vsel %vm665_vm2, %v2463_v27, %v2461_v18  ;;  %v7114_v36 = vsel %vm8323_vm1, %v2450_v43, %v2452_v29  ;;  %v2454_v30 = vsel %vm8324_vm3, %v2452_v29, %v2450_v43  ;;  %5556 = vmatmul.msk.f32.vlgmr.msrb.gmra.mxu0 %vm454_vm15, %v7099_v63 }
 0x955   :  { %3102 = vst [vmem:[#allocation1] ss:$2 sm:$0xff] %v7102_v39  ;;  %v2468_v0 = vmul.f32 %v2464_v35, %v5892_v24  ;;  %v2469_v25 = vmul.f32 %v7110_v49, %v5892_v24  ;;  %v2466_v3 = vmul.f32 %v2454_v30, %v5890_v23  ;;  %v2467_v4 = vmul.f32 %v7114_v36, %v5890_v23 }
 0x956   :  { %5558 = vmatmul.msk.f32.vlgmr.msrb.gmra.mxu1 %vm454_vm15, %v7099_v63  ;;  %v2795_v29 = vmul.f32 %v7068_v1, %v5892_v24 }
 0x957   :  { %v2470_v59 = vadd.f32 %v2468_v0, %v2466_v3  ;;  %v2471_v43 = vadd.f32 %v2469_v25, %v2467_v4  ;;  %v2535_v20 = vpop.permute.xlu2 %2534  ;;  %v2793_v0 = vmul.f32 %v7076_v26, %v5890_v23  ;;  %v2671_v25 = vmul.f32 %v2464_v35, %v5890_v23  ;;  %v8326_v3 = vld [vmem:[#allocation15_spill] sm:$0xff] }
 0x959   :  { %v2472_v16 = vmul.f32 %v2470_v59, %v6333_v33  ;;  %v2473_v58 = vmul.f32 %v2471_v43, %v8325_v34  ;;  %v8327_v59 = vld [vmem:[#allocation16_spill] sm:$0xff] }
 0x95b   :  { %v2369_v11 = vpop.permute.xlu1 %2368  ;;  %v2367_v50 = vpop.permute.xlu0 %2366  ;;  %5569 = vmatpush.msk.msra.mxu2 %vm55_vm0, %v2472_v16  ;;  %5571 = vmatpush.msk.msra.mxu3 %vm55_vm0, %v2473_v58  ;;  %v7174_v16 = vld [vmem:[%s8212_s3 + $0x28] sm:$0xf]  ;;  %v2673_v58 = vmul.f32 %v2454_v30, %v5892_v24 }
 0x95c   :  { %v3104_v17 = vld.sshfl [vmem:[#allocation1 + $0x8] sm:$0xff pattern:$0x75316420]  ;;  %v3103_v10 = vld.sshfl [vmem:[#allocation1] sm:$0xff pattern:$0x75316420]  ;;  %5572 = vmatmul.msk.f32.vlgmr.msra.gmra.mxu3 %vm454_vm15, %v7134_v9  ;;  %5570 = vmatmul.msk.f32.vlgmr.msra.gmra.mxu2 %vm454_vm15, %v7134_v9  ;;  %v2370_v2 = vsel %vm334_vm11, %v2367_v50, %v2369_v11  ;;  %v2371_v56 = vsel %vm334_vm11, %v2369_v11, %v2367_v50 }
 0x95d   :  { %3109 = vrot.lane.b32.xlu0 %v3104_v17, %s5763_s6  ;;  %3107 = vrot.lane.b32.xlu2 %v3103_v10, %s5763_s6  ;;  %3113 = vst [vmem:[#allocation1] ss:$2 sm:$0xff] %v7102_v39  ;;  %v2383_v37 = vmul.f32 %v2371_v56, %v5890_v23  ;;  %v2384_v53 = vmul.f32 %v2370_v2, %v5890_v23 }
 0x963   :  { %v2533_v15 = vpop.permute.xlu1 %2532  ;;  %v2380_v60 = vpop.permute.xlu0 %2379 }
 0x964   :  { %v2381_v52 = vsel %vm346_vm12, %v2378_v51, %v2380_v60  ;;  %v2382_v40 = vsel %vm346_vm12, %v2380_v60, %v2378_v51  ;;  %v3115_v44 = vld.sshfl [vmem:[#allocation1 + $0x8] sm:$0xff pattern:$0x75316420]  ;;  %v3114_v57 = vld.sshfl [vmem:[#allocation1] sm:$0xff pattern:$0x75316420]  ;;  %v2536_v31 = vsel %vm203_vm8, %v2533_v15, %v2535_v20  ;;  %v2537_v8 = vsel %vm203_vm8, %v2535_v20, %v2533_v15 }
 0x965   :  { %v2385_v32 = vmul.f32 %v2381_v52, %v5892_v24  ;;  %v2386_v48 = vmul.f32 %v2382_v40, %v5892_v24  ;;  %3120 = vrot.lane.b32.xlu2 %v3115_v44, %s5764_s27  ;;  %3178 = vst [vmem:[#allocation1] ss:$2 sm:$0xff] %v7102_v39  ;;  %3118 = vrot.lane.b32.xlu1 %v3114_v57, %s5764_s27 }
 0x966   :  { %v2549_v11 = vmul.f32 %v2537_v8, %v5890_v23  ;;  %v2550_v1 = vmul.f32 %v2536_v31, %v5890_v23  ;;  %v2612_v50 = vmul.f32 %v2537_v8, %v5892_v24  ;;  %v2613_v35 = vmul.f32 %v2536_v31, %v5892_v24 }
 0x967   :  { %v2387_v27 = vadd.f32 %v2385_v32, %v2383_v37  ;;  %v2388_v18 = vadd.f32 %v2386_v48, %v2384_v53  ;;  %v2672_v57 = vmul.f32 %v7110_v49, %v5890_v23  ;;  %v2674_v37 = vmul.f32 %v7114_v36, %v5892_v24 }
 0x968   :  { %v2732_v53 = vmul.f32 %v2381_v52, %v5890_v23  ;;  %v2733_v32 = vmul.f32 %v2382_v40, %v5890_v23  ;;  %v2794_v49 = vmul.f32 %v7080_v12, %v5890_v23  ;;  %v2734_v36 = vmul.f32 %v2371_v56, %v5892_v24  ;;  %v8328_v40 = vld [vmem:[#allocation19_spill] sm:$0xff] }
 0x969   :  { %v2389_v4 = vmul.f32 %v2387_v27, %v8326_v3  ;;  %v2390_v43 = vmul.f32 %v2388_v18, %v8327_v59  ;;  %v2735_v52 = vmul.f32 %v2370_v2, %v5892_v24  ;;  %v7215_v12 = vld [vmem:[%s8212_s3 + $0x30] sm:$0xf]  ;;  %v7220_v2 = vld [vmem:[%s8212_s3 + $0x38] sm:$0xf]  ;;  %v2797_v56 = vadd.f32 %v2795_v29, %v2793_v0 }
 0x96a   :  { %v8334_v0 = vld [vmem:[#allocation23_spill] sm:$0xff] }
 0x96b   :  { %v2546_v26 = vpop.permute.xlu1 %2545  ;;  %v2544_v17 = vpop.permute.xlu0 %2543  ;;  %5564 = vmatpush.msk.msra.mxu0 %vm55_vm0, %v2389_v4  ;;  %5566 = vmatpush.msk.msra.mxu1 %vm55_vm0, %v2390_v43  ;;  %v2675_v4 = vadd.f32 %v2673_v58, %v2671_v25  ;;  %v2737_v25 = vadd.f32 %v2735_v52, %v2733_v32  ;;  %v8337_v32 = vld [vmem:[#allocation26_spill] sm:$0xff] }
 0x96c   :  { %v2547_v10 = vsel %vm41_vm4, %v2544_v17, %v2546_v26  ;;  %v2548_v51 = vsel %vm41_vm4, %v2546_v26, %v2544_v17  ;;  %5565 = vmatmul.msk.f32.vlgmr.msra.gmra.mxu0 %vm454_vm15, %v7174_v16  ;;  %v3179_v48 = vld.sshfl [vmem:[#allocation1] sm:$0xff pattern:$0x75316420]  ;;  %v3180_v20 = vld.sshfl [vmem:[#allocation1 + $0x8] sm:$0xff pattern:$0x75316420]  ;;  %5567 = vmatmul.msk.f32.vlgmr.msra.gmra.mxu1 %vm454_vm15, %v7174_v16 }
 0x96d   :  { %v2551_v30 = vmul.f32 %v2547_v10, %v5892_v24  ;;  %v2552_v15 = vmul.f32 %v2548_v51, %v5892_v24  ;;  %v2610_v60 = vmul.f32 %v2547_v10, %v5890_v23  ;;  %v2611_v44 = vmul.f32 %v2548_v51, %v5890_v23  ;;  %3225 = vst [vmem:[#allocation1] ss:$2 sm:$0xff] %v7102_v39  ;;  %v8329_v26 = vld [vmem:[#allocation20_spill] sm:$0xff]  ;;  %v8330_v10 = vld [vmem:[#allocation21_spill] sm:$0xff] }
 0x96f   :  { %v2553_v31 = vadd.f32 %v2551_v30, %v2549_v11  ;;  %v2554_v8 = vadd.f32 %v2552_v15, %v2550_v1  ;;  %v2614_v27 = vadd.f32 %v2612_v50, %v2610_v60  ;;  %v2615_v18 = vadd.f32 %v2613_v35, %v2611_v44  ;;  %v8333_v30 = vld [vmem:[#allocation18_spill] sm:$0xff] }
 0x970   :  { %v2796_v11 = vmul.f32 %v7064_v28, %v5892_v24  ;;  %v2676_v1 = vadd.f32 %v2674_v37, %v2672_v57  ;;  %v2736_v50 = vadd.f32 %v2734_v36, %v2732_v53  ;;  %v8332_v28 = vld [vmem:[#allocation17_spill] sm:$0xff] }
 0x971   :  { %v2555_v43 = vmul.f32 %v2553_v31, %v8328_v40  ;;  %v2556_v17 = vmul.f32 %v2554_v8, %v8329_v26  ;;  %v2616_v51 = vmul.f32 %v2614_v27, %v8330_v10  ;;  %v2617_v13 = vmul.f32 %v2615_v18, %v8331_v21  ;;  %v8335_v57 = vld [vmem:[#allocation25_spill] sm:$0xff]  ;;  %v7252_v8 = vld [vmem:[%s8212_s3 + $0x3c] sm:$0xf] }
 0x972   :  { %v2798_v58 = vadd.f32 %v2796_v11, %v2794_v49  ;;  %v2677_v35 = vmul.f32 %v2675_v4, %v8332_v28  ;;  %v2678_v29 = vmul.f32 %v2676_v1, %v8333_v30  ;;  %v2738_v15 = vmul.f32 %v2736_v50, %v8334_v0  ;;  %v7257_v27 = vld [vmem:[%s8212_s3 + $0x40] sm:$0xf]  ;;  %v7275_v4 = vld [vmem:[%s8212_s3 + $0x44] sm:$0xf] }
 0x973   :  { %5574 = vmatpush.msk.msrb.mxu0 %vm55_vm0, %v2555_v43  ;;  %5576 = vmatpush.msk.msrb.mxu1 %vm55_vm0, %v2556_v17  ;;  %v2799_v37 = vmul.f32 %v2797_v56, %v8335_v57 }
 0x974   :  { %5579 = vmatpush.msk.msrb.mxu2 %vm55_vm0, %v2616_v51  ;;  %5581 = vmatpush.msk.msrb.mxu3 %vm55_vm0, %v2617_v13  ;;  %v3227_v60 = vld.sshfl [vmem:[#allocation1 + $0x8] sm:$0xff pattern:$0x75316420]  ;;  %v3226_v44 = vld.sshfl [vmem:[#allocation1] sm:$0xff pattern:$0x75316420]  ;;  %v2800_v31 = vmul.f32 %v2798_v58, %v8337_v32 }
 0x975   :  { %5575 = vmatmul.msk.f32.vlgmr.msrb.gmra.mxu0 %vm454_vm15, %v7215_v12  ;;  %5582 = vmatmul.msk.f32.vlgmr.msrb.gmra.mxu3 %vm454_vm15, %v7220_v2  ;;  %v8336_v13 = vld [vmem:[#allocation24_spill] sm:$0xff]  ;;  %3236 = vst [vmem:[#allocation1] ss:$2 sm:$0xff] %v7102_v39 }
 0x976   :  { %5577 = vmatmul.msk.f32.vlgmr.msrb.gmra.mxu1 %vm454_vm15, %v7215_v12  ;;  %5584 = vmatpush.msk.msra.mxu0 %vm55_vm0, %v2677_v35  ;;  %v2739_v53 = vmul.f32 %v2737_v25, %v8336_v13 }
 0x977   :  { %3232 = vrot.lane.b32.xlu1 %v3227_v60, %s5761_s0  ;;  %3230 = vrot.lane.b32.xlu0 %v3226_v44, %s5761_s0 }
 0x978   :  { %5586 = vmatpush.msk.msra.mxu1 %vm55_vm0, %v2678_v29  ;;  %5589 = vmatpush.msk.msra.mxu2 %vm55_vm0, %v2738_v15 }
 0x979   :  { %5591 = vmatpush.msk.msra.mxu3 %vm55_vm0, %v2739_v53  ;;  %5594 = vmatpush.msk.msrb.mxu0 %vm55_vm0, %v2799_v37 }
 0x97a   :  { %5596 = vmatpush.msk.msrb.mxu1 %vm55_vm0, %v2800_v31  ;;  %5580 = vmatmul.msk.f32.vlgmr.msrb.gmra.mxu2 %vm454_vm15, %v7220_v2 }
 0x97c   :  { %v3238_v18 = vld.sshfl [vmem:[#allocation1 + $0x8] sm:$0xff pattern:$0x75316420]  ;;  %v3237_v49 = vld.sshfl [vmem:[#allocation1] sm:$0xff pattern:$0x75316420] }
 0x97d   :  { %5585 = vmatmul.msk.f32.vlgmr.msra.gmra.mxu0 %vm454_vm15, %v7252_v8  ;;  %5592 = vmatmul.msk.f32.vlgmr.msra.gmra.mxu3 %vm454_vm15, %v7257_v27  ;;  %3303 = vst [vmem:[#allocation1] ss:$2 sm:$0xff] %v7102_v39 }
 0x97e   :  { %5587 = vmatmul.msk.f32.vlgmr.msra.gmra.mxu1 %vm454_vm15, %v7252_v8  ;;  %5605 = vmatpush.msk.msra.mxu0 %vm55_vm0, %v3179_v48 }
 0x97f   :  { %3243 = vrot.lane.b32.xlu0 %v3238_v18, %s5762_s13  ;;  %3241 = vrot.lane.b32.xlu2 %v3237_v49, %s5762_s13 }
 0x980   :  { %5607 = vmatpush.msk.msra.mxu1 %vm55_vm0, %v3180_v20 }
 0x982   :  { %5590 = vmatmul.msk.f32.vlgmr.msra.gmra.mxu2 %vm454_vm15, %v7257_v27 }
 0x984   :  { %v3304_v48 = vld.sshfl [vmem:[#allocation1] sm:$0xff pattern:$0x75316420]  ;;  %v3305_v36 = vld.sshfl [vmem:[#allocation1 + $0x8] sm:$0xff pattern:$0x75316420] }
 0x985   :  { %5595 = vmatmul.msk.f32.vlgmr.msrb.gmra.mxu0 %vm454_vm15, %v7275_v4  ;;  %3314 = vst [vmem:[#allocation1] ss:$2 sm:$0xff] %v7102_v39 }
 0x986   :  { %5597 = vmatmul.msk.f32.vlgmr.msrb.gmra.mxu1 %vm454_vm15, %v7275_v4 }
 0x987   :  { %3308 = vrot.lane.b32.xlu2 %v3304_v48, %s5766_s29 }
 0x98c   :  { %v3315_v20 = vld.sshfl [vmem:[#allocation1] sm:$0xff pattern:$0x75316420]  ;;  %v3316_v52 = vld.sshfl [vmem:[#allocation1 + $0x8] sm:$0xff pattern:$0x75316420] }
 0x98d   :  { %5606 = vmatmul.msk.f32.vlgmr.msra.gmra.mxu0 %vm454_vm15, %v7047_v22  ;;  %3381 = vst [vmem:[#allocation1] ss:$2 sm:$0xff] %v7102_v39 }
 0x98e   :  { %5608 = vmatmul.msk.f32.vlgmr.msra.gmra.mxu1 %vm454_vm15, %v7047_v22  ;;  %v5598_v22 = vld [vmem:[%s8213_s4 + $0x4] sm:$0xf] }
 0x994   :  { %v3383_v43 = vld.sshfl [vmem:[#allocation1 + $0x8] sm:$0xff pattern:$0x75316420]  ;;  %v3382_v17 = vld.sshfl [vmem:[#allocation1] sm:$0xff pattern:$0x75316420] }
 0x995   :  { %3388 = vrot.lane.b32.xlu2 %v3383_v43, %s5758_s22  ;;  %3386 = vrot.lane.b32.xlu1 %v3382_v17, %s5758_s22  ;;  %3392 = vst [vmem:[#allocation1] ss:$2 sm:$0xff] %v7102_v39 }
 0x99c   :  { %v3394_v51 = vld.sshfl [vmem:[#allocation1 + $0x8] sm:$0xff pattern:$0x75316420]  ;;  %v3393_v11 = vld.sshfl [vmem:[#allocation1] sm:$0xff pattern:$0x75316420] }
 0x99d   :  { %3321 = vrot.lane.b32.xlu2 %v3316_v52, %s5765_s28  ;;  %3399 = vrot.lane.b32.xlu1 %v3394_v51, %s5753_s14 }
 0x99e   :  { %3397 = vrot.lane.b32.xlu0 %v3393_v11, %s5753_s14 }
 0x9a5   :  { %3319 = vrot.lane.b32.xlu1 %v3315_v20, %s5765_s28 }
 0x9a6   :  { %3310 = vrot.lane.b32.xlu0 %v3305_v36, %s5766_s29 }
 0x9ae   :  { %2864 = vperm.xlu0 %5745, %v5598_v22  }
 0x9b7   :  { %v3108_v1 = vpop.permute.xlu2 %3107 }
 0x9bf   :  { %v3121_v25 = vpop.permute.xlu2 %3120 }
 0x9cf   :  { %v3110_v50 = vpop.permute.xlu0 %3109 }
 0x9d0   :  { %v3111_v39 = vsel %vm424_vm14, %v3108_v1, %v3110_v50  ;;  %v3112_v56 = vsel %vm424_vm14, %v3110_v50, %v3108_v1 }
 0x9d1   :  { %v3124_v58 = vmul.f32 %v3112_v56, %v5890_v23  ;;  %v3125_v35 = vmul.f32 %v3111_v39, %v5890_v23  ;;  %v3629_v15 = vmul.f32 %v3112_v56, %v5892_v24  ;;  %v3630_v60 = vmul.f32 %v3111_v39, %v5892_v24  ;;  %v2288_v1 = vpop.f32.mrf.mxu0  ;;  %v2358_v56 = vpop.f32.mrf.mxu3 }
 0x9d3   :  { %v2308_v11 = vpop.f32.mrf.mxu1 }
 0x9d7   :  { %v3119_v29 = vpop.permute.xlu1 %3118 }
 0x9d8   :  { %v3122_v44 = vsel %vm436_vm13, %v3119_v29, %v3121_v25  ;;  %v3123_v37 = vsel %vm436_vm13, %v3121_v25, %v3119_v29 }
 0x9d9   :  { %v3126_v53 = vmul.f32 %v3122_v44, %v5892_v24  ;;  %v3127_v31 = vmul.f32 %v3123_v37, %v5892_v24  ;;  %v3627_v18 = vmul.f32 %v3122_v44, %v5890_v23  ;;  %v3628_v49 = vmul.f32 %v3123_v37, %v5890_v23  ;;  %v3242_v25 = vpop.permute.xlu2 %3241 }
 0x9db   :  { %v3128_v48 = vadd.f32 %v3126_v53, %v3124_v58  ;;  %v3129_v36 = vadd.f32 %v3127_v31, %v3125_v35  ;;  %v7315_v20 = vadd.f32 %v3629_v15, %v3627_v18  ;;  %v7317_v52 = vadd.f32 %v3630_v60, %v3628_v49  ;;  %v2338_v53 = vpop.f32.mrf.mxu2 }
 0x9dd   :  { %v3130_v43 = vmul.f32 %v3128_v48, %v6248_v38  ;;  %v3131_v17 = vmul.f32 %v3129_v36, %v6284_v5 }
 0x9df   :  { %5601 = vmatpush.msk.msrb.mxu2 %vm55_vm0, %v3130_v43  ;;  %5603 = vmatpush.msk.msrb.mxu3 %vm55_vm0, %v3131_v17  ;;  %v2359_v43 = vadd.f32 %v2358_v56, %v2308_v11  ;;  %v2522_v17 = vpop.f32.mrf.mxu3 }
 0x9e0   :  { %5604 = vmatmul.msk.f32.vlgmr.msrb.gmra.mxu3 %vm454_vm15, %v7099_v63  ;;  %5602 = vmatmul.msk.f32.vlgmr.msrb.gmra.mxu2 %vm454_vm15, %v7099_v63 }
 0x9e9   :  { %v3231_v51 = vpop.permute.xlu0 %3230  ;;  %v3233_v22 = vpop.permute.xlu1 %3232 }
 0x9ea   :  { %v7329_v50 = vsel %vm334_vm11, %v3231_v51, %v3233_v22  ;;  %v7333_v39 = vsel %vm334_vm11, %v3233_v22, %v3231_v51  ;;  %v2439_v37 = vpop.f32.mrf.mxu1  ;;  %v2419_v36 = vpop.f32.mrf.mxu0  ;;  %v2339_v51 = vadd.f32 %v2338_v53, %v2288_v1 }
 0x9eb   :  { %v3247_v29 = vmul.f32 %v7333_v39, %v5890_v23  ;;  %v3248_v15 = vmul.f32 %v7329_v50, %v5890_v23  ;;  %v2443_v22 = vadd.f32 %v2439_v37, %v2359_v43 }
 0x9f1   :  { %v3244_v58 = vpop.permute.xlu0 %3243 }
 0x9f2   :  { %v7337_v35 = vsel %vm346_vm12, %v3242_v25, %v3244_v58  ;;  %v7341_v63 = vsel %vm346_vm12, %v3244_v58, %v3242_v25  ;;  %v2502_v58 = vpop.f32.mrf.mxu2 }
 0x9f3   :  { %v3249_v60 = vmul.f32 %v7337_v35, %v5892_v24  ;;  %v3250_v44 = vmul.f32 %v7341_v63, %v5892_v24  ;;  %v2605_v25 = vpop.f32.mrf.mxu1 }
 0x9f5   :  { %v3251_v31 = vadd.f32 %v3249_v60, %v3247_v29  ;;  %v3252_v18 = vadd.f32 %v3250_v44, %v3248_v15  ;;  %v2442_v29 = vadd.f32 %v2419_v36, %v2339_v51  ;;  %v2526_v15 = vadd.f32 %v2522_v17, %v2443_v22  ;;  %v2585_v60 = vpop.f32.mrf.mxu0 }
 0x9f7   :  { %v3253_v49 = vmul.f32 %v3251_v31, %v8326_v3  ;;  %v3254_v48 = vmul.f32 %v3252_v18, %v8327_v59  ;;  %v2525_v31 = vadd.f32 %v2502_v58, %v2442_v29  ;;  %v2609_v18 = vadd.f32 %v2605_v25, %v2526_v15 }
 0x9f8   :  { %v2666_v44 = vpop.f32.mrf.mxu3 }
 0x9f9   :  { %5609 = vmatpush.msk.msra.mxu2 %vm55_vm0, %v3253_v49  ;;  %5611 = vmatpush.msk.msra.mxu3 %vm55_vm0, %v3254_v48  ;;  %v3309_v49 = vpop.permute.xlu2 %3308  ;;  %v2608_v59 = vadd.f32 %v2585_v60, %v2525_v31  ;;  %v2670_v3 = vadd.f32 %v2666_v44, %v2609_v18 }
 0x9fa   :  { %5612 = vmatmul.msk.f32.vlgmr.msra.gmra.mxu3 %vm454_vm15, %v7174_v16  ;;  %5610 = vmatmul.msk.f32.vlgmr.msra.gmra.mxu2 %vm454_vm15, %v7174_v16 }
 0x9fb   :  { %v2727_v48 = vpop.f32.mrf.mxu1 }
 0x9fc   :  { %v2731_v16 = vadd.f32 %v2727_v48, %v2670_v3 }
 0x9fd   :  { %v2646_v11 = vpop.f32.mrf.mxu2  ;;  %v2707_v5 = vpop.f32.mrf.mxu0 }
 0x9fe   :  { %v2669_v38 = vadd.f32 %v2646_v11, %v2608_v59  ;;  %v3573_v11 = vmul.f32 %v7333_v39, %v5892_v24 }
 0xa00   :  { %v2788_v1 = vpop.f32.mrf.mxu3  ;;  %v2730_v43 = vadd.f32 %v2707_v5, %v2669_v38 }
 0xa01   :  { %v3389_v62 = vpop.permute.xlu2 %3388  ;;  %v2792_v17 = vadd.f32 %v2788_v1, %v2731_v16 }
 0xa03   :  { %v2849_v25 = vpop.f32.mrf.mxu1 }
 0xa04   :  { %v2853_v38 = vadd.f32 %v2849_v25, %v2792_v17 }
 0xa05   :  { %v2768_v22 = vpop.f32.mrf.mxu2  ;;  %v2829_v31 = vpop.f32.mrf.mxu0 }
 0xa06   :  { %v2791_v60 = vadd.f32 %v2768_v22, %v2730_v43  ;;  %v2856_v1 = vrot.slane %v2853_v38, 4 }
 0xa07   :  { %v3387_v56 = vpop.permute.xlu1 %3386 }
 0xa08   :  { %v3390_v37 = vsel %vm203_vm8, %v3387_v56, %v3389_v62  ;;  %v3391_v53 = vsel %vm203_vm8, %v3389_v62, %v3387_v56 }
 0xa09   :  { %v3403_v59 = vmul.f32 %v3391_v53, %v5890_v23  ;;  %v3404_v29 = vmul.f32 %v3390_v37, %v5890_v23  ;;  %v3322_v56 = vpop.permute.xlu2 %3321 }
 0xa0f   :  { %v3400_v36 = vpop.permute.xlu1 %3399 }
 0xa10   :  { %v3398_v51 = vpop.permute.xlu0 %3397 }
 0xa11   :  { %v3401_v58 = vsel %vm41_vm4, %v3398_v51, %v3400_v36  ;;  %v3402_v3 = vsel %vm41_vm4, %v3400_v36, %v3398_v51  ;;  %v2852_v36 = vadd.f32 %v2829_v31, %v2791_v60 }
 0xa12   :  { %v3405_v15 = vmul.f32 %v3401_v58, %v5892_v24  ;;  %v3406_v62 = vmul.f32 %v3402_v3, %v5892_v24 }
 0xa14   :  { %v3407_v5 = vadd.f32 %v3405_v15, %v3403_v59  ;;  %v3408_v44 = vadd.f32 %v3406_v62, %v3404_v29  ;;  %v3459_v29 = vmul.f32 %v3401_v58, %v5890_v23  ;;  %v3460_v15 = vmul.f32 %v3402_v3, %v5890_v23 }
 0xa15   :  { %v3571_v58 = vmul.f32 %v7337_v35, %v5890_v23  ;;  %v3572_v3 = vmul.f32 %v7341_v63, %v5890_v23 }
 0xa16   :  { %v3409_v18 = vmul.f32 %v3407_v5, %v8328_v40  ;;  %v3410_v48 = vmul.f32 %v3408_v44, %v8329_v26 }
 0xa17   :  { %v3320_v16 = vpop.permute.xlu1 %3319 }
 0xa18   :  { %v3323_v51 = vsel %vm665_vm2, %v3320_v16, %v3322_v56  ;;  %v3324_v43 = vsel %vm665_vm2, %v3322_v56, %v3320_v16  ;;  %v3311_v17 = vpop.permute.xlu0 %3310  ;;  %5617 = vmatpush.msk.msrb.mxu2 %vm55_vm0, %v3409_v18  ;;  %5619 = vmatpush.msk.msrb.mxu3 %vm55_vm0, %v3410_v48  ;;  %v3461_v18 = vmul.f32 %v3391_v53, %v5892_v24 }
 0xa19   :  { %v3327_v22 = vmul.f32 %v3323_v51, %v5892_v24  ;;  %v3328_v25 = vmul.f32 %v3324_v43, %v5892_v24  ;;  %v3515_v39 = vmul.f32 %v3323_v51, %v5890_v23  ;;  %v3516_v59 = vmul.f32 %v3324_v43, %v5890_v23  ;;  %5618 = vmatmul.msk.f32.vlgmr.msrb.gmra.mxu2 %vm454_vm15, %v7215_v12 }
 0xa1a   :  { %v3312_v62 = vsel %vm8338_vm5, %v3309_v49, %v3311_v17  ;;  %v3313_v60 = vsel %vm8323_vm1, %v3311_v17, %v3309_v49  ;;  %5620 = vmatmul.msk.f32.vlgmr.msrb.gmra.mxu3 %vm454_vm15, %v7215_v12  ;;  %v3462_v49 = vmul.f32 %v3390_v37, %v5892_v24  ;;  %v3574_v51 = vmul.f32 %v7329_v50, %v5892_v24 }
 0xa1b   :  { %v3325_v38 = vmul.f32 %v3313_v60, %v5890_v23  ;;  %v3326_v5 = vmul.f32 %v3312_v62, %v5890_v23  ;;  %v3517_v44 = vmul.f32 %v3313_v60, %v5892_v24  ;;  %v3518_v31 = vmul.f32 %v3312_v62, %v5892_v24 }
 0xa1c   :  { %v2857_v43 = vsel %vm55_vm0, %v2852_v36, %v2856_v1  ;;  %v3463_v17 = vadd.f32 %v3461_v18, %v3459_v29  ;;  %v3464_v62 = vadd.f32 %v3462_v49, %v3460_v15  ;;  %v3575_v37 = vadd.f32 %v3573_v11, %v3571_v58  ;;  %v3222_v49 = vpop.f32.mrf.mxu1 }
 0xa1d   :  { %v3329_v48 = vadd.f32 %v3327_v22, %v3325_v38  ;;  %v3330_v12 = vadd.f32 %v3328_v25, %v3326_v5  ;;  %v3519_v56 = vadd.f32 %v3517_v44, %v3515_v39  ;;  %v3520_v16 = vadd.f32 %v3518_v31, %v3516_v59  ;;  %v8339_v39 = vld [vmem:[#allocation27_spill] sm:$0xff]  ;;  %v8340_v38 = vld [vmem:[#allocation2_spill] sm:$0xff] }
 0xa1e   :  { %v3576_v22 = vadd.f32 %v3574_v51, %v3572_v3  ;;  %v2859_v59 = vadd.f32 %v2857_v43, %v8339_v39  ;;  %v3465_v50 = vmul.f32 %v3463_v17, %v8330_v10  ;;  %v3466_v1 = vmul.f32 %v3464_v62, %v8331_v21 }
 0xa1f   :  { %v3331_v35 = vmul.f32 %v3329_v48, %v6333_v33  ;;  %v3332_v60 = vmul.f32 %v3330_v12, %v8325_v34  ;;  %v3521_v63 = vmul.f32 %v3519_v56, %v8332_v28  ;;  %v3522_v53 = vmul.f32 %v3520_v16, %v8333_v30  ;;  %v3202_v48 = vpop.f32.mrf.mxu0 }
 0xa20   :  { %v2865_v25 = vpop.permute.xlu0 %2864  ;;  %v3633_v11 = vmul.f32 %v7315_v20, %v8335_v57  ;;  %v3634_v36 = vmul.f32 %v7317_v52, %v8337_v32  ;;  %v3577_v15 = vmul.f32 %v3575_v37, %v8334_v0  ;;  %v3578_v44 = vmul.f32 %v3576_v22, %v8336_v13 }
 0xa21   :  { %v7414_v5 = vperm.slane %v2865_v25, %v8340_v38  ;;  %5613 = vmatpush.msk.msrb.mxu0 %vm55_vm0, %v3331_v35  ;;  %5615 = vmatpush.msk.msrb.mxu1 %vm55_vm0, %v3332_v60 }
 0xa22   :  { %5625 = vmatpush.msk.msra.mxu2 %vm55_vm0, %v3521_v63  ;;  %5627 = vmatpush.msk.msra.mxu3 %vm55_vm0, %v3522_v53 }
 0xa23   :  { %v7427_v29 = vadd.f32 %v7414_v5, %v2859_v59  ;;  %5614 = vmatmul.msk.f32.vlgmr.msrb.gmra.mxu0 %vm454_vm15, %v7134_v9  ;;  %5616 = vmatmul.msk.f32.vlgmr.msrb.gmra.mxu1 %vm454_vm15, %v7134_v9 }
 0xa24   :  { %5621 = vmatpush.msk.msra.mxu0 %vm55_vm0, %v3465_v50  ;;  %5623 = vmatpush.msk.msra.mxu1 %vm55_vm0, %v3466_v1 }
 0xa25   :  { %8341 = vst [vmem:[#allocation5_spill] sm:$0xff] %v7427_v29  ;;  %5633 = vmatpush.msk.msrb.mxu2 %vm55_vm0, %v3633_v11  ;;  %5635 = vmatpush.msk.msrb.mxu3 %vm55_vm0, %v3634_v36 }
 0xa26   :  { %3691 = vst [vmem:[#allocation1] ss:$2 sm:$0xff] %v7427_v29  ;;  %5629 = vmatpush.msk.msrb.mxu0 %vm55_vm0, %v3577_v15  ;;  %5631 = vmatpush.msk.msrb.mxu1 %vm55_vm0, %v3578_v44 }
 0xa27   :  { %5626 = vmatmul.msk.f32.vlgmr.msra.gmra.mxu2 %vm454_vm15, %v7252_v8  ;;  %5628 = vmatmul.msk.f32.vlgmr.msra.gmra.mxu3 %vm454_vm15, %v7252_v8 }
 0xa2b   :  { %5622 = vmatmul.msk.f32.vlgmr.msra.gmra.mxu0 %vm454_vm15, %v7220_v2  ;;  %5624 = vmatmul.msk.f32.vlgmr.msra.gmra.mxu1 %vm454_vm15, %v7220_v2 }
 0xa2d   :  { %v3692_v9 = vld.sshfl [vmem:[#allocation1] sm:$0xff pattern:$0x75316420]  ;;  %v3693_v20 = vld.sshfl [vmem:[#allocation1 + $0x8] sm:$0xff pattern:$0x75316420] }
 0xa2e   :  { %v3696_v52 = vsel %vm55_vm0, %v3692_v9, 0.0  ;;  %v3697_v31 = vsel %vm55_vm0, %v3693_v20, 0.0 }
 0xa2f   :  { %v3698_v58 = vadd.f32 %v3697_v31, %v3696_v52  ;;  %5634 = vmatmul.msk.f32.vlgmr.msrb.gmra.mxu2 %vm454_vm15, %v7275_v4  ;;  %5636 = vmatmul.msk.f32.vlgmr.msrb.gmra.mxu3 %vm454_vm15, %v7275_v4 }
 0xa31   :  { %3699 = vadd.xlane.f32.xlu1 %v3698_v58 }
 0xa33   :  { %5630 = vmatmul.msk.f32.vlgmr.msrb.gmra.mxu0 %vm454_vm15, %v7257_v27  ;;  %5632 = vmatmul.msk.f32.vlgmr.msrb.gmra.mxu1 %vm454_vm15, %v7257_v27 }
 0xa63   :  { %v3175_v2 = vpop.f32.mrf.mxu3  ;;  %v3155_v8 = vpop.f32.mrf.mxu2 }
 0xa64   :  { %v3223_v12 = vadd.f32 %v3222_v49, %v3175_v2  ;;  %v3203_v56 = vadd.f32 %v3202_v48, %v3155_v8  ;;  %v8342_v8 = vld [vmem:[#allocation28_spill] sm:$0xff]  ;;  %v3714_v49 = vmul.f32 %v7427_v29, %v7427_v29 }
 0xa7d   :  { %v3298_v3 = vpop.f32.mrf.mxu3  ;;  %v3278_v18 = vpop.f32.mrf.mxu2 }
 0xa7e   :  { %v3302_v4 = vadd.f32 %v3298_v3, %v3223_v12  ;;  %v3301_v62 = vadd.f32 %v3278_v18, %v3203_v56 }
 0xa9c   :  { %v3434_v16 = vpop.f32.mrf.mxu2 }
 0xa9d   :  { %v3454_v51 = vpop.f32.mrf.mxu3 }
 0xaa0   :  { %v3356_v43 = vpop.f32.mrf.mxu0  ;;  %v3376_v17 = vpop.f32.mrf.mxu1 }
 0xaa1   :  { %v3379_v35 = vadd.f32 %v3356_v43, %v3301_v62  ;;  %v3380_v60 = vadd.f32 %v3376_v17, %v3302_v4 }
 0xaa3   :  { %v3457_v37 = vadd.f32 %v3434_v16, %v3379_v35  ;;  %v3458_v27 = vadd.f32 %v3454_v51, %v3380_v60 }
 0xaa8   :  { %v3490_v63 = vpop.f32.mrf.mxu0  ;;  %v3510_v53 = vpop.f32.mrf.mxu1 }
 0xaa9   :  { %v3513_v39 = vadd.f32 %v3490_v63, %v3457_v37  ;;  %v3514_v59 = vadd.f32 %v3510_v53, %v3458_v27 }
 0xaaa   :  { %v3546_v22 = vpop.f32.mrf.mxu2  ;;  %v3566_v25 = vpop.f32.mrf.mxu3 }
 0xaab   :  { %v3569_v50 = vadd.f32 %v3546_v22, %v3513_v39  ;;  %v3570_v1 = vadd.f32 %v3566_v25, %v3514_v59  ;;  %v3700_v22 = vpop.xlane.xlu1 %3699 }
 0xab0   :  { %v3602_v11 = vpop.f32.mrf.mxu0  ;;  %v3622_v36 = vpop.f32.mrf.mxu1 }
 0xab1   :  { %v3625_v15 = vadd.f32 %v3602_v11, %v3569_v50  ;;  %v3626_v44 = vadd.f32 %v3622_v36, %v3570_v1 }
 0xab2   :  { %v3658_v9 = vpop.f32.mrf.mxu2  ;;  %v3678_v20 = vpop.f32.mrf.mxu3 }
 0xab3   :  { %v3682_v52 = vadd.f32 %v3678_v20, %v3626_v44  ;;  %v3681_v31 = vadd.f32 %v3658_v9, %v3625_v15 }
 0xab5   :  { %v3685_v58 = vrot.slane %v3682_v52, 4 }
 0xab7   :  { %v3686_v2 = vsel %vm55_vm0, %v3681_v31, %v3685_v58 }
 0xab8   :  { %v3688_v3 = vadd.f32 %v3686_v2, %v8342_v8 }
 0xaba   :  { %v7463_v18 = vadd.f32 %v3688_v3, %v7414_v5  ;;  %v5637_v3 = vld [vmem:[%s8207_s1 + $0x10] sm:$0xf] }
 0xabc   :  { %8343 = vst [vmem:[#allocation6_spill] sm:$0xff] %v7463_v18  ;;  %v3727_v43 = vmul.f32 %v7463_v18, %v7463_v18 }
 0xabd   :  { %3703 = vst [vmem:[#allocation1] ss:$2 sm:$0xff] %v7463_v18 }
 0xac4   :  { %v3704_v48 = vld.sshfl [vmem:[#allocation1] sm:$0xff pattern:$0x75316420]  ;;  %v3705_v12 = vld.sshfl [vmem:[#allocation1 + $0x8] sm:$0xff pattern:$0x75316420] }
 0xac5   :  { %v3708_v56 = vsel %vm55_vm0, %v3704_v48, 0.0  ;;  %v3709_v16 = vsel %vm55_vm0, %v3705_v12, 0.0  ;;  %3716 = vst [vmem:[#allocation1] ss:$2 sm:$0xff] %v3714_v49  ;;  %v5685_v49 = vld [vmem:[%s8207_s1 + $0x14] sm:$0xf] }
 0xac6   :  { %v3710_v51 = vadd.f32 %v3709_v16, %v3708_v56  ;;  %v5638_v16 = vld [vmem:[%s8208_s2 + $0x10] sm:$0xf] }
 0xac8   :  { %3711 = vadd.xlane.f32.xlu2 %v3710_v51 }
 0xacc   :  { %v3717_v17 = vld.sshfl [vmem:[#allocation1] sm:$0xff pattern:$0x75316420]  ;;  %v3718_v5 = vld.sshfl [vmem:[#allocation1 + $0x8] sm:$0xff pattern:$0x75316420] }
 0xacd   :  { %v3721_v4 = vsel %vm55_vm0, %v3717_v17, 0.0  ;;  %v3722_v62 = vsel %vm55_vm0, %v3718_v5, 0.0  ;;  %3729 = vst [vmem:[#allocation1] ss:$2 sm:$0xff] %v3727_v43 }
 0xace   :  { %v3723_v35 = vadd.f32 %v3722_v62, %v3721_v4 }
 0xad0   :  { %3724 = vadd.xlane.f32.xlu0 %v3723_v35 }
 0xad4   :  { %v3730_v60 = vld.sshfl [vmem:[#allocation1] sm:$0xff pattern:$0x75316420]  ;;  %v3731_v63 = vld.sshfl [vmem:[#allocation1 + $0x8] sm:$0xff pattern:$0x75316420] }
 0xad5   :  { %v3734_v53 = vsel %vm55_vm0, %v3730_v60, 0.0  ;;  %v3735_v37 = vsel %vm55_vm0, %v3731_v63, 0.0 }
 0xad6   :  { %v3736_v27 = vadd.f32 %v3735_v37, %v3734_v53 }
 0xad8   :  { %3737 = vadd.xlane.f32.xlu1 %v3736_v27 }
 0xb3b   :  { %v3712_v25 = vpop.xlane.xlu2 %3711 }
 0xb3c   :  { %v3713_v39 = vadd.f32 %v3712_v25, %v3700_v22 }
 0xb3e   :  { %v3740_v59 = vmul.f32 0.001953125, %v3713_v39 }
 0xb40   :  { %v3742_v15 = vmul.f32 %v3740_v59, %v3740_v59 }
 0xb43   :  { %v3725_v50 = vpop.xlane.xlu0 %3724 }
 0xb4b   :  { %v3738_v1 = vpop.xlane.xlu1 %3737 }
 0xb4c   :  { %v3739_v11 = vadd.f32 %v3738_v1, %v3725_v50 }
 0xb4e   :  { %v3741_v36 = vmul.f32 0.001953125, %v3739_v11 }
 0xb50   :  { %v3743_v44 = vsub.f32 %v3741_v36, %v3742_v15 }
 0xb52   :  { %v3744_v9 = vadd.f32 1e-05, %v3743_v44 }
 0xb54   :  { %5750 = vrsqrt.f32 %v3744_v9  ;;  %vm3751_vm5 = vweird.f32 %v3744_v9 }
 0xb5a   :  { %v5751_v20 = vpop.eup %5750 }
 0xb5b   :  { %v3746_v52 = vmul.f32 %v5751_v20, %v3744_v9  ;;  %vm3752_vm3 = vweird.f32 %v5751_v20 }
 0xb5c   :  { %vm3753_vm1 = vmor %vm3751_vm5, %vm3752_vm3 }
 0xb5d   :  { %v3747_v31 = vmul.f32 %v5751_v20, %v3746_v52 }
 0xb5f   :  { %v3748_v58 = vmul.f32 0.5, %v3747_v31 }
 0xb61   :  { %v3749_v2 = vsub.f32 1.5, %v3748_v58 }
 0xb63   :  { %v3750_v8 = vmul.f32 %v5751_v20, %v3749_v2 }
 0xb65   :  { %v3754_v48 = vsel %vm3753_vm1, %v5751_v20, %v3750_v8 }
 0xb66   :  { %v3757_v12 = vmul.f32 %v5637_v3, %v3754_v48  ;;  %v7482_v56 = vmul.f32 %v5685_v49, %v3754_v48  ;;  %v8344_v48 = vld [vmem:[#allocation3_spill] sm:$0xff] }
 0xb68   :  { %3764 = vperm.xlu2 %5743, %v3757_v12   ;;  %v3760_v51 = vmul.f32 %v3757_v12, %v3740_v59  ;;  %v7488_v43 = vmul.f32 %v7482_v56, %v3740_v59 }
 0xb6a   :  { %v3761_v17 = vsub.f32 %v5638_v16, %v3760_v51 }
 0xb6c   :  { %3774 = vperm.xlu0 %5745, %v3761_v17  }
 0xbc2   :  { %v3765_v5 = vpop.permute.xlu2 %3764 }
 0xbc3   :  { %v3769_v4 = vperm.slane %v3765_v5, %v8340_v38 }
 0xbc5   :  { %v3771_v35 = vmul.f32 %v3769_v4, %v7427_v29 }
 0xbde   :  { %v3775_v62 = vpop.permute.xlu0 %3774 }
 0xbdf   :  { %v3779_v60 = vperm.slane %v3775_v62, %v8340_v38 }
 0xbe1   :  { %v7493_v63 = vadd.f32 %v3779_v60, %v3771_v35 }
 0xbe3   :  { %3783 = vst [vmem:[#allocation1] ss:$2 sm:$0xff] %v7493_v63 }
 0xbea   :  { %v3785_v53 = vld.sshfl [vmem:[#allocation1 + $0x8] sm:$0xff pattern:$0x75316420]  ;;  %v3784_v37 = vld.sshfl [vmem:[#allocation1] sm:$0xff pattern:$0x75316420] }
 0xbeb   :  { %3790 = vrot.lane.b32.xlu0 %v3785_v53, %s5755_s20  ;;  %3788 = vrot.lane.b32.xlu1 %v3784_v37, %s5755_s20  ;;  %3794 = vst [vmem:[#allocation1] ss:$2 sm:$0xff] %v7493_v63 }
 0xbf2   :  { %v3796_v27 = vld.sshfl [vmem:[#allocation1 + $0x8] sm:$0xff pattern:$0x75316420]  ;;  %v3795_v22 = vld.sshfl [vmem:[#allocation1] sm:$0xff pattern:$0x75316420] }
 0xbf3   :  { %3801 = vrot.lane.b32.xlu1 %v3796_v27, %s5756_s21  ;;  %3799 = vrot.lane.b32.xlu2 %v3795_v22, %s5756_s21  ;;  %3819 = vst [vmem:[#allocation1] ss:$2 sm:$0xff] %v7493_v63 }
 0xbfa   :  { %v3821_v25 = vld.sshfl [vmem:[#allocation1 + $0x8] sm:$0xff pattern:$0x75316420]  ;;  %v3820_v39 = vld.sshfl [vmem:[#allocation1] sm:$0xff pattern:$0x75316420] }
 0xbfb   :  { %3826 = vrot.lane.b32.xlu2 %v3821_v25, %s5758_s22  ;;  %3824 = vrot.lane.b32.xlu0 %v3820_v39, %s5758_s22  ;;  %3830 = vst [vmem:[#allocation1] ss:$2 sm:$0xff] %v7493_v63 }
 0xc02   :  { %v3832_v59 = vld.sshfl [vmem:[#allocation1 + $0x8] sm:$0xff pattern:$0x75316420]  ;;  %v3831_v50 = vld.sshfl [vmem:[#allocation1] sm:$0xff pattern:$0x75316420] }
 0xc03   :  { %3837 = vrot.lane.b32.xlu0 %v3832_v59, %s5753_s14  ;;  %3835 = vrot.lane.b32.xlu1 %v3831_v50, %s5753_s14 }
 0xc4d   :  { %v3800_v11 = vpop.permute.xlu2 %3799 }
 0xc55   :  { %v3827_v49 = vpop.permute.xlu2 %3826 }
 0xc5d   :  { %v3789_v1 = vpop.permute.xlu1 %3788  ;;  %v3791_v36 = vpop.permute.xlu0 %3790 }
 0xc5e   :  { %v3792_v9 = vsel %vm150_vm7, %v3789_v1, %v3791_v36  ;;  %v3793_v8 = vsel %vm150_vm7, %v3791_v36, %v3789_v1 }
 0xc5f   :  { %v3806_v52 = vmul.f32 %v3792_v9, %v5890_v23  ;;  %v3805_v51 = vmul.f32 %v3793_v8, %v5890_v23  ;;  %v3872_v5 = vmul.f32 %v3792_v9, %v5892_v24 }
 0xc65   :  { %v3802_v15 = vpop.permute.xlu1 %3801 }
 0xc66   :  { %v3804_v44 = vsel %vm162_vm6, %v3802_v15, %v3800_v11  ;;  %v3803_v31 = vsel %vm162_vm6, %v3800_v11, %v3802_v15  ;;  %v8345_v15 = vld [vmem:[#allocation4_spill] sm:$0xff] }
 0xc67   :  { %v3808_v20 = vmul.f32 %v3804_v44, %v5892_v24  ;;  %v3807_v3 = vmul.f32 %v3803_v31, %v5892_v24  ;;  %v3870_v16 = vmul.f32 %v3804_v44, %v5890_v23  ;;  %v3869_v9 = vmul.f32 %v3803_v31, %v5890_v23 }
 0xc69   :  { %v3810_v58 = vadd.f32 %v3808_v20, %v3806_v52  ;;  %v3809_v62 = vadd.f32 %v3807_v3, %v3805_v51  ;;  %v3874_v60 = vadd.f32 %v3872_v5, %v3870_v16  ;;  %v3871_v3 = vmul.f32 %v3793_v8, %v5892_v24 }
 0xc6b   :  { %v3812_v12 = vadd.f32 %v3810_v58, %v8344_v48  ;;  %v3811_v44 = vadd.f32 %v3809_v62, %v8345_v15 }
 0xc6d   :  { %v3825_v2 = vpop.permute.xlu0 %3824  ;;  %v3815_v35 = vrot.slane %v3812_v12, 4 }
 0xc6e   :  { %v3829_v17 = vsel %vm203_vm8, %v3827_v49, %v3825_v2  ;;  %v3828_v4 = vsel %vm203_vm8, %v3825_v2, %v3827_v49  ;;  %v3876_v49 = vadd.f32 %v3874_v60, %v5926_v45 }
 0xc6f   :  { %v3841_v53 = vmul.f32 %v3829_v17, %v5890_v23  ;;  %v3842_v22 = vmul.f32 %v3828_v4, %v5890_v23  ;;  %v3858_v25 = vmul.f32 %v3828_v4, %v5892_v24  ;;  %v3857_v20 = vmul.f32 %v3829_v17, %v5892_v24 }
 0xc70   :  { %v3816_v12 = vsel %vm55_vm0, %v3811_v44, %v3815_v35  ;;  %v3873_v4 = vadd.f32 %v3871_v3, %v3869_v9 }
 0xc71   :  { %v3818_v17 = vmax.f32 %v7493_v63, %v3816_v12 }
 0xc72   :  { %v3875_v35 = vadd.f32 %v3873_v4, %v5955_v19 }
 0xc75   :  { %v3838_v37 = vpop.permute.xlu0 %3837  ;;  %v3836_v27 = vpop.permute.xlu1 %3835 }
 0xc76   :  { %v3839_v39 = vsel %vm41_vm4, %v3836_v27, %v3838_v37  ;;  %v3840_v59 = vsel %vm41_vm4, %v3838_v37, %v3836_v27 }
 0xc77   :  { %v3843_v50 = vmul.f32 %v3839_v39, %v5892_v24  ;;  %v3844_v1 = vmul.f32 %v3840_v59, %v5892_v24  ;;  %v3855_v11 = vmul.f32 %v3839_v39, %v5890_v23  ;;  %v3856_v36 = vmul.f32 %v3840_v59, %v5890_v23 }
 0xc79   :  { %v3845_v52 = vadd.f32 %v3843_v50, %v3841_v53  ;;  %v3846_v58 = vadd.f32 %v3844_v1, %v3842_v22  ;;  %v3860_v2 = vadd.f32 %v3858_v25, %v3856_v36  ;;  %v3859_v51 = vadd.f32 %v3857_v20, %v3855_v11 }
 0xc7a   :  { %v3879_v53 = vrot.slane %v3876_v49, 4 }
 0xc7b   :  { %v3848_v16 = vadd.f32 %v3846_v58, %v5928_v47  ;;  %v3862_v5 = vadd.f32 %v3860_v2, %v5931_v54  ;;  %v3847_v62 = vadd.f32 %v3845_v52, %v5945_v7  ;;  %v3861_v8 = vadd.f32 %v3859_v51, %v5950_v14  ;;  %v5686_v52 = vld [vmem:[%s8208_s2 + $0x14] sm:$0xf] }
 0xc7c   :  { %v3880_v39 = vsel %vm55_vm0, %v3875_v35, %v3879_v53  ;;  %v4635_v58 = vsub.f32 %v5686_v52, %v7488_v43 }
 0xc7d   :  { %v3851_v31 = vrot.slane %v3848_v16, 4  ;;  %v3865_v37 = vrot.slane %v3862_v5, 4 }
 0xc7f   :  { %v3852_v27 = vsel %vm55_vm0, %v3847_v62, %v3851_v31  ;;  %v3866_v22 = vsel %vm55_vm0, %v3861_v8, %v3865_v37 }
 0xc80   :  { %v3854_v60 = vmax.f32 %v3818_v17, %v3852_v27 }
 0xc82   :  { %v3868_v25 = vmax.f32 %v3854_v60, %v3866_v22 }
 0xc84   :  { %v7552_v59 = vmax.f32 %v3868_v25, %v3880_v39 }
 0xc86   :  { %3884 = vst [vmem:[#allocation1] ss:$2 sm:$0xff] %v7552_v59 }
 0xc8d   :  { %v3886_v50 = vld.sshfl [vmem:[#allocation1 + $0x8] sm:$0xff pattern:$0x75316420]  ;;  %v3885_v1 = vld.sshfl [vmem:[#allocation1] sm:$0xff pattern:$0x75316420] }
 0xc8e   :  { %3891 = vrot.lane.b32.xlu1 %v3886_v50, %s5759_s5  ;;  %3889 = vrot.lane.b32.xlu2 %v3885_v1, %s5759_s5  ;;  %3895 = vst [vmem:[#allocation1] ss:$2 sm:$0xff] %v7552_v59 }
 0xc95   :  { %v3897_v63 = vld.sshfl [vmem:[#allocation1 + $0x8] sm:$0xff pattern:$0x75316420]  ;;  %v3896_v11 = vld.sshfl [vmem:[#allocation1] sm:$0xff pattern:$0x75316420] }
 0xc96   :  { %3902 = vrot.lane.b32.xlu2 %v3897_v63, %s5760_s12  ;;  %3900 = vrot.lane.b32.xlu0 %v3896_v11, %s5760_s12  ;;  %3920 = vst [vmem:[#allocation1] ss:$2 sm:$0xff] %v7552_v59 }
 0xc9d   :  { %v3922_v36 = vld.sshfl [vmem:[#allocation1 + $0x8] sm:$0xff pattern:$0x75316420]  ;;  %v3921_v44 = vld.sshfl [vmem:[#allocation1] sm:$0xff pattern:$0x75316420] }
 0xc9e   :  { %3927 = vrot.lane.b32.xlu0 %v3922_v36, %s5761_s0  ;;  %3925 = vrot.lane.b32.xlu1 %v3921_v44, %s5761_s0  ;;  %3931 = vst [vmem:[#allocation1] ss:$2 sm:$0xff] %v7552_v59 }
 0xca5   :  { %v3933_v9 = vld.sshfl [vmem:[#allocation1 + $0x8] sm:$0xff pattern:$0x75316420]  ;;  %v3932_v20 = vld.sshfl [vmem:[#allocation1] sm:$0xff pattern:$0x75316420] }
 0xca6   :  { %4638 = vperm.xlu0 %5745, %v7482_v56   ;;  %3938 = vrot.lane.b32.xlu1 %v3933_v9, %s5762_s13 }
 0xca7   :  { %3936 = vrot.lane.b32.xlu2 %v3932_v20, %s5762_s13 }
 0xcaf   :  { %4648 = vperm.xlu2 %5743, %v4635_v58  }
 0xce8   :  { %v3890_v2 = vpop.permute.xlu2 %3889 }
 0xcf0   :  { %v3903_v3 = vpop.permute.xlu2 %3902 }
 0xd00   :  { %v3892_v49 = vpop.permute.xlu1 %3891 }
 0xd01   :  { %v3893_v56 = vsel %vm290_vm10, %v3890_v2, %v3892_v49  ;;  %v3894_v31 = vsel %vm290_vm10, %v3892_v49, %v3890_v2  ;;  %v3937_v39 = vpop.permute.xlu2 %3936 }
 0xd02   :  { %v3907_v5 = vmul.f32 %v3893_v56, %v5890_v23  ;;  %v3906_v8 = vmul.f32 %v3894_v31, %v5890_v23  ;;  %v3973_v35 = vmul.f32 %v3893_v56, %v5892_v24 }
 0xd08   :  { %v3901_v12 = vpop.permute.xlu0 %3900 }
 0xd09   :  { %v3905_v16 = vsel %vm302_vm9, %v3903_v3, %v3901_v12  ;;  %v3904_v4 = vsel %vm302_vm9, %v3901_v12, %v3903_v3 }
 0xd0a   :  { %v3909_v51 = vmul.f32 %v3905_v16, %v5892_v24  ;;  %v3908_v17 = vmul.f32 %v3904_v4, %v5892_v24  ;;  %v3971_v27 = vmul.f32 %v3905_v16, %v5890_v23  ;;  %v3970_v12 = vmul.f32 %v3904_v4, %v5890_v23 }
 0xd0c   :  { %v3911_v62 = vadd.f32 %v3909_v51, %v3907_v5  ;;  %v3910_v25 = vadd.f32 %v3908_v17, %v3906_v8  ;;  %v3975_v1 = vadd.f32 %v3973_v35, %v3971_v27  ;;  %v8346_v35 = vld [vmem:[#allocation9_spill] sm:$0xff] }
 0xd0e   :  { %v3913_v53 = vadd.f32 %v3911_v62, %v5994_v61  ;;  %v3912_v49 = vadd.f32 %v3910_v25, %v8316_v41  ;;  %v3972_v62 = vmul.f32 %v3894_v31, %v5892_v24  ;;  %v8347_v31 = vld [vmem:[#allocation10_spill] sm:$0xff] }
 0xd10   :  { %v3926_v43 = vpop.permute.xlu1 %3925  ;;  %v3928_v37 = vpop.permute.xlu0 %3927  ;;  %v3916_v50 = vrot.slane %v3913_v53, 4  ;;  %v3974_v8 = vadd.f32 %v3972_v62, %v3970_v12 }
 0xd11   :  { %v3930_v60 = vsel %vm334_vm11, %v3928_v37, %v3926_v43  ;;  %v3929_v22 = vsel %vm334_vm11, %v3926_v43, %v3928_v37  ;;  %v3977_v43 = vadd.f32 %v3975_v1, %v8317_v46 }
 0xd12   :  { %v3942_v63 = vmul.f32 %v3930_v60, %v5890_v23  ;;  %v3943_v36 = vmul.f32 %v3929_v22, %v5890_v23  ;;  %v3959_v44 = vmul.f32 %v3929_v22, %v5892_v24  ;;  %v3958_v16 = vmul.f32 %v3930_v60, %v5892_v24 }
 0xd13   :  { %v3917_v37 = vsel %vm55_vm0, %v3912_v49, %v3916_v50 }
 0xd14   :  { %v3919_v60 = vmax.f32 %v7552_v59, %v3917_v37 }
 0xd18   :  { %v3939_v11 = vpop.permute.xlu1 %3938 }
 0xd19   :  { %v3940_v9 = vsel %vm346_vm12, %v3937_v39, %v3939_v11  ;;  %v3941_v20 = vsel %vm346_vm12, %v3939_v11, %v3937_v39  ;;  %v3980_v39 = vrot.slane %v3977_v43, 4 }
 0xd1a   :  { %v3944_v52 = vmul.f32 %v3940_v9, %v5892_v24  ;;  %v3945_v58 = vmul.f32 %v3941_v20, %v5892_v24  ;;  %v3956_v2 = vmul.f32 %v3940_v9, %v5890_v23  ;;  %v3957_v3 = vmul.f32 %v3941_v20, %v5890_v23 }
 0xd1c   :  { %v3946_v56 = vadd.f32 %v3944_v52, %v3942_v63  ;;  %v3947_v51 = vadd.f32 %v3945_v58, %v3943_v36  ;;  %v3961_v5 = vadd.f32 %v3959_v44, %v3957_v3  ;;  %v3960_v53 = vadd.f32 %v3958_v16, %v3956_v2  ;;  %v8348_v36 = vld [vmem:[#allocation11_spill] sm:$0xff] }
 0xd1d   :  { %v3976_v50 = vadd.f32 %v3974_v8, %v8348_v36 }
 0xd1e   :  { %v3949_v17 = vadd.f32 %v3947_v51, %v8318_v42  ;;  %v3963_v27 = vadd.f32 %v3961_v5, %v8319_v55  ;;  %v3948_v22 = vadd.f32 %v3946_v56, %v8346_v35  ;;  %v3962_v11 = vadd.f32 %v3960_v53, %v8347_v31  ;;  %v4639_v53 = vpop.permute.xlu0 %4638 }
 0xd1f   :  { %v3981_v20 = vsel %vm55_vm0, %v3976_v50, %v3980_v39 }
 0xd20   :  { %v3952_v4 = vrot.slane %v3949_v17, 4  ;;  %v3966_v25 = vrot.slane %v3963_v27, 4  ;;  %v4643_v27 = vperm.slane %v4639_v53, %v8340_v38 }
 0xd22   :  { %v3953_v63 = vsel %vm55_vm0, %v3948_v22, %v3952_v4  ;;  %v3967_v44 = vsel %vm55_vm0, %v3962_v11, %v3966_v25  ;;  %v4649_v4 = vpop.permute.xlu2 %4648  ;;  %v4645_v25 = vmul.f32 %v4643_v27, %v7463_v18 }
 0xd23   :  { %v3955_v1 = vmax.f32 %v3919_v60, %v3953_v63  ;;  %v4653_v60 = vperm.slane %v4649_v4, %v8340_v38 }
 0xd25   :  { %v3969_v9 = vmax.f32 %v3955_v1, %v3967_v44  ;;  %v7649_v39 = vadd.f32 %v4653_v60, %v4645_v25 }
 0xd27   :  { %v3983_v52 = vmax.f32 %v3969_v9, %v3981_v20 }
 0xd29   :  { %3987 = vst [vmem:[#allocation1] ss:$2 sm:$0xff] %v3983_v52 }
 0xd30   :  { %v7616_v58 = vld.sshfl [vmem:[#allocation1] sm:$0xff pattern:$0x75316420]  ;;  %v7618_v2 = vld.sshfl [vmem:[#allocation1 + $0x8] sm:$0xff pattern:$0x75316420] }
 0xd31   :  { %3998 = vst [vmem:[#allocation1] ss:$2 sm:$0xff] %v3983_v52 }
 0xd38   :  { %v7620_v59 = vld.sshfl [vmem:[#allocation1] sm:$0xff pattern:$0x75316420]  ;;  %v7622_v3 = vld.sshfl [vmem:[#allocation1 + $0x8] sm:$0xff pattern:$0x75316420] }
 0xd39   :  { %4068 = vst [vmem:[#allocation1] ss:$2 sm:$0xff] %v3983_v52 }
 0xd40   :  { %v4069_v49 = vld.sshfl [vmem:[#allocation1] sm:$0xff pattern:$0x75316420]  ;;  %v4070_v12 = vld.sshfl [vmem:[#allocation1 + $0x8] sm:$0xff pattern:$0x75316420] }
 0xd41   :  { %5645 = vmatpush.msk.msra.mxu2 %vm55_vm0, %v4069_v49  ;;  %5647 = vmatpush.msk.msra.mxu3 %vm55_vm0, %v4070_v12  ;;  %4118 = vst [vmem:[#allocation1] ss:$2 sm:$0xff] %v3983_v52 }
 0xd48   :  { %v7626_v16 = vld.sshfl [vmem:[#allocation1] sm:$0xff pattern:$0x75316420]  ;;  %v7628_v56 = vld.sshfl [vmem:[#allocation1 + $0x8] sm:$0xff pattern:$0x75316420] }
 0xd49   :  { %4129 = vst [vmem:[#allocation1] ss:$2 sm:$0xff] %v3983_v52 }
 0xd50   :  { %v7630_v51 = vld.sshfl [vmem:[#allocation1] sm:$0xff pattern:$0x75316420]  ;;  %v7632_v5 = vld.sshfl [vmem:[#allocation1 + $0x8] sm:$0xff pattern:$0x75316420] }
 0xd51   :  { %4201 = vst [vmem:[#allocation1] ss:$2 sm:$0xff] %v3983_v52 }
 0xd58   :  { %v7634_v62 = vld.sshfl [vmem:[#allocation1] sm:$0xff pattern:$0x75316420]  ;;  %v7636_v43 = vld.sshfl [vmem:[#allocation1 + $0x8] sm:$0xff pattern:$0x75316420] }
 0xd59   :  { %4212 = vst [vmem:[#allocation1] ss:$2 sm:$0xff] %v3983_v52 }
 0xd60   :  { %v7638_v37 = vld.sshfl [vmem:[#allocation1] sm:$0xff pattern:$0x75316420]  ;;  %v7640_v17 = vld.sshfl [vmem:[#allocation1 + $0x8] sm:$0xff pattern:$0x75316420] }
 0xd61   :  { %4284 = vst [vmem:[#allocation1] ss:$2 sm:$0xff] %v3983_v52 }
 0xd68   :  { %v7643_v8 = vld.sshfl [vmem:[#allocation1] sm:$0xff pattern:$0x75316420]  ;;  %v7645_v22 = vld.sshfl [vmem:[#allocation1 + $0x8] sm:$0xff pattern:$0x75316420] }
 0xd69   :  { %4295 = vst [vmem:[#allocation1] ss:$2 sm:$0xff] %v3983_v52 }
 0xd70   :  { %v7651_v63 = vld.sshfl [vmem:[#allocation1] sm:$0xff pattern:$0x75316420]  ;;  %v7653_v11 = vld.sshfl [vmem:[#allocation1 + $0x8] sm:$0xff pattern:$0x75316420] }
 0xd71   :  { %4657 = vst [vmem:[#allocation1] ss:$2 sm:$0xff] %v7649_v39 }
 0xd78   :  { %v4659_v1 = vld.sshfl [vmem:[#allocation1 + $0x8] sm:$0xff pattern:$0x75316420]  ;;  %v4658_v50 = vld.sshfl [vmem:[#allocation1] sm:$0xff pattern:$0x75316420] }
 0xd79   :  { %4664 = vrot.lane.b32.xlu0 %v4659_v1, %s5755_s20  ;;  %4662 = vrot.lane.b32.xlu1 %v4658_v50, %s5755_s20  ;;  %4668 = vst [vmem:[#allocation1] ss:$2 sm:$0xff] %v7649_v39 }
 0xd80   :  { %v4670_v44 = vld.sshfl [vmem:[#allocation1 + $0x8] sm:$0xff pattern:$0x75316420]  ;;  %v4669_v9 = vld.sshfl [vmem:[#allocation1] sm:$0xff pattern:$0x75316420] }
 0xd81   :  { %4675 = vrot.lane.b32.xlu1 %v4670_v44, %s5756_s21  ;;  %4673 = vrot.lane.b32.xlu2 %v4669_v9, %s5756_s21  ;;  %4693 = vst [vmem:[#allocation1] ss:$2 sm:$0xff] %v7649_v39 }
 0xd88   :  { %v4695_v20 = vld.sshfl [vmem:[#allocation1 + $0x8] sm:$0xff pattern:$0x75316420]  ;;  %v4694_v52 = vld.sshfl [vmem:[#allocation1] sm:$0xff pattern:$0x75316420] }
 0xd89   :  { %4700 = vrot.lane.b32.xlu2 %v4695_v20, %s5758_s22  ;;  %4698 = vrot.lane.b32.xlu0 %v4694_v52, %s5758_s22  ;;  %4704 = vst [vmem:[#allocation1] ss:$2 sm:$0xff] %v7649_v39 }
 0xd90   :  { %v4706_v49 = vld.sshfl [vmem:[#allocation1 + $0x8] sm:$0xff pattern:$0x75316420]  ;;  %v4705_v12 = vld.sshfl [vmem:[#allocation1] sm:$0xff pattern:$0x75316420] }
 0xd91   :  { %4711 = vrot.lane.b32.xlu0 %v4706_v49, %s5753_s14  ;;  %4709 = vrot.lane.b32.xlu1 %v4705_v12, %s5753_s14 }
 0xddb   :  { %v4674_v27 = vpop.permute.xlu2 %4673 }
 0xde3   :  { %v4701_v18 = vpop.permute.xlu2 %4700 }
 0xdeb   :  { %v4663_v53 = vpop.permute.xlu1 %4662  ;;  %v4665_v4 = vpop.permute.xlu0 %4664 }
 0xdec   :  { %v4666_v1 = vsel %vm150_vm7, %v4663_v53, %v4665_v4  ;;  %v4667_v49 = vsel %vm150_vm7, %v4665_v4, %v4663_v53 }
 0xded   :  { %v4680_v44 = vmul.f32 %v4666_v1, %v5890_v23  ;;  %v4679_v32 = vmul.f32 %v4667_v49, %v5890_v23  ;;  %v4746_v57 = vmul.f32 %v4666_v1, %v5892_v24  ;;  %v4745_v21 = vmul.f32 %v4667_v49, %v5892_v24 }
 0xdf3   :  { %v4676_v25 = vpop.permute.xlu1 %4675 }
 0xdf4   :  { %v4678_v60 = vsel %vm162_vm6, %v4676_v25, %v4674_v27  ;;  %v4677_v9 = vsel %vm162_vm6, %v4674_v27, %v4676_v25  ;;  %vm8351_vm6 = vcmp.lt.s32.totalorder %v5870_v6, 15 }
 0xdf5   :  { %v4682_v50 = vmul.f32 %v4678_v60, %v5892_v24  ;;  %v4681_v12 = vmul.f32 %v4677_v9, %v5892_v24  ;;  %v4744_v29 = vmul.f32 %v4678_v60, %v5890_v23  ;;  %vm8352_vm7 = vmmov %vm8351_vm6 }
 0xdf7   :  { %v4684_v20 = vadd.f32 %v4682_v50, %v4680_v44  ;;  %v4683_v25 = vadd.f32 %v4681_v12, %v4679_v32  ;;  %v4748_v53 = vadd.f32 %v4746_v57, %v4744_v29 }
 0xdf9   :  { %v4686_v38 = vadd.f32 %v4684_v20, %v8344_v48  ;;  %v4685_v29 = vadd.f32 %v4683_v25, %v8345_v15 }
 0xdfb   :  { %v4699_v52 = vpop.permute.xlu0 %4698  ;;  %v4689_v50 = vrot.slane %v4686_v38, 4 }
 0xdfc   :  { %v4703_v13 = vsel %vm203_vm8, %v4701_v18, %v4699_v52  ;;  %v4702_v27 = vsel %vm203_vm8, %v4699_v52, %v4701_v18  ;;  %v4743_v18 = vmul.f32 %v4677_v9, %v5890_v23 }
 0xdfd   :  { %v4715_v4 = vmul.f32 %v4703_v13, %v5890_v23  ;;  %v4716_v48 = vmul.f32 %v4702_v27, %v5890_v23  ;;  %v4732_v60 = vmul.f32 %v4702_v27, %v5892_v24  ;;  %v4731_v52 = vmul.f32 %v4703_v13, %v5892_v24 }
 0xdfe   :  { %v4747_v26 = vadd.f32 %v4745_v21, %v4743_v18 }
 0xe03   :  { %v4712_v44 = vpop.permute.xlu0 %4711  ;;  %v4710_v0 = vpop.permute.xlu1 %4709 }
 0xe04   :  { %v4713_v20 = vsel %vm41_vm4, %v4710_v0, %v4712_v44  ;;  %v4714_v1 = vsel %vm41_vm4, %v4712_v44, %v4710_v0  ;;  %v4750_v0 = vadd.f32 %v4748_v53, %v5926_v45  ;;  %v4690_v44 = vsel %vm55_vm0, %v4685_v29, %v4689_v50 }
 0xe05   :  { %v4717_v30 = vmul.f32 %v4713_v20, %v5892_v24  ;;  %v4718_v32 = vmul.f32 %v4714_v1, %v5892_v24  ;;  %v4729_v57 = vmul.f32 %v4713_v20, %v5890_v23  ;;  %v4730_v38 = vmul.f32 %v4714_v1, %v5890_v23 }
 0xe06   :  { %v4753_v13 = vrot.slane %v4750_v0, 4  ;;  %v4749_v50 = vadd.f32 %v4747_v26, %v5955_v19 }
 0xe07   :  { %v4719_v12 = vadd.f32 %v4717_v30, %v4715_v4  ;;  %v4720_v27 = vadd.f32 %v4718_v32, %v4716_v48  ;;  %v4734_v28 = vadd.f32 %v4732_v60, %v4730_v38  ;;  %v4733_v20 = vadd.f32 %v4731_v52, %v4729_v57 }
 0xe08   :  { %v4692_v30 = vmax.f32 %v7649_v39, %v4690_v44 }
 0xe09   :  { %v4722_v10 = vadd.f32 %v4720_v27, %v5928_v47  ;;  %v4736_v1 = vadd.f32 %v4734_v28, %v5931_v54  ;;  %v4721_v15 = vadd.f32 %v4719_v12, %v5945_v7  ;;  %v4735_v49 = vadd.f32 %v4733_v20, %v5950_v14 }
 0xe0a   :  { %v4754_v54 = vsel %vm55_vm0, %v4749_v50, %v4753_v13 }
 0xe0b   :  { %v4725_v9 = vrot.slane %v4722_v10, 4  ;;  %v4739_v25 = vrot.slane %v4736_v1, 4 }
 0xe0d   :  { %v4726_v4 = vsel %vm55_vm0, %v4721_v15, %v4725_v9  ;;  %v4740_v47 = vsel %vm55_vm0, %v4735_v49, %v4739_v25 }
 0xe0e   :  { %v4728_v45 = vmax.f32 %v4692_v30, %v4726_v4  ;;  %v7788_v30 = vld [vmem:[%s8212_s3 + $0x58] sm:$0xf] }
 0xe0f   :  { %5648 = vmatmul.msk.f32.vlgmr.msra.gmra.mxu3 %vm454_vm15, %v7788_v30  ;;  %5646 = vmatmul.msk.f32.vlgmr.msra.gmra.mxu2 %vm454_vm15, %v7788_v30 }
 0xe10   :  { %v4742_v53 = vmax.f32 %v4728_v45, %v4740_v47 }
 0xe12   :  { %v7712_v21 = vmax.f32 %v4742_v53, %v4754_v54 }
 0xe14   :  { %4758 = vst [vmem:[#allocation1] ss:$2 sm:$0xff] %v7712_v21 }
 0xe1b   :  { %v4760_v7 = vld.sshfl [vmem:[#allocation1 + $0x8] sm:$0xff pattern:$0x75316420]  ;;  %v4759_v10 = vld.sshfl [vmem:[#allocation1] sm:$0xff pattern:$0x75316420] }
 0xe1c   :  { %4765 = vrot.lane.b32.xlu1 %v4760_v7, %s5759_s5  ;;  %4763 = vrot.lane.b32.xlu2 %v4759_v10, %s5759_s5  ;;  %4769 = vst [vmem:[#allocation1] ss:$2 sm:$0xff] %v7712_v21 }
 0xe23   :  { %v4771_v14 = vld.sshfl [vmem:[#allocation1 + $0x8] sm:$0xff pattern:$0x75316420]  ;;  %v4770_v28 = vld.sshfl [vmem:[#allocation1] sm:$0xff pattern:$0x75316420] }
 0xe24   :  { %4776 = vrot.lane.b32.xlu2 %v4771_v14, %s5760_s12  ;;  %4774 = vrot.lane.b32.xlu0 %v4770_v28, %s5760_s12  ;;  %4794 = vst [vmem:[#allocation1] ss:$2 sm:$0xff] %v7712_v21 }
 0xe2b   :  { %v4796_v19 = vld.sshfl [vmem:[#allocation1 + $0x8] sm:$0xff pattern:$0x75316420]  ;;  %v4795_v26 = vld.sshfl [vmem:[#allocation1] sm:$0xff pattern:$0x75316420] }
 0xe2c   :  { %4801 = vrot.lane.b32.xlu0 %v4796_v19, %s5761_s0  ;;  %4799 = vrot.lane.b32.xlu1 %v4795_v26, %s5761_s0  ;;  %4805 = vst [vmem:[#allocation1] ss:$2 sm:$0xff] %v7712_v21 }
 0xe33   :  { %v4807_v39 = vld.sshfl [vmem:[#allocation1 + $0x8] sm:$0xff pattern:$0x75316420]  ;;  %v4806_v48 = vld.sshfl [vmem:[#allocation1] sm:$0xff pattern:$0x75316420] }
 0xe34   :  { %3992 = vrot.lane.b32.xlu0 %v7616_v58, %s5763_s6  ;;  %4812 = vrot.lane.b32.xlu1 %v4807_v39, %s5762_s13 }
 0xe35   :  { %4810 = vrot.lane.b32.xlu2 %v4806_v48, %s5762_s13 }
 0xe3c   :  { %4005 = vrot.lane.b32.xlu0 %v7622_v3, %s5764_s27  ;;  %4003 = vrot.lane.b32.xlu1 %v7620_v59, %s5764_s27 }
 0xe3d   :  { %3994 = vrot.lane.b32.xlu2 %v7618_v2, %s5763_s6 }
 0xe44   :  { %4217 = vrot.lane.b32.xlu0 %v7638_v37, %s5765_s28  ;;  %4208 = vrot.lane.b32.xlu1 %v7636_v43, %s5766_s29 }
 0xe45   :  { %4206 = vrot.lane.b32.xlu2 %v7634_v62, %s5766_s29 }
 0xe4c   :  { %4125 = vrot.lane.b32.xlu0 %v7628_v56, %s5761_s0  ;;  %4123 = vrot.lane.b32.xlu1 %v7626_v16, %s5761_s0 }
 0xe4d   :  { %4219 = vrot.lane.b32.xlu2 %v7640_v17, %s5765_s28 }
 0xe54   :  { %4289 = vrot.lane.b32.xlu0 %v7643_v8, %s5758_s22  ;;  %4136 = vrot.lane.b32.xlu1 %v7632_v5, %s5762_s13 }
 0xe55   :  { %4134 = vrot.lane.b32.xlu2 %v7630_v51, %s5762_s13 }
 0xe5c   :  { %4302 = vrot.lane.b32.xlu0 %v7653_v11, %s5753_s14  ;;  %4300 = vrot.lane.b32.xlu1 %v7651_v63, %s5753_s14 }
 0xe5d   :  { %4291 = vrot.lane.b32.xlu2 %v7645_v22, %s5758_s22 }
 0xe76   :  { %v4764_v58 = vpop.permute.xlu2 %4763 }
 0xe7e   :  { %v4777_v2 = vpop.permute.xlu2 %4776 }
 0xe8e   :  { %v4766_v59 = vpop.permute.xlu1 %4765 }
 0xe8f   :  { %v4811_v16 = vpop.permute.xlu2 %4810  ;;  %v4767_v51 = vsel %vm290_vm10, %v4764_v58, %v4766_v59  ;;  %v4768_v22 = vsel %vm290_vm10, %v4766_v59, %v4764_v58 }
 0xe90   :  { %v4781_v62 = vmul.f32 %v4767_v51, %v5890_v23  ;;  %v4780_v60 = vmul.f32 %v4768_v22, %v5890_v23  ;;  %v4847_v29 = vmul.f32 %v4767_v51, %v5892_v24  ;;  %v4846_v14 = vmul.f32 %v4768_v22, %v5892_v24 }
 0xe96   :  { %v4775_v3 = vpop.permute.xlu0 %4774 }
 0xe97   :  { %v4779_v56 = vsel %vm302_vm9, %v4777_v2, %v4775_v3  ;;  %v4778_v43 = vsel %vm302_vm9, %v4775_v3, %v4777_v2  ;;  %v3995_v11 = vpop.permute.xlu2 %3994 }
 0xe98   :  { %v4783_v5 = vmul.f32 %v4779_v56, %v5892_v24  ;;  %v4782_v63 = vmul.f32 %v4778_v43, %v5892_v24  ;;  %v4845_v57 = vmul.f32 %v4779_v56, %v5890_v23  ;;  %v4844_v50 = vmul.f32 %v4778_v43, %v5890_v23 }
 0xe9a   :  { %v4785_v37 = vadd.f32 %v4783_v5, %v4781_v62  ;;  %v4784_v38 = vadd.f32 %v4782_v63, %v4780_v60  ;;  %v4849_v44 = vadd.f32 %v4847_v29, %v4845_v57  ;;  %v4848_v59 = vadd.f32 %v4846_v14, %v4844_v50  ;;  %v8349_v57 = vld [vmem:[#allocation12_spill] sm:$0xff]  ;;  %v8350_v29 = vld [vmem:[#allocation13_spill] sm:$0xff] }
 0xe9c   :  { %v4787_v32 = vadd.f32 %v4785_v37, %v5994_v61  ;;  %v4786_v1 = vadd.f32 %v4784_v38, %v8316_v41  ;;  %v4851_v28 = vadd.f32 %v4849_v44, %v8317_v46 }
 0xe9e   :  { %v4802_v17 = vpop.permute.xlu0 %4801  ;;  %v4800_v8 = vpop.permute.xlu1 %4799  ;;  %v4790_v12 = vrot.slane %v4787_v32, 4  ;;  %v4854_v43 = vrot.slane %v4851_v28, 4 }
 0xe9f   :  { %v4803_v18 = vsel %vm334_vm11, %v4800_v8, %v4802_v17  ;;  %v4804_v52 = vsel %vm334_vm11, %v4802_v17, %v4800_v8  ;;  %v4207_v53 = vpop.permute.xlu2 %4206 }
 0xea0   :  { %v4816_v15 = vmul.f32 %v4804_v52, %v5890_v23  ;;  %v4817_v9 = vmul.f32 %v4803_v18, %v5890_v23  ;;  %v4833_v25 = vmul.f32 %v4803_v18, %v5892_v24  ;;  %v4791_v41 = vsel %vm55_vm0, %v4786_v1, %v4790_v12 }
 0xea1   :  { %v4832_v47 = vmul.f32 %v4804_v52, %v5892_v24  ;;  %v4793_v2 = vmax.f32 %v7712_v21, %v4791_v41  ;;  %v7840_v52 = vld [vmem:[%s8212_s3 + $0x48] sm:$0xf] }
 0xea6   :  { %v3993_v27 = vpop.permute.xlu0 %3992  ;;  %v4813_v0 = vpop.permute.xlu1 %4812 }
 0xea7   :  { %v4814_v20 = vsel %vm346_vm12, %v4811_v16, %v4813_v0  ;;  %v4815_v61 = vsel %vm346_vm12, %v4813_v0, %v4811_v16  ;;  %v7805_v19 = vsel %vm424_vm14, %v3993_v27, %v3995_v11  ;;  %v7809_v26 = vsel %vm424_vm14, %v3995_v11, %v3993_v27 }
 0xea8   :  { %v4818_v13 = vmul.f32 %v4814_v20, %v5892_v24  ;;  %v4819_v4 = vmul.f32 %v4815_v61, %v5892_v24  ;;  %v4830_v49 = vmul.f32 %v4814_v20, %v5890_v23  ;;  %v4831_v45 = vmul.f32 %v4815_v61, %v5890_v23 }
 0xea9   :  { %v4850_v11 = vadd.f32 %v4848_v59, %v8348_v36 }
 0xeaa   :  { %v4820_v54 = vadd.f32 %v4818_v13, %v4816_v15  ;;  %v4821_v7 = vadd.f32 %v4819_v4, %v4817_v9  ;;  %v4835_v10 = vadd.f32 %v4833_v25, %v4831_v45  ;;  %v4834_v48 = vadd.f32 %v4832_v47, %v4830_v49 }
 0xeab   :  { %v4855_v12 = vsel %vm55_vm0, %v4850_v11, %v4854_v43  ;;  %v8354_v11 = vld [vmem:[#allocation16_spill] sm:$0xff] }
 0xeac   :  { %v4823_v39 = vadd.f32 %v4821_v7, %v8318_v42  ;;  %v4837_v58 = vadd.f32 %v4835_v10, %v8319_v55  ;;  %v4822_v3 = vadd.f32 %v4820_v54, %v8346_v35  ;;  %v4009_v42 = vmul.f32 %v7809_v26, %v5890_v23 }
 0xead   :  { %v4010_v55 = vmul.f32 %v7805_v19, %v5890_v23  ;;  %v4836_v17 = vadd.f32 %v4834_v48, %v8347_v31  ;;  %v4220_v31 = vpop.permute.xlu2 %4219 }
 0xeae   :  { %v4006_v16 = vpop.permute.xlu0 %4005  ;;  %v4004_v46 = vpop.permute.xlu1 %4003  ;;  %v4826_v56 = vrot.slane %v4823_v39, 4  ;;  %v4840_v51 = vrot.slane %v4837_v58, 4 }
 0xeaf   :  { %v7817_v5 = vsel %vm436_vm13, %v4004_v46, %v4006_v16  ;;  %v7821_v62 = vsel %vm436_vm13, %v4006_v16, %v4004_v46 }
 0xeb0   :  { %v4011_v35 = vmul.f32 %v7817_v5, %v5892_v24  ;;  %v4012_v21 = vmul.f32 %v7821_v62, %v5892_v24  ;;  %v4827_v37 = vsel %vm55_vm0, %v4822_v3, %v4826_v56  ;;  %v4841_v60 = vsel %vm55_vm0, %v4836_v17, %v4840_v51 }
 0xeb1   :  { %v4829_v8 = vmax.f32 %v4793_v2, %v4827_v37  ;;  %v4552_v37 = vmul.f32 %v7809_v26, %v5892_v24  ;;  %v4550_v17 = vmul.f32 %v7817_v5, %v5890_v23 }
 0xeb2   :  { %v4013_v22 = vadd.f32 %v4011_v35, %v4009_v42  ;;  %v4014_v63 = vadd.f32 %v4012_v21, %v4010_v55 }
 0xeb3   :  { %v4843_v32 = vmax.f32 %v4829_v8, %v4841_v60 }
 0xeb4   :  { %v4015_v38 = vmul.f32 %v4013_v22, %v8349_v57  ;;  %v4016_v18 = vmul.f32 %v4014_v63, %v8350_v29  ;;  %v8353_v22 = vld [vmem:[#allocation15_spill] sm:$0xff] }
 0xeb5   :  { %v7843_v27 = vmax.f32 %v4843_v32, %v4855_v12  ;;  %v4135_v10 = vpop.permute.xlu2 %4134  ;;  %v7915_v32 = vld [vmem:[%s8212_s3 + $0x4c] sm:$0xf] }
 0xeb6   :  { %v4218_v0 = vpop.permute.xlu0 %4217  ;;  %v4209_v44 = vpop.permute.xlu1 %4208  ;;  %5641 = vmatpush.msk.msra.mxu0 %vm55_vm0, %v4015_v38  ;;  %5643 = vmatpush.msk.msra.mxu1 %vm55_vm0, %v4016_v18 }
 0xeb7   :  { %v4221_v36 = vsel %vm665_vm2, %v4218_v0, %v4220_v31  ;;  %v7851_v20 = vsel %vm665_vm2, %v4220_v31, %v4218_v0  ;;  %v7855_v61 = vsel %vm8351_vm6, %v4207_v53, %v4209_v44  ;;  %v4211_v1 = vsel %vm8352_vm7, %v4209_v44, %v4207_v53  ;;  %5642 = vmatmul.msk.f32.vlgmr.msra.gmra.mxu0 %vm454_vm15, %v7840_v52  ;;  %v7875_v53 = vld [vmem:[%s8212_s3 + $0x50] sm:$0xf] }
 0xeb8   :  { %4859 = vst [vmem:[#allocation1] ss:$2 sm:$0xff] %v7843_v27  ;;  %v4225_v15 = vmul.f32 %v4221_v36, %v5892_v24  ;;  %v4226_v9 = vmul.f32 %v7851_v20, %v5892_v24  ;;  %v4223_v25 = vmul.f32 %v4211_v1, %v5890_v23  ;;  %v4224_v13 = vmul.f32 %v7855_v61, %v5890_v23 }
 0xeb9   :  { %5644 = vmatmul.msk.f32.vlgmr.msra.gmra.mxu1 %vm454_vm15, %v7840_v52  ;;  %v4428_v8 = vmul.f32 %v4221_v36, %v5890_v23  ;;  %v4430_v38 = vmul.f32 %v4211_v1, %v5892_v24 }
 0xeba   :  { %v4227_v4 = vadd.f32 %v4225_v15, %v4223_v25  ;;  %v4228_v49 = vadd.f32 %v4226_v9, %v4224_v13  ;;  %v4429_v13 = vmul.f32 %v7851_v20, %v5890_v23  ;;  %v4551_v20 = vmul.f32 %v7821_v62, %v5890_v23  ;;  %v7956_v62 = vld [vmem:[%s8212_s3 + $0x54] sm:$0xf] }
 0xebc   :  { %v4229_v45 = vmul.f32 %v4227_v4, %v6333_v33  ;;  %v4230_v41 = vmul.f32 %v4228_v49, %v8325_v34  ;;  %v4431_v4 = vmul.f32 %v7855_v61, %v5892_v24 }
 0xebd   :  { %v4292_v42 = vpop.permute.xlu2 %4291 }
 0xebe   :  { %v4126_v50 = vpop.permute.xlu0 %4125  ;;  %v4124_v47 = vpop.permute.xlu1 %4123  ;;  %5655 = vmatpush.msk.msrb.mxu2 %vm55_vm0, %v4229_v45  ;;  %5657 = vmatpush.msk.msrb.mxu3 %vm55_vm0, %v4230_v41 }
 0xebf   :  { %v4861_v54 = vld.sshfl [vmem:[#allocation1 + $0x8] sm:$0xff pattern:$0x75316420]  ;;  %v4860_v7 = vld.sshfl [vmem:[#allocation1] sm:$0xff pattern:$0x75316420]  ;;  %5658 = vmatmul.msk.f32.vlgmr.msrb.gmra.mxu3 %vm454_vm15, %v7875_v53  ;;  %5656 = vmatmul.msk.f32.vlgmr.msrb.gmra.mxu2 %vm454_vm15, %v7875_v53  ;;  %v4127_v14 = vsel %vm334_vm11, %v4124_v47, %v4126_v50  ;;  %v4128_v28 = vsel %vm334_vm11, %v4126_v50, %v4124_v47 }
 0xec0   :  { %4866 = vrot.lane.b32.xlu1 %v4861_v54, %s5763_s6  ;;  %4864 = vrot.lane.b32.xlu2 %v4860_v7, %s5763_s6  ;;  %4870 = vst [vmem:[#allocation1] ss:$2 sm:$0xff] %v7843_v27  ;;  %v4140_v16 = vmul.f32 %v4128_v28, %v5890_v23  ;;  %v4141_v46 = vmul.f32 %v4127_v14, %v5890_v23 }
 0xec1   :  { %v4491_v61 = vmul.f32 %v4128_v28, %v5892_v24  ;;  %v4554_v28 = vadd.f32 %v4552_v37, %v4550_v17  ;;  %v8360_v17 = vld [vmem:[#allocation23_spill] sm:$0xff] }
 0xec6   :  { %v4290_v39 = vpop.permute.xlu0 %4289  ;;  %v4137_v48 = vpop.permute.xlu1 %4136 }
 0xec7   :  { %v4138_v58 = vsel %vm346_vm12, %v4135_v10, %v4137_v48  ;;  %v4139_v2 = vsel %vm346_vm12, %v4137_v48, %v4135_v10  ;;  %v4872_v59 = vld.sshfl [vmem:[#allocation1 + $0x8] sm:$0xff pattern:$0x75316420]  ;;  %v4871_v3 = vld.sshfl [vmem:[#allocation1] sm:$0xff pattern:$0x75316420]  ;;  %v4293_v55 = vsel %vm203_vm8, %v4290_v39, %v4292_v42  ;;  %v4294_v35 = vsel %vm203_vm8, %v4292_v42, %v4290_v39 }
 0xec8   :  { %v4142_v56 = vmul.f32 %v4138_v58, %v5892_v24  ;;  %v4143_v51 = vmul.f32 %v4139_v2, %v5892_v24  ;;  %4877 = vrot.lane.b32.xlu2 %v4872_v59, %s5764_s27  ;;  %4875 = vrot.lane.b32.xlu0 %v4871_v3, %s5764_s27  ;;  %4935 = vst [vmem:[#allocation1] ss:$2 sm:$0xff] %v7843_v27  ;;  %v8356_v3 = vld [vmem:[#allocation21_spill] sm:$0xff] }
 0xec9   :  { %v4306_v18 = vmul.f32 %v4294_v35, %v5890_v23  ;;  %v4307_v26 = vmul.f32 %v4293_v55, %v5890_v23  ;;  %v4369_v12 = vmul.f32 %v4294_v35, %v5892_v24  ;;  %v4370_v0 = vmul.f32 %v4293_v55, %v5892_v24 }
 0xeca   :  { %v4144_v21 = vadd.f32 %v4142_v56, %v4140_v16  ;;  %v4145_v43 = vadd.f32 %v4143_v51, %v4141_v46  ;;  %v4489_v49 = vmul.f32 %v4138_v58, %v5890_v23  ;;  %v4490_v45 = vmul.f32 %v4139_v2, %v5890_v23  ;;  %v8355_v2 = vld [vmem:[#allocation20_spill] sm:$0xff]  ;;  %v8357_v46 = vld [vmem:[#allocation22_spill] sm:$0xff] }
 0xecb   :  { %v4432_v39 = vadd.f32 %v4430_v38, %v4428_v8  ;;  %v4492_v48 = vmul.f32 %v4127_v14, %v5892_v24  ;;  %v4553_v51 = vmul.f32 %v7805_v19, %v5892_v24  ;;  %v4433_v42 = vadd.f32 %v4431_v4, %v4429_v13  ;;  %v7961_v14 = vld [vmem:[%s8212_s3 + $0x5c] sm:$0xf]  ;;  %v8358_v19 = vld [vmem:[#allocation17_spill] sm:$0xff]  ;;  %v8359_v8 = vld [vmem:[#allocation18_spill] sm:$0xff] }
 0xecc   :  { %v4146_v63 = vmul.f32 %v4144_v21, %v8353_v22  ;;  %v4147_v60 = vmul.f32 %v4145_v43, %v8354_v11  ;;  %v4493_v55 = vadd.f32 %v4491_v61, %v4489_v49 }
 0xecd   :  { %v4494_v35 = vadd.f32 %v4492_v48, %v4490_v45  ;;  %v4555_v21 = vadd.f32 %v4553_v51, %v4551_v20  ;;  %v4434_v43 = vmul.f32 %v4432_v39, %v8358_v19  ;;  %v4435_v37 = vmul.f32 %v4433_v42, %v8359_v8 }
 0xece   :  { %v4303_v5 = vpop.permute.xlu0 %4302  ;;  %v4301_v31 = vpop.permute.xlu1 %4300  ;;  %5650 = vmatpush.msk.msrb.mxu0 %vm55_vm0, %v4146_v63  ;;  %5652 = vmatpush.msk.msrb.mxu1 %vm55_vm0, %v4147_v60  ;;  %v4495_v63 = vmul.f32 %v4493_v55, %v8360_v17 }
 0xecf   :  { %v4304_v44 = vsel %vm41_vm4, %v4301_v31, %v4303_v5  ;;  %v4305_v36 = vsel %vm41_vm4, %v4303_v5, %v4301_v31  ;;  %5651 = vmatmul.msk.f32.vlgmr.msrb.gmra.mxu0 %vm454_vm15, %v7915_v32  ;;  %5653 = vmatmul.msk.f32.vlgmr.msrb.gmra.mxu1 %vm454_vm15, %v7915_v32  ;;  %v4936_v41 = vld.sshfl [vmem:[#allocation1] sm:$0xff pattern:$0x75316420]  ;;  %v4937_v50 = vld.sshfl [vmem:[#allocation1 + $0x8] sm:$0xff pattern:$0x75316420] }
 0xed0   :  { %v4308_v1 = vmul.f32 %v4304_v44, %v5892_v24  ;;  %v4309_v15 = vmul.f32 %v4305_v36, %v5892_v24  ;;  %v4367_v9 = vmul.f32 %v4304_v44, %v5890_v23  ;;  %v4368_v25 = vmul.f32 %v4305_v36, %v5890_v23  ;;  %4982 = vst [vmem:[#allocation1] ss:$2 sm:$0xff] %v7843_v27  ;;  %v8363_v31 = vld [vmem:[#allocation26_spill] sm:$0xff]  ;;  %v7993_v44 = vld [vmem:[%s8212_s3 + $0x60] sm:$0xf] }
 0xed1   :  { %v7998_v36 = vld [vmem:[%s8212_s3 + $0x64] sm:$0xf] }
 0xed2   :  { %v4310_v47 = vadd.f32 %v4308_v1, %v4306_v18  ;;  %v4311_v54 = vadd.f32 %v4309_v15, %v4307_v26  ;;  %v4371_v7 = vadd.f32 %v4369_v12, %v4367_v9  ;;  %v4372_v10 = vadd.f32 %v4370_v0, %v4368_v25  ;;  %v8361_v18 = vld [vmem:[#allocation25_spill] sm:$0xff]  ;;  %v8362_v12 = vld [vmem:[#allocation24_spill] sm:$0xff]  ;;  %v8016_v9 = vld [vmem:[%s8212_s3 + $0x68] sm:$0xf] }
 0xed3   :  { %v4556_v26 = vmul.f32 %v4554_v28, %v8361_v18  ;;  %v4496_v5 = vmul.f32 %v4494_v35, %v8362_v12  ;;  %v4557_v0 = vmul.f32 %v4555_v21, %v8363_v31 }
 0xed4   :  { %v4312_v58 = vmul.f32 %v4310_v47, %v8328_v40  ;;  %v4313_v59 = vmul.f32 %v4311_v54, %v8355_v2  ;;  %v4373_v16 = vmul.f32 %v4371_v7, %v8356_v3  ;;  %v4374_v56 = vmul.f32 %v4372_v10, %v8357_v46 }
 0xed6   :  { %5660 = vmatpush.msk.msra.mxu0 %vm55_vm0, %v4312_v58  ;;  %5662 = vmatpush.msk.msra.mxu1 %vm55_vm0, %v4313_v59 }
 0xed7   :  { %5665 = vmatpush.msk.msra.mxu2 %vm55_vm0, %v4373_v16  ;;  %5667 = vmatpush.msk.msra.mxu3 %vm55_vm0, %v4374_v56  ;;  %v4984_v60 = vld.sshfl [vmem:[#allocation1 + $0x8] sm:$0xff pattern:$0x75316420]  ;;  %v4983_v38 = vld.sshfl [vmem:[#allocation1] sm:$0xff pattern:$0x75316420] }
 0xed8   :  { %5661 = vmatmul.msk.f32.vlgmr.msra.gmra.mxu0 %vm454_vm15, %v7956_v62  ;;  %5668 = vmatmul.msk.f32.vlgmr.msra.gmra.mxu3 %vm454_vm15, %v7961_v14  ;;  %4993 = vst [vmem:[#allocation1] ss:$2 sm:$0xff] %v7843_v27 }
 0xed9   :  { %5663 = vmatmul.msk.f32.vlgmr.msra.gmra.mxu1 %vm454_vm15, %v7956_v62  ;;  %5670 = vmatpush.msk.msrb.mxu0 %vm55_vm0, %v4434_v43 }
 0xeda   :  { %4989 = vrot.lane.b32.xlu0 %v4984_v60, %s5761_s0  ;;  %4987 = vrot.lane.b32.xlu1 %v4983_v38, %s5761_s0 }
 0xedb   :  { %5672 = vmatpush.msk.msrb.mxu1 %vm55_vm0, %v4435_v37  ;;  %5675 = vmatpush.msk.msrb.mxu2 %vm55_vm0, %v4495_v63 }
 0xedc   :  { %5677 = vmatpush.msk.msrb.mxu3 %vm55_vm0, %v4496_v5  ;;  %5680 = vmatpush.msk.msra.mxu0 %vm55_vm0, %v4556_v26 }
 0xedd   :  { %5682 = vmatpush.msk.msra.mxu1 %vm55_vm0, %v4557_v0  ;;  %5666 = vmatmul.msk.f32.vlgmr.msra.gmra.mxu2 %vm454_vm15, %v7961_v14 }
 0xedf   :  { %v4995_v1 = vld.sshfl [vmem:[#allocation1 + $0x8] sm:$0xff pattern:$0x75316420]  ;;  %v4994_v15 = vld.sshfl [vmem:[#allocation1] sm:$0xff pattern:$0x75316420] }
 0xee0   :  { %5671 = vmatmul.msk.f32.vlgmr.msrb.gmra.mxu0 %vm454_vm15, %v7993_v44  ;;  %5678 = vmatmul.msk.f32.vlgmr.msrb.gmra.mxu3 %vm454_vm15, %v7998_v36  ;;  %5060 = vst [vmem:[#allocation1] ss:$2 sm:$0xff] %v7843_v27 }
 0xee1   :  { %5673 = vmatmul.msk.f32.vlgmr.msrb.gmra.mxu1 %vm454_vm15, %v7993_v44  ;;  %5691 = vmatpush.msk.msrb.mxu0 %vm55_vm0, %v4936_v41 }
 0xee2   :  { %5000 = vrot.lane.b32.xlu1 %v4995_v1, %s5762_s13  ;;  %4998 = vrot.lane.b32.xlu2 %v4994_v15, %s5762_s13 }
 0xee3   :  { %5693 = vmatpush.msk.msrb.mxu1 %vm55_vm0, %v4937_v50 }
 0xee5   :  { %5676 = vmatmul.msk.f32.vlgmr.msrb.gmra.mxu2 %vm454_vm15, %v7998_v36 }
 0xee7   :  { %v5061_v25 = vld.sshfl [vmem:[#allocation1] sm:$0xff pattern:$0x75316420]  ;;  %v5062_v13 = vld.sshfl [vmem:[#allocation1 + $0x8] sm:$0xff pattern:$0x75316420] }
 0xee8   :  { %5681 = vmatmul.msk.f32.vlgmr.msra.gmra.mxu0 %vm454_vm15, %v8016_v9  ;;  %5071 = vst [vmem:[#allocation1] ss:$2 sm:$0xff] %v7843_v27 }
 0xee9   :  { %5683 = vmatmul.msk.f32.vlgmr.msra.gmra.mxu1 %vm454_vm15, %v8016_v9 }
 0xeea   :  { %5065 = vrot.lane.b32.xlu2 %v5061_v25, %s5766_s29 }
 0xeef   :  { %v5072_v4 = vld.sshfl [vmem:[#allocation1] sm:$0xff pattern:$0x75316420]  ;;  %v5073_v49 = vld.sshfl [vmem:[#allocation1 + $0x8] sm:$0xff pattern:$0x75316420] }
 0xef0   :  { %5692 = vmatmul.msk.f32.vlgmr.msrb.gmra.mxu0 %vm454_vm15, %v7788_v30  ;;  %5138 = vst [vmem:[#allocation1] ss:$2 sm:$0xff] %v7843_v27 }
 0xef1   :  { %5694 = vmatmul.msk.f32.vlgmr.msrb.gmra.mxu1 %vm454_vm15, %v7788_v30  ;;  %v5684_v30 = vld [vmem:[%s8213_s4 + $0x8] sm:$0xf] }
 0xef7   :  { %v5140_v45 = vld.sshfl [vmem:[#allocation1 + $0x8] sm:$0xff pattern:$0x75316420]  ;;  %v5139_v41 = vld.sshfl [vmem:[#allocation1] sm:$0xff pattern:$0x75316420] }
 0xef8   :  { %5145 = vrot.lane.b32.xlu2 %v5140_v45, %s5758_s22  ;;  %5143 = vrot.lane.b32.xlu0 %v5139_v41, %s5758_s22  ;;  %5149 = vst [vmem:[#allocation1] ss:$2 sm:$0xff] %v7843_v27 }
 0xeff   :  { %v5151_v50 = vld.sshfl [vmem:[#allocation1 + $0x8] sm:$0xff pattern:$0x75316420]  ;;  %v5150_v47 = vld.sshfl [vmem:[#allocation1] sm:$0xff pattern:$0x75316420] }
 0xf00   :  { %5078 = vrot.lane.b32.xlu2 %v5073_v49, %s5765_s28  ;;  %5156 = vrot.lane.b32.xlu0 %v5151_v50, %s5753_s14 }
 0xf01   :  { %5154 = vrot.lane.b32.xlu1 %v5150_v47, %s5753_s14  ;;  %v4095_v47 = vpop.f32.mrf.mxu2 }
 0xf08   :  { %5076 = vrot.lane.b32.xlu0 %v5072_v4, %s5765_s28 }
 0xf09   :  { %5067 = vrot.lane.b32.xlu1 %v5062_v13, %s5766_s29 }
 0xf11   :  { %4621 = vperm.xlu1 %5744, %v5684_v30  }
 0xf1a   :  { %v4865_v54 = vpop.permute.xlu2 %4864 }
 0xf22   :  { %v4878_v20 = vpop.permute.xlu2 %4877 }
 0xf32   :  { %v4867_v7 = vpop.permute.xlu1 %4866 }
 0xf33   :  { %v4868_v27 = vsel %vm424_vm14, %v4865_v54, %v4867_v7  ;;  %v4869_v10 = vsel %vm424_vm14, %v4867_v7, %v4865_v54 }
 0xf34   :  { %v4881_v39 = vmul.f32 %v4869_v10, %v5890_v23  ;;  %v4882_v61 = vmul.f32 %v4868_v27, %v5890_v23  ;;  %v5386_v58 = vmul.f32 %v4869_v10, %v5892_v24  ;;  %v5387_v59 = vmul.f32 %v4868_v27, %v5892_v24  ;;  %v4045_v0 = vpop.f32.mrf.mxu0 }
 0xf36   :  { %v4065_v26 = vpop.f32.mrf.mxu1 }
 0xf3a   :  { %v4876_v48 = vpop.permute.xlu0 %4875 }
 0xf3b   :  { %v4879_v16 = vsel %vm436_vm13, %v4876_v48, %v4878_v20  ;;  %v4880_v56 = vsel %vm436_vm13, %v4878_v20, %v4876_v48 }
 0xf3c   :  { %v4883_v51 = vmul.f32 %v4879_v16, %v5892_v24  ;;  %v4884_v42 = vmul.f32 %v4880_v56, %v5892_v24  ;;  %v5384_v55 = vmul.f32 %v4879_v16, %v5890_v23  ;;  %v5385_v28 = vmul.f32 %v4880_v56, %v5890_v23  ;;  %v4999_v15 = vpop.permute.xlu2 %4998 }
 0xf3e   :  { %v4885_v35 = vadd.f32 %v4883_v51, %v4881_v39  ;;  %v4886_v21 = vadd.f32 %v4884_v42, %v4882_v61  ;;  %v8056_v43 = vadd.f32 %v5386_v58, %v5384_v55  ;;  %v8058_v37 = vadd.f32 %v5387_v59, %v5385_v28 }
 0xf3f   :  { %v4096_v61 = vadd.f32 %v4095_v47, %v4045_v0 }
 0xf40   :  { %v4887_v63 = vmul.f32 %v4885_v35, %v8349_v57  ;;  %v4888_v60 = vmul.f32 %v4886_v21, %v8350_v29  ;;  %v4115_v29 = vpop.f32.mrf.mxu3 }
 0xf41   :  { %v4116_v20 = vadd.f32 %v4115_v29, %v4065_v26 }
 0xf42   :  { %5687 = vmatpush.msk.msra.mxu2 %vm55_vm0, %v4887_v63  ;;  %5689 = vmatpush.msk.msra.mxu3 %vm55_vm0, %v4888_v60  ;;  %v4259_v59 = vpop.f32.mrf.mxu2 }
 0xf43   :  { %5688 = vmatmul.msk.f32.vlgmr.msra.gmra.mxu2 %vm454_vm15, %v7840_v52  ;;  %5690 = vmatmul.msk.f32.vlgmr.msra.gmra.mxu3 %vm454_vm15, %v7840_v52 }
 0xf44   :  { %v5066_v55 = vpop.permute.xlu2 %5065 }
 0xf48   :  { %v4279_v39 = vpop.f32.mrf.mxu3 }
 0xf4c   :  { %v4988_v38 = vpop.permute.xlu1 %4987  ;;  %v4990_v5 = vpop.permute.xlu0 %4989 }
 0xf4d   :  { %v8070_v1 = vsel %vm334_vm11, %v4988_v38, %v4990_v5  ;;  %v8074_v57 = vsel %vm334_vm11, %v4990_v5, %v4988_v38  ;;  %v4196_v50 = vpop.f32.mrf.mxu1  ;;  %v4176_v10 = vpop.f32.mrf.mxu0 }
 0xf4e   :  { %v5004_v4 = vmul.f32 %v8074_v57, %v5890_v23  ;;  %v5005_v49 = vmul.f32 %v8070_v1, %v5890_v23  ;;  %v4200_v48 = vadd.f32 %v4196_v50, %v4116_v20 }
 0xf50   :  { %v4283_v16 = vadd.f32 %v4279_v39, %v4200_v48 }
 0xf52   :  { %v5146_v5 = vpop.permute.xlu2 %5145 }
 0xf54   :  { %v5001_v25 = vpop.permute.xlu1 %5000 }
 0xf55   :  { %v8078_v13 = vsel %vm346_vm12, %v4999_v15, %v5001_v25  ;;  %v8082_v52 = vsel %vm346_vm12, %v5001_v25, %v4999_v15 }
 0xf56   :  { %v5006_v45 = vmul.f32 %v8078_v13, %v5892_v24  ;;  %v5007_v41 = vmul.f32 %v8082_v52, %v5892_v24  ;;  %v4362_v58 = vpop.f32.mrf.mxu1 }
 0xf57   :  { %v4366_v42 = vadd.f32 %v4362_v58, %v4283_v16  ;;  %v5330_v16 = vmul.f32 %v8074_v57, %v5892_v24 }
 0xf58   :  { %v5008_v30 = vadd.f32 %v5006_v45, %v5004_v4  ;;  %v5009_v54 = vadd.f32 %v5007_v41, %v5005_v49 }
 0xf5a   :  { %v5010_v7 = vmul.f32 %v5008_v30, %v8353_v22  ;;  %v5011_v27 = vmul.f32 %v5009_v54, %v8354_v11  ;;  %v4199_v22 = vadd.f32 %v4176_v10, %v4096_v61  ;;  %v4342_v11 = vpop.f32.mrf.mxu0 }
 0xf5b   :  { %v4423_v56 = vpop.f32.mrf.mxu3 }
 0xf5c   :  { %5695 = vmatpush.msk.msrb.mxu2 %vm55_vm0, %v5010_v7  ;;  %5697 = vmatpush.msk.msrb.mxu3 %vm55_vm0, %v5011_v27  ;;  %v4282_v51 = vadd.f32 %v4259_v59, %v4199_v22  ;;  %v4427_v60 = vadd.f32 %v4423_v56, %v4366_v42 }
 0xf5d   :  { %5696 = vmatmul.msk.f32.vlgmr.msrb.gmra.mxu2 %vm454_vm15, %v7915_v32  ;;  %5698 = vmatmul.msk.f32.vlgmr.msrb.gmra.mxu3 %vm454_vm15, %v7915_v32 }
 0xf5e   :  { %v4484_v28 = vpop.f32.mrf.mxu1  ;;  %v4365_v63 = vadd.f32 %v4342_v11, %v4282_v51  ;;  %v5079_v11 = vpop.permute.xlu2 %5078 }
 0xf5f   :  { %v4488_v32 = vadd.f32 %v4484_v28, %v4427_v60 }
 0xf60   :  { %v4403_v35 = vpop.f32.mrf.mxu2 }
 0xf61   :  { %v4426_v26 = vadd.f32 %v4403_v35, %v4365_v63 }
 0xf62   :  { %v4464_v38 = vpop.f32.mrf.mxu0 }
 0xf63   :  { %v4545_v0 = vpop.f32.mrf.mxu3  ;;  %v4487_v4 = vadd.f32 %v4464_v38, %v4426_v26 }
 0xf64   :  { %v4549_v49 = vadd.f32 %v4545_v0, %v4488_v32 }
 0xf66   :  { %v4606_v50 = vpop.f32.mrf.mxu1 }
 0xf67   :  { %v4610_v39 = vadd.f32 %v4606_v50, %v4549_v49  ;;  %v5328_v49 = vmul.f32 %v8078_v13, %v5890_v23 }
 0xf68   :  { %v4525_v41 = vpop.f32.mrf.mxu2 }
 0xf69   :  { %v4548_v20 = vadd.f32 %v4525_v41, %v4487_v4  ;;  %v4613_v51 = vrot.slane %v4610_v39, 4  ;;  %v8366_v39 = vld [vmem:[#allocation5_spill] sm:$0xff] }
 0xf6a   :  { %v5144_v21 = vpop.permute.xlu0 %5143  ;;  %v4586_v58 = vpop.f32.mrf.mxu0 }
 0xf6b   :  { %v5147_v29 = vsel %vm203_vm8, %v5144_v21, %v5146_v5  ;;  %v5148_v15 = vsel %vm203_vm8, %v5146_v5, %v5144_v21  ;;  %v4609_v42 = vadd.f32 %v4586_v58, %v4548_v20 }
 0xf6c   :  { %v5160_v54 = vmul.f32 %v5148_v15, %v5890_v23  ;;  %v5161_v7 = vmul.f32 %v5147_v29, %v5890_v23  ;;  %v5218_v6 = vmul.f32 %v5148_v15, %v5892_v24 }
 0xf72   :  { %v5157_v25 = vpop.permute.xlu0 %5156 }
 0xf73   :  { %v5155_v45 = vpop.permute.xlu1 %5154 }
 0xf74   :  { %v5158_v47 = vsel %vm41_vm4, %v5155_v45, %v5157_v25  ;;  %v5159_v30 = vsel %vm41_vm4, %v5157_v25, %v5155_v45  ;;  %vm8364_vm4 = vmmov %vm8351_vm6  ;;  %v5329_v45 = vmul.f32 %v8082_v52, %v5890_v23 }
 0xf75   :  { %v5162_v27 = vmul.f32 %v5158_v47, %v5892_v24  ;;  %v5163_v10 = vmul.f32 %v5159_v30, %v5892_v24  ;;  %v5216_v60 = vmul.f32 %v5158_v47, %v5890_v23  ;;  %v5217_v38 = vmul.f32 %v5159_v30, %v5890_v23  ;;  %vm8365_vm8 = vmmov %vm8364_vm4 }
 0xf76   :  { %v5331_v30 = vmul.f32 %v8070_v1, %v5892_v24 }
 0xf77   :  { %v5164_v61 = vadd.f32 %v5162_v27, %v5160_v54  ;;  %v5165_v48 = vadd.f32 %v5163_v10, %v5161_v7  ;;  %v4614_v54 = vsel %vm55_vm0, %v4609_v42, %v4613_v51  ;;  %v5220_v7 = vadd.f32 %v5218_v6, %v5216_v60  ;;  %v8368_v6 = vld [vmem:[#allocation6_spill] sm:$0xff] }
 0xf78   :  { %v5333_v15 = vadd.f32 %v5331_v30, %v5329_v45 }
 0xf79   :  { %v5166_v59 = vmul.f32 %v5164_v61, %v8328_v40  ;;  %v5167_v22 = vmul.f32 %v5165_v48, %v8355_v2  ;;  %v4616_v61 = vadd.f32 %v4614_v54, %v8366_v39  ;;  %v8367_v48 = vld [vmem:[#allocation2_spill] sm:$0xff] }
 0xf7a   :  { %v5077_v56 = vpop.permute.xlu0 %5076 }
 0xf7b   :  { %v5080_v28 = vsel %vm665_vm2, %v5077_v56, %v5079_v11  ;;  %v5081_v35 = vsel %vm665_vm2, %v5079_v11, %v5077_v56  ;;  %v5068_v21 = vpop.permute.xlu1 %5067  ;;  %5703 = vmatpush.msk.msra.mxu2 %vm55_vm0, %v5166_v59  ;;  %5705 = vmatpush.msk.msra.mxu3 %vm55_vm0, %v5167_v22 }
 0xf7c   :  { %v5084_v40 = vmul.f32 %v5080_v28, %v5892_v24  ;;  %v5085_v2 = vmul.f32 %v5081_v35, %v5892_v24  ;;  %v5272_v57 = vmul.f32 %v5080_v28, %v5890_v23  ;;  %v5273_v63 = vmul.f32 %v5081_v35, %v5890_v23  ;;  %5704 = vmatmul.msk.f32.vlgmr.msra.gmra.mxu2 %vm454_vm15, %v7956_v62 }
 0xf7d   :  { %v5069_v26 = vsel %vm8364_vm4, %v5066_v55, %v5068_v21  ;;  %v5070_v32 = vsel %vm8365_vm8, %v5068_v21, %v5066_v55  ;;  %5706 = vmatmul.msk.f32.vlgmr.msra.gmra.mxu3 %vm454_vm15, %v7956_v62  ;;  %v5219_v55 = vmul.f32 %v5147_v29, %v5892_v24  ;;  %v5332_v29 = vadd.f32 %v5330_v16, %v5328_v49 }
 0xf7e   :  { %v5082_v5 = vmul.f32 %v5070_v32, %v5890_v23  ;;  %v5083_v0 = vmul.f32 %v5069_v26, %v5890_v23  ;;  %v5274_v25 = vmul.f32 %v5070_v32, %v5892_v24  ;;  %v5275_v4 = vmul.f32 %v5069_v26, %v5892_v24 }
 0xf7f   :  { %v5221_v27 = vadd.f32 %v5219_v55, %v5217_v38  ;;  %v5222_v24 = vmul.f32 %v5220_v7, %v8356_v3  ;;  %v5334_v3 = vmul.f32 %v5332_v29, %v8360_v17 }
 0xf80   :  { %v5086_v41 = vadd.f32 %v5084_v40, %v5082_v5  ;;  %v5087_v62 = vadd.f32 %v5085_v2, %v5083_v0  ;;  %v5276_v50 = vadd.f32 %v5274_v25, %v5272_v57  ;;  %v5277_v47 = vadd.f32 %v5275_v4, %v5273_v63 }
 0xf82   :  { %v5088_v13 = vmul.f32 %v5086_v41, %v6333_v33  ;;  %v5089_v10 = vmul.f32 %v5087_v62, %v8325_v34  ;;  %v5278_v23 = vmul.f32 %v5276_v50, %v8358_v19  ;;  %v5279_v52 = vmul.f32 %v5277_v47, %v8359_v8 }
 0xf83   :  { %v4622_v20 = vpop.permute.xlu1 %4621  ;;  %v5223_v33 = vmul.f32 %v5221_v27, %v8357_v46  ;;  %v5390_v34 = vmul.f32 %v8056_v43, %v8361_v18  ;;  %v5391_v19 = vmul.f32 %v8058_v37, %v8363_v31  ;;  %v5335_v46 = vmul.f32 %v5333_v15, %v8362_v12  ;;  %v4959_v31 = vpop.f32.mrf.mxu0 }
 0xf84   :  { %v8155_v58 = vperm.slane %v4622_v20, %v8367_v48  ;;  %5699 = vmatpush.msk.msra.mxu0 %vm55_vm0, %v5088_v13  ;;  %5701 = vmatpush.msk.msra.mxu1 %vm55_vm0, %v5089_v10 }
 0xf85   :  { %5711 = vmatpush.msk.msrb.mxu2 %vm55_vm0, %v5278_v23  ;;  %5713 = vmatpush.msk.msrb.mxu3 %vm55_vm0, %v5279_v52 }
 0xf86   :  { %v4628_v8 = vadd.f32 %v8155_v58, %v4616_v61  ;;  %5700 = vmatmul.msk.f32.vlgmr.msra.gmra.mxu0 %vm454_vm15, %v7875_v53  ;;  %5702 = vmatmul.msk.f32.vlgmr.msra.gmra.mxu1 %vm454_vm15, %v7875_v53 }
 0xf87   :  { %5707 = vmatpush.msk.msrb.mxu0 %vm55_vm0, %v5222_v24  ;;  %5709 = vmatpush.msk.msrb.mxu1 %vm55_vm0, %v5223_v33 }
 0xf88   :  { %5447 = vst [vmem:[%s8214_s9] sm:$0xff] %v4628_v8  ;;  %5719 = vmatpush.msk.msra.mxu2 %vm55_vm0, %v5390_v34  ;;  %5721 = vmatpush.msk.msra.mxu3 %vm55_vm0, %v5391_v19 }
 0xf89   :  { %5715 = vmatpush.msk.msra.mxu0 %vm55_vm0, %v5334_v3  ;;  %5717 = vmatpush.msk.msra.mxu1 %vm55_vm0, %v5335_v46 }
 0xf8a   :  { %5712 = vmatmul.msk.f32.vlgmr.msrb.gmra.mxu2 %vm454_vm15, %v7993_v44  ;;  %5714 = vmatmul.msk.f32.vlgmr.msrb.gmra.mxu3 %vm454_vm15, %v7993_v44  ;;  %v4979_v44 = vpop.f32.mrf.mxu1 }
 0xf8e   :  { %5708 = vmatmul.msk.f32.vlgmr.msrb.gmra.mxu0 %vm454_vm15, %v7961_v14  ;;  %5710 = vmatmul.msk.f32.vlgmr.msrb.gmra.mxu1 %vm454_vm15, %v7961_v14 }
 0xf92   :  { %5720 = vmatmul.msk.f32.vlgmr.msra.gmra.mxu2 %vm454_vm15, %v8016_v9  ;;  %5722 = vmatmul.msk.f32.vlgmr.msra.gmra.mxu3 %vm454_vm15, %v8016_v9 }
 0xf96   :  { %5716 = vmatmul.msk.f32.vlgmr.msra.gmra.mxu0 %vm454_vm15, %v7998_v36  ;;  %5718 = vmatmul.msk.f32.vlgmr.msra.gmra.mxu1 %vm454_vm15, %v7998_v36 }
 0xfc6   :  { %v4912_v53 = vpop.f32.mrf.mxu2  ;;  %v4932_v17 = vpop.f32.mrf.mxu3 }
 0xfc7   :  { %v4960_v43 = vadd.f32 %v4959_v31, %v4912_v53  ;;  %v4980_v14 = vadd.f32 %v4979_v44, %v4932_v17 }
 0xfe0   :  { %v5035_v18 = vpop.f32.mrf.mxu2  ;;  %v5055_v12 = vpop.f32.mrf.mxu3 }
 0xfe1   :  { %v5058_v16 = vadd.f32 %v5035_v18, %v4960_v43  ;;  %v5059_v9 = vadd.f32 %v5055_v12, %v4980_v14 }
 0xfff   :  { %v5191_v37 = vpop.f32.mrf.mxu2 }
0x1000   :  { %v5211_v1 = vpop.f32.mrf.mxu3 }
0x1003   :  { %v5113_v59 = vpop.f32.mrf.mxu0  ;;  %v5133_v22 = vpop.f32.mrf.mxu1 }
0x1004   :  { %v5136_v11 = vadd.f32 %v5113_v59, %v5058_v16  ;;  %v5137_v56 = vadd.f32 %v5133_v22, %v5059_v9 }
0x1006   :  { %v5214_v28 = vadd.f32 %v5191_v37, %v5136_v11  ;;  %v5215_v36 = vadd.f32 %v5211_v1, %v5137_v56 }
0x100b   :  { %v5247_v51 = vpop.f32.mrf.mxu0  ;;  %v5267_v42 = vpop.f32.mrf.mxu1 }
0x100c   :  { %v5270_v40 = vadd.f32 %v5247_v51, %v5214_v28  ;;  %v5271_v2 = vadd.f32 %v5267_v42, %v5215_v36 }
0x100d   :  { %v5303_v35 = vpop.f32.mrf.mxu2  ;;  %v5323_v21 = vpop.f32.mrf.mxu3 }
0x100e   :  { %v5326_v57 = vadd.f32 %v5303_v35, %v5270_v40  ;;  %v5327_v63 = vadd.f32 %v5323_v21, %v5271_v2 }
0x1013   :  { %v5359_v60 = vpop.f32.mrf.mxu0  ;;  %v5379_v38 = vpop.f32.mrf.mxu1 }
0x1014   :  { %v5382_v26 = vadd.f32 %v5359_v60, %v5326_v57  ;;  %v5383_v32 = vadd.f32 %v5379_v38, %v5327_v63 }
0x1015   :  { %v5415_v5 = vpop.f32.mrf.mxu2  ;;  %v5435_v0 = vpop.f32.mrf.mxu3 }
0x1016   :  { %v5439_v25 = vadd.f32 %v5435_v0, %v5383_v32  ;;  %v5438_v4 = vadd.f32 %v5415_v5, %v5382_v26 }
0x1018   :  { %v5442_v49 = vrot.slane %v5439_v25, 4 }
0x101a   :  { %v5443_v45 = vsel %vm55_vm0, %v5438_v4, %v5442_v49 }
0x101b   :  { %v5445_v55 = vadd.f32 %v5443_v45, %v8368_v6 }
0x101d   :  { %v5446_v41 = vadd.f32 %v5445_v55, %v8155_v58 }
0x101f   :  { %5723 = vst [vmem:[%s8214_s9 + $0x8] sm:$0xff] %v5446_v41 }

</bundles_post_ra>
